<compile_context>
chip_gen: v7x
topology: tpu7x:2x2x1
jax: 0.10.0
libtpu: 0.0.40
codegen_flags: <defaults>
</compile_context>

<pallas_src>
import functools

import jax
import jax.numpy as jnp
from jax.experimental import pallas as pl
from jax.experimental.pallas import tpu as pltpu


# ----------------------------------------------------------------------------
# helpers
# ----------------------------------------------------------------------------
def _round_up(x, m):
    return ((x + m - 1) // m) * m


def _vmem_budgets():
    """(per-tile budget bytes, vmem_limit_bytes), derived per TPU generation."""
    try:
        cap = pltpu.get_tpu_info().vmem_capacity_bytes
    except Exception:                       # conservative fallback
        cap = 64 * 1024 * 1024
    if cap >= 96 * 1024 * 1024:             # v5e / v6e: 128 MiB physical VMEM
        return 12 * 1024 * 1024, 64 * 1024 * 1024
    return 6 * 1024 * 1024, 40 * 1024 * 1024   # v7x: 64 MiB per TensorCore


def _pick_tile_rows(H, per_row_bytes, budget_bytes, max_rows=None, quantum=2):
    """Largest quantum-aligned divisor of H whose tile fits the VMEM budget."""
    cap = max(quantum, budget_bytes // max(per_row_bytes, 1))
    if max_rows is not None:
        cap = min(cap, max_rows)
    best = None
    for t in range(quantum, H + 1, quantum):
        if H % t == 0 and t <= cap:
            best = t
    if best is None:                        # fall back to the smallest divisor
        for t in range(1, H + 1):
            if H % t == 0:
                best = t
                break
    return best


def _col_mask(H, W, Wp):
    """(H*Wp, 1) f32 mask: 1.0 on image columns [1, W], 0.0 on pad columns."""
    col = jnp.arange(H * Wp, dtype=jnp.int32) % Wp
    return jnp.logical_and(col >= 1, col <= W).astype(jnp.float32).reshape(H * Wp, 1)


# ----------------------------------------------------------------------------
# 3x3 same-padding conv + bias + ReLU on padded-flat feature maps
#   input  : (B, H*Wp, Cin)  bf16, image at cols [1, W], zero pad columns
#   output : (B, H*Wp, Cout) bf16, same layout, pad columns forced to zero
# ----------------------------------------------------------------------------
def _conv3x3_relu_kernel(xt_ref, xa_ref, xb_ref, w_ref, b_ref, m_ref, o_ref,
                         acc_ref, *, TH, Wp, W, Cin, Cout, nR):
    # xt_ref : (1, Wp, Cin)     input row r*TH-1 (clamped; zeroed at r == 0)
    # xa_ref : (1, TH*Wp, Cin)  main rows [r*TH, (r+1)*TH)
    # xb_ref : (1, Wp, Cin)     input row (r+1)*TH (clamped; zeroed at last r)
    # w_ref  : (3, 3*Cin, Cout) per-kx weight slabs, rows ordered (ky, ci)
    # b_ref  : (1, Cout)        f32 bias
    # m_ref  : (TH*Wp, 1)       f32 column mask (1 on image cols, 0 on pads)
    # o_ref  : (1, TH*Wp, Cout) bf16 output tile
    # acc_ref: (TH*Wp, Cout)    f32 VMEM accumulator scratch
    r = pl.program_id(1)
    na = TH * Wp

    xa = xa_ref[0]                                        # (na, Cin) bf16
    keep_top = (r > 0).astype(xa.dtype)                   # conv zero-pad at image top
    keep_bot = (r < nR - 1).astype(xa.dtype)              # ... and bottom
    top = xt_ref[0] * keep_top                            # (Wp, Cin)
    bot = xb_ref[0] * keep_bot                            # (Wp, Cin)

    # K-folded LHS: L[q] = [win[q], win[q+Wp], win[q+2*Wp]] with
    # win = [top ; xa ; bot].  All row slices / concats are 16-row aligned
    # (Wp % 16 == 0), so no relayouts; the lane concat folds the three ky taps
    # into a single K = 3*Cin contraction.
    lhs = jnp.concatenate(
        [jnp.concatenate([top, xa[:na - Wp]], axis=0),    # window rows [0, na)
         xa,                                              # window rows [Wp, Wp+na)
         jnp.concatenate([xa[Wp:], bot], axis=0)],        # window rows [2Wp, 2Wp+na)
        axis=-1)                                          # (na, 3*Cin) bf16

    # out[q] = Z1[q] + Z0[q-1] + Z2[q+1]   (kx = 1, 0, 2 columns of the kernel)
    acc_ref[...] = jnp.dot(lhs, w_ref[1], preferred_element_type=jnp.float32)
    z0 = jnp.dot(lhs, w_ref[0], preferred_element_type=jnp.float32)
    acc_ref[...] += pltpu.roll(z0, 1, 0)
    z2 = jnp.dot(lhs, w_ref[2], preferred_element_type=jnp.float32)
    acc_ref[...] += pltpu.roll(z2, na - 1, 0)
    # NOTE: the two roll wrap rows land only at q = 0 and q = na-1, which are
    # storage columns 0 and Wp-1 (pad columns) and are zeroed by the mask.

    y = jnp.maximum(acc_ref[...] + b_ref[...], 0.0) * m_ref[...]
    o_ref[0] = y.astype(o_ref.dtype)


def conv3x3_relu(x, w, b, H, W, Wp, *, max_tile_rows=None):
    """x: (B, H*Wp, Cin) padded-flat bf16; w: (Cout, Cin, 3, 3) OIHW; b: (Cout,)."""
    B, rows, Cin = x.shape
    Cout = w.shape[0]
    assert rows == H * Wp and Wp % 16 == 0 and Wp >= W + 2
    assert w.shape[1] == Cin

    # per-kx weight slabs, rows ordered (ky, ci)
    wt = jnp.transpose(w, (3, 2, 1, 0)).reshape(3, 3 * Cin, Cout).astype(jnp.bfloat16)
    bt = b.reshape(1, Cout).astype(jnp.float32)
    mask = _col_mask(H, W, Wp)

    budget, vmem_lim = _vmem_budgets()
    per_row = Wp * (Cin * 2 * 2          # main input block rows, double buffered
                    + Cout * 2 * 2       # output block rows, double buffered
                    + 3 * Cin * 2        # K-folded bf16 LHS
                    + 3 * Cout * 4)      # f32 accumulator scratch + live results
    TH = _pick_tile_rows(H, per_row, budget, max_rows=max_tile_rows)
    nR = H // TH

    kernel = functools.partial(_conv3x3_relu_kernel, TH=TH, Wp=Wp, W=W,
                               Cin=Cin, Cout=Cout, nR=nR)
    out = pl.pallas_call(
        kernel,
        out_shape=jax.ShapeDtypeStruct((B, H * Wp, Cout), jnp.bfloat16),
        grid_spec=pltpu.PrefetchScalarGridSpec(
            num_scalar_prefetch=0,
            grid=(B, nR),
            in_specs=[
                # 1-row top halo (row r*TH - 1, clamped at the top edge)
                pl.BlockSpec((1, Wp, Cin),
                             lambda n, r: (n, jnp.maximum(r * TH - 1, 0), 0)),
                # main TH-row block
                pl.BlockSpec((1, TH * Wp, Cin), lambda n, r: (n, r, 0)),
                # 1-row bottom halo (row (r+1)*TH, clamped at the bottom edge)
                pl.BlockSpec((1, Wp, Cin),
                             lambda n, r: (n, jnp.minimum((r + 1) * TH, H - 1), 0)),
                pl.BlockSpec((3, 3 * Cin, Cout), lambda n, r: (0, 0, 0)),
                pl.BlockSpec((1, Cout), lambda n, r: (0, 0)),
                pl.BlockSpec((TH * Wp, 1), lambda n, r: (r, 0)),
            ],
            out_specs=pl.BlockSpec((1, TH * Wp, Cout), lambda n, r: (n, r, 0)),
            scratch_shapes=[pltpu.VMEM((TH * Wp, Cout), jnp.float32)],
        ),
        compiler_params=pltpu.CompilerParams(
            dimension_semantics=("parallel", "parallel"),
            vmem_limit_bytes=vmem_lim),
    )(x, x, x, wt, bt, mask)
    return out


# ----------------------------------------------------------------------------
# conv1_1 (Cin = 3): wrapper-side im2col (tiny input) + plain matmul kernel
# ----------------------------------------------------------------------------
def _matmul_bias_relu_kernel(x_ref, w_ref, b_ref, m_ref, o_ref):
    z = jnp.dot(x_ref[0], w_ref[...], preferred_element_type=jnp.float32)
    y = jnp.maximum(z + b_ref[...], 0.0) * m_ref[...]
    o_ref[0] = y.astype(o_ref.dtype)


def conv1_1_im2col(x_nhwc, w, b, Wp, *, max_tile_rows=None):
    """x_nhwc: (B, H, W, 3) f32 -> (B, H*Wp, 64) padded-flat bf16."""
    B, H, W, Cin = x_nhwc.shape
    Cout = w.shape[0]
    K = 9 * Cin
    Kp = _round_up(K, 8)

    xp = jnp.pad(x_nhwc, ((0, 0), (1, 1), (1, 1), (0, 0)))
    cols = jnp.concatenate(
        [xp[:, ky:ky + H, kx:kx + W, :] for ky in range(3) for kx in range(3)],
        axis=-1)                                              # (B, H, W, 27)
    cols = jnp.pad(cols, ((0, 0), (0, 0), (1, Wp - W - 1), (0, Kp - K)))
    x2 = cols.reshape(B, H * Wp, Kp).astype(jnp.bfloat16)

    wt = jnp.transpose(w, (2, 3, 1, 0)).reshape(K, Cout)
    wt = jnp.pad(wt, ((0, Kp - K), (0, 0))).astype(jnp.bfloat16)
    bt = b.reshape(1, Cout).astype(jnp.float32)
    mask = _col_mask(H, W, Wp)

    budget, vmem_lim = _vmem_budgets()
    per_row = Wp * (Kp * 2 * 2 + Cout * 2 * 2 + Cout * 4)
    TH = _pick_tile_rows(H, per_row, budget, max_rows=max_tile_rows)
    nR = H // TH

    out = pl.pallas_call(
        _matmul_bias_relu_kernel,
        out_shape=jax.ShapeDtypeStruct((B, H * Wp, Cout), jnp.bfloat16),
        grid_spec=pltpu.PrefetchScalarGridSpec(
            num_scalar_prefetch=0,
            grid=(B, nR),
            in_specs=[
                pl.BlockSpec((1, TH * Wp, Kp), lambda n, r: (n, r, 0)),
                pl.BlockSpec((Kp, Cout), lambda n, r: (0, 0)),
                pl.BlockSpec((1, Cout), lambda n, r: (0, 0)),
                pl.BlockSpec((TH * Wp, 1), lambda n, r: (r, 0)),
            ],
            out_specs=pl.BlockSpec((1, TH * Wp, Cout), lambda n, r: (n, r, 0)),
        ),
        compiler_params=pltpu.CompilerParams(
            dimension_semantics=("parallel", "parallel"),
            vmem_limit_bytes=vmem_lim),
    )(x2, wt, bt, mask)
    return out


# ----------------------------------------------------------------------------
# 2x2 maxpool on padded-flat maps (plain JAX; small, quarter-size tensor)
# ----------------------------------------------------------------------------
def maxpool2x2_padded(x, H, W, Wp, Wp2):
    # TODO(synk): fuse this pool into the conv1_2 epilogue as a second output.
    B, _, C = x.shape
    xi = x.reshape(B, H, Wp, C)[:, :, 1:W + 1, :]
    p = xi.reshape(B, H // 2, 2, W // 2, 2, C).max(axis=(2, 4))
    H2, W2 = H // 2, W // 2
    out = jnp.zeros((B, H2, Wp2, C), x.dtype).at[:, :, 1:W2 + 1, :].set(p)
    return out.reshape(B, H2 * Wp2, C)


# ----------------------------------------------------------------------------
# grid-tiled L1 (mean) reduction: pred half vs target half of a batched tensor
# ----------------------------------------------------------------------------
def _l1_partial_kernel(p_ref, t_ref, o_ref):
    @pl.when(pl.program_id(1) == 0)
    def _():
        o_ref[...] = jnp.zeros_like(o_ref)

    d = jnp.abs(p_ref[...].astype(jnp.float32) - t_ref[...].astype(jnp.float32))
    o_ref[...] = o_ref[...] + jnp.sum(d)


def l1_mean(feat, num_pred, H, W, Wp, C):
    """feat: (2*num_pred, H*Wp, C) padded-flat (zero pad cols); pred = [0, n)."""
    budget, vmem_lim = _vmem_budgets()
    TL = _pick_tile_rows(H, Wp * C * 2 * 2 * 2, budget)
    nR = H // TL

    partial = pl.pallas_call(
        _l1_partial_kernel,
        out_shape=jax.ShapeDtypeStruct((num_pred, 8, 128), jnp.float32),
        grid_spec=pltpu.PrefetchScalarGridSpec(
            num_scalar_prefetch=0,
            grid=(num_pred, nR),
            in_specs=[
                pl.BlockSpec((1, TL * Wp, C), lambda n, r: (n, r, 0)),
                pl.BlockSpec((1, TL * Wp, C), lambda n, r: (n + num_pred, r, 0)),
            ],
            # per-prediction resident accumulator block -> batch axis parallel
            out_specs=pl.BlockSpec((1, 8, 128), lambda n, r: (n, 0, 0)),
        ),
        compiler_params=pltpu.CompilerParams(
            dimension_semantics=("parallel", "arbitrary"),
            vmem_limit_bytes=vmem_lim),
    )(feat, feat)
    # pad columns are zero in both halves, so they add 0 to the sum; the mean
    # divisor is the true element count.
    return jnp.sum(partial[:, 0, 0]) / (num_pred * H * W * C)


# ----------------------------------------------------------------------------
# truncated VGG16 feature extractor (relu1_2, relu2_2)
# ----------------------------------------------------------------------------
def init_vgg16_params(key):
    """Deterministic synthetic VGG16 (first two blocks) parameters.

    Shapes match torchvision VGG16: conv1_1 3->64, conv1_2 64->64,
    conv2_1 64->128, conv2_2 128->128, all 3x3 / pad 1.
    # TODO(synk): the real module loads './model/vgg16.weight'; synthetic here.
    """
    layer_shapes = [
        ("conv1_1", 64, 3),
        ("conv1_2", 64, 64),
        ("conv2_1", 128, 64),
        ("conv2_2", 128, 128),
    ]
    params = {}
    for i, (name, cout, cin) in enumerate(layer_shapes):
        kw, kb = jax.random.split(jax.random.fold_in(key, i))
        fan_in = cin * 3 * 3
        w = jax.random.normal(kw, (cout, cin, 3, 3), jnp.float32) / jnp.sqrt(fan_in)
        b = jax.random.normal(kb, (cout,), jnp.float32) * 0.01
        params[name] = (w, b)
    return params


def vgg16_features(x_nhwc, params, *, max_tile_rows=None):
    """x: (B, H, W, 3) f32 -> (relu1_2, relu2_2) in padded-flat bf16 layout."""
    B, H, W, _ = x_nhwc.shape
    assert H % 2 == 0 and W % 2 == 0
    Wp1 = _round_up(W + 2, 16)
    H2, W2 = H // 2, W // 2
    Wp2 = _round_up(W2 + 2, 16)

    h = conv1_1_im2col(x_nhwc, *params["conv1_1"], Wp1, max_tile_rows=max_tile_rows)
    relu1_2 = conv3x3_relu(h, *params["conv1_2"], H, W, Wp1, max_tile_rows=max_tile_rows)
    h = maxpool2x2_padded(relu1_2, H, W, Wp1, Wp2)
    h = conv3x3_relu(h, *params["conv2_1"], H2, W2, Wp2, max_tile_rows=max_tile_rows)
    relu2_2 = conv3x3_relu(h, *params["conv2_2"], H2, W2, Wp2, max_tile_rows=max_tile_rows)
    geom = (H, W, Wp1, H2, W2, Wp2)
    return relu1_2, relu2_2, geom


# ----------------------------------------------------------------------------
# VGG_loss.forward equivalent
# ----------------------------------------------------------------------------
def vgg_loss(depth_nchw, depth_pred_nchw, params, *, max_tile_rows=None):
    n = depth_pred_nchw.shape[0]
    # One batched feature pass: predictions in [0, n), targets in [n, 2n).
    # The reference detaches the target features; that only affects gradients,
    # the forward value is identical.
    both = jnp.concatenate([depth_pred_nchw, depth_nchw], axis=0)
    x = jnp.transpose(both, (0, 2, 3, 1)).astype(jnp.float32)      # NCHW -> NHWC
    f1, f2, (H, W, Wp1, H2, W2, Wp2) = vgg16_features(
        x, params, max_tile_rows=max_tile_rows)
    # TODO(synk): fuse these L1 partial sums into the conv epilogues so relu1_2
    # never needs an HBM round trip for the loss.
    loss1 = l1_mean(f1, n, H, W, Wp1, f1.shape[-1])
    loss2 = l1_mean(f2, n, H2, W2, Wp2, f2.shape[-1])
    return loss1 + loss2


if __name__ == "__main__":
    key = jax.random.PRNGKey(0)
    k_d, k_p, k_w = jax.random.split(key, 3)

    # Small NCHW 3-channel inputs; 32x32 with max_tile_rows=8 exercises the
    # multi-row-tile + top/bottom-halo edge paths of the conv kernels.
    depth = jax.random.uniform(k_d, (2, 3, 32, 32), jnp.float32)
    depth_pred = jax.random.uniform(k_p, (2, 3, 32, 32), jnp.float32)
    params = init_vgg16_params(k_w)

    loss_fn = jax.jit(functools.partial(vgg_loss, max_tile_rows=8))
    loss = loss_fn(depth, depth_pred, params)
    jax.block_until_ready(loss)
    print("KERNEL_OK")
</pallas_src>

<mosaic_0001>
module attributes {stable_mosaic.version = 11 : i64} {
  func.func @_matmul_bias_relu_kernel(%arg0: i32, %arg1: i32, %arg2: memref<1x384x32xbf16, #tpu.memory_space<vmem>>, %arg3: memref<32x64xbf16, #tpu.memory_space<vmem>>, %arg4: memref<1x64xf32, #tpu.memory_space<vmem>>, %arg5: memref<384x1xf32, #tpu.memory_space<vmem>>, %arg6: memref<1x384x64xbf16, #tpu.memory_space<vmem>>) attributes {dimension_semantics = [#tpu.dimension_semantics<parallel>, #tpu.dimension_semantics<parallel>], iteration_bounds = array<i64: 4, 4>, scalar_prefetch = 0 : i64, scratch_operands = 0 : i64, tpu.core_type = #tpu.core_type<tc>, window_params = [{transform_indices = @transform_0, window_bounds = array<i64: 1, 384, 32>}, {pipeline_mode = #tpu.pipeline_mode<synchronous>, transform_indices = @transform_1, window_bounds = array<i64: 32, 64>}, {pipeline_mode = #tpu.pipeline_mode<synchronous>, transform_indices = @transform_2, window_bounds = array<i64: 1, 64>}, {transform_indices = @transform_3, window_bounds = array<i64: 384, 1>}, {transform_indices = @transform_4, window_bounds = array<i64: 1, 384, 64>}]} {
    %c0 = arith.constant 0 : index
    %c0_0 = arith.constant 0 : index
    %c0_1 = arith.constant 0 : index
    %0 = vector.load %arg2[%c0, %c0_0, %c0_1] : memref<1x384x32xbf16, #tpu.memory_space<vmem>>, vector<1x384x32xbf16>
    %1 = vector.shape_cast %0 : vector<1x384x32xbf16> to vector<384x32xbf16>
    %c0_2 = arith.constant 0 : index
    %c0_3 = arith.constant 0 : index
    %2 = vector.load %arg3[%c0_2, %c0_3] : memref<32x64xbf16, #tpu.memory_space<vmem>>, vector<32x64xbf16>
    %cst = arith.constant dense<0.000000e+00> : vector<384x64xf32>
    %3 = tpu.matmul %1, %2, %cst {dimension_numbers = #tpu.dot_dimension_numbers<[1], [0], [0], [1], [0, 0, 1, 1], [], []>} : vector<384x32xbf16>, vector<32x64xbf16>, vector<384x64xf32> -> vector<384x64xf32>
    %c0_4 = arith.constant 0 : index
    %c0_5 = arith.constant 0 : index
    %4 = vector.load %arg4[%c0_4, %c0_5] : memref<1x64xf32, #tpu.memory_space<vmem>>, vector<1x64xf32>
    %5 = vector.broadcast %4 : vector<1x64xf32> to vector<384x64xf32>
    %6 = arith.addf %3, %5 : vector<384x64xf32>
    %cst_6 = arith.constant 0.000000e+00 : f32
    %7 = vector.broadcast %cst_6 : f32 to vector<384x64xf32>
    %8 = arith.maximumf %6, %7 : vector<384x64xf32>
    %c0_7 = arith.constant 0 : index
    %c0_8 = arith.constant 0 : index
    %9 = vector.load %arg5[%c0_7, %c0_8] : memref<384x1xf32, #tpu.memory_space<vmem>>, vector<384x1xf32>
    %10 = vector.broadcast %9 : vector<384x1xf32> to vector<384x64xf32>
    %11 = arith.mulf %8, %10 : vector<384x64xf32>
    %12 = arith.truncf %11 : vector<384x64xf32> to vector<384x64xbf16>
    %c0_9 = arith.constant 0 : index
    %c0_10 = arith.constant 0 : index
    %c0_11 = arith.constant 0 : index
    %13 = vector.load %arg6[%c0_9, %c0_10, %c0_11] : memref<1x384x64xbf16, #tpu.memory_space<vmem>>, vector<1x384x64xbf16>
    %14 = vector.shape_cast %13 : vector<1x384x64xbf16> to vector<384x64xbf16>
    %15 = vector.shape_cast %12 : vector<384x64xbf16> to vector<1x384x64xbf16>
    tpu.vector_store %arg6[%c0_9, %c0_10, %c0_11], %15 {strides = array<i32>} : memref<1x384x64xbf16, #tpu.memory_space<vmem>>, vector<1x384x64xbf16>,
    return
  }
  func.func @transform_0(%arg0: i32, %arg1: i32) -> (i32, i32, i32) {
    %c0_i32 = arith.constant 0 : i32
    %c0_i32_0 = arith.constant 0 : i32
    return %arg0, %arg1, %c0_i32 : i32, i32, i32
  }
  func.func @transform_1(%arg0: i32, %arg1: i32) -> (i32, i32) {
    %c0_i32 = arith.constant 0 : i32
    %c0_i32_0 = arith.constant 0 : i32
    %c0_i32_1 = arith.constant 0 : i32
    return %c0_i32, %c0_i32_0 : i32, i32
  }
  func.func @transform_2(%arg0: i32, %arg1: i32) -> (i32, i32) {
    %c0_i32 = arith.constant 0 : i32
    %c0_i32_0 = arith.constant 0 : i32
    %c0_i32_1 = arith.constant 0 : i32
    return %c0_i32, %c0_i32_0 : i32, i32
  }
  func.func @transform_3(%arg0: i32, %arg1: i32) -> (i32, i32) {
    %c0_i32 = arith.constant 0 : i32
    %c0_i32_0 = arith.constant 0 : i32
    return %arg1, %c0_i32 : i32, i32
  }
  func.func @transform_4(%arg0: i32, %arg1: i32) -> (i32, i32, i32) {
    %c0_i32 = arith.constant 0 : i32
    %c0_i32_0 = arith.constant 0 : i32
    return %arg0, %arg1, %c0_i32 : i32, i32, i32
  }
}

module attributes {stable_mosaic.version = 11 : i64} {
  func.func @_conv3x3_relu_kernel(%arg0: i32, %arg1: i32, %arg2: memref<1x48x64xbf16, #tpu.memory_space<vmem>>, %arg3: memref<1x384x64xbf16, #tpu.memory_space<vmem>>, %arg4: memref<1x48x64xbf16, #tpu.memory_space<vmem>>, %arg5: memref<3x192x64xbf16, #tpu.memory_space<vmem>>, %arg6: memref<1x64xf32, #tpu.memory_space<vmem>>, %arg7: memref<384x1xf32, #tpu.memory_space<vmem>>, %arg8: memref<1x384x64xbf16, #tpu.memory_space<vmem>>, %arg9: memref<384x64xf32, #tpu.memory_space<vmem>>) attributes {dimension_semantics = [#tpu.dimension_semantics<parallel>, #tpu.dimension_semantics<parallel>], iteration_bounds = array<i64: 4, 4>, scalar_prefetch = 0 : i64, scratch_operands = 1 : i64, tpu.core_type = #tpu.core_type<tc>, window_params = [{transform_indices = @transform_0, window_bounds = array<i64: 1, 48, 64>}, {transform_indices = @transform_1, window_bounds = array<i64: 1, 384, 64>}, {transform_indices = @transform_2, window_bounds = array<i64: 1, 48, 64>}, {pipeline_mode = #tpu.pipeline_mode<synchronous>, transform_indices = @transform_3, window_bounds = array<i64: 3, 192, 64>}, {pipeline_mode = #tpu.pipeline_mode<synchronous>, transform_indices = @transform_4, window_bounds = array<i64: 1, 64>}, {transform_indices = @transform_5, window_bounds = array<i64: 384, 1>}, {transform_indices = @transform_6, window_bounds = array<i64: 1, 384, 64>}]} {
    %c0 = arith.constant 0 : index
    %c0_0 = arith.constant 0 : index
    %c0_1 = arith.constant 0 : index
    %0 = vector.load %arg3[%c0, %c0_0, %c0_1] : memref<1x384x64xbf16, #tpu.memory_space<vmem>>, vector<1x384x64xbf16>
    %1 = vector.shape_cast %0 : vector<1x384x64xbf16> to vector<384x64xbf16>
    %c0_i32 = arith.constant 0 : i32
    %2 = arith.cmpi sgt, %arg1, %c0_i32 : i32
    %3 = arith.extui %2 : i1 to i32
    %4 = arith.sitofp %3 : i32 to f32
    %5 = arith.truncf %4 : f32 to bf16
    %c3_i32 = arith.constant 3 : i32
    %6 = arith.cmpi slt, %arg1, %c3_i32 : i32
    %7 = arith.extui %6 : i1 to i32
    %8 = arith.sitofp %7 : i32 to f32
    %9 = arith.truncf %8 : f32 to bf16
    %c0_2 = arith.constant 0 : index
    %c0_3 = arith.constant 0 : index
    %c0_4 = arith.constant 0 : index
    %10 = vector.load %arg2[%c0_2, %c0_3, %c0_4] : memref<1x48x64xbf16, #tpu.memory_space<vmem>>, vector<1x48x64xbf16>
    %11 = vector.shape_cast %10 : vector<1x48x64xbf16> to vector<48x64xbf16>
    %12 = vector.broadcast %5 : bf16 to vector<48x64xbf16>
    %13 = arith.mulf %11, %12 : vector<48x64xbf16>
    %c0_5 = arith.constant 0 : index
    %c0_6 = arith.constant 0 : index
    %c0_7 = arith.constant 0 : index
    %14 = vector.load %arg4[%c0_5, %c0_6, %c0_7] : memref<1x48x64xbf16, #tpu.memory_space<vmem>>, vector<1x48x64xbf16>
    %15 = vector.shape_cast %14 : vector<1x48x64xbf16> to vector<48x64xbf16>
    %16 = vector.broadcast %9 : bf16 to vector<48x64xbf16>
    %17 = arith.mulf %15, %16 : vector<48x64xbf16>
    %18 = vector.extract_strided_slice %1 {offsets = [0, 0], sizes = [336, 64], strides = [1, 1]} : vector<384x64xbf16> to vector<336x64xbf16>
    %19 = tpu.concatenate %13, %18 in 0 : vector<48x64xbf16>, vector<336x64xbf16> -> vector<384x64xbf16>
    %20 = vector.extract_strided_slice %1 {offsets = [48, 0], sizes = [336, 64], strides = [1, 1]} : vector<384x64xbf16> to vector<336x64xbf16>
    %21 = tpu.concatenate %20, %17 in 0 : vector<336x64xbf16>, vector<48x64xbf16> -> vector<384x64xbf16>
    %22 = tpu.concatenate %19, %1, %21 in 1 : vector<384x64xbf16>, vector<384x64xbf16>, vector<384x64xbf16> -> vector<384x192xbf16>
    %c1 = arith.constant 1 : index
    %c0_8 = arith.constant 0 : index
    %c0_9 = arith.constant 0 : index
    %23 = vector.load %arg5[%c1, %c0_8, %c0_9] : memref<3x192x64xbf16, #tpu.memory_space<vmem>>, vector<1x192x64xbf16>
    %24 = vector.shape_cast %23 : vector<1x192x64xbf16> to vector<192x64xbf16>
    %cst = arith.constant dense<0.000000e+00> : vector<384x64xf32>
    %25 = tpu.matmul %22, %24, %cst {dimension_numbers = #tpu.dot_dimension_numbers<[1], [0], [0], [1], [0, 0, 1, 1], [], []>} : vector<384x192xbf16>, vector<192x64xbf16>, vector<384x64xf32> -> vector<384x64xf32>
    %c0_10 = arith.constant 0 : index
    %c0_11 = arith.constant 0 : index
    %26 = vector.load %arg9[%c0_10, %c0_11] : memref<384x64xf32, #tpu.memory_space<vmem>>, vector<384x64xf32>
    tpu.vector_store %arg9[%c0_10, %c0_11], %25 {strides = array<i32>} : memref<384x64xf32, #tpu.memory_space<vmem>>, vector<384x64xf32>,
    %c0_12 = arith.constant 0 : index
    %c0_13 = arith.constant 0 : index
    %c0_14 = arith.constant 0 : index
    %27 = vector.load %arg5[%c0_12, %c0_13, %c0_14] : memref<3x192x64xbf16, #tpu.memory_space<vmem>>, vector<1x192x64xbf16>
    %28 = vector.shape_cast %27 : vector<1x192x64xbf16> to vector<192x64xbf16>
    %cst_15 = arith.constant dense<0.000000e+00> : vector<384x64xf32>
    %29 = tpu.matmul %22, %28, %cst_15 {dimension_numbers = #tpu.dot_dimension_numbers<[1], [0], [0], [1], [0, 0, 1, 1], [], []>} : vector<384x192xbf16>, vector<192x64xbf16>, vector<384x64xf32> -> vector<384x64xf32>
    %c0_16 = arith.constant 0 : index
    %c0_17 = arith.constant 0 : index
    %30 = vector.load %arg9[%c0_16, %c0_17] : memref<384x64xf32, #tpu.memory_space<vmem>>, vector<384x64xf32>
    %c1_i32 = arith.constant 1 : i32
    %31 = tpu.dynamic_rotate %29 by %c1_i32 dim 0 : vector<384x64xf32>, i32 -> vector<384x64xf32>
    %32 = arith.addf %30, %31 : vector<384x64xf32>
    %c0_18 = arith.constant 0 : index
    %c0_19 = arith.constant 0 : index
    %33 = vector.load %arg9[%c0_18, %c0_19] : memref<384x64xf32, #tpu.memory_space<vmem>>, vector<384x64xf32>
    tpu.vector_store %arg9[%c0_18, %c0_19], %32 {strides = array<i32>} : memref<384x64xf32, #tpu.memory_space<vmem>>, vector<384x64xf32>,
    %c2 = arith.constant 2 : index
    %c0_20 = arith.constant 0 : index
    %c0_21 = arith.constant 0 : index
    %34 = vector.load %arg5[%c2, %c0_20, %c0_21] : memref<3x192x64xbf16, #tpu.memory_space<vmem>>, vector<1x192x64xbf16>
    %35 = vector.shape_cast %34 : vector<1x192x64xbf16> to vector<192x64xbf16>
    %cst_22 = arith.constant dense<0.000000e+00> : vector<384x64xf32>
    %36 = tpu.matmul %22, %35, %cst_22 {dimension_numbers = #tpu.dot_dimension_numbers<[1], [0], [0], [1], [0, 0, 1, 1], [], []>} : vector<384x192xbf16>, vector<192x64xbf16>, vector<384x64xf32> -> vector<384x64xf32>
    %c0_23 = arith.constant 0 : index
    %c0_24 = arith.constant 0 : index
    %37 = vector.load %arg9[%c0_23, %c0_24] : memref<384x64xf32, #tpu.memory_space<vmem>>, vector<384x64xf32>
    %c383_i32 = arith.constant 383 : i32
    %38 = tpu.dynamic_rotate %36 by %c383_i32 dim 0 : vector<384x64xf32>, i32 -> vector<384x64xf32>
    %39 = arith.addf %37, %38 : vector<384x64xf32>
    %c0_25 = arith.constant 0 : index
    %c0_26 = arith.constant 0 : index
    %40 = vector.load %arg9[%c0_25, %c0_26] : memref<384x64xf32, #tpu.memory_space<vmem>>, vector<384x64xf32>
    tpu.vector_store %arg9[%c0_25, %c0_26], %39 {strides = array<i32>} : memref<384x64xf32, #tpu.memory_space<vmem>>, vector<384x64xf32>,
    %c0_27 = arith.constant 0 : index
    %c0_28 = arith.constant 0 : index
    %41 = vector.load %arg9[%c0_27, %c0_28] : memref<384x64xf32, #tpu.memory_space<vmem>>, vector<384x64xf32>
    %c0_29 = arith.constant 0 : index
    %c0_30 = arith.constant 0 : index
    %42 = vector.load %arg6[%c0_29, %c0_30] : memref<1x64xf32, #tpu.memory_space<vmem>>, vector<1x64xf32>
    %43 = vector.broadcast %42 : vector<1x64xf32> to vector<384x64xf32>
    %44 = arith.addf %41, %43 : vector<384x64xf32>
    %cst_31 = arith.constant 0.000000e+00 : f32
    %45 = vector.broadcast %cst_31 : f32 to vector<384x64xf32>
    %46 = arith.maximumf %44, %45 : vector<384x64xf32>
    %c0_32 = arith.constant 0 : index
    %c0_33 = arith.constant 0 : index
    %47 = vector.load %arg7[%c0_32, %c0_33] : memref<384x1xf32, #tpu.memory_space<vmem>>, vector<384x1xf32>
    %48 = vector.broadcast %47 : vector<384x1xf32> to vector<384x64xf32>
    %49 = arith.mulf %46, %48 : vector<384x64xf32>
    %50 = arith.truncf %49 : vector<384x64xf32> to vector<384x64xbf16>
    %c0_34 = arith.constant 0 : index
    %c0_35 = arith.constant 0 : index
    %c0_36 = arith.constant 0 : index
    %51 = vector.load %arg8[%c0_34, %c0_35, %c0_36] : memref<1x384x64xbf16, #tpu.memory_space<vmem>>, vector<1x384x64xbf16>
    %52 = vector.shape_cast %51 : vector<1x384x64xbf16> to vector<384x64xbf16>
    %53 = vector.shape_cast %50 : vector<384x64xbf16> to vector<1x384x64xbf16>
    tpu.vector_store %arg8[%c0_34, %c0_35, %c0_36], %53 {strides = array<i32>} : memref<1x384x64xbf16, #tpu.memory_space<vmem>>, vector<1x384x64xbf16>,
    return
  }
  func.func @transform_0(%arg0: i32, %arg1: i32) -> (i32, i32, i32) {
    %c8_i32 = arith.constant 8 : i32
    %0 = arith.muli %arg1, %c8_i32 : i32
    %c1_i32 = arith.constant 1 : i32
    %1 = arith.subi %0, %c1_i32 : i32
    %c0_i32 = arith.constant 0 : i32
    %2 = arith.maxsi %1, %c0_i32 : i32
    %c0_i32_0 = arith.constant 0 : i32
    %c0_i32_1 = arith.constant 0 : i32
    return %arg0, %2, %c0_i32_0 : i32, i32, i32
  }
  func.func @transform_1(%arg0: i32, %arg1: i32) -> (i32, i32, i32) {
    %c0_i32 = arith.constant 0 : i32
    %c0_i32_0 = arith.constant 0 : i32
    return %arg0, %arg1, %c0_i32 : i32, i32, i32
  }
  func.func @transform_2(%arg0: i32, %arg1: i32) -> (i32, i32, i32) {
    %c1_i32 = arith.constant 1 : i32
    %0 = arith.addi %arg1, %c1_i32 : i32
    %c8_i32 = arith.constant 8 : i32
    %1 = arith.muli %0, %c8_i32 : i32
    %c31_i32 = arith.constant 31 : i32
    %2 = arith.minsi %1, %c31_i32 : i32
    %c0_i32 = arith.constant 0 : i32
    %c0_i32_0 = arith.constant 0 : i32
    return %arg0, %2, %c0_i32 : i32, i32, i32
  }
  func.func @transform_3(%arg0: i32, %arg1: i32) -> (i32, i32, i32) {
    %c0_i32 = arith.constant 0 : i32
    %c0_i32_0 = arith.constant 0 : i32
    %c0_i32_1 = arith.constant 0 : i32
    %c0_i32_2 = arith.constant 0 : i32
    return %c0_i32, %c0_i32_0, %c0_i32_1 : i32, i32, i32
  }
  func.func @transform_4(%arg0: i32, %arg1: i32) -> (i32, i32) {
    %c0_i32 = arith.constant 0 : i32
    %c0_i32_0 = arith.constant 0 : i32
    %c0_i32_1 = arith.constant 0 : i32
    return %c0_i32, %c0_i32_0 : i32, i32
  }
  func.func @transform_5(%arg0: i32, %arg1: i32) -> (i32, i32) {
    %c0_i32 = arith.constant 0 : i32
    %c0_i32_0 = arith.constant 0 : i32
    return %arg1, %c0_i32 : i32, i32
  }
  func.func @transform_6(%arg0: i32, %arg1: i32) -> (i32, i32, i32) {
    %c0_i32 = arith.constant 0 : i32
    %c0_i32_0 = arith.constant 0 : i32
    return %arg0, %arg1, %c0_i32 : i32, i32, i32
  }
}

module attributes {stable_mosaic.version = 11 : i64} {
  func.func @_conv3x3_relu_kernel(%arg0: i32, %arg1: i32, %arg2: memref<1x32x64xbf16, #tpu.memory_space<vmem>>, %arg3: memref<1x256x64xbf16, #tpu.memory_space<vmem>>, %arg4: memref<1x32x64xbf16, #tpu.memory_space<vmem>>, %arg5: memref<3x192x128xbf16, #tpu.memory_space<vmem>>, %arg6: memref<1x128xf32, #tpu.memory_space<vmem>>, %arg7: memref<256x1xf32, #tpu.memory_space<vmem>>, %arg8: memref<1x256x128xbf16, #tpu.memory_space<vmem>>, %arg9: memref<256x128xf32, #tpu.memory_space<vmem>>) attributes {dimension_semantics = [#tpu.dimension_semantics<parallel>, #tpu.dimension_semantics<parallel>], iteration_bounds = array<i64: 4, 2>, scalar_prefetch = 0 : i64, scratch_operands = 1 : i64, tpu.core_type = #tpu.core_type<tc>, window_params = [{transform_indices = @transform_0, window_bounds = array<i64: 1, 32, 64>}, {transform_indices = @transform_1, window_bounds = array<i64: 1, 256, 64>}, {transform_indices = @transform_2, window_bounds = array<i64: 1, 32, 64>}, {pipeline_mode = #tpu.pipeline_mode<synchronous>, transform_indices = @transform_3, window_bounds = array<i64: 3, 192, 128>}, {pipeline_mode = #tpu.pipeline_mode<synchronous>, transform_indices = @transform_4, window_bounds = array<i64: 1, 128>}, {transform_indices = @transform_5, window_bounds = array<i64: 256, 1>}, {transform_indices = @transform_6, window_bounds = array<i64: 1, 256, 128>}]} {
    %c0 = arith.constant 0 : index
    %c0_0 = arith.constant 0 : index
    %c0_1 = arith.constant 0 : index
    %0 = vector.load %arg3[%c0, %c0_0, %c0_1] : memref<1x256x64xbf16, #tpu.memory_space<vmem>>, vector<1x256x64xbf16>
    %1 = vector.shape_cast %0 : vector<1x256x64xbf16> to vector<256x64xbf16>
    %c0_i32 = arith.constant 0 : i32
    %2 = arith.cmpi sgt, %arg1, %c0_i32 : i32
    %3 = arith.extui %2 : i1 to i32
    %4 = arith.sitofp %3 : i32 to f32
    %5 = arith.truncf %4 : f32 to bf16
    %c1_i32 = arith.constant 1 : i32
    %6 = arith.cmpi slt, %arg1, %c1_i32 : i32
    %7 = arith.extui %6 : i1 to i32
    %8 = arith.sitofp %7 : i32 to f32
    %9 = arith.truncf %8 : f32 to bf16
    %c0_2 = arith.constant 0 : index
    %c0_3 = arith.constant 0 : index
    %c0_4 = arith.constant 0 : index
    %10 = vector.load %arg2[%c0_2, %c0_3, %c0_4] : memref<1x32x64xbf16, #tpu.memory_space<vmem>>, vector<1x32x64xbf16>
    %11 = vector.shape_cast %10 : vector<1x32x64xbf16> to vector<32x64xbf16>
    %12 = vector.broadcast %5 : bf16 to vector<32x64xbf16>
    %13 = arith.mulf %11, %12 : vector<32x64xbf16>
    %c0_5 = arith.constant 0 : index
    %c0_6 = arith.constant 0 : index
    %c0_7 = arith.constant 0 : index
    %14 = vector.load %arg4[%c0_5, %c0_6, %c0_7] : memref<1x32x64xbf16, #tpu.memory_space<vmem>>, vector<1x32x64xbf16>
    %15 = vector.shape_cast %14 : vector<1x32x64xbf16> to vector<32x64xbf16>
    %16 = vector.broadcast %9 : bf16 to vector<32x64xbf16>
    %17 = arith.mulf %15, %16 : vector<32x64xbf16>
    %18 = vector.extract_strided_slice %1 {offsets = [0, 0], sizes = [224, 64], strides = [1, 1]} : vector<256x64xbf16> to vector<224x64xbf16>
    %19 = tpu.concatenate %13, %18 in 0 : vector<32x64xbf16>, vector<224x64xbf16> -> vector<256x64xbf16>
    %20 = vector.extract_strided_slice %1 {offsets = [32, 0], sizes = [224, 64], strides = [1, 1]} : vector<256x64xbf16> to vector<224x64xbf16>
    %21 = tpu.concatenate %20, %17 in 0 : vector<224x64xbf16>, vector<32x64xbf16> -> vector<256x64xbf16>
    %22 = tpu.concatenate %19, %1, %21 in 1 : vector<256x64xbf16>, vector<256x64xbf16>, vector<256x64xbf16> -> vector<256x192xbf16>
    %c1 = arith.constant 1 : index
    %c0_8 = arith.constant 0 : index
    %c0_9 = arith.constant 0 : index
    %23 = vector.load %arg5[%c1, %c0_8, %c0_9] : memref<3x192x128xbf16, #tpu.memory_space<vmem>>, vector<1x192x128xbf16>
    %24 = vector.shape_cast %23 : vector<1x192x128xbf16> to vector<192x128xbf16>
    %cst = arith.constant dense<0.000000e+00> : vector<256x128xf32>
    %25 = tpu.matmul %22, %24, %cst {dimension_numbers = #tpu.dot_dimension_numbers<[1], [0], [0], [1], [0, 0, 1, 1], [], []>} : vector<256x192xbf16>, vector<192x128xbf16>, vector<256x128xf32> -> vector<256x128xf32>
    %c0_10 = arith.constant 0 : index
    %c0_11 = arith.constant 0 : index
    %26 = vector.load %arg9[%c0_10, %c0_11] : memref<256x128xf32, #tpu.memory_space<vmem>>, vector<256x128xf32>
    tpu.vector_store %arg9[%c0_10, %c0_11], %25 {strides = array<i32>} : memref<256x128xf32, #tpu.memory_space<vmem>>, vector<256x128xf32>,
    %c0_12 = arith.constant 0 : index
    %c0_13 = arith.constant 0 : index
    %c0_14 = arith.constant 0 : index
    %27 = vector.load %arg5[%c0_12, %c0_13, %c0_14] : memref<3x192x128xbf16, #tpu.memory_space<vmem>>, vector<1x192x128xbf16>
    %28 = vector.shape_cast %27 : vector<1x192x128xbf16> to vector<192x128xbf16>
    %cst_15 = arith.constant dense<0.000000e+00> : vector<256x128xf32>
    %29 = tpu.matmul %22, %28, %cst_15 {dimension_numbers = #tpu.dot_dimension_numbers<[1], [0], [0], [1], [0, 0, 1, 1], [], []>} : vector<256x192xbf16>, vector<192x128xbf16>, vector<256x128xf32> -> vector<256x128xf32>
    %c0_16 = arith.constant 0 : index
    %c0_17 = arith.constant 0 : index
    %30 = vector.load %arg9[%c0_16, %c0_17] : memref<256x128xf32, #tpu.memory_space<vmem>>, vector<256x128xf32>
    %c1_i32_18 = arith.constant 1 : i32
    %31 = tpu.dynamic_rotate %29 by %c1_i32_18 dim 0 : vector<256x128xf32>, i32 -> vector<256x128xf32>
    %32 = arith.addf %30, %31 : vector<256x128xf32>
    %c0_19 = arith.constant 0 : index
    %c0_20 = arith.constant 0 : index
    %33 = vector.load %arg9[%c0_19, %c0_20] : memref<256x128xf32, #tpu.memory_space<vmem>>, vector<256x128xf32>
    tpu.vector_store %arg9[%c0_19, %c0_20], %32 {strides = array<i32>} : memref<256x128xf32, #tpu.memory_space<vmem>>, vector<256x128xf32>,
    %c2 = arith.constant 2 : index
    %c0_21 = arith.constant 0 : index
    %c0_22 = arith.constant 0 : index
    %34 = vector.load %arg5[%c2, %c0_21, %c0_22] : memref<3x192x128xbf16, #tpu.memory_space<vmem>>, vector<1x192x128xbf16>
    %35 = vector.shape_cast %34 : vector<1x192x128xbf16> to vector<192x128xbf16>
    %cst_23 = arith.constant dense<0.000000e+00> : vector<256x128xf32>
    %36 = tpu.matmul %22, %35, %cst_23 {dimension_numbers = #tpu.dot_dimension_numbers<[1], [0], [0], [1], [0, 0, 1, 1], [], []>} : vector<256x192xbf16>, vector<192x128xbf16>, vector<256x128xf32> -> vector<256x128xf32>
    %c0_24 = arith.constant 0 : index
    %c0_25 = arith.constant 0 : index
    %37 = vector.load %arg9[%c0_24, %c0_25] : memref<256x128xf32, #tpu.memory_space<vmem>>, vector<256x128xf32>
    %c255_i32 = arith.constant 255 : i32
    %38 = tpu.dynamic_rotate %36 by %c255_i32 dim 0 : vector<256x128xf32>, i32 -> vector<256x128xf32>
    %39 = arith.addf %37, %38 : vector<256x128xf32>
    %c0_26 = arith.constant 0 : index
    %c0_27 = arith.constant 0 : index
    %40 = vector.load %arg9[%c0_26, %c0_27] : memref<256x128xf32, #tpu.memory_space<vmem>>, vector<256x128xf32>
    tpu.vector_store %arg9[%c0_26, %c0_27], %39 {strides = array<i32>} : memref<256x128xf32, #tpu.memory_space<vmem>>, vector<256x128xf32>,
    %c0_28 = arith.constant 0 : index
    %c0_29 = arith.constant 0 : index
    %41 = vector.load %arg9[%c0_28, %c0_29] : memref<256x128xf32, #tpu.memory_space<vmem>>, vector<256x128xf32>
    %c0_30 = arith.constant 0 : index
    %c0_31 = arith.constant 0 : index
    %42 = vector.load %arg6[%c0_30, %c0_31] : memref<1x128xf32, #tpu.memory_space<vmem>>, vector<1x128xf32>
    %43 = vector.broadcast %42 : vector<1x128xf32> to vector<256x128xf32>
    %44 = arith.addf %41, %43 : vector<256x128xf32>
    %cst_32 = arith.constant 0.000000e+00 : f32
    %45 = vector.broadcast %cst_32 : f32 to vector<256x128xf32>
    %46 = arith.maximumf %44, %45 : vector<256x128xf32>
    %c0_33 = arith.constant 0 : index
    %c0_34 = arith.constant 0 : index
    %47 = vector.load %arg7[%c0_33, %c0_34] : memref<256x1xf32, #tpu.memory_space<vmem>>, vector<256x1xf32>
    %48 = vector.broadcast %47 : vector<256x1xf32> to vector<256x128xf32>
    %49 = arith.mulf %46, %48 : vector<256x128xf32>
    %50 = arith.truncf %49 : vector<256x128xf32> to vector<256x128xbf16>
    %c0_35 = arith.constant 0 : index
    %c0_36 = arith.constant 0 : index
    %c0_37 = arith.constant 0 : index
    %51 = vector.load %arg8[%c0_35, %c0_36, %c0_37] : memref<1x256x128xbf16, #tpu.memory_space<vmem>>, vector<1x256x128xbf16>
    %52 = vector.shape_cast %51 : vector<1x256x128xbf16> to vector<256x128xbf16>
    %53 = vector.shape_cast %50 : vector<256x128xbf16> to vector<1x256x128xbf16>
    tpu.vector_store %arg8[%c0_35, %c0_36, %c0_37], %53 {strides = array<i32>} : memref<1x256x128xbf16, #tpu.memory_space<vmem>>, vector<1x256x128xbf16>,
    return
  }
  func.func @transform_0(%arg0: i32, %arg1: i32) -> (i32, i32, i32) {
    %c8_i32 = arith.constant 8 : i32
    %0 = arith.muli %arg1, %c8_i32 : i32
    %c1_i32 = arith.constant 1 : i32
    %1 = arith.subi %0, %c1_i32 : i32
    %c0_i32 = arith.constant 0 : i32
    %2 = arith.maxsi %1, %c0_i32 : i32
    %c0_i32_0 = arith.constant 0 : i32
    %c0_i32_1 = arith.constant 0 : i32
    return %arg0, %2, %c0_i32_0 : i32, i32, i32
  }
  func.func @transform_1(%arg0: i32, %arg1: i32) -> (i32, i32, i32) {
    %c0_i32 = arith.constant 0 : i32
    %c0_i32_0 = arith.constant 0 : i32
    return %arg0, %arg1, %c0_i32 : i32, i32, i32
  }
  func.func @transform_2(%arg0: i32, %arg1: i32) -> (i32, i32, i32) {
    %c1_i32 = arith.constant 1 : i32
    %0 = arith.addi %arg1, %c1_i32 : i32
    %c8_i32 = arith.constant 8 : i32
    %1 = arith.muli %0, %c8_i32 : i32
    %c15_i32 = arith.constant 15 : i32
    %2 = arith.minsi %1, %c15_i32 : i32
    %c0_i32 = arith.constant 0 : i32
    %c0_i32_0 = arith.constant 0 : i32
    return %arg0, %2, %c0_i32 : i32, i32, i32
  }
  func.func @transform_3(%arg0: i32, %arg1: i32) -> (i32, i32, i32) {
    %c0_i32 = arith.constant 0 : i32
    %c0_i32_0 = arith.constant 0 : i32
    %c0_i32_1 = arith.constant 0 : i32
    %c0_i32_2 = arith.constant 0 : i32
    return %c0_i32, %c0_i32_0, %c0_i32_1 : i32, i32, i32
  }
  func.func @transform_4(%arg0: i32, %arg1: i32) -> (i32, i32) {
    %c0_i32 = arith.constant 0 : i32
    %c0_i32_0 = arith.constant 0 : i32
    %c0_i32_1 = arith.constant 0 : i32
    return %c0_i32, %c0_i32_0 : i32, i32
  }
  func.func @transform_5(%arg0: i32, %arg1: i32) -> (i32, i32) {
    %c0_i32 = arith.constant 0 : i32
    %c0_i32_0 = arith.constant 0 : i32
    return %arg1, %c0_i32 : i32, i32
  }
  func.func @transform_6(%arg0: i32, %arg1: i32) -> (i32, i32, i32) {
    %c0_i32 = arith.constant 0 : i32
    %c0_i32_0 = arith.constant 0 : i32
    return %arg0, %arg1, %c0_i32 : i32, i32, i32
  }
}

module attributes {stable_mosaic.version = 11 : i64} {
  func.func @_conv3x3_relu_kernel(%arg0: i32, %arg1: i32, %arg2: memref<1x32x128xbf16, #tpu.memory_space<vmem>>, %arg3: memref<1x256x128xbf16, #tpu.memory_space<vmem>>, %arg4: memref<1x32x128xbf16, #tpu.memory_space<vmem>>, %arg5: memref<3x384x128xbf16, #tpu.memory_space<vmem>>, %arg6: memref<1x128xf32, #tpu.memory_space<vmem>>, %arg7: memref<256x1xf32, #tpu.memory_space<vmem>>, %arg8: memref<1x256x128xbf16, #tpu.memory_space<vmem>>, %arg9: memref<256x128xf32, #tpu.memory_space<vmem>>) attributes {dimension_semantics = [#tpu.dimension_semantics<parallel>, #tpu.dimension_semantics<parallel>], iteration_bounds = array<i64: 4, 2>, scalar_prefetch = 0 : i64, scratch_operands = 1 : i64, tpu.core_type = #tpu.core_type<tc>, window_params = [{transform_indices = @transform_0, window_bounds = array<i64: 1, 32, 128>}, {transform_indices = @transform_1, window_bounds = array<i64: 1, 256, 128>}, {transform_indices = @transform_2, window_bounds = array<i64: 1, 32, 128>}, {pipeline_mode = #tpu.pipeline_mode<synchronous>, transform_indices = @transform_3, window_bounds = array<i64: 3, 384, 128>}, {pipeline_mode = #tpu.pipeline_mode<synchronous>, transform_indices = @transform_4, window_bounds = array<i64: 1, 128>}, {transform_indices = @transform_5, window_bounds = array<i64: 256, 1>}, {transform_indices = @transform_6, window_bounds = array<i64: 1, 256, 128>}]} {
    %c0 = arith.constant 0 : index
    %c0_0 = arith.constant 0 : index
    %c0_1 = arith.constant 0 : index
    %0 = vector.load %arg3[%c0, %c0_0, %c0_1] : memref<1x256x128xbf16, #tpu.memory_space<vmem>>, vector<1x256x128xbf16>
    %1 = vector.shape_cast %0 : vector<1x256x128xbf16> to vector<256x128xbf16>
    %c0_i32 = arith.constant 0 : i32
    %2 = arith.cmpi sgt, %arg1, %c0_i32 : i32
    %3 = arith.extui %2 : i1 to i32
    %4 = arith.sitofp %3 : i32 to f32
    %5 = arith.truncf %4 : f32 to bf16
    %c1_i32 = arith.constant 1 : i32
    %6 = arith.cmpi slt, %arg1, %c1_i32 : i32
    %7 = arith.extui %6 : i1 to i32
    %8 = arith.sitofp %7 : i32 to f32
    %9 = arith.truncf %8 : f32 to bf16
    %c0_2 = arith.constant 0 : index
    %c0_3 = arith.constant 0 : index
    %c0_4 = arith.constant 0 : index
    %10 = vector.load %arg2[%c0_2, %c0_3, %c0_4] : memref<1x32x128xbf16, #tpu.memory_space<vmem>>, vector<1x32x128xbf16>
    %11 = vector.shape_cast %10 : vector<1x32x128xbf16> to vector<32x128xbf16>
    %12 = vector.broadcast %5 : bf16 to vector<32x128xbf16>
    %13 = arith.mulf %11, %12 : vector<32x128xbf16>
    %c0_5 = arith.constant 0 : index
    %c0_6 = arith.constant 0 : index
    %c0_7 = arith.constant 0 : index
    %14 = vector.load %arg4[%c0_5, %c0_6, %c0_7] : memref<1x32x128xbf16, #tpu.memory_space<vmem>>, vector<1x32x128xbf16>
    %15 = vector.shape_cast %14 : vector<1x32x128xbf16> to vector<32x128xbf16>
    %16 = vector.broadcast %9 : bf16 to vector<32x128xbf16>
    %17 = arith.mulf %15, %16 : vector<32x128xbf16>
    %18 = vector.extract_strided_slice %1 {offsets = [0, 0], sizes = [224, 128], strides = [1, 1]} : vector<256x128xbf16> to vector<224x128xbf16>
    %19 = tpu.concatenate %13, %18 in 0 : vector<32x128xbf16>, vector<224x128xbf16> -> vector<256x128xbf16>
    %20 = vector.extract_strided_slice %1 {offsets = [32, 0], sizes = [224, 128], strides = [1, 1]} : vector<256x128xbf16> to vector<224x128xbf16>
    %21 = tpu.concatenate %20, %17 in 0 : vector<224x128xbf16>, vector<32x128xbf16> -> vector<256x128xbf16>
    %22 = tpu.concatenate %19, %1, %21 in 1 : vector<256x128xbf16>, vector<256x128xbf16>, vector<256x128xbf16> -> vector<256x384xbf16>
    %c1 = arith.constant 1 : index
    %c0_8 = arith.constant 0 : index
    %c0_9 = arith.constant 0 : index
    %23 = vector.load %arg5[%c1, %c0_8, %c0_9] : memref<3x384x128xbf16, #tpu.memory_space<vmem>>, vector<1x384x128xbf16>
    %24 = vector.shape_cast %23 : vector<1x384x128xbf16> to vector<384x128xbf16>
    %cst = arith.constant dense<0.000000e+00> : vector<256x128xf32>
    %25 = tpu.matmul %22, %24, %cst {dimension_numbers = #tpu.dot_dimension_numbers<[1], [0], [0], [1], [0, 0, 1, 1], [], []>} : vector<256x384xbf16>, vector<384x128xbf16>, vector<256x128xf32> -> vector<256x128xf32>
    %c0_10 = arith.constant 0 : index
    %c0_11 = arith.constant 0 : index
    %26 = vector.load %arg9[%c0_10, %c0_11] : memref<256x128xf32, #tpu.memory_space<vmem>>, vector<256x128xf32>
    tpu.vector_store %arg9[%c0_10, %c0_11], %25 {strides = array<i32>} : memref<256x128xf32, #tpu.memory_space<vmem>>, vector<256x128xf32>,
    %c0_12 = arith.constant 0 : index
    %c0_13 = arith.constant 0 : index
    %c0_14 = arith.constant 0 : index
    %27 = vector.load %arg5[%c0_12, %c0_13, %c0_14] : memref<3x384x128xbf16, #tpu.memory_space<vmem>>, vector<1x384x128xbf16>
    %28 = vector.shape_cast %27 : vector<1x384x128xbf16> to vector<384x128xbf16>
    %cst_15 = arith.constant dense<0.000000e+00> : vector<256x128xf32>
    %29 = tpu.matmul %22, %28, %cst_15 {dimension_numbers = #tpu.dot_dimension_numbers<[1], [0], [0], [1], [0, 0, 1, 1], [], []>} : vector<256x384xbf16>, vector<384x128xbf16>, vector<256x128xf32> -> vector<256x128xf32>
    %c0_16 = arith.constant 0 : index
    %c0_17 = arith.constant 0 : index
    %30 = vector.load %arg9[%c0_16, %c0_17] : memref<256x128xf32, #tpu.memory_space<vmem>>, vector<256x128xf32>
    %c1_i32_18 = arith.constant 1 : i32
    %31 = tpu.dynamic_rotate %29 by %c1_i32_18 dim 0 : vector<256x128xf32>, i32 -> vector<256x128xf32>
    %32 = arith.addf %30, %31 : vector<256x128xf32>
    %c0_19 = arith.constant 0 : index
    %c0_20 = arith.constant 0 : index
    %33 = vector.load %arg9[%c0_19, %c0_20] : memref<256x128xf32, #tpu.memory_space<vmem>>, vector<256x128xf32>
    tpu.vector_store %arg9[%c0_19, %c0_20], %32 {strides = array<i32>} : memref<256x128xf32, #tpu.memory_space<vmem>>, vector<256x128xf32>,
    %c2 = arith.constant 2 : index
    %c0_21 = arith.constant 0 : index
    %c0_22 = arith.constant 0 : index
    %34 = vector.load %arg5[%c2, %c0_21, %c0_22] : memref<3x384x128xbf16, #tpu.memory_space<vmem>>, vector<1x384x128xbf16>
    %35 = vector.shape_cast %34 : vector<1x384x128xbf16> to vector<384x128xbf16>
    %cst_23 = arith.constant dense<0.000000e+00> : vector<256x128xf32>
    %36 = tpu.matmul %22, %35, %cst_23 {dimension_numbers = #tpu.dot_dimension_numbers<[1], [0], [0], [1], [0, 0, 1, 1], [], []>} : vector<256x384xbf16>, vector<384x128xbf16>, vector<256x128xf32> -> vector<256x128xf32>
    %c0_24 = arith.constant 0 : index
    %c0_25 = arith.constant 0 : index
    %37 = vector.load %arg9[%c0_24, %c0_25] : memref<256x128xf32, #tpu.memory_space<vmem>>, vector<256x128xf32>
    %c255_i32 = arith.constant 255 : i32
    %38 = tpu.dynamic_rotate %36 by %c255_i32 dim 0 : vector<256x128xf32>, i32 -> vector<256x128xf32>
    %39 = arith.addf %37, %38 : vector<256x128xf32>
    %c0_26 = arith.constant 0 : index
    %c0_27 = arith.constant 0 : index
    %40 = vector.load %arg9[%c0_26, %c0_27] : memref<256x128xf32, #tpu.memory_space<vmem>>, vector<256x128xf32>
    tpu.vector_store %arg9[%c0_26, %c0_27], %39 {strides = array<i32>} : memref<256x128xf32, #tpu.memory_space<vmem>>, vector<256x128xf32>,
    %c0_28 = arith.constant 0 : index
    %c0_29 = arith.constant 0 : index
    %41 = vector.load %arg9[%c0_28, %c0_29] : memref<256x128xf32, #tpu.memory_space<vmem>>, vector<256x128xf32>
    %c0_30 = arith.constant 0 : index
    %c0_31 = arith.constant 0 : index
    %42 = vector.load %arg6[%c0_30, %c0_31] : memref<1x128xf32, #tpu.memory_space<vmem>>, vector<1x128xf32>
    %43 = vector.broadcast %42 : vector<1x128xf32> to vector<256x128xf32>
    %44 = arith.addf %41, %43 : vector<256x128xf32>
    %cst_32 = arith.constant 0.000000e+00 : f32
    %45 = vector.broadcast %cst_32 : f32 to vector<256x128xf32>
    %46 = arith.maximumf %44, %45 : vector<256x128xf32>
    %c0_33 = arith.constant 0 : index
    %c0_34 = arith.constant 0 : index
    %47 = vector.load %arg7[%c0_33, %c0_34] : memref<256x1xf32, #tpu.memory_space<vmem>>, vector<256x1xf32>
    %48 = vector.broadcast %47 : vector<256x1xf32> to vector<256x128xf32>
    %49 = arith.mulf %46, %48 : vector<256x128xf32>
    %50 = arith.truncf %49 : vector<256x128xf32> to vector<256x128xbf16>
    %c0_35 = arith.constant 0 : index
    %c0_36 = arith.constant 0 : index
    %c0_37 = arith.constant 0 : index
    %51 = vector.load %arg8[%c0_35, %c0_36, %c0_37] : memref<1x256x128xbf16, #tpu.memory_space<vmem>>, vector<1x256x128xbf16>
    %52 = vector.shape_cast %51 : vector<1x256x128xbf16> to vector<256x128xbf16>
    %53 = vector.shape_cast %50 : vector<256x128xbf16> to vector<1x256x128xbf16>
    tpu.vector_store %arg8[%c0_35, %c0_36, %c0_37], %53 {strides = array<i32>} : memref<1x256x128xbf16, #tpu.memory_space<vmem>>, vector<1x256x128xbf16>,
    return
  }
  func.func @transform_0(%arg0: i32, %arg1: i32) -> (i32, i32, i32) {
    %c8_i32 = arith.constant 8 : i32
    %0 = arith.muli %arg1, %c8_i32 : i32
    %c1_i32 = arith.constant 1 : i32
    %1 = arith.subi %0, %c1_i32 : i32
    %c0_i32 = arith.constant 0 : i32
    %2 = arith.maxsi %1, %c0_i32 : i32
    %c0_i32_0 = arith.constant 0 : i32
    %c0_i32_1 = arith.constant 0 : i32
    return %arg0, %2, %c0_i32_0 : i32, i32, i32
  }
  func.func @transform_1(%arg0: i32, %arg1: i32) -> (i32, i32, i32) {
    %c0_i32 = arith.constant 0 : i32
    %c0_i32_0 = arith.constant 0 : i32
    return %arg0, %arg1, %c0_i32 : i32, i32, i32
  }
  func.func @transform_2(%arg0: i32, %arg1: i32) -> (i32, i32, i32) {
    %c1_i32 = arith.constant 1 : i32
    %0 = arith.addi %arg1, %c1_i32 : i32
    %c8_i32 = arith.constant 8 : i32
    %1 = arith.muli %0, %c8_i32 : i32
    %c15_i32 = arith.constant 15 : i32
    %2 = arith.minsi %1, %c15_i32 : i32
    %c0_i32 = arith.constant 0 : i32
    %c0_i32_0 = arith.constant 0 : i32
    return %arg0, %2, %c0_i32 : i32, i32, i32
  }
  func.func @transform_3(%arg0: i32, %arg1: i32) -> (i32, i32, i32) {
    %c0_i32 = arith.constant 0 : i32
    %c0_i32_0 = arith.constant 0 : i32
    %c0_i32_1 = arith.constant 0 : i32
    %c0_i32_2 = arith.constant 0 : i32
    return %c0_i32, %c0_i32_0, %c0_i32_1 : i32, i32, i32
  }
  func.func @transform_4(%arg0: i32, %arg1: i32) -> (i32, i32) {
    %c0_i32 = arith.constant 0 : i32
    %c0_i32_0 = arith.constant 0 : i32
    %c0_i32_1 = arith.constant 0 : i32
    return %c0_i32, %c0_i32_0 : i32, i32
  }
  func.func @transform_5(%arg0: i32, %arg1: i32) -> (i32, i32) {
    %c0_i32 = arith.constant 0 : i32
    %c0_i32_0 = arith.constant 0 : i32
    return %arg1, %c0_i32 : i32, i32
  }
  func.func @transform_6(%arg0: i32, %arg1: i32) -> (i32, i32, i32) {
    %c0_i32 = arith.constant 0 : i32
    %c0_i32_0 = arith.constant 0 : i32
    return %arg0, %arg1, %c0_i32 : i32, i32, i32
  }
}

module attributes {stable_mosaic.version = 11 : i64} {
  func.func @_l1_partial_kernel(%arg0: i32, %arg1: i32, %arg2: memref<1x512x128xbf16, #tpu.memory_space<vmem>>, %arg3: memref<1x512x128xbf16, #tpu.memory_space<vmem>>, %arg4: memref<1x8x128xf32, #tpu.memory_space<vmem>>) attributes {dimension_semantics = [#tpu.dimension_semantics<parallel>, #tpu.dimension_semantics<arbitrary>], iteration_bounds = array<i64: 2, 1>, scalar_prefetch = 0 : i64, scratch_operands = 0 : i64, tpu.core_type = #tpu.core_type<tc>, window_params = [{transform_indices = @transform_0, window_bounds = array<i64: 1, 512, 128>}, {transform_indices = @transform_1, window_bounds = array<i64: 1, 512, 128>}, {transform_indices = @transform_2, window_bounds = array<i64: 1, 8, 128>}]} {
    %c0_i32 = arith.constant 0 : i32
    %0 = arith.cmpi eq, %arg1, %c0_i32 : i32
    %1 = arith.extui %0 : i1 to i32
    %c0_i32_0 = arith.constant 0 : i32
    %2 = arith.cmpi ne, %1, %c0_i32_0 : i32
    scf.if %2 {
      %cst_12 = arith.constant 0.000000e+00 : f32
      %17 = vector.broadcast %cst_12 : f32 to vector<1x8x128xf32>
      %c0_13 = arith.constant 0 : index
      %c0_14 = arith.constant 0 : index
      %c0_15 = arith.constant 0 : index
      %18 = vector.load %arg4[%c0_13, %c0_14, %c0_15] : memref<1x8x128xf32, #tpu.memory_space<vmem>>, vector<1x8x128xf32>
      tpu.vector_store %arg4[%c0_13, %c0_14, %c0_15], %17 {strides = array<i32>} : memref<1x8x128xf32, #tpu.memory_space<vmem>>, vector<1x8x128xf32>,
    } else {
    }
    %c0 = arith.constant 0 : index
    %c0_1 = arith.constant 0 : index
    %c0_2 = arith.constant 0 : index
    %3 = vector.load %arg2[%c0, %c0_1, %c0_2] : memref<1x512x128xbf16, #tpu.memory_space<vmem>>, vector<1x512x128xbf16>
    %4 = arith.extf %3 : vector<1x512x128xbf16> to vector<1x512x128xf32>
    %c0_3 = arith.constant 0 : index
    %c0_4 = arith.constant 0 : index
    %c0_5 = arith.constant 0 : index
    %5 = vector.load %arg3[%c0_3, %c0_4, %c0_5] : memref<1x512x128xbf16, #tpu.memory_space<vmem>>, vector<1x512x128xbf16>
    %6 = arith.extf %5 : vector<1x512x128xbf16> to vector<1x512x128xf32>
    %7 = arith.subf %4, %6 : vector<1x512x128xf32>
    %8 = math.absf %7 : vector<1x512x128xf32>
    %c0_6 = arith.constant 0 : index
    %c0_7 = arith.constant 0 : index
    %c0_8 = arith.constant 0 : index
    %9 = vector.load %arg4[%c0_6, %c0_7, %c0_8] : memref<1x8x128xf32, #tpu.memory_space<vmem>>, vector<1x8x128xf32>
    %10 = vector.shape_cast %8 : vector<1x512x128xf32> to vector<1x1x512x128xf32>
    %cst = arith.constant dense<0.000000e+00> : vector<1xf32>
    %11 = vector.multi_reduction <add>, %10, %cst [1, 2, 3] : vector<1x1x512x128xf32> to vector<1xf32>
    %12 = vector.shape_cast %11 : vector<1xf32> to vector<1x1x1x1xf32>
    %13 = vector.extract %12[0, 0, 0, 0] : f32 from vector<1x1x1x1xf32>
    %14 = vector.broadcast %13 : f32 to vector<1x8x128xf32>
    %15 = arith.addf %9, %14 : vector<1x8x128xf32>
    %c0_9 = arith.constant 0 : index
    %c0_10 = arith.constant 0 : index
    %c0_11 = arith.constant 0 : index
    %16 = vector.load %arg4[%c0_9, %c0_10, %c0_11] : memref<1x8x128xf32, #tpu.memory_space<vmem>>, vector<1x8x128xf32>
    tpu.vector_store %arg4[%c0_9, %c0_10, %c0_11], %15 {strides = array<i32>} : memref<1x8x128xf32, #tpu.memory_space<vmem>>, vector<1x8x128xf32>,
    return
  }
  func.func @transform_0(%arg0: i32, %arg1: i32) -> (i32, i32, i32) {
    %c0_i32 = arith.constant 0 : i32
    %c0_i32_0 = arith.constant 0 : i32
    return %arg0, %arg1, %c0_i32 : i32, i32, i32
  }
  func.func @transform_1(%arg0: i32, %arg1: i32) -> (i32, i32, i32) {
    %c2_i32 = arith.constant 2 : i32
    %0 = arith.addi %arg0, %c2_i32 : i32
    %c0_i32 = arith.constant 0 : i32
    %c0_i32_0 = arith.constant 0 : i32
    return %0, %arg1, %c0_i32 : i32, i32, i32
  }
  func.func @transform_2(%arg0: i32, %arg1: i32) -> (i32, i32, i32) {
    %c0_i32 = arith.constant 0 : i32
    %c0_i32_0 = arith.constant 0 : i32
    %c0_i32_1 = arith.constant 0 : i32
    return %arg0, %c0_i32, %c0_i32_0 : i32, i32, i32
  }
}

module attributes {stable_mosaic.version = 11 : i64} {
  func.func @_l1_partial_kernel(%arg0: i32, %arg1: i32, %arg2: memref<1x1536x64xbf16, #tpu.memory_space<vmem>>, %arg3: memref<1x1536x64xbf16, #tpu.memory_space<vmem>>, %arg4: memref<1x8x128xf32, #tpu.memory_space<vmem>>) attributes {dimension_semantics = [#tpu.dimension_semantics<parallel>, #tpu.dimension_semantics<arbitrary>], iteration_bounds = array<i64: 2, 1>, scalar_prefetch = 0 : i64, scratch_operands = 0 : i64, tpu.core_type = #tpu.core_type<tc>, window_params = [{transform_indices = @transform_0, window_bounds = array<i64: 1, 1536, 64>}, {transform_indices = @transform_1, window_bounds = array<i64: 1, 1536, 64>}, {transform_indices = @transform_2, window_bounds = array<i64: 1, 8, 128>}]} {
    %c0_i32 = arith.constant 0 : i32
    %0 = arith.cmpi eq, %arg1, %c0_i32 : i32
    %1 = arith.extui %0 : i1 to i32
    %c0_i32_0 = arith.constant 0 : i32
    %2 = arith.cmpi ne, %1, %c0_i32_0 : i32
    scf.if %2 {
      %cst_12 = arith.constant 0.000000e+00 : f32
      %17 = vector.broadcast %cst_12 : f32 to vector<1x8x128xf32>
      %c0_13 = arith.constant 0 : index
      %c0_14 = arith.constant 0 : index
      %c0_15 = arith.constant 0 : index
      %18 = vector.load %arg4[%c0_13, %c0_14, %c0_15] : memref<1x8x128xf32, #tpu.memory_space<vmem>>, vector<1x8x128xf32>
      tpu.vector_store %arg4[%c0_13, %c0_14, %c0_15], %17 {strides = array<i32>} : memref<1x8x128xf32, #tpu.memory_space<vmem>>, vector<1x8x128xf32>,
    } else {
    }
    %c0 = arith.constant 0 : index
    %c0_1 = arith.constant 0 : index
    %c0_2 = arith.constant 0 : index
    %3 = vector.load %arg2[%c0, %c0_1, %c0_2] : memref<1x1536x64xbf16, #tpu.memory_space<vmem>>, vector<1x1536x64xbf16>
    %4 = arith.extf %3 : vector<1x1536x64xbf16> to vector<1x1536x64xf32>
    %c0_3 = arith.constant 0 : index
    %c0_4 = arith.constant 0 : index
    %c0_5 = arith.constant 0 : index
    %5 = vector.load %arg3[%c0_3, %c0_4, %c0_5] : memref<1x1536x64xbf16, #tpu.memory_space<vmem>>, vector<1x1536x64xbf16>
    %6 = arith.extf %5 : vector<1x1536x64xbf16> to vector<1x1536x64xf32>
    %7 = arith.subf %4, %6 : vector<1x1536x64xf32>
    %8 = math.absf %7 : vector<1x1536x64xf32>
    %c0_6 = arith.constant 0 : index
    %c0_7 = arith.constant 0 : index
    %c0_8 = arith.constant 0 : index
    %9 = vector.load %arg4[%c0_6, %c0_7, %c0_8] : memref<1x8x128xf32, #tpu.memory_space<vmem>>, vector<1x8x128xf32>
    %10 = vector.shape_cast %8 : vector<1x1536x64xf32> to vector<1x1x1536x64xf32>
    %cst = arith.constant dense<0.000000e+00> : vector<1xf32>
    %11 = vector.multi_reduction <add>, %10, %cst [1, 2, 3] : vector<1x1x1536x64xf32> to vector<1xf32>
    %12 = vector.shape_cast %11 : vector<1xf32> to vector<1x1x1x1xf32>
    %13 = vector.extract %12[0, 0, 0, 0] : f32 from vector<1x1x1x1xf32>
    %14 = vector.broadcast %13 : f32 to vector<1x8x128xf32>
    %15 = arith.addf %9, %14 : vector<1x8x128xf32>
    %c0_9 = arith.constant 0 : index
    %c0_10 = arith.constant 0 : index
    %c0_11 = arith.constant 0 : index
    %16 = vector.load %arg4[%c0_9, %c0_10, %c0_11] : memref<1x8x128xf32, #tpu.memory_space<vmem>>, vector<1x8x128xf32>
    tpu.vector_store %arg4[%c0_9, %c0_10, %c0_11], %15 {strides = array<i32>} : memref<1x8x128xf32, #tpu.memory_space<vmem>>, vector<1x8x128xf32>,
    return
  }
  func.func @transform_0(%arg0: i32, %arg1: i32) -> (i32, i32, i32) {
    %c0_i32 = arith.constant 0 : i32
    %c0_i32_0 = arith.constant 0 : i32
    return %arg0, %arg1, %c0_i32 : i32, i32, i32
  }
  func.func @transform_1(%arg0: i32, %arg1: i32) -> (i32, i32, i32) {
    %c2_i32 = arith.constant 2 : i32
    %0 = arith.addi %arg0, %c2_i32 : i32
    %c0_i32 = arith.constant 0 : i32
    %c0_i32_0 = arith.constant 0 : i32
    return %0, %arg1, %c0_i32 : i32, i32, i32
  }
  func.func @transform_2(%arg0: i32, %arg1: i32) -> (i32, i32, i32) {
    %c0_i32 = arith.constant 0 : i32
    %c0_i32_0 = arith.constant 0 : i32
    %c0_i32_1 = arith.constant 0 : i32
    return %arg0, %c0_i32, %c0_i32_0 : i32, i32, i32
  }
}

</mosaic_0001>

<bundles_post_ra>
// kernel: vgg_loss.6
= control target key start
LH: loop header
LB: loop body
LE: loop exit
PB: predicated region body
PF: predicated region fallthrough
CT: control target
= control target key end

     0   :  { %s1851_s15 = smov 0   ;;  %s1853_s16 = smov 0   ;;  %s2280_s0 = inlined_call_operand.vmem [shape: bf16[4,1536,32], index: 0, kind: input, shape index: {}]   ;;  %s2281_s1 = inlined_call_operand.vmem [shape: bf16[32,64], index: 1, kind: input, shape index: {}]   ;;  %s2282_s2 = inlined_call_operand.vmem [shape: f32[1,64], index: 2, kind: input, shape index: {}]   ;;  %s2283_s3 = inlined_call_operand.vmem [shape: f32[1536,1], index: 3, kind: input, shape index: {}]   ;;  %s2284_s4 = inlined_call_operand.vmem [shape: bf16[4,1536,64], index: 4, kind: output, shape index: {}]  }
   0x1   :  { %s1855_s17 = smov 0   ;;  %s1857_s18 = smov 0  }
   0x2   :  { %s1859_s19 = smov 0  }
   0x3 LB: > { %s23_s20 = sadd.s32 1, %s1815_s17  ;;  %s26_s21 = sadd.s32 1, %s1819_s18  ;;  %s1823_s19 = sphi %s1859_s19, %s14_s19   ;;  %s1819_s18 = sphi %s1857_s18, %s2288_s18   ;;  %s1815_s17 = sphi %s1855_s17, %s2287_s17   ;;  %s1811_s16 = sphi %s1853_s16, %s2286_s16   ;;  %s1807_s15 = sphi %s1851_s15, %s2285_s15  }
   0x4   : > { %p24_p0 = scmp.ge.s32.totalorder %s23_s20, 4  ;;  %p1480_p1 = scmp.ge.s32.totalorder %s1823_s19, 1 }
   0x5   : > { %p194_p2 = scmp.lt.s32.totalorder %s1823_s19, 17 }
   0x6   : > { %s2290_s20 = smov (%p24_p0, %s23_s20), 0  ;;  %s2292_s21 = smov (!%p24_p0, %s26_s21), %s1819_s18 }
   0x7   : > { %p195_p3 = pnand %p1480_p1, %p194_p2  ;;  %p28_p4 = scmp.ge.s32.totalorder %s2292_s21, 4 }
   0x8   : > { %v1759_v0 = vld [vmem:[%s2281_s1] sm:$0xff] (!%p195_p3)   ;;  %v1825_v1 = vmov (!%p195_p3), 0   ;;  %v1760_v2 = vld [vmem:[%s2281_s1 + $0x8] sm:$0xff] (!%p195_p3)   ;;  %s233_s26 = smul.u32 (!%p195_p3), 48, %s1807_s15  ;;  %p234_p5 = scmp.lt.s32.totalorder (!%p195_p3), %s1811_s16, 3  ;;  %vm451_vm0 = vcmask (!%p195_p3), 261120  }
   0x9   : > { %s2294_s21 = smov (%p28_p4, %s2292_s21), 0  ;;  %198 = sbr.rel (%p195_p3) target bundleno = 291 (0x123), region = 36 }
   0xa   : > { %1758 = vset.pattern.permute.xlu1 (!%p195_p3), %v1825_v1  ;;  %1757 = vset.pattern.permute.xlu0 (!%p195_p3), %v1825_v1  ;;  %p236_p6 = scmp.lt.s32.totalorder (!%p195_p3), %s233_s26, 191  ;;  %vm1325_vm1 = vcmask (!%p195_p3), 519168  }
   0xb   : > { %1659 = vmatprep.subr.bf16.mxu0 (!%p195_p3), %v1759_v0  ;;  %1711 = vmatprep.subr.bf16.mxu1 (!%p195_p3), %v1759_v0 }
   0xc   : > { %1660 = vmatpush3.bf16.msra.mxu0 (!%p195_p3), %v1759_v0  ;;  %1713 = vmatpush3.bf16.msra.mxu1 (!%p195_p3), %v1759_v0 }
   0xd   : > { %1661 = vmatprep.subr.bf16.mxu0 (!%p195_p3), %v1760_v2  ;;  %1712 = vmatprep.subr.bf16.mxu1 (!%p195_p3), %v1760_v2 }
  0x10   : > { %s2296_s16 = smov (!%p234_p5, %s1811_s16), 3  ;;  %s2298_s26 = smov (!%p236_p6, %s233_s26), 191  ;;  %1662 = vmatpush3.bf16.msra.mxu0 %v1760_v2  ;;  %1714 = vmatpush3.bf16.msra.mxu1 %v1760_v2 }
  0x11   : > { %s1715_s27 = smul.u32 192, %s2296_s16  ;;  %s1482_s28 = sshll.u32 %s2298_s26, 3 }
  0x12   : > { %s1893_s5 = scalar_lea.vmem %s2283_s3, %s1482_s28 }
  0x13   : > { %s1895_s6 = sadd.s32 %s1715_s27, %s2298_s26  ;;  %v799_v3 = vld [vmem:[%s1893_s5 + $0x10] sm:$0xff]  ;;  %v797_v4 = vld [vmem:[%s1893_s5] sm:$0xff]  ;;  %v800_v5 = vld [vmem:[%s1893_s5 + $0x18] sm:$0xff] }
  0x14   : > { %s1481_s7 = sshll.u32 %s1895_s6, 2  ;;  %857 = vperm.xlu1 %1758, %v799_v3   ;;  %847 = vperm.xlu0 %1757, %v797_v4   ;;  %v798_v6 = vld [vmem:[%s1893_s5 + $0x8] sm:$0xff]  ;;  %v801_v12 = vld [vmem:[%s1893_s5 + $0x20] sm:$0xff]  ;;  %v804_v15 = vld [vmem:[%s1893_s5 + $0x38] sm:$0xff] }
  0x15   : > { %s1905_s10 = scalar_lea.vmem %s2280_s0, %s1481_s7  ;;  %v802_v10 = vld [vmem:[%s1893_s5 + $0x28] sm:$0xff]  ;;  %v803_v16 = vld [vmem:[%s1893_s5 + $0x30] sm:$0xff]  ;;  %v805_v22 = vld [vmem:[%s1893_s5 + $0x40] sm:$0xff]  ;;  %s2079_s15 = scalar_lea.vmem %s2284_s4, %s1481_s7 }
  0x16   : > { %v1761_v7 = vld [vmem:[%s1905_s10] sm:$0xff]   ;;  %v1763_v9 = vld [vmem:[%s1905_s10 + $0x8] sm:$0xff]   ;;  %v1765_v13 = vld [vmem:[%s1905_s10 + $0x10] sm:$0xff]  }
  0x17   : > { %v1762_v8 = vld [vmem:[%s1905_s10 + $0x60] sm:$0xff]   ;;  %1663 = vmatprep.mubr.msk.bf16.mxu0 %vm451_vm0, %v1761_v7  ;;  %v1764_v11 = vld [vmem:[%s1905_s10 + $0x68] sm:$0xff]   ;;  %v1766_v14 = vld [vmem:[%s1905_s10 + $0x70] sm:$0xff]  }
  0x18   : > { %1687 = vmatprep.mubr.msk.bf16.mxu1 %vm451_vm0, %v1762_v8  ;;  %862 = vperm.xlu1 %1758, %v800_v5   ;;  %v1767_v17 = vld [vmem:[%s1905_s10 + $0x18] sm:$0xff]   ;;  %v1769_v19 = vld [vmem:[%s1905_s10 + $0x20] sm:$0xff]   ;;  %v806_v21 = vld [vmem:[%s1893_s5 + $0x48] sm:$0xff] }
  0x19   : > { %852 = vperm.xlu0 %1757, %v798_v6   ;;  %1664 = vmatmul.mubr.msk.bf16.vlgmr.msra.gmra.mrb[0].mxu0 %vm451_vm0, %v1763_v9  ;;  %v1768_v18 = vld [vmem:[%s1905_s10 + $0x78] sm:$0xff]   ;;  %v1770_v20 = vld [vmem:[%s1905_s10 + $0x80] sm:$0xff]   ;;  %v807_v24 = vld [vmem:[%s1893_s5 + $0x50] sm:$0xff] }
  0x1a   : > { %1688 = vmatmul.mubr.msk.bf16.vlgmr.msra.gmra.mrb[0].mxu1 %vm451_vm0, %v1764_v11  ;;  %1667 = vmatprep.mubr.msk.bf16.mxu0 %vm451_vm0, %v1765_v13  ;;  %v808_v23 = vld [vmem:[%s1893_s5 + $0x58] sm:$0xff]  ;;  %v1771_v25 = vld [vmem:[%s1905_s10 + $0x28] sm:$0xff]   ;;  %v1773_v27 = vld [vmem:[%s1905_s10 + $0x30] sm:$0xff]  }
  0x1b   : > { %1691 = vmatprep.mubr.msk.bf16.mxu1 %vm451_vm0, %v1766_v14  ;;  %v1772_v26 = vld [vmem:[%s1905_s10 + $0x88] sm:$0xff]   ;;  %v1774_v28 = vld [vmem:[%s1905_s10 + $0x90] sm:$0xff]   ;;  %v809_v30 = vld [vmem:[%s1893_s5 + $0x60] sm:$0xff] }
  0x1c   : > { %872 = vperm.xlu1 %1758, %v802_v10   ;;  %v810_v29 = vld [vmem:[%s1893_s5 + $0x68] sm:$0xff]  ;;  %v812_v31 = vld [vmem:[%s1893_s5 + $0x78] sm:$0xff]  ;;  %v811_v32 = vld [vmem:[%s1893_s5 + $0x70] sm:$0xff] }
  0x1d   : > { %867 = vperm.xlu0 %1757, %v801_v12   ;;  %v1775_v33 = vld [vmem:[%s1905_s10 + $0x38] sm:$0xff]   ;;  %v1777_v35 = vld [vmem:[%s1905_s10 + $0x40] sm:$0xff]   ;;  %v814_v37 = vld [vmem:[%s1893_s5 + $0x88] sm:$0xff] }
  0x1e   : > { %v1776_v34 = vld [vmem:[%s1905_s10 + $0x98] sm:$0xff]   ;;  %v1778_v36 = vld [vmem:[%s1905_s10 + $0xa0] sm:$0xff]   ;;  %v1779_v40 = vld [vmem:[%s1905_s10 + $0x48] sm:$0xff]  }
  0x1f   : > { %v813_v38 = vld [vmem:[%s1893_s5 + $0x80] sm:$0xff]  ;;  %v816_v39 = vld [vmem:[%s1893_s5 + $0x98] sm:$0xff]  ;;  %v815_v41 = vld [vmem:[%s1893_s5 + $0x90] sm:$0xff] }
  0x20   : > { %882 = vperm.xlu1 %1758, %v804_v15   ;;  %v1780_v42 = vld [vmem:[%s1905_s10 + $0xa8] sm:$0xff]   ;;  %v1781_v43 = vld [vmem:[%s1905_s10 + $0x50] sm:$0xff]   ;;  %v817_v46 = vld [vmem:[%s1893_s5 + $0xa0] sm:$0xff] }
  0x21   : > { %877 = vperm.xlu0 %1757, %v803_v16   ;;  %1668 = vmatmul.mubr.msk.bf16.gmra.mrb[4].mxu0 %vm451_vm0, %v1767_v17  ;;  %v1782_v44 = vld [vmem:[%s1905_s10 + $0xb0] sm:$0xff]   ;;  %v818_v45 = vld [vmem:[%s1893_s5 + $0xa8] sm:$0xff]  ;;  %v820_v47 = vld [vmem:[%s1893_s5 + $0xb8] sm:$0xff] }
  0x22   : > { %1692 = vmatmul.mubr.msk.bf16.gmra.mrb[4].mxu1 %vm451_vm0, %v1768_v18  ;;  %1671 = vmatprep.mubr.msk.bf16.mxu0 %vm451_vm0, %v1769_v19  ;;  %v1783_v48 = vld [vmem:[%s1905_s10 + $0x58] sm:$0xff]   ;;  %v819_v49 = vld [vmem:[%s1893_s5 + $0xb0] sm:$0xff]  ;;  %v822_v51 = vld [vmem:[%s1893_s5 + $0xc8] sm:$0xff] }
  0x23   : > { %1695 = vmatprep.mubr.msk.bf16.mxu1 %vm451_vm0, %v1770_v20  ;;  %v1784_v50 = vld [vmem:[%s1905_s10 + $0xb8] sm:$0xff]   ;;  %v821_v52 = vld [vmem:[%s1893_s5 + $0xc0] sm:$0xff]  ;;  %v823_v54 = vld [vmem:[%s1893_s5 + $0xd0] sm:$0xff] }
  0x24   : > { %892 = vperm.xlu1 %1758, %v806_v21   ;;  %v824_v53 = vld [vmem:[%s1893_s5 + $0xd8] sm:$0xff]  ;;  %v826_v55 = vld [vmem:[%s1893_s5 + $0xe8] sm:$0xff]  ;;  %v825_v56 = vld [vmem:[%s1893_s5 + $0xe0] sm:$0xff] }
  0x25   : > { %887 = vperm.xlu0 %1757, %v805_v22   ;;  %v828_v57 = vld [vmem:[%s1893_s5 + $0xf8] sm:$0xff]  ;;  %v827_v58 = vld [vmem:[%s1893_s5 + $0xf0] sm:$0xff]  ;;  %v830_v59 = vld [vmem:[%s1893_s5 + $0x108] sm:$0xff] }
  0x26   : > { %v829_v60 = vld [vmem:[%s1893_s5 + $0x100] sm:$0xff]  ;;  %v832_v61 = vld [vmem:[%s1893_s5 + $0x118] sm:$0xff]  ;;  %v831_v62 = vld [vmem:[%s1893_s5 + $0x110] sm:$0xff] }
  0x27   : > { %v834_v63 = vld [vmem:[%s1893_s5 + $0x128] sm:$0xff]  ;;  %v833_v0 = vld [vmem:[%s1893_s5 + $0x120] sm:$0xff]  ;;  %v836_v1 = vld [vmem:[%s1893_s5 + $0x138] sm:$0xff] }
  0x28   : > { %902 = vperm.xlu1 %1758, %v808_v23   ;;  %v835_v2 = vld [vmem:[%s1893_s5 + $0x130] sm:$0xff]  ;;  %v838_v3 = vld [vmem:[%s1893_s5 + $0x148] sm:$0xff]  ;;  %v837_v4 = vld [vmem:[%s1893_s5 + $0x140] sm:$0xff] }
  0x29   : > { %897 = vperm.xlu0 %1757, %v807_v24   ;;  %1672 = vmatmul.mubr.msk.bf16.gmra.mrb[8].mxu0 %vm451_vm0, %v1771_v25  ;;  %v840_v5 = vld [vmem:[%s1893_s5 + $0x158] sm:$0xff]  ;;  %v839_v6 = vld [vmem:[%s1893_s5 + $0x150] sm:$0xff]  ;;  %v842_v7 = vld [vmem:[%s1893_s5 + $0x168] sm:$0xff] }
  0x2a   : > { %1696 = vmatmul.mubr.msk.bf16.gmra.mrb[8].mxu1 %vm451_vm0, %v1772_v26  ;;  %1675 = vmatprep.mubr.msk.bf16.mxu0 %vm451_vm0, %v1773_v27  ;;  %v841_v8 = vld [vmem:[%s1893_s5 + $0x160] sm:$0xff]  ;;  %v844_v9 = vld [vmem:[%s1893_s5 + $0x178] sm:$0xff]  ;;  %v843_v10 = vld [vmem:[%s1893_s5 + $0x170] sm:$0xff] }
  0x2b   : > { %1699 = vmatprep.mubr.msk.bf16.mxu1 %vm451_vm0, %v1774_v28 }
  0x2c   : > { %912 = vperm.xlu1 %1758, %v810_v29  }
  0x2d   : > { %907 = vperm.xlu0 %1757, %v809_v30  }
  0x30   : > { %922 = vperm.xlu1 %1758, %v812_v31  }
  0x31   : > { %917 = vperm.xlu0 %1757, %v811_v32   ;;  %1676 = vmatmul.mubr.msk.bf16.gmra.mrb[12].mxu0 %vm451_vm0, %v1775_v33 }
  0x32   : > { %1700 = vmatmul.mubr.msk.bf16.gmra.mrb[12].mxu1 %vm451_vm0, %v1776_v34  ;;  %1679 = vmatprep.mubr.msk.bf16.mxu0 %vm451_vm0, %v1777_v35 }
  0x33   : > { %1703 = vmatprep.mubr.msk.bf16.mxu1 %vm451_vm0, %v1778_v36 }
  0x34   : > { %932 = vperm.xlu1 %1758, %v814_v37  }
  0x35   : > { %927 = vperm.xlu0 %1757, %v813_v38  }
  0x38   : > { %942 = vperm.xlu1 %1758, %v816_v39  }
  0x39   : > { %937 = vperm.xlu0 %1757, %v815_v41   ;;  %1680 = vmatmul.mubr.msk.bf16.gmra.mrb[16].mxu0 %vm451_vm0, %v1779_v40 }
  0x3a   : > { %1704 = vmatmul.mubr.msk.bf16.gmra.mrb[16].mxu1 %vm451_vm0, %v1780_v42  ;;  %1683 = vmatprep.mubr.msk.bf16.mxu0 %vm451_vm0, %v1781_v43 }
  0x3b   : > { %1707 = vmatprep.mubr.msk.bf16.mxu1 %vm451_vm0, %v1782_v44 }
  0x3c   : > { %952 = vperm.xlu1 %1758, %v818_v45   ;;  %v2060_v45 = vld [vmem:[%s2282_s2] ss:$0 sm:$0xff] }
  0x3d   : > { %947 = vperm.xlu0 %1757, %v817_v46  }
  0x40   : > { %962 = vperm.xlu1 %1758, %v820_v47  }
  0x41   : > { %957 = vperm.xlu0 %1757, %v819_v49   ;;  %1684 = vmatmul.mubr.msk.bf16.gmra.mrb[20].mxu0 %vm451_vm0, %v1783_v48 }
  0x42   : > { %1708 = vmatmul.mubr.msk.bf16.gmra.mrb[20].mxu1 %vm451_vm0, %v1784_v50 }
  0x44   : > { %972 = vperm.xlu1 %1758, %v822_v51  }
  0x45   : > { %967 = vperm.xlu0 %1757, %v821_v52  }
  0x48   : > { %982 = vperm.xlu1 %1758, %v824_v53  }
  0x49   : > { %977 = vperm.xlu0 %1757, %v823_v54  }
  0x4c   : > { %992 = vperm.xlu1 %1758, %v826_v55  }
  0x4d   : > { %987 = vperm.xlu0 %1757, %v825_v56  }
  0x50   : > { %1002 = vperm.xlu1 %1758, %v828_v57  }
  0x51   : > { %997 = vperm.xlu0 %1757, %v827_v58  }
  0x54   : > { %1012 = vperm.xlu1 %1758, %v830_v59  }
  0x55   : > { %1007 = vperm.xlu0 %1757, %v829_v60  }
  0x58   : > { %1022 = vperm.xlu1 %1758, %v832_v61  }
  0x59   : > { %1017 = vperm.xlu0 %1757, %v831_v62  }
  0x5c   : > { %1032 = vperm.xlu1 %1758, %v834_v63  }
  0x5d   : > { %1027 = vperm.xlu0 %1757, %v833_v0  }
  0x60   : > { %1042 = vperm.xlu1 %1758, %v836_v1  }
  0x61   : > { %1037 = vperm.xlu0 %1757, %v835_v2  }
  0x64   : > { %1052 = vperm.xlu1 %1758, %v838_v3  }
  0x65   : > { %1047 = vperm.xlu0 %1757, %v837_v4  }
  0x68   : > { %1062 = vperm.xlu1 %1758, %v840_v5  }
  0x69   : > { %1057 = vperm.xlu0 %1757, %v839_v6  }
  0x6c   : > { %1072 = vperm.xlu1 %1758, %v842_v7  }
  0x6d   : > { %1067 = vperm.xlu0 %1757, %v841_v8  }
  0x70   : > { %1082 = vperm.xlu1 %1758, %v844_v9  }
  0x71   : > { %1077 = vperm.xlu0 %1757, %v843_v10  }
  0x93   : > { %v858_v11 = vpop.permute.xlu1 %857  ;;  %v848_v12 = vpop.permute.xlu0 %847 }
  0x97   : > { %v2001_v13 = vpop.permute.xlu1 %862 }
  0x98   : > { %v2003_v14 = vpop.permute.xlu0 %852 }
  0x9b   : > { %v2005_v15 = vpop.permute.xlu1 %872 }
  0x9c   : > { %v2007_v16 = vpop.permute.xlu0 %867 }
  0x9f   : > { %v2009_v17 = vpop.permute.xlu1 %882 }
  0xa0   : > { %v2011_v18 = vpop.permute.xlu0 %877 }
  0xa3   : > { %v2013_v19 = vpop.permute.xlu1 %892 }
  0xa4   : > { %v2015_v20 = vpop.permute.xlu0 %887 }
  0xa7   : > { %v2017_v21 = vpop.permute.xlu1 %902 }
  0xa8   : > { %v2019_v22 = vpop.permute.xlu0 %897 }
  0xab   : > { %v2021_v23 = vpop.permute.xlu1 %912 }
  0xac   : > { %v2023_v24 = vpop.permute.xlu0 %907 }
  0xaf   : > { %v2025_v25 = vpop.permute.xlu1 %922 }
  0xb0   : > { %v2027_v26 = vpop.permute.xlu0 %917 }
  0xb3   : > { %v2029_v27 = vpop.permute.xlu1 %932 }
  0xb4   : > { %v2031_v28 = vpop.permute.xlu0 %927 }
  0xb7   : > { %v2033_v29 = vpop.permute.xlu1 %942 }
  0xb8   : > { %v2035_v30 = vpop.permute.xlu0 %937 }
  0xbb   : > { %v2037_v31 = vpop.permute.xlu1 %952 }
  0xbc   : > { %v2039_v32 = vpop.permute.xlu0 %947 }
  0xbf   : > { %v2041_v33 = vpop.permute.xlu1 %962 }
  0xc0   : > { %v2043_v34 = vpop.permute.xlu0 %957 }
  0xc3   : > { %v973_v35 = vpop.permute.xlu1 %972 }
  0xc4   : > { %v968_v36 = vpop.permute.xlu0 %967 }
  0xc7   : > { %v983_v37 = vpop.permute.xlu1 %982 }
  0xc8   : > { %v978_v38 = vpop.permute.xlu0 %977 }
  0xcb   : > { %v2045_v39 = vpop.permute.xlu1 %992 }
  0xcc   : > { %v2047_v40 = vpop.permute.xlu0 %987 }
  0xcf   : > { %v2049_v41 = vpop.permute.xlu1 %1002 }
  0xd0   : > { %v2051_v42 = vpop.permute.xlu0 %997 }
  0xd3   : > { %v2053_v43 = vpop.permute.xlu1 %1012 }
  0xd4   : > { %v2055_v44 = vpop.permute.xlu0 %1007 }
  0xd7   : > { %v2062_v46 = vpop.permute.xlu1 %1022 }
  0xd8   : > { %v2064_v47 = vpop.permute.xlu0 %1017 }
  0xdb   : > { %v2081_v10 = vpop.permute.xlu1 %1032 }
  0xec   : > { %v1665_v48 = vpop.f32.mrb[0].mxu0 }
  0xed   : > { %v567_v49 = vadd.f32 %v1665_v48, %v2060_v45  ;;  %v1689_v50 = vpop.f32.mrb[0].mxu1  ;;  %v558_v51 = vpop.f32.mrb[1].mxu0 }
  0xee   : > { %v663_v52 = vadd.f32 %v1689_v50, %v2060_v45  ;;  %v559_v53 = vadd.f32 %v2060_v45, %v558_v51  ;;  %v654_v54 = vpop.f32.mrb[1].mxu1  ;;  %v1666_v55 = vpop.f32.mrb[2].mxu0 }
  0xef   : > { %v751_v56 = vmax.f32 %v567_v49, 0.0  ;;  %v655_v57 = vadd.f32 %v2060_v45, %v654_v54  ;;  %v570_v58 = vadd.f32 %v1666_v55, %v2060_v45  ;;  %v1690_v59 = vpop.f32.mrb[2].mxu1  ;;  %v561_v60 = vpop.f32.mrb[3].mxu0 }
  0xf0   : > { %v775_v61 = vmax.f32 %v663_v52, 0.0  ;;  %v749_v62 = vmax.f32 %v559_v53, 0.0  ;;  %v666_v63 = vadd.f32 %v1690_v59, %v2060_v45  ;;  %v562_v0 = vadd.f32 %v2060_v45, %v561_v60  ;;  %v657_v1 = vpop.f32.mrb[3].mxu1  ;;  %v2084_v51 = vpop.permute.xlu0 %1027 }
  0xf1   : > { %v1087_v2 = vmul.f32 %v858_v11, %v751_v56  ;;  %v773_v3 = vmax.f32 %v655_v57, 0.0  ;;  %v752_v4 = vmax.f32 %v570_v58, 0.0  ;;  %v658_v5 = vadd.f32 %v2060_v45, %v657_v1 }
  0xf2   : > { %v1111_v6 = vmul.f32 %v978_v38, %v775_v61  ;;  %v1085_v7 = vmul.f32 %v848_v12, %v749_v62  ;;  %v776_v8 = vmax.f32 %v666_v63, 0.0  ;;  %v750_v9 = vmax.f32 %v562_v0, 0.0 }
  0xf3   : > { %v1587_v48 = vpack.c.bf16 %v1087_v2, %v1087_v2  ;;  %v1109_v49 = vmul.f32 %v968_v36, %v773_v3  ;;  %v1088_v11 = vmul.f32 %v2001_v13, %v752_v4  ;;  %v774_v50 = vmax.f32 %v658_v5, 0.0 }
  0xf4   : > { %v1611_v52 = vpack.c.bf16 %v1111_v6, %v1111_v6  ;;  %v1585_v53 = vpack.c.bf16 %v1085_v7, %v1085_v7  ;;  %v1112_v54 = vmul.f32 %v983_v37, %v776_v8  ;;  %v1086_v55 = vmul.f32 %v2003_v14, %v750_v9  ;;  %v1669_v38 = vpop.f32.mrb[4].mxu0 }
  0xf5   : > { %1328 = vst.msk [vmem:[%s2079_s15 + $0x8] sm:$0xf] %vm1325_vm1, %v1587_v48  ;;  %v1609_v12 = vpack.c.bf16 %v1109_v49, %v1109_v49  ;;  %v1588_v56 = vpack.c.bf16 %v1088_v11, %v1088_v11  ;;  %v1110_v36 = vmul.f32 %v973_v35, %v774_v50  ;;  %v583_v57 = vadd.f32 %v1669_v38, %v2060_v45  ;;  %v1693_v13 = vpop.f32.mrb[4].mxu1  ;;  %v574_v58 = vpop.f32.mrb[5].mxu0 }
  0xf6   : > { %1352 = vst.msk [vmem:[%s2079_s15 + $0x68] sm:$0xf] %vm1325_vm1, %v1611_v52  ;;  %1326 = vst.msk [vmem:[%s2079_s15] sm:$0xf] %vm1325_vm1, %v1585_v53  ;;  %v1612_v37 = vpack.c.bf16 %v1112_v54, %v1112_v54  ;;  %v1586_v14 = vpack.c.bf16 %v1086_v55, %v1086_v55  ;;  %v679_v59 = vadd.f32 %v1693_v13, %v2060_v45  ;;  %v670_v61 = vpop.f32.mrb[5].mxu1  ;;  %v1670_v62 = vpop.f32.mrb[6].mxu0 }
  0xf7   : > { %v575_v60 = vadd.f32 %v2060_v45, %v574_v58  ;;  %1350 = vst.msk [vmem:[%s2079_s15 + $0x60] sm:$0xf] %vm1325_vm1, %v1609_v12  ;;  %1329 = vst.msk [vmem:[%s2079_s15 + $0xc] sm:$0xf] %vm1325_vm1, %v1588_v56  ;;  %v1610_v35 = vpack.c.bf16 %v1110_v36, %v1110_v36  ;;  %v755_v63 = vmax.f32 %v583_v57, 0.0  ;;  %v671_v0 = vadd.f32 %v2060_v45, %v670_v61  ;;  %v1694_v2 = vpop.f32.mrb[6].mxu1  ;;  %v2114_v55 = vpop.permute.xlu1 %1042 }
  0xf8   : > { %v586_v1 = vadd.f32 %v1670_v62, %v2060_v45  ;;  %v577_v3 = vpop.f32.mrb[7].mxu0  ;;  %1353 = vst.msk [vmem:[%s2079_s15 + $0x6c] sm:$0xf] %vm1325_vm1, %v1612_v37  ;;  %1327 = vst.msk [vmem:[%s2079_s15 + $0x4] sm:$0xf] %vm1325_vm1, %v1586_v14  ;;  %v779_v4 = vmax.f32 %v679_v59, 0.0  ;;  %v682_v6 = vadd.f32 %v1694_v2, %v2060_v45  ;;  %v2118_v36 = vpop.permute.xlu0 %1037 }
  0xf9   : > { %v753_v5 = vmax.f32 %v575_v60, 0.0  ;;  %v578_v7 = vadd.f32 %v2060_v45, %v577_v3  ;;  %v673_v8 = vpop.f32.mrb[7].mxu1  ;;  %1351 = vst.msk [vmem:[%s2079_s15 + $0x64] sm:$0xf] %vm1325_vm1, %v1610_v35  ;;  %v1091_v9 = vmul.f32 %v2011_v18, %v755_v63  ;;  %v777_v48 = vmax.f32 %v671_v0, 0.0 }
  0xfa   : > { %v756_v49 = vmax.f32 %v586_v1, 0.0  ;;  %v674_v11 = vadd.f32 %v2060_v45, %v673_v8  ;;  %v1115_v50 = vmul.f32 %v2051_v42, %v779_v4  ;;  %v780_v53 = vmax.f32 %v682_v6, 0.0 }
  0xfb   : > { %v1089_v52 = vmul.f32 %v2007_v16, %v753_v5  ;;  %v754_v54 = vmax.f32 %v578_v7, 0.0  ;;  %v1591_v38 = vpack.c.bf16 %v1091_v9, %v1091_v9  ;;  %v1113_v12 = vmul.f32 %v2047_v40, %v777_v48 }
  0xfc   : > { %v1092_v56 = vmul.f32 %v2009_v17, %v756_v49  ;;  %v778_v18 = vmax.f32 %v674_v11, 0.0  ;;  %v1615_v57 = vpack.c.bf16 %v1115_v50, %v1115_v50  ;;  %v1116_v42 = vmul.f32 %v2049_v41, %v780_v53  ;;  %v1673_v58 = vpop.f32.mrb[8].mxu0 }
  0xfd   : > { %v1589_v13 = vpack.c.bf16 %v1089_v52, %v1089_v52  ;;  %v1090_v16 = vmul.f32 %v2005_v15, %v754_v54  ;;  %1332 = vst.msk [vmem:[%s2079_s15 + $0x18] sm:$0xf] %vm1325_vm1, %v1591_v38  ;;  %v1613_v37 = vpack.c.bf16 %v1113_v12, %v1113_v12  ;;  %v599_v17 = vadd.f32 %v1673_v58, %v2060_v45  ;;  %v1697_v59 = vpop.f32.mrb[8].mxu1  ;;  %v590_v60 = vpop.f32.mrb[9].mxu0 }
  0xfe   : > { %v1592_v40 = vpack.c.bf16 %v1092_v56, %v1092_v56  ;;  %v1114_v14 = vmul.f32 %v2045_v39, %v778_v18  ;;  %1356 = vst.msk [vmem:[%s2079_s15 + $0x78] sm:$0xf] %vm1325_vm1, %v1615_v57  ;;  %v1616_v15 = vpack.c.bf16 %v1116_v42, %v1116_v42  ;;  %v695_v61 = vadd.f32 %v1697_v59, %v2060_v45  ;;  %v686_v35 = vpop.f32.mrb[9].mxu1  ;;  %v1674_v63 = vpop.f32.mrb[10].mxu0 }
  0xff   : > { %1330 = vst.msk [vmem:[%s2079_s15 + $0x10] sm:$0xf] %vm1325_vm1, %v1589_v13  ;;  %v1590_v41 = vpack.c.bf16 %v1090_v16, %v1090_v16  ;;  %v591_v62 = vadd.f32 %v2060_v45, %v590_v60  ;;  %1354 = vst.msk [vmem:[%s2079_s15 + $0x70] sm:$0xf] %vm1325_vm1, %v1613_v37  ;;  %v759_v0 = vmax.f32 %v599_v17, 0.0  ;;  %v687_v1 = vadd.f32 %v2060_v45, %v686_v35  ;;  %v1698_v3 = vpop.f32.mrb[10].mxu1  ;;  %v2150_v12 = vpop.permute.xlu1 %1052 }
 0x100   : > { %1333 = vst.msk [vmem:[%s2079_s15 + $0x1c] sm:$0xf] %vm1325_vm1, %v1592_v40  ;;  %v1614_v39 = vpack.c.bf16 %v1114_v14, %v1114_v14  ;;  %v602_v2 = vadd.f32 %v1674_v63, %v2060_v45  ;;  %v593_v4 = vpop.f32.mrb[11].mxu0  ;;  %1357 = vst.msk [vmem:[%s2079_s15 + $0x7c] sm:$0xf] %vm1325_vm1, %v1616_v15  ;;  %v783_v5 = vmax.f32 %v695_v61, 0.0  ;;  %v698_v7 = vadd.f32 %v1698_v3, %v2060_v45  ;;  %v2154_v13 = vpop.permute.xlu0 %1047 }
 0x101   : > { %1331 = vst.msk [vmem:[%s2079_s15 + $0x14] sm:$0xf] %vm1325_vm1, %v1590_v41  ;;  %v757_v6 = vmax.f32 %v591_v62, 0.0  ;;  %v594_v8 = vadd.f32 %v2060_v45, %v593_v4  ;;  %v689_v9 = vpop.f32.mrb[11].mxu1  ;;  %v1095_v48 = vmul.f32 %v2019_v22, %v759_v0  ;;  %v781_v49 = vmax.f32 %v687_v1, 0.0 }
 0x102   : > { %1355 = vst.msk [vmem:[%s2079_s15 + $0x74] sm:$0xf] %vm1325_vm1, %v1614_v39  ;;  %v760_v11 = vmax.f32 %v602_v2, 0.0  ;;  %v690_v50 = vadd.f32 %v2060_v45, %v689_v9  ;;  %v1119_v52 = vmul.f32 %v2064_v47, %v783_v5  ;;  %v784_v54 = vmax.f32 %v698_v7, 0.0 }
 0x103   : > { %v1093_v53 = vmul.f32 %v2015_v20, %v757_v6  ;;  %v758_v38 = vmax.f32 %v594_v8, 0.0  ;;  %v1595_v56 = vpack.c.bf16 %v1095_v48, %v1095_v48  ;;  %v1117_v18 = vmul.f32 %v2055_v44, %v781_v49 }
 0x104   : > { %v1096_v57 = vmul.f32 %v2017_v21, %v760_v11  ;;  %v782_v22 = vmax.f32 %v690_v50, 0.0  ;;  %v1619_v42 = vpack.c.bf16 %v1119_v52, %v1119_v52  ;;  %v1120_v47 = vmul.f32 %v2062_v46, %v784_v54  ;;  %v1677_v58 = vpop.f32.mrb[12].mxu0  ;;  %v1063_v50 = vpop.permute.xlu1 %1062 }
 0x105   : > { %v1593_v16 = vpack.c.bf16 %v1093_v53, %v1093_v53  ;;  %v1094_v20 = vmul.f32 %v2013_v19, %v758_v38  ;;  %1336 = vst.msk [vmem:[%s2079_s15 + $0x28] sm:$0xf] %vm1325_vm1, %v1595_v56  ;;  %v1617_v37 = vpack.c.bf16 %v1117_v18, %v1117_v18  ;;  %v615_v21 = vadd.f32 %v1677_v58, %v2060_v45  ;;  %v1701_v14 = vpop.f32.mrb[12].mxu1  ;;  %v606_v17 = vpop.f32.mrb[13].mxu0 }
 0x106   : > { %v1596_v44 = vpack.c.bf16 %v1096_v57, %v1096_v57  ;;  %v1118_v40 = vmul.f32 %v2053_v43, %v782_v22  ;;  %1360 = vst.msk [vmem:[%s2079_s15 + $0x88] sm:$0xf] %vm1325_vm1, %v1619_v42  ;;  %v1620_v19 = vpack.c.bf16 %v1120_v47, %v1120_v47  ;;  %v711_v59 = vadd.f32 %v1701_v14, %v2060_v45  ;;  %v702_v15 = vpop.f32.mrb[13].mxu1  ;;  %v1678_v41 = vpop.f32.mrb[14].mxu0 }
 0x107   : > { %1334 = vst.msk [vmem:[%s2079_s15 + $0x20] sm:$0xf] %vm1325_vm1, %v1593_v16  ;;  %v1594_v46 = vpack.c.bf16 %v1094_v20, %v1094_v20  ;;  %v607_v60 = vadd.f32 %v2060_v45, %v606_v17  ;;  %1358 = vst.msk [vmem:[%s2079_s15 + $0x80] sm:$0xf] %vm1325_vm1, %v1617_v37  ;;  %v763_v61 = vmax.f32 %v615_v21, 0.0  ;;  %v703_v62 = vadd.f32 %v2060_v45, %v702_v15  ;;  %v1702_v63 = vpop.f32.mrb[14].mxu1  ;;  %v1058_v38 = vpop.permute.xlu0 %1057 }
 0x108   : > { %1337 = vst.msk [vmem:[%s2079_s15 + $0x2c] sm:$0xf] %vm1325_vm1, %v1596_v44  ;;  %v1618_v43 = vpack.c.bf16 %v1118_v40, %v1118_v40  ;;  %v618_v35 = vadd.f32 %v1678_v41, %v2060_v45  ;;  %v609_v39 = vpop.f32.mrb[15].mxu0  ;;  %1361 = vst.msk [vmem:[%s2079_s15 + $0x8c] sm:$0xf] %vm1325_vm1, %v1620_v19  ;;  %v787_v0 = vmax.f32 %v711_v59, 0.0  ;;  %v714_v2 = vadd.f32 %v1702_v63, %v2060_v45 }
 0x109   : > { %1335 = vst.msk [vmem:[%s2079_s15 + $0x24] sm:$0xf] %vm1325_vm1, %v1594_v46  ;;  %v761_v1 = vmax.f32 %v607_v60, 0.0  ;;  %v610_v3 = vadd.f32 %v2060_v45, %v609_v39  ;;  %v705_v4 = vpop.f32.mrb[15].mxu1  ;;  %v1099_v5 = vmul.f32 %v2027_v26, %v763_v61  ;;  %v785_v6 = vmax.f32 %v703_v62, 0.0 }
 0x10a   : > { %1359 = vst.msk [vmem:[%s2079_s15 + $0x84] sm:$0xf] %vm1325_vm1, %v1618_v43  ;;  %v764_v7 = vmax.f32 %v618_v35, 0.0  ;;  %v706_v8 = vadd.f32 %v2060_v45, %v705_v4  ;;  %v1123_v9 = vmul.f32 %v2118_v36, %v787_v0  ;;  %v788_v49 = vmax.f32 %v714_v2, 0.0 }
 0x10b   : > { %v1097_v48 = vmul.f32 %v2023_v24, %v761_v1  ;;  %v762_v11 = vmax.f32 %v610_v3, 0.0  ;;  %v1599_v52 = vpack.c.bf16 %v1099_v5, %v1099_v5  ;;  %v1121_v53 = vmul.f32 %v2084_v51, %v785_v6  ;;  %v1068_v2 = vpop.permute.xlu0 %1067 }
 0x10c   : > { %v1100_v54 = vmul.f32 %v2025_v25, %v764_v7  ;;  %v786_v26 = vmax.f32 %v706_v8, 0.0  ;;  %v1623_v56 = vpack.c.bf16 %v1123_v9, %v1123_v9  ;;  %v1124_v57 = vmul.f32 %v2114_v55, %v788_v49  ;;  %v1681_v22 = vpop.f32.mrb[16].mxu0 }
 0x10d   : > { %v1597_v18 = vpack.c.bf16 %v1097_v48, %v1097_v48  ;;  %v1098_v36 = vmul.f32 %v2021_v23, %v762_v11  ;;  %1340 = vst.msk [vmem:[%s2079_s15 + $0x38] sm:$0xf] %vm1325_vm1, %v1599_v52  ;;  %v1621_v24 = vpack.c.bf16 %v1121_v53, %v1121_v53  ;;  %v631_v25 = vadd.f32 %v1681_v22, %v2060_v45  ;;  %v1705_v16 = vpop.f32.mrb[16].mxu1  ;;  %v622_v47 = vpop.f32.mrb[17].mxu0 }
 0x10e   : > { %v1600_v42 = vpack.c.bf16 %v1100_v54, %v1100_v54  ;;  %v1122_v51 = vmul.f32 %v2081_v10, %v786_v26  ;;  %1364 = vst.msk [vmem:[%s2079_s15 + $0x98] sm:$0xf] %vm1325_vm1, %v1623_v56  ;;  %v1624_v23 = vpack.c.bf16 %v1124_v57, %v1124_v57  ;;  %v727_v20 = vadd.f32 %v1705_v16, %v2060_v45  ;;  %v718_v37 = vpop.f32.mrb[17].mxu1  ;;  %v1682_v44 = vpop.f32.mrb[18].mxu0 }
 0x10f   : > { %1338 = vst.msk [vmem:[%s2079_s15 + $0x30] sm:$0xf] %vm1325_vm1, %v1597_v18  ;;  %v1598_v55 = vpack.c.bf16 %v1098_v36, %v1098_v36  ;;  %v623_v58 = vadd.f32 %v2060_v45, %v622_v47  ;;  %1362 = vst.msk [vmem:[%s2079_s15 + $0x90] sm:$0xf] %vm1325_vm1, %v1621_v24  ;;  %v767_v40 = vmax.f32 %v631_v25, 0.0  ;;  %v719_v21 = vadd.f32 %v2060_v45, %v718_v37  ;;  %v1706_v17 = vpop.f32.mrb[18].mxu1 }
 0x110   : > { %1341 = vst.msk [vmem:[%s2079_s15 + $0x3c] sm:$0xf] %vm1325_vm1, %v1600_v42  ;;  %v1622_v10 = vpack.c.bf16 %v1122_v51, %v1122_v51  ;;  %v634_v14 = vadd.f32 %v1682_v44, %v2060_v45  ;;  %v625_v19 = vpop.f32.mrb[19].mxu0  ;;  %1365 = vst.msk [vmem:[%s2079_s15 + $0x9c] sm:$0xf] %vm1325_vm1, %v1624_v23  ;;  %v791_v46 = vmax.f32 %v727_v20, 0.0  ;;  %v730_v60 = vadd.f32 %v1706_v17, %v2060_v45  ;;  %v1078_v23 = vpop.permute.xlu0 %1077 }
 0x111   : > { %1339 = vst.msk [vmem:[%s2079_s15 + $0x34] sm:$0xf] %vm1325_vm1, %v1598_v55  ;;  %v765_v59 = vmax.f32 %v623_v58, 0.0  ;;  %v626_v15 = vadd.f32 %v2060_v45, %v625_v19  ;;  %v721_v41 = vpop.f32.mrb[19].mxu1  ;;  %v1103_v43 = vmul.f32 %v2035_v30, %v767_v40  ;;  %v789_v61 = vmax.f32 %v719_v21, 0.0  ;;  %v1073_v30 = vpop.permute.xlu1 %1072 }
 0x112   : > { %1363 = vst.msk [vmem:[%s2079_s15 + $0x94] sm:$0xf] %vm1325_vm1, %v1622_v10  ;;  %v768_v62 = vmax.f32 %v634_v14, 0.0  ;;  %v722_v35 = vadd.f32 %v2060_v45, %v721_v41  ;;  %v1127_v63 = vmul.f32 %v1058_v38, %v791_v46  ;;  %v792_v0 = vmax.f32 %v730_v60, 0.0 }
 0x113   : > { %v1101_v39 = vmul.f32 %v2031_v28, %v765_v59  ;;  %v766_v1 = vmax.f32 %v626_v15, 0.0  ;;  %v1603_v3 = vpack.c.bf16 %v1103_v43, %v1103_v43  ;;  %v1125_v4 = vmul.f32 %v2154_v13, %v789_v61 }
 0x114   : > { %v1104_v5 = vmul.f32 %v2033_v29, %v768_v62  ;;  %v790_v6 = vmax.f32 %v722_v35, 0.0  ;;  %v1627_v7 = vpack.c.bf16 %v1127_v63, %v1127_v63  ;;  %v1128_v9 = vmul.f32 %v1063_v50, %v792_v0  ;;  %v1685_v49 = vpop.f32.mrb[20].mxu0 }
 0x115   : > { %v1601_v8 = vpack.c.bf16 %v1101_v39, %v1101_v39  ;;  %v1102_v48 = vmul.f32 %v2029_v27, %v766_v1  ;;  %1344 = vst.msk [vmem:[%s2079_s15 + $0x48] sm:$0xf] %vm1325_vm1, %v1603_v3  ;;  %v1625_v28 = vpack.c.bf16 %v1125_v4, %v1125_v4  ;;  %v647_v52 = vadd.f32 %v1685_v49, %v2060_v45  ;;  %v1709_v29 = vpop.f32.mrb[20].mxu1  ;;  %v638_v53 = vpop.f32.mrb[21].mxu0 }
 0x116   : > { %v1604_v11 = vpack.c.bf16 %v1104_v5, %v1104_v5  ;;  %v1126_v13 = vmul.f32 %v2150_v12, %v790_v6  ;;  %1368 = vst.msk [vmem:[%s2079_s15 + $0xa8] sm:$0xf] %vm1325_vm1, %v1627_v7  ;;  %v1628_v27 = vpack.c.bf16 %v1128_v9, %v1128_v9  ;;  %v743_v54 = vadd.f32 %v1709_v29, %v2060_v45  ;;  %v734_v38 = vpop.f32.mrb[21].mxu1  ;;  %v1686_v56 = vpop.f32.mrb[22].mxu0 }
 0x117   : > { %1342 = vst.msk [vmem:[%s2079_s15 + $0x40] sm:$0xf] %vm1325_vm1, %v1601_v8  ;;  %v1602_v50 = vpack.c.bf16 %v1102_v48, %v1102_v48  ;;  %v639_v26 = vadd.f32 %v2060_v45, %v638_v53  ;;  %1366 = vst.msk [vmem:[%s2079_s15 + $0xa0] sm:$0xf] %vm1325_vm1, %v1625_v28  ;;  %v771_v18 = vmax.f32 %v647_v52, 0.0  ;;  %v735_v57 = vadd.f32 %v2060_v45, %v734_v38  ;;  %v1710_v22 = vpop.f32.mrb[22].mxu1  ;;  %v1083_v14 = vpop.permute.xlu1 %1082 }
 0x118   : > { %1345 = vst.msk [vmem:[%s2079_s15 + $0x4c] sm:$0xf] %vm1325_vm1, %v1604_v11  ;;  %v1626_v12 = vpack.c.bf16 %v1126_v13, %v1126_v13  ;;  %v650_v36 = vadd.f32 %v1686_v56, %v2060_v45  ;;  %v641_v24 = vpop.f32.mrb[23].mxu0  ;;  %1369 = vst.msk [vmem:[%s2079_s15 + $0xac] sm:$0xf] %vm1325_vm1, %v1628_v27  ;;  %v795_v42 = vmax.f32 %v743_v54, 0.0  ;;  %v746_v25 = vadd.f32 %v1710_v22, %v2060_v45 }
 0x119   : > { %1343 = vst.msk [vmem:[%s2079_s15 + $0x44] sm:$0xf] %vm1325_vm1, %v1602_v50  ;;  %v769_v51 = vmax.f32 %v639_v26, 0.0  ;;  %v642_v16 = vadd.f32 %v2060_v45, %v641_v24  ;;  %v737_v47 = vpop.f32.mrb[23].mxu1  ;;  %v1107_v55 = vmul.f32 %v2043_v34, %v771_v18  ;;  %v793_v20 = vmax.f32 %v735_v57, 0.0 }
 0x11a   : > { %1367 = vst.msk [vmem:[%s2079_s15 + $0xa4] sm:$0xf] %vm1325_vm1, %v1626_v12  ;;  %v772_v58 = vmax.f32 %v650_v36, 0.0  ;;  %v738_v37 = vadd.f32 %v2060_v45, %v737_v47  ;;  %v1131_v44 = vmul.f32 %v1078_v23, %v795_v42  ;;  %v796_v40 = vmax.f32 %v746_v25, 0.0 }
 0x11b   : > { %v1105_v10 = vmul.f32 %v2039_v32, %v769_v51  ;;  %v770_v21 = vmax.f32 %v642_v16, 0.0  ;;  %v1607_v17 = vpack.c.bf16 %v1107_v55, %v1107_v55  ;;  %v1129_v19 = vmul.f32 %v1068_v2, %v793_v20 }
 0x11c   : > { %v1108_v46 = vmul.f32 %v2041_v33, %v772_v58  ;;  %v794_v34 = vmax.f32 %v738_v37, 0.0  ;;  %v1631_v59 = vpack.c.bf16 %v1131_v44, %v1131_v44  ;;  %v1132_v45 = vmul.f32 %v1083_v14, %v796_v40 }
 0x11d   : > { %v1605_v60 = vpack.c.bf16 %v1105_v10, %v1105_v10  ;;  %v1106_v32 = vmul.f32 %v2037_v31, %v770_v21  ;;  %1348 = vst.msk [vmem:[%s2079_s15 + $0x58] sm:$0xf] %vm1325_vm1, %v1607_v17  ;;  %v1629_v15 = vpack.c.bf16 %v1129_v19, %v1129_v19 }
 0x11e   : > { %v1608_v41 = vpack.c.bf16 %v1108_v46, %v1108_v46  ;;  %v1130_v43 = vmul.f32 %v1073_v30, %v794_v34  ;;  %1372 = vst.msk [vmem:[%s2079_s15 + $0xb8] sm:$0xf] %vm1325_vm1, %v1631_v59  ;;  %v1632_v61 = vpack.c.bf16 %v1132_v45, %v1132_v45 }
 0x11f   : > { %1346 = vst.msk [vmem:[%s2079_s15 + $0x50] sm:$0xf] %vm1325_vm1, %v1605_v60  ;;  %v1606_v33 = vpack.c.bf16 %v1106_v32, %v1106_v32  ;;  %1370 = vst.msk [vmem:[%s2079_s15 + $0xb0] sm:$0xf] %vm1325_vm1, %v1629_v15 }
 0x120   : > { %1349 = vst.msk [vmem:[%s2079_s15 + $0x5c] sm:$0xf] %vm1325_vm1, %v1608_v41  ;;  %v1630_v62 = vpack.c.bf16 %v1130_v43, %v1130_v43  ;;  %1373 = vst.msk [vmem:[%s2079_s15 + $0xbc] sm:$0xf] %vm1325_vm1, %v1632_v61 }
 0x121   : > { %1347 = vst.msk [vmem:[%s2079_s15 + $0x54] sm:$0xf] %vm1325_vm1, %v1606_v33 }
 0x122   : > { %1371 = vst.msk [vmem:[%s2079_s15 + $0xb4] sm:$0xf] %vm1325_vm1, %v1630_v62 }
 0x123 PF: > { %s14_s19 = sadd.s32 1, %s1823_s19   ;;  %s2285_s15 = smov %s1815_s17 }
 0x124   : > { %p11_p7 = scmp.ge.s32.totalorder %s14_s19, 18   ;;  %s2286_s16 = smov %s1819_s18 }
 0x125   : > { %s2287_s17 = smov %s2290_s20  ;;  %s2288_s18 = smov %s2294_s21 }
 0x126   :  { %13 = sbr.rel (!%p11_p7) target bundleno = 3 (0x3), region = 69 }

// kernel: vgg_loss.7
= control target key start
LH: loop header
LB: loop body
LE: loop exit
PB: predicated region body
PF: predicated region fallthrough
CT: control target
= control target key end

     0   :  { %s3789_s21 = smov 0   ;;  %s3791_s22 = smov 0   ;;  %s5038_s0 = inlined_call_operand.vmem [shape: bf16[4,1536,64], index: 0, kind: input, shape index: {}, may-alias: {0,1,2}]   ;;  %s5039_s1 = inlined_call_operand.vmem [shape: bf16[4,1536,64], index: 1, kind: input, shape index: {}, may-alias: {0,1,2}]   ;;  %s5040_s2 = inlined_call_operand.vmem [shape: bf16[4,1536,64], index: 2, kind: input, shape index: {}, may-alias: {0,1,2}]   ;;  %s5041_s3 = inlined_call_operand.vmem [shape: bf16[3,192,64], index: 3, kind: input, shape index: {}]   ;;  %s5042_s4 = inlined_call_operand.vmem [shape: f32[1,64], index: 4, kind: input, shape index: {}]   ;;  %s5043_s5 = inlined_call_operand.vmem [shape: f32[1536,1], index: 5, kind: input, shape index: {}]   ;;  %s5044_s6 = inlined_call_operand.vmem [shape: bf16[4,1536,64], index: 6, kind: output, shape index: {}]  }
   0x1   :  { %5045 = sst [smem:[#allocation5_spill]] %s5039_s1  ;;  %s3793_s23 = smov 0  }
   0x2   :  { %s3795_s24 = smov 0   ;;  %s3797_s25 = smov 0  }
   0x3 LB: > { %s25_s26 = sadd.s32 1, %s3742_s23  ;;  %s28_s27 = sadd.s32 1, %s3746_s24  ;;  %s3750_s25 = sphi %s3797_s25, %s16_s25   ;;  %s3746_s24 = sphi %s3795_s24, %s5055_s24   ;;  %s3742_s23 = sphi %s3793_s23, %s5054_s23   ;;  %s3738_s22 = sphi %s3791_s22, %s5053_s22   ;;  %s3734_s21 = sphi %s3789_s21, %s5052_s21  }
   0x4   : > { %p26_p0 = scmp.ge.s32.totalorder %s25_s26, 4  ;;  %p3270_p1 = scmp.ge.s32.totalorder %s3750_s25, 1 }
   0x5   : > { %p310_p2 = scmp.lt.s32.totalorder %s3750_s25, 17 }
   0x6   : > { %s5057_s26 = smov (%p26_p0, %s25_s26), 0  ;;  %s5059_s27 = smov (!%p26_p0, %s28_s27), %s3746_s24 }
   0x7   : > { %5046 = sst [smem:[#allocation3_spill]] %s5057_s26  ;;  %p311_p3 = pnand %p3270_p1, %p310_p2 }
   0x8   : > { %p30_p4 = scmp.ge.s32.totalorder %s5059_s27, 4  ;;  %p384_p5 = scmp.lt.s32.totalorder (!%p311_p3), %s3738_s22, 3  ;;  %v3657_v0 = vld [vmem:[%s5041_s3 + $0x60] sm:$0xff] (!%p311_p3)   ;;  %v3752_v1 = vmov (!%p311_p3), 0   ;;  %v3658_v2 = vld [vmem:[%s5041_s3 + $0x68] sm:$0xff] (!%p311_p3)   ;;  %v3661_v3 = vld [vmem:[%s5041_s3 + $0x70] sm:$0xff] (!%p311_p3)  }
   0x9   : > { %314 = sbr.rel (%p311_p3) target bundleno = 667 (0x29b), region = 44  ;;  %3570 = vmatprep.subr.bf16.mxu1 (!%p311_p3), %v3752_v1  ;;  %994 = vmatprep.subr.bf16.mxu0 (!%p311_p3), %v3752_v1  ;;  %s5048_s1 = sld [smem:[#allocation5_spill]] (!%p311_p3)  ;;  %v3662_v4 = vld [vmem:[%s5041_s3 + $0x78] sm:$0xff] (!%p311_p3)   ;;  %v3665_v8 = vld [vmem:[%s5041_s3 + $0x80] sm:$0xff] (!%p311_p3)   ;;  %v3667_v11 = vld [vmem:[%s5041_s3 + $0x88] sm:$0xff] (!%p311_p3)   ;;  %vm746_vm0 = vcmask (!%p311_p3), 523264  }
   0xa   : > { %s5061_s27 = smov (%p30_p4, %s5059_s27), 0  ;;  %s397_s28 = smul.u32 (!%p311_p3), 48, %s3734_s21  ;;  %3582 = vmatpush1.bf16.msra.mxu1 (!%p311_p3), %v3657_v0  ;;  %995 = vmatpush1.bf16.msra.mxu0 (!%p311_p3), %v3657_v0  ;;  %v3669_v16 = vld [vmem:[%s5041_s3 + $0x90] sm:$0xff] (!%p311_p3)   ;;  %v3670_v18 = vld [vmem:[%s5041_s3 + $0x98] sm:$0xff] (!%p311_p3)   ;;  %v3671_v21 = vld [vmem:[%s5041_s3 + $0xa0] sm:$0xff] (!%p311_p3)   ;;  %vm3073_vm3 = vcmask (!%p311_p3), 519168  }
   0xb   : > { %5047 = sst [smem:[#allocation4_spill]] %s5061_s27  ;;  %3571 = vmatprep.subr.bf16.mxu1 (!%p311_p3), %v3752_v1  ;;  %996 = vmatprep.subr.bf16.mxu0 (!%p311_p3), %v3752_v1  ;;  %s3753_s19 = smov (!%p311_p3), 64   ;;  %v3672_v24 = vld [vmem:[%s5041_s3 + $0xa8] sm:$0xff] (!%p311_p3)   ;;  %v3673_v27 = vld [vmem:[%s5041_s3 + $0xb0] sm:$0xff] (!%p311_p3)   ;;  %v3674_v30 = vld [vmem:[%s5041_s3 + $0xb8] sm:$0xff] (!%p311_p3)  }
   0xc   : > { %p400_p6 = scmp.lt.s32.totalorder (!%p311_p3), %s397_s28, 191  ;;  %3638 = vset.pattern.permute.xlu1 (!%p311_p3), %v3752_v1  ;;  %3637 = vset.pattern.permute.xlu0 (!%p311_p3), %v3752_v1  ;;  %s3271_s30 = sshll.u32 (!%p311_p3), %s3734_s21, 3  ;;  %v3675_v45 = vld [vmem:[%s5041_s3] sm:$0xff] (!%p311_p3)   ;;  %v3676_v53 = vld [vmem:[%s5041_s3 + $0x8] sm:$0xff] (!%p311_p3)   ;;  %v3678_v63 = vld [vmem:[%s5041_s3 + $0x10] sm:$0xff] (!%p311_p3)  }
   0xd   : > { %s3521_s7 = sadd.s32 (!%p311_p3), 8, %s3271_s30  ;;  %p490_p9 = scmp.gt.s32.totalorder (!%p311_p3), %s3734_s21, 0  ;;  %v3677_v51 = vld [vmem:[%s5041_s3 + $0xc0] sm:$0xff] (!%p311_p3)   ;;  %v3679_v58 = vld [vmem:[%s5041_s3 + $0xc8] sm:$0xff] (!%p311_p3)  }
   0xe   : > { %3583 = vmatpush1.bf16.msra.mxu1 (!%p311_p3), %v3658_v2  ;;  %997 = vmatpush1.bf16.msra.mxu0 (!%p311_p3), %v3658_v2  ;;  %p409_p7 = scmp.lt.s32.totalorder (!%p311_p3), %s3521_s7, 31  ;;  %v3681_v2 = vld [vmem:[%s5041_s3 + $0xd0] sm:$0xff] (!%p311_p3)   ;;  %p503_p13 = scmp.lt.s32.totalorder (!%p311_p3), %s3734_s21, 3 }
   0xf   : > { %3572 = vmatprep.subr.bf16.mxu1 (!%p311_p3), %v3752_v1  ;;  %998 = vmatprep.subr.bf16.mxu0 (!%p311_p3), %v3752_v1 }
  0x10   : > { %s5063_s22 = smov (!%p384_p5, %s3738_s22), 3  ;;  %s5065_s28 = smov (!%p400_p6, %s397_s28), 191 }
  0x11   : > { %s3832_s9 = smul.u32 192, %s5063_s22  ;;  %s5067_s7 = smov (!%p409_p7, %s3521_s7), 31 }
  0x12   : > { %3584 = vmatpush1.bf16.msra.mxu1 %v3661_v3  ;;  %999 = vmatpush1.bf16.msra.mxu0 %v3661_v3  ;;  %s411_s8 = smul.u32 6, %s5067_s7 }
  0x13   : > { %s403_s12 = sadd.s32 %s3832_s9, %s5065_s28  ;;  %3573 = vmatprep.subr.bf16.mxu1 %v3752_v1  ;;  %1000 = vmatprep.subr.bf16.mxu0 %v3752_v1 }
  0x14   : > { %s3845_s13 = sshll.u32 %s403_s12, 2  ;;  %p414_p8 = scmp.lt.s32.totalorder %s411_s8, 191 }
  0x15   : > { %s3851_s16 = scalar_lea.vmem %s5048_s1, %s3845_s13  ;;  %s3272_s12 = sadd.s32 4294967295, %s3271_s30 }
  0x16   : > { %v3857_v5 = vld [vmem:[%s3851_s16 + $0x60] sm:$0xff]   ;;  %v3867_v7 = vld [vmem:[%s3851_s16 + $0x68] sm:$0xff]   ;;  %3585 = vmatpush1.bf16.msra.mxu1 %v3662_v4  ;;  %1001 = vmatpush1.bf16.msra.mxu0 %v3662_v4  ;;  %v3875_v9 = vld [vmem:[%s3851_s16 + $0x70] sm:$0xff]   ;;  %s5069_s8 = smov (!%p414_p8, %s411_s8), 191  ;;  %p381_p10 = scmp.gt.s32.totalorder %s3272_s12, 0 }
  0x17   : > { %v3860_v6 = vld [vmem:[%s3851_s16] sm:$0xff]   ;;  %722 = vrot.lane.b32.xlu0 %v3857_v5, %s3753_s19  ;;  %3574 = vmatprep.subr.bf16.mxu1 %v3752_v1  ;;  %v3882_v10 = vld [vmem:[%s3851_s16 + $0x8] sm:$0xff]   ;;  %v3890_v12 = vld [vmem:[%s3851_s16 + $0x78] sm:$0xff]   ;;  %s491_s11 = scalar_select %p490_p9, 1, 0 }
  0x18   : > { %698 = vrot.lane.b32.xlu1 %v3860_v6, %s3753_s19  ;;  %1002 = vmatprep.subr.bf16.mxu0 %v3752_v1  ;;  %v3893_v13 = vld [vmem:[%s3851_s16 + $0x18] sm:$0xff]   ;;  %v3900_v14 = vld [vmem:[%s3851_s16 + $0x10] sm:$0xff]   ;;  %v3907_v15 = vld [vmem:[%s3851_s16 + $0x80] sm:$0xff]   ;;  %s5071_s12 = smov (!%p381_p10, %s3272_s12), 0 }
  0x19   : > { %3345 = vmatprep.mubr.msk.bf16.mxu0 %vm746_vm0, %v3893_v13  ;;  %3357 = vmatprep.mubr.msk.bf16.mxu1 %vm746_vm0, %v3890_v12  ;;  %v3921_v17 = vld [vmem:[%s3851_s16 + $0x88] sm:$0xff]   ;;  %v3931_v19 = vld [vmem:[%s3851_s16 + $0x20] sm:$0xff]   ;;  %v3936_v20 = vld [vmem:[%s3851_s16 + $0x90] sm:$0xff]   ;;  %s492_s14 = scvt.s32.f32 %s491_s11  ;;  %s383_s18 = smul.u32 6, %s5071_s12 }
  0x1a   : > { %3586 = vmatpush1.bf16.msra.mxu1 %v3665_v8  ;;  %1003 = vmatpush1.bf16.msra.mxu0 %v3665_v8  ;;  %v3946_v22 = vld [vmem:[%s3851_s16 + $0x28] sm:$0xff]   ;;  %v3951_v23 = vld [vmem:[%s3851_s16 + $0x98] sm:$0xff]   ;;  %v3961_v25 = vld [vmem:[%s3851_s16 + $0x30] sm:$0xff]  }
  0x1b   : > { %724 = vrot.lane.b32.xlu0 %v3867_v7, %s3753_s19  ;;  %3575 = vmatprep.subr.bf16.mxu1 %v3752_v1  ;;  %v3966_v26 = vld [vmem:[%s3851_s16 + $0xa0] sm:$0xff]   ;;  %v3976_v28 = vld [vmem:[%s3851_s16 + $0x38] sm:$0xff]   ;;  %v3981_v29 = vld [vmem:[%s3851_s16 + $0xa8] sm:$0xff]   ;;  %s495_s15 = sshrl.u32 %s492_s14, 16  ;;  %p386_p11 = scmp.lt.s32.totalorder %s383_s18, 191 }
  0x1c   : > { %726 = vrot.lane.b32.xlu1 %v3875_v9, %s3753_s19  ;;  %1004 = vmatprep.subr.bf16.mxu0 %v3752_v1  ;;  %v3991_v31 = vld [vmem:[%s3851_s16 + $0x40] sm:$0xff]   ;;  %v3996_v32 = vld [vmem:[%s3851_s16 + $0xb0] sm:$0xff]   ;;  %v4003_v33 = vld [vmem:[%s3851_s16 + $0x48] sm:$0xff]   ;;  %s496_s17 = sand.u32 1, %s495_s15  ;;  %p494_p12 = scmp.ne.f32.partialorder %s492_s14, %s492_s14 }
  0x1d   : > { %v4008_v34 = vld [vmem:[%s3851_s16 + $0xb8] sm:$0xff]   ;;  %v4011_v35 = vld [vmem:[%s3851_s16 + $0x50] sm:$0xff]   ;;  %s497_s20 = sadd.s32 32767, %s496_s17  ;;  %s5073_s18 = smov (!%p386_p11, %s383_s18), 191 }
  0x1e   : > { %3587 = vmatpush1.bf16.msra.mxu1 %v3667_v11  ;;  %1005 = vmatpush1.bf16.msra.mxu0 %v3667_v11  ;;  %v4014_v36 = vld [vmem:[%s3851_s16 + $0x58] sm:$0xff]   ;;  %s498_s22 = sadd.s32 %s497_s20, %s492_s14  ;;  %s389_s29 = sadd.s32 %s3832_s9, %s5073_s18 }
  0x1f   : > { %700 = vrot.lane.b32.xlu0 %v3882_v10, %s3753_s19  ;;  %3576 = vmatprep.subr.bf16.mxu1 %v3752_v1  ;;  %s3273_s10 = sshll.u32 %s389_s29, 2  ;;  %v3680_v8 = vld [vmem:[%s5041_s3 + $0x18] sm:$0xff]   ;;  %s4616_s14 = scalar_lea.vmem %s5044_s6, %s3845_s13 }
  0x20   : > { %728 = vrot.lane.b32.xlu1 %v3890_v12, %s3753_s19  ;;  %1006 = vmatprep.subr.bf16.mxu0 %v3752_v1  ;;  %s391_s30 = scalar_lea.vmem %s5038_s0, %s3273_s10 }
  0x21   : > { %v516_v37 = vld [vmem:[%s391_s30] sm:$0xf]  ;;  %v517_v38 = vld [vmem:[%s391_s30 + $0x4] sm:$0xf]  ;;  %v518_v43 = vld [vmem:[%s391_s30 + $0x8] sm:$0xf] }
  0x22   : > { %3588 = vmatpush1.bf16.msra.mxu1 %v3669_v16  ;;  %1007 = vmatpush1.bf16.msra.mxu0 %v3669_v16  ;;  %v519_v44 = vld [vmem:[%s391_s30 + $0xc] sm:$0xf]  ;;  %v520_v56 = vld [vmem:[%s391_s30 + $0x10] sm:$0xf]  ;;  %v521_v57 = vld [vmem:[%s391_s30 + $0x14] sm:$0xf] }
  0x23   : > { %702 = vrot.lane.b32.xlu0 %v3900_v14, %s3753_s19  ;;  %3577 = vmatprep.subr.bf16.mxu1 %v3752_v1  ;;  %v3683_v16 = vld [vmem:[%s5041_s3 + $0xd8] sm:$0xff]   ;;  %s504_s10 = scalar_select %p503_p13, 1, 0 }
  0x24   : > { %730 = vrot.lane.b32.xlu1 %v3907_v15, %s3753_s19  ;;  %1008 = vmatprep.subr.bf16.mxu0 %v3752_v1 }
  0x26   : > { %3589 = vmatpush1.bf16.msra.mxu1 %v3670_v18  ;;  %1009 = vmatpush1.bf16.msra.mxu0 %v3670_v18 }
  0x27   : > { %704 = vrot.lane.b32.xlu0 %v3893_v13, %s3753_s19  ;;  %3578 = vmatprep.subr.bf16.mxu1 %v3752_v1 }
  0x28   : > { %732 = vrot.lane.b32.xlu1 %v3921_v17, %s3753_s19  ;;  %1010 = vmatprep.subr.bf16.mxu0 %v3752_v1 }
  0x2a   : > { %3590 = vmatpush1.bf16.msra.mxu1 %v3671_v21  ;;  %1011 = vmatpush1.bf16.msra.mxu0 %v3671_v21 }
  0x2b   : > { %706 = vrot.lane.b32.xlu0 %v3931_v19, %s3753_s19  ;;  %3579 = vmatprep.subr.bf16.mxu1 %v3752_v1 }
  0x2c   : > { %734 = vrot.lane.b32.xlu1 %v3936_v20, %s3753_s19  ;;  %1012 = vmatprep.subr.bf16.mxu0 %v3752_v1 }
  0x2e   : > { %3591 = vmatpush1.bf16.msra.mxu1 %v3672_v24  ;;  %1013 = vmatpush1.bf16.msra.mxu0 %v3672_v24  ;;  %v3682_v24 = vld [vmem:[%s5041_s3 + $0x20] sm:$0xff]  }
  0x2f   : > { %708 = vrot.lane.b32.xlu0 %v3946_v22, %s3753_s19  ;;  %3580 = vmatprep.subr.bf16.mxu1 %v3752_v1 }
  0x30   : > { %736 = vrot.lane.b32.xlu1 %v3951_v23, %s3753_s19  ;;  %1014 = vmatprep.subr.bf16.mxu0 %v3752_v1 }
  0x32   : > { %3592 = vmatpush1.bf16.msra.mxu1 %v3673_v27  ;;  %1015 = vmatpush1.bf16.msra.mxu0 %v3673_v27  ;;  %v3685_v27 = vld [vmem:[%s5041_s3 + $0xe0] sm:$0xff]  }
  0x33   : > { %710 = vrot.lane.b32.xlu0 %v3961_v25, %s3753_s19  ;;  %3581 = vmatprep.subr.bf16.mxu1 %v3752_v1 }
  0x34   : > { %738 = vrot.lane.b32.xlu1 %v3966_v26, %s3753_s19  ;;  %1016 = vmatprep.subr.bf16.mxu0 %v3752_v1 }
  0x36   : > { %3593 = vmatpush1.bf16.msra.mxu1 %v3674_v30  ;;  %1017 = vmatpush1.bf16.msra.mxu0 %v3674_v30 }
  0x37   : > { %712 = vrot.lane.b32.xlu0 %v3976_v28, %s3753_s19  ;;  %1363 = vmatprep.subr.bf16.mxu1 %v3752_v1 }
  0x38   : > { %740 = vrot.lane.b32.xlu1 %v3981_v29, %s3753_s19  ;;  %1928 = vmatprep.subr.bf16.mxu0 %v3752_v1 }
  0x3b   : > { %714 = vrot.lane.b32.xlu0 %v3991_v31, %s3753_s19 }
  0x3c   : > { %742 = vrot.lane.b32.xlu1 %v3996_v32, %s3753_s19 }
  0x3f   : > { %716 = vrot.lane.b32.xlu0 %v4003_v33, %s3753_s19 }
  0x40   : > { %744 = vrot.lane.b32.xlu1 %v4008_v34, %s3753_s19 }
  0x43   : > { %718 = vrot.lane.b32.xlu0 %v4011_v35, %s3753_s19 }
  0x44   : > { %720 = vrot.lane.b32.xlu1 %v4014_v36, %s3753_s19  ;;  %s499_s19 = sand.u32 4294901760, %s498_s22  ;;  %s4131_s22 = scvt.s32.f32 %s504_s10 }
  0x45   : > { %s5075_s19 = smov (%p494_p12, %s499_s19), 2143289344  ;;  %s5049_s10 = sadd.s32 %s3832_s9, %s5069_s8 }
  0x46   : > { %s502_s7 = sshrl.u32 %s5075_s19, 16  ;;  %p507_p0 = scmp.ne.f32.partialorder %s4131_s22, %s4131_s22 }
  0x47   : > { %s522_s1 = sshll.u32 %s502_s7, 16  ;;  %s3277_s8 = sshll.u32 %s5065_s28, 3 }
  0x48   : > { %s523_s11 = sor.u32 %s522_s1, %s502_s7  ;;  %s4305_s30 = scalar_lea.vmem %s5043_s5, %s3277_s8 }
  0x49   : > { %v524_v39 = vstv %s523_s11  ;;  %s508_s11 = sshrl.u32 %s4131_s22, 16 }
  0x4a   : > { %v526_v40 = vmul.bf16 %v524_v39, %v516_v37  ;;  %v527_v41 = vmul.bf16 %v524_v39, %v517_v38  ;;  %v528_v49 = vmul.bf16 %v524_v39, %v518_v43  ;;  %v529_v50 = vmul.bf16 %v524_v39, %v519_v44  ;;  %v3684_v37 = vld [vmem:[%s5041_s3 + $0x28] sm:$0xff]   ;;  %v3689_v43 = vld [vmem:[%s5041_s3 + $0xf0] sm:$0xff]   ;;  %v3688_v44 = vld [vmem:[%s5041_s3 + $0x38] sm:$0xff]   ;;  %s509_s1 = sand.u32 1, %s508_s11 }
  0x4b   : > { %v530_v61 = vmul.bf16 %v524_v39, %v520_v56  ;;  %v531_v62 = vmul.bf16 %v524_v39, %v521_v57  ;;  %v3687_v39 = vld [vmem:[%s5041_s3 + $0xe8] sm:$0xff]   ;;  %s510_s15 = sadd.s32 32767, %s509_s1 }
  0x4c   : > { %v3279_v42 = vcombine.low %v526_v40, %v527_v41  ;;  %v3280_v55 = vcombine.low %v528_v49, %v529_v50  ;;  %v3690_v50 = vld [vmem:[%s5041_s3 + $0x40] sm:$0xff]   ;;  %s511_s20 = sadd.s32 %s510_s15, %s4131_s22  ;;  %s3276_s15 = sshll.u32 %s5049_s10, 2 }
  0x4d   : > { %v3281_v4 = vcombine.low %v530_v61, %v531_v62  ;;  %s512_s7 = sand.u32 4294901760, %s511_s20  ;;  %v3696_v61 = vld [vmem:[%s5041_s3 + $0x58] sm:$0xff]   ;;  %s4236_s19 = scalar_lea.vmem %s5040_s2, %s3276_s15 }
  0x4e   : > { %s5077_s7 = smov (%p507_p0, %s512_s7), 2143289344 }
  0x4f   : > { %s515_s27 = sshrl.u32 %s5077_s7, 16 }
  0x50   : > { %s538_s17 = sshll.u32 %s515_s27, 16 }
  0x51   : > { %s539_s9 = sor.u32 %s538_s17, %s515_s27 }
  0x89   : > { %v723_v46 = vpop.permute.xlu0 %722 }
  0x8a   : > { %v699_v47 = vpop.permute.xlu1 %698  ;;  %v4039_v48 = vsel %vm746_vm0, %v4003_v33, %v723_v46  ;;  %v3691_v46 = vld [vmem:[%s5041_s3 + $0xf8] sm:$0xff]  }
  0x8b   : > { %v4045_v52 = vsel %vm746_vm0, %v3279_v42, %v699_v47  ;;  %1123 = vmatmul.mubr.bf16.vlgmr.msra.gmra.mrb[0].mxu1 %v4039_v48  ;;  %v3686_v42 = vld [vmem:[%s5041_s3 + $0x30] sm:$0xff]  }
  0x8c   : > { %1027 = vmatmul.mubr.bf16.vlgmr.msra.gmra.mrb[0].mxu0 %v4045_v52  ;;  %1364 = vmatpush1.bf16.msra.mxu1 %v3675_v45 }
  0x8d   : > { %v725_v54 = vpop.permute.xlu0 %724  ;;  %3346 = vmatprep.mubr.msk.bf16.mxu0 %vm746_vm0, %v3931_v19  ;;  %3358 = vmatprep.mubr.msk.bf16.mxu1 %vm746_vm0, %v3907_v15 }
  0x8e   : > { %1365 = vmatprep.subr.bf16.mxu1 %v3752_v1  ;;  %1929 = vmatpush1.bf16.msra.mxu0 %v3677_v51  ;;  %v4063_v59 = vsel %vm746_vm0, %v4011_v35, %v725_v54  ;;  %v727_v3 = vpop.permute.xlu1 %726  ;;  %v3693_v51 = vld [vmem:[%s5041_s3 + $0x100] sm:$0xff]  }
  0x8f   : > { %1930 = vmatprep.subr.bf16.mxu0 %v3752_v1  ;;  %v4092_v18 = vsel %vm746_vm0, %v4014_v36, %v727_v3 }
  0x90   : > { %1366 = vmatpush1.bf16.msra.mxu1 %v3676_v53  ;;  %v3692_v53 = vld [vmem:[%s5041_s3 + $0x48] sm:$0xff]  }
  0x91   : > { %v701_v60 = vpop.permute.xlu0 %700  ;;  %1367 = vmatprep.subr.bf16.mxu1 %v3752_v1 }
  0x92   : > { %v4070_v0 = vsel %vm746_vm0, %v3280_v55, %v701_v60  ;;  %1931 = vmatpush1.bf16.msra.mxu0 %v3679_v58  ;;  %v729_v30 = vpop.permute.xlu1 %728  ;;  %v3695_v55 = vld [vmem:[%s5041_s3 + $0x108] sm:$0xff]   ;;  %v3694_v58 = vld [vmem:[%s5041_s3 + $0x50] sm:$0xff]  }
  0x93   : > { %1131 = vmatmul.mubr.bf16.gmra.mrb[4].mxu1 %v4063_v59  ;;  %1932 = vmatprep.subr.bf16.mxu0 %v3752_v1  ;;  %v4122_v40 = vsel %vm746_vm0, %v3857_v5, %v729_v30  ;;  %v3697_v60 = vld [vmem:[%s5041_s3 + $0x110] sm:$0xff]  }
  0x94   : > { %1035 = vmatmul.mubr.bf16.gmra.mrb[4].mxu0 %v4070_v0  ;;  %3359 = vmatprep.mubr.msk.bf16.mxu1 %vm746_vm0, %v3921_v17 }
  0x95   : > { %3347 = vmatprep.mubr.msk.bf16.mxu0 %vm746_vm0, %v3946_v22  ;;  %1368 = vmatpush1.bf16.msra.mxu1 %v3678_v63  ;;  %v703_v11 = vpop.permute.xlu0 %702 }
  0x96   : > { %1369 = vmatprep.subr.bf16.mxu1 %v3752_v1  ;;  %1933 = vmatpush1.bf16.msra.mxu0 %v3681_v2  ;;  %v4095_v21 = vsel %vm746_vm0, %v3281_v4, %v703_v11  ;;  %v532_v4 = vld [vmem:[%s4236_s19] sm:$0xf]  ;;  %v540_v11 = vstv %s539_s9 }
  0x97   : > { %1934 = vmatprep.subr.bf16.mxu0 %v3752_v1 }
  0x99   : > { %1370 = vmatpush1.bf16.msra.mxu1 %v3680_v8  ;;  %v705_v38 = vpop.permute.xlu0 %704  ;;  %v533_v8 = vld [vmem:[%s4236_s19 + $0x4] sm:$0xf] }
  0x9a   : > { %1371 = vmatprep.subr.bf16.mxu1 %v3752_v1  ;;  %1935 = vmatpush1.bf16.msra.mxu0 %v3683_v16  ;;  %v4126_v41 = vsel %vm746_vm0, %v3860_v6, %v705_v38  ;;  %v731_v6 = vpop.permute.xlu1 %730  ;;  %v542_v16 = vmul.bf16 %v540_v11, %v532_v4  ;;  %v2552_v4 = vld [vmem:[%s4305_s30 + $0x38] sm:$0xff] }
  0x9b   : > { %1139 = vmatmul.mubr.bf16.gmra.mrb[8].mxu1 %v4092_v18  ;;  %1936 = vmatprep.subr.bf16.mxu0 %v3752_v1  ;;  %v4155_v47 = vsel %vm746_vm0, %v3867_v7, %v731_v6 }
  0x9c   : > { %1043 = vmatmul.mubr.bf16.gmra.mrb[8].mxu0 %v4095_v21  ;;  %3360 = vmatprep.mubr.msk.bf16.mxu1 %vm746_vm0, %v3936_v20 }
  0x9d   : > { %3348 = vmatprep.mubr.msk.bf16.mxu0 %vm746_vm0, %v3961_v25  ;;  %1372 = vmatpush1.bf16.msra.mxu1 %v3682_v24  ;;  %v707_v45 = vpop.permute.xlu0 %706  ;;  %v543_v24 = vmul.bf16 %v540_v11, %v533_v8  ;;  %v2551_v8 = vld [vmem:[%s4305_s30 + $0x30] sm:$0xff] }
  0x9e   : > { %1373 = vmatprep.subr.bf16.mxu1 %v3752_v1  ;;  %1937 = vmatpush1.bf16.msra.mxu0 %v3685_v27  ;;  %v4159_v49 = vsel %vm746_vm0, %v3882_v10, %v707_v45  ;;  %v733_v10 = vpop.permute.xlu1 %732 }
  0x9f   : > { %1938 = vmatprep.subr.bf16.mxu0 %v3752_v1  ;;  %v4186_v56 = vsel %vm746_vm0, %v3875_v9, %v733_v10 }
  0xa1   : > { %1374 = vmatpush1.bf16.msra.mxu1 %v3684_v37  ;;  %v709_v54 = vpop.permute.xlu0 %708  ;;  %v4258_v37 = vcombine.low %v542_v16, %v543_v24  ;;  %v2553_v16 = vld [vmem:[%s4305_s30 + $0x40] sm:$0xff]  ;;  %v2555_v24 = vld [vmem:[%s4305_s30 + $0x50] sm:$0xff] }
  0xa2   : > { %1375 = vmatprep.subr.bf16.mxu1 %v3752_v1  ;;  %1939 = vmatpush1.bf16.msra.mxu0 %v3687_v39  ;;  %v4192_v57 = vsel %vm746_vm0, %v3900_v14, %v709_v54  ;;  %v735_v14 = vpop.permute.xlu1 %734  ;;  %v535_v39 = vld [vmem:[%s4236_s19 + $0xc] sm:$0xf] }
  0xa3   : > { %1147 = vmatmul.mubr.bf16.gmra.mrb[12].mxu1 %v4122_v40  ;;  %1940 = vmatprep.subr.bf16.mxu0 %v3752_v1  ;;  %v4218_v63 = vsel %vm746_vm0, %v3890_v12, %v735_v14  ;;  %v2546_v14 = vld [vmem:[%s4305_s30 + $0x8] sm:$0xff] }
  0xa4   : > { %1051 = vmatmul.mubr.bf16.gmra.mrb[12].mxu0 %v4126_v41  ;;  %3361 = vmatprep.mubr.msk.bf16.mxu1 %vm746_vm0, %v3951_v23 }
  0xa5   : > { %3349 = vmatprep.mubr.msk.bf16.mxu0 %vm746_vm0, %v3976_v28  ;;  %1376 = vmatpush1.bf16.msra.mxu1 %v3686_v42  ;;  %v711_v62 = vpop.permute.xlu0 %710 }
  0xa6   : > { %1377 = vmatprep.subr.bf16.mxu1 %v3752_v1  ;;  %1941 = vmatpush1.bf16.msra.mxu0 %v3689_v43  ;;  %v4222_v2 = vsel %vm746_vm0, %v3893_v13, %v711_v62 }
  0xa7   : > { %1942 = vmatprep.subr.bf16.mxu0 %v3752_v1  ;;  %2600 = vperm.xlu1 %3638, %v2546_v14   ;;  %v2587_v14 = vld [vmem:[%s4305_s30 + $0x150] sm:$0xff] }
  0xa9   : > { %1378 = vmatpush1.bf16.msra.mxu1 %v3688_v44  ;;  %v713_v12 = vpop.permute.xlu0 %712 }
  0xaa   : > { %1379 = vmatprep.subr.bf16.mxu1 %v3752_v1  ;;  %1943 = vmatpush1.bf16.msra.mxu0 %v3691_v46 }
  0xab   : > { %1155 = vmatmul.mubr.bf16.gmra.mrb[16].mxu1 %v4155_v47  ;;  %1944 = vmatprep.subr.bf16.mxu0 %v3752_v1 }
  0xac   : > { %1059 = vmatmul.mubr.bf16.gmra.mrb[16].mxu0 %v4159_v49  ;;  %3362 = vmatprep.mubr.msk.bf16.mxu1 %vm746_vm0, %v3966_v26 }
  0xad   : > { %3350 = vmatprep.mubr.msk.bf16.mxu0 %vm746_vm0, %v3991_v31  ;;  %1380 = vmatpush1.bf16.msra.mxu1 %v3690_v50  ;;  %v715_v27 = vpop.permute.xlu0 %714  ;;  %v536_v50 = vld [vmem:[%s4236_s19 + $0x10] sm:$0xf] }
  0xae   : > { %1381 = vmatprep.subr.bf16.mxu1 %v3752_v1  ;;  %1945 = vmatpush1.bf16.msra.mxu0 %v3693_v51  ;;  %v4262_v38 = vsel %vm746_vm0, %v3946_v22, %v715_v27  ;;  %v537_v51 = vld [vmem:[%s4236_s19 + $0x14] sm:$0xf] }
  0xaf   : > { %1946 = vmatprep.subr.bf16.mxu0 %v3752_v1  ;;  %v2559_v27 = vld [vmem:[%s4305_s30 + $0x70] sm:$0xff] }
  0xb1   : > { %1382 = vmatpush1.bf16.msra.mxu1 %v3692_v53  ;;  %v717_v6 = vpop.permute.xlu0 %716 }
  0xb2   : > { %1383 = vmatprep.subr.bf16.mxu1 %v3752_v1  ;;  %1947 = vmatpush1.bf16.msra.mxu0 %v3695_v55  ;;  %v4280_v46 = vsel %vm746_vm0, %v3961_v25, %v717_v6  ;;  %v2571_v6 = vld [vmem:[%s4305_s30 + $0xd0] sm:$0xff] }
  0xb3   : > { %1163 = vmatmul.mubr.bf16.gmra.mrb[20].mxu1 %v4186_v56  ;;  %1948 = vmatprep.subr.bf16.mxu0 %v3752_v1 }
  0xb4   : > { %1067 = vmatmul.mubr.bf16.gmra.mrb[20].mxu0 %v4192_v57  ;;  %3363 = vmatprep.mubr.msk.bf16.mxu1 %vm746_vm0, %v3981_v29  ;;  %v3698_v29 = vld [vmem:[%s5041_s3 + $0x118] sm:$0xff]  }
  0xb5   : > { %3351 = vmatprep.mubr.msk.bf16.mxu0 %vm746_vm0, %v4003_v33  ;;  %1384 = vmatpush1.bf16.msra.mxu1 %v3694_v58  ;;  %v719_v53 = vpop.permute.xlu0 %718 }
  0xb6   : > { %1385 = vmatprep.subr.bf16.mxu1 %v3752_v1  ;;  %1949 = vmatpush1.bf16.msra.mxu0 %v3697_v60  ;;  %v4298_v60 = vsel %vm746_vm0, %v3976_v28, %v719_v53  ;;  %v2583_v53 = vld [vmem:[%s4305_s30 + $0x130] sm:$0xff] }
  0xb7   : > { %1950 = vmatprep.subr.bf16.mxu0 %v3752_v1  ;;  %v737_v1 = vpop.permute.xlu1 %736 }
  0xb8   : > { %v4240_v3 = vsel %vm746_vm0, %v3907_v15, %v737_v1  ;;  %v2547_v1 = vld [vmem:[%s4305_s30 + $0x10] sm:$0xff] }
  0xb9   : > { %1386 = vmatpush1.bf16.msra.mxu1 %v3696_v61  ;;  %2605 = vperm.xlu1 %3638, %v2547_v1   ;;  %v2592_v1 = vld [vmem:[%s4305_s30 + $0x178] sm:$0xff] }
  0xba   : > { %1951 = vmatpush1.bf16.msra.mxu0 %v3698_v29  ;;  %v2548_v29 = vld [vmem:[%s4305_s30 + $0x18] sm:$0xff] }
  0xbb   : > { %1171 = vmatmul.mubr.bf16.gmra.mrb[24].mxu1 %v4218_v63  ;;  %v739_v15 = vpop.permute.xlu1 %738 }
  0xbc   : > { %1075 = vmatmul.mubr.bf16.gmra.mrb[24].mxu0 %v4222_v2  ;;  %3364 = vmatprep.mubr.msk.bf16.mxu1 %vm746_vm0, %v3996_v32  ;;  %v4244_v32 = vsel %vm746_vm0, %v3931_v19, %v713_v12  ;;  %v4256_v30 = vsel %vm746_vm0, %v3921_v17, %v739_v15  ;;  %v545_v17 = vmul.bf16 %v540_v11, %v535_v39  ;;  %v2557_v15 = vld [vmem:[%s4305_s30 + $0x60] sm:$0xff]  ;;  %v2563_v39 = vld [vmem:[%s4305_s30 + $0x90] sm:$0xff] }
  0xbd   : > { %3352 = vmatprep.mubr.msk.bf16.mxu0 %vm746_vm0, %v4011_v35 }
  0xbf   : > { %v741_v43 = vpop.permute.xlu1 %740 }
  0xc0   : > { %v4274_v44 = vsel %vm746_vm0, %v3936_v20, %v741_v43  ;;  %v547_v20 = vmul.bf16 %v540_v11, %v537_v51  ;;  %v2569_v43 = vld [vmem:[%s4305_s30 + $0xc0] sm:$0xff]  ;;  %v2575_v51 = vld [vmem:[%s4305_s30 + $0xf0] sm:$0xff] }
  0xc3   : > { %1179 = vmatmul.mubr.bf16.gmra.mrb[28].mxu1 %v4240_v3  ;;  %v743_v10 = vpop.permute.xlu1 %742 }
  0xc4   : > { %1083 = vmatmul.mubr.bf16.gmra.mrb[28].mxu0 %v4244_v32  ;;  %3365 = vmatprep.mubr.msk.bf16.mxu1 %vm746_vm0, %v4008_v34  ;;  %v534_v34 = vld [vmem:[%s4236_s19 + $0x8] sm:$0xf]  ;;  %v4292_v54 = vsel %vm746_vm0, %v3951_v23, %v743_v10  ;;  %v2577_v10 = vld [vmem:[%s4305_s30 + $0x100] sm:$0xff] }
  0xc5   : > { %3353 = vmatprep.mubr.msk.bf16.mxu0 %vm746_vm0, %v4014_v36  ;;  %v544_v42 = vmul.bf16 %v540_v11, %v534_v34  ;;  %v2561_v34 = vld [vmem:[%s4305_s30 + $0x80] sm:$0xff] }
  0xc7   : > { %v4276_v45 = vcombine.low %v544_v42, %v545_v17  ;;  %v745_v55 = vpop.permute.xlu1 %744  ;;  %v2565_v42 = vld [vmem:[%s4305_s30 + $0xa0] sm:$0xff]  ;;  %v2567_v17 = vld [vmem:[%s4305_s30 + $0xb0] sm:$0xff] }
  0xc8   : > { %v4316_v62 = vsel %vm746_vm0, %v3966_v26, %v745_v55  ;;  %v2549_v26 = vld [vmem:[%s4305_s30 + $0x20] sm:$0xff]  ;;  %v2586_v55 = vld [vmem:[%s4305_s30 + $0x148] sm:$0xff] }
  0xc9   : > { %2615 = vperm.xlu1 %3638, %v2549_v26   ;;  %v3701_v26 = vld [vmem:[%s3851_s16 + $0x70] sm:$0xff]  }
  0xcb   : > { %1187 = vmatmul.mubr.bf16.gmra.mrb[32].mxu1 %v4256_v30  ;;  %v721_v61 = vpop.permute.xlu1 %720 }
  0xcc   : > { %1091 = vmatmul.mubr.bf16.gmra.mrb[32].mxu0 %v4262_v38  ;;  %3366 = vmatprep.mubr.msk.bf16.mxu1 %vm746_vm0, %v4258_v37  ;;  %v4322_v12 = vsel %vm746_vm0, %v3991_v31, %v721_v61  ;;  %v2590_v61 = vld [vmem:[%s4305_s30 + $0x168] sm:$0xff] }
  0xcd   : > { %3354 = vmatprep.mubr.msk.bf16.mxu0 %vm746_vm0, %v3857_v5  ;;  %v546_v5 = vmul.bf16 %v540_v11, %v536_v50  ;;  %2625 = vperm.xlu1 %3638, %v2551_v8   ;;  %v2554_v11 = vld [vmem:[%s4305_s30 + $0x48] sm:$0xff]  ;;  %v2573_v50 = vld [vmem:[%s4305_s30 + $0xe0] sm:$0xff] }
  0xcf   : > { %v4294_v58 = vcombine.low %v546_v5, %v547_v20  ;;  %v2579_v5 = vld [vmem:[%s4305_s30 + $0x110] sm:$0xff]  ;;  %v2581_v20 = vld [vmem:[%s4305_s30 + $0x120] sm:$0xff] }
  0xd1   : > { %2635 = vperm.xlu1 %3638, %v2553_v16  }
  0xd3   : > { %1195 = vmatmul.mubr.bf16.gmra.mrb[36].mxu1 %v4274_v44 }
  0xd4   : > { %1099 = vmatmul.mubr.bf16.gmra.mrb[36].mxu0 %v4280_v46  ;;  %3367 = vmatprep.mubr.msk.bf16.mxu1 %vm746_vm0, %v4276_v45 }
  0xd5   : > { %3355 = vmatprep.mubr.msk.bf16.mxu0 %vm746_vm0, %v3867_v7  ;;  %v2545_v7 = vld [vmem:[%s4305_s30] sm:$0xff]  ;;  %2645 = vperm.xlu1 %3638, %v2555_v24  }
  0xd6   : > { %2595 = vperm.xlu0 %3637, %v2545_v7   ;;  %v3699_v7 = vld [vmem:[%s3851_s16 + $0x60] sm:$0xff]  }
  0xd9   : > { %2655 = vperm.xlu1 %3638, %v2557_v15  }
  0xda   : > { %2610 = vperm.xlu0 %3637, %v2548_v29   ;;  %v2589_v29 = vld [vmem:[%s4305_s30 + $0x160] sm:$0xff] }
  0xdb   : > { %1203 = vmatmul.mubr.bf16.gmra.mrb[40].mxu1 %v4292_v54 }
  0xdc   : > { %1107 = vmatmul.mubr.bf16.gmra.mrb[40].mxu0 %v4298_v60  ;;  %3368 = vmatprep.mubr.msk.bf16.mxu1 %vm746_vm0, %v4294_v58 }
  0xdd   : > { %3356 = vmatprep.mubr.msk.bf16.mxu0 %vm746_vm0, %v3875_v9  ;;  %v2550_v9 = vld [vmem:[%s4305_s30 + $0x28] sm:$0xff]  ;;  %2665 = vperm.xlu1 %3638, %v2559_v27  }
  0xde   : > { %2620 = vperm.xlu0 %3637, %v2550_v9   ;;  %v2591_v9 = vld [vmem:[%s4305_s30 + $0x170] sm:$0xff] }
  0xe1   : > { %2675 = vperm.xlu1 %3638, %v2561_v34  }
  0xe2   : > { %2630 = vperm.xlu0 %3637, %v2552_v4   ;;  %v3705_v4 = vld [vmem:[%s3851_s16 + $0x90] sm:$0xff]  }
  0xe3   : > { %1211 = vmatmul.mubr.bf16.gmra.mrb[44].mxu1 %v4316_v62 }
  0xe4   : > { %1115 = vmatmul.mubr.bf16.gmra.mrb[44].mxu0 %v4322_v12  ;;  %3381 = vmatprep.mubr.msk.bf16.mxu1 %vm746_vm0, %v3893_v13 }
  0xe5   : > { %3441 = vmatprep.mubr.msk.bf16.mxu0 %vm746_vm0, %v3893_v13  ;;  %v2556_v13 = vld [vmem:[%s4305_s30 + $0x58] sm:$0xff]  ;;  %2685 = vperm.xlu1 %3638, %v2563_v39   ;;  %v3707_v39 = vld [vmem:[%s3851_s16 + $0xa0] sm:$0xff]  }
  0xe6   : > { %2640 = vperm.xlu0 %3637, %v2554_v11  }
  0xe9   : > { %2695 = vperm.xlu1 %3638, %v2565_v42  }
  0xea   : > { %2650 = vperm.xlu0 %3637, %v2556_v13  }
  0xeb   : > { %1396 = vmatmul.mubr.bf16.vlgmr.msra.gmra.mrb[48].mxu1 %v4045_v52 }
  0xec   : > { %1961 = vmatmul.mubr.bf16.vlgmr.msra.gmra.mrb[48].mxu0 %v4045_v52  ;;  %3382 = vmatprep.mubr.msk.bf16.mxu1 %vm746_vm0, %v3931_v19  ;;  %v2558_v52 = vld [vmem:[%s4305_s30 + $0x68] sm:$0xff] }
  0xed   : > { %3442 = vmatprep.mubr.msk.bf16.mxu0 %vm746_vm0, %v3931_v19  ;;  %v2560_v19 = vld [vmem:[%s4305_s30 + $0x78] sm:$0xff]  ;;  %2705 = vperm.xlu1 %3638, %v2567_v17  }
  0xee   : > { %2660 = vperm.xlu0 %3637, %v2558_v52   ;;  %v3706_v52 = vld [vmem:[%s3851_s16 + $0x98] sm:$0xff]  }
  0xf1   : > { %2715 = vperm.xlu1 %3638, %v2569_v43  }
  0xf2   : > { %2670 = vperm.xlu0 %3637, %v2560_v19  }
  0xf3   : > { %1404 = vmatmul.mubr.bf16.gmra.mrb[52].mxu1 %v4070_v0 }
  0xf4   : > { %1969 = vmatmul.mubr.bf16.gmra.mrb[52].mxu0 %v4070_v0  ;;  %3383 = vmatprep.mubr.msk.bf16.mxu1 %vm746_vm0, %v3946_v22  ;;  %v2562_v0 = vld [vmem:[%s4305_s30 + $0x88] sm:$0xff] }
  0xf5   : > { %3443 = vmatprep.mubr.msk.bf16.mxu0 %vm746_vm0, %v3946_v22  ;;  %v2564_v22 = vld [vmem:[%s4305_s30 + $0x98] sm:$0xff]  ;;  %2725 = vperm.xlu1 %3638, %v2571_v6   ;;  %v3708_v6 = vld [vmem:[%s3851_s16 + $0xa8] sm:$0xff]  }
  0xf6   : > { %2680 = vperm.xlu0 %3637, %v2562_v0  }
  0xf9   : > { %2735 = vperm.xlu1 %3638, %v2573_v50  }
  0xfa   : > { %2690 = vperm.xlu0 %3637, %v2564_v22  }
  0xfb   : > { %1412 = vmatmul.mubr.bf16.gmra.mrb[56].mxu1 %v4095_v21 }
  0xfc   : > { %1977 = vmatmul.mubr.bf16.gmra.mrb[56].mxu0 %v4095_v21  ;;  %3384 = vmatprep.mubr.msk.bf16.mxu1 %vm746_vm0, %v3961_v25  ;;  %v2566_v21 = vld [vmem:[%s4305_s30 + $0xa8] sm:$0xff] }
  0xfd   : > { %3444 = vmatprep.mubr.msk.bf16.mxu0 %vm746_vm0, %v3961_v25  ;;  %v2568_v25 = vld [vmem:[%s4305_s30 + $0xb8] sm:$0xff]  ;;  %2745 = vperm.xlu1 %3638, %v2575_v51  }
  0xfe   : > { %2700 = vperm.xlu0 %3637, %v2566_v21  }
 0x101   : > { %2755 = vperm.xlu1 %3638, %v2577_v10  }
 0x102   : > { %2710 = vperm.xlu0 %3637, %v2568_v25  }
 0x103   : > { %1420 = vmatmul.mubr.bf16.gmra.mrb[60].mxu1 %v4126_v41 }
 0x104   : > { %1985 = vmatmul.mubr.bf16.gmra.mrb[60].mxu0 %v4126_v41  ;;  %3385 = vmatprep.mubr.msk.bf16.mxu1 %vm746_vm0, %v3976_v28  ;;  %v2570_v41 = vld [vmem:[%s4305_s30 + $0xc8] sm:$0xff] }
 0x105   : > { %3445 = vmatprep.mubr.msk.bf16.mxu0 %vm746_vm0, %v3976_v28  ;;  %v2572_v28 = vld [vmem:[%s4305_s30 + $0xd8] sm:$0xff]  ;;  %2765 = vperm.xlu1 %3638, %v2579_v5   ;;  %v3709_v5 = vld [vmem:[%s3851_s16 + $0xb0] sm:$0xff]  }
 0x106   : > { %2720 = vperm.xlu0 %3637, %v2570_v41  }
 0x109   : > { %2775 = vperm.xlu1 %3638, %v2581_v20  }
 0x10a   : > { %2730 = vperm.xlu0 %3637, %v2572_v28  }
 0x10b   : > { %1428 = vmatmul.mubr.bf16.gmra.mrb[64].mxu1 %v4159_v49 }
 0x10c   : > { %1993 = vmatmul.mubr.bf16.gmra.mrb[64].mxu0 %v4159_v49  ;;  %3386 = vmatprep.mubr.msk.bf16.mxu1 %vm746_vm0, %v3991_v31  ;;  %v2574_v49 = vld [vmem:[%s4305_s30 + $0xe8] sm:$0xff] }
 0x10d   : > { %3446 = vmatprep.mubr.msk.bf16.mxu0 %vm746_vm0, %v3991_v31  ;;  %v2576_v31 = vld [vmem:[%s4305_s30 + $0xf8] sm:$0xff]  ;;  %2785 = vperm.xlu1 %3638, %v2583_v53  }
 0x10e   : > { %2740 = vperm.xlu0 %3637, %v2574_v49  }
 0x112   : > { %2750 = vperm.xlu0 %3637, %v2576_v31  }
 0x113   : > { %1436 = vmatmul.mubr.bf16.gmra.mrb[68].mxu1 %v4192_v57 }
 0x114   : > { %2001 = vmatmul.mubr.bf16.gmra.mrb[68].mxu0 %v4192_v57  ;;  %3387 = vmatprep.mubr.msk.bf16.mxu1 %vm746_vm0, %v4003_v33  ;;  %v2578_v57 = vld [vmem:[%s4305_s30 + $0x108] sm:$0xff] }
 0x115   : > { %3447 = vmatprep.mubr.msk.bf16.mxu0 %vm746_vm0, %v4003_v33  ;;  %v2580_v33 = vld [vmem:[%s4305_s30 + $0x118] sm:$0xff] }
 0x116   : > { %2760 = vperm.xlu0 %3637, %v2578_v57  }
 0x11a   : > { %2770 = vperm.xlu0 %3637, %v2580_v33  }
 0x11b   : > { %1444 = vmatmul.mubr.bf16.gmra.mrb[72].mxu1 %v4222_v2 }
 0x11c   : > { %2009 = vmatmul.mubr.bf16.gmra.mrb[72].mxu0 %v4222_v2  ;;  %3388 = vmatprep.mubr.msk.bf16.mxu1 %vm746_vm0, %v4011_v35  ;;  %v2582_v2 = vld [vmem:[%s4305_s30 + $0x128] sm:$0xff] }
 0x11d   : > { %3448 = vmatprep.mubr.msk.bf16.mxu0 %vm746_vm0, %v4011_v35  ;;  %v2584_v35 = vld [vmem:[%s4305_s30 + $0x138] sm:$0xff] }
 0x11e   : > { %2780 = vperm.xlu0 %3637, %v2582_v2  }
 0x122   : > { %2790 = vperm.xlu0 %3637, %v2584_v35  }
 0x123   : > { %1452 = vmatmul.mubr.bf16.gmra.mrb[76].mxu1 %v4244_v32 }
 0x124   : > { %2017 = vmatmul.mubr.bf16.gmra.mrb[76].mxu0 %v4244_v32  ;;  %3389 = vmatprep.mubr.msk.bf16.mxu1 %vm746_vm0, %v4014_v36  ;;  %v2585_v32 = vld [vmem:[%s4305_s30 + $0x140] sm:$0xff] }
 0x125   : > { %3449 = vmatprep.mubr.msk.bf16.mxu0 %vm746_vm0, %v4014_v36  ;;  %2795 = vperm.xlu1 %3638, %v2585_v32   ;;  %v2588_v36 = vld [vmem:[%s4305_s30 + $0x158] sm:$0xff] }
 0x126   : > { %2800 = vperm.xlu0 %3637, %v2586_v55  }
 0x129   : > { %2805 = vperm.xlu1 %3638, %v2587_v14  }
 0x12a   : > { %2810 = vperm.xlu0 %3637, %v2588_v36   ;;  %v3710_v36 = vld [vmem:[%s3851_s16 + $0xb8] sm:$0xff]  }
 0x12b   : > { %1460 = vmatmul.mubr.bf16.gmra.mrb[80].mxu1 %v4262_v38 }
 0x12c   : > { %2025 = vmatmul.mubr.bf16.gmra.mrb[80].mxu0 %v4262_v38  ;;  %3390 = vmatprep.mubr.msk.bf16.mxu1 %vm746_vm0, %v3699_v7  ;;  %v3700_v38 = vld [vmem:[%s3851_s16 + $0x68] sm:$0xff]  }
 0x12d   : > { %3450 = vmatprep.mubr.msk.bf16.mxu0 %vm746_vm0, %v3699_v7  ;;  %2815 = vperm.xlu1 %3638, %v2589_v29  }
 0x12e   : > { %2820 = vperm.xlu0 %3637, %v2590_v61  }
 0x131   : > { %2825 = vperm.xlu1 %3638, %v2591_v9  }
 0x132   : > { %2830 = vperm.xlu0 %3637, %v2592_v1  }
 0x133   : > { %1468 = vmatmul.mubr.bf16.gmra.mrb[84].mxu1 %v4280_v46 }
 0x134   : > { %2033 = vmatmul.mubr.bf16.gmra.mrb[84].mxu0 %v4280_v46  ;;  %3391 = vmatprep.mubr.msk.bf16.mxu1 %vm746_vm0, %v3700_v38  ;;  %v3702_v46 = vld [vmem:[%s3851_s16 + $0x78] sm:$0xff]  }
 0x135   : > { %3451 = vmatprep.mubr.msk.bf16.mxu0 %vm746_vm0, %v3700_v38 }
 0x13b   : > { %1476 = vmatmul.mubr.bf16.gmra.mrb[88].mxu1 %v4298_v60 }
 0x13c   : > { %2041 = vmatmul.mubr.bf16.gmra.mrb[88].mxu0 %v4298_v60  ;;  %3392 = vmatprep.mubr.msk.bf16.mxu1 %vm746_vm0, %v3701_v26  ;;  %v3703_v60 = vld [vmem:[%s3851_s16 + $0x80] sm:$0xff]  }
 0x13d   : > { %3452 = vmatprep.mubr.msk.bf16.mxu0 %vm746_vm0, %v3701_v26 }
 0x143   : > { %1484 = vmatmul.mubr.bf16.gmra.mrb[92].mxu1 %v4322_v12 }
 0x144   : > { %2049 = vmatmul.mubr.bf16.gmra.mrb[92].mxu0 %v4322_v12  ;;  %3393 = vmatprep.mubr.msk.bf16.mxu1 %vm746_vm0, %v3702_v46  ;;  %v3704_v12 = vld [vmem:[%s3851_s16 + $0x88] sm:$0xff]  }
 0x145   : > { %3453 = vmatprep.mubr.msk.bf16.mxu0 %vm746_vm0, %v3702_v46 }
 0x14b   : > { %1492 = vmatmul.mubr.bf16.gmra.mrb[96].mxu1 %v4039_v48 }
 0x14c   : > { %2057 = vmatmul.mubr.bf16.gmra.mrb[96].mxu0 %v4039_v48  ;;  %3394 = vmatprep.mubr.msk.bf16.mxu1 %vm746_vm0, %v3703_v60 }
 0x14d   : > { %3454 = vmatprep.mubr.msk.bf16.mxu0 %vm746_vm0, %v3703_v60 }
 0x153   : > { %1500 = vmatmul.mubr.bf16.gmra.mrb[100].mxu1 %v4063_v59 }
 0x154   : > { %2065 = vmatmul.mubr.bf16.gmra.mrb[100].mxu0 %v4063_v59  ;;  %3395 = vmatprep.mubr.msk.bf16.mxu1 %vm746_vm0, %v3704_v12 }
 0x155   : > { %3455 = vmatprep.mubr.msk.bf16.mxu0 %vm746_vm0, %v3704_v12 }
 0x15b   : > { %1508 = vmatmul.mubr.bf16.gmra.mrb[104].mxu1 %v4092_v18 }
 0x15c   : > { %2073 = vmatmul.mubr.bf16.gmra.mrb[104].mxu0 %v4092_v18  ;;  %3396 = vmatprep.mubr.msk.bf16.mxu1 %vm746_vm0, %v3705_v4 }
 0x15d   : > { %3456 = vmatprep.mubr.msk.bf16.mxu0 %vm746_vm0, %v3705_v4 }
 0x15e   : > { %v1124_v48 = vpop.f32.mrb[0].mxu1 }
 0x15f   : > { %1243 = vst.msk [vmem:[#allocation2 + $0xc0] sm:$0xff] %vm746_vm0, %v1124_v48  ;;  %v1126_v8 = vpop.f32.mrb[1].mxu1  ;;  %v1028_v59 = vpop.f32.mrb[0].mxu0 }
 0x160   : > { %v1127_v11 = vpop.f32.mrb[2].mxu1  ;;  %1219 = vst.msk [vmem:[#allocation2] sm:$0xff] %vm746_vm0, %v1028_v59  ;;  %v1030_v16 = vpop.f32.mrb[1].mxu0 }
 0x161   : > { %1244 = vst.msk [vmem:[#allocation2 + $0xc8] sm:$0xff] %vm746_vm0, %v1127_v11  ;;  %v1129_v13 = vpop.f32.mrb[3].mxu1  ;;  %v1031_v24 = vpop.f32.mrb[2].mxu0 }
 0x162   : > { %1220 = vst.msk [vmem:[#allocation2 + $0x8] sm:$0xff] %vm746_vm0, %v1031_v24  ;;  %v1033_v18 = vpop.f32.mrb[3].mxu0 }
 0x163   : > { %1516 = vmatmul.mubr.bf16.gmra.mrb[108].mxu1 %v4122_v40 }
 0x164   : > { %2081 = vmatmul.mubr.bf16.gmra.mrb[108].mxu0 %v4122_v40  ;;  %3397 = vmatprep.mubr.msk.bf16.mxu1 %vm746_vm0, %v3951_v23 }
 0x165   : > { %3457 = vmatprep.mubr.msk.bf16.mxu0 %vm746_vm0, %v3706_v52 }
 0x166   : > { %v1132_v15 = vpop.f32.mrb[4].mxu1 }
 0x167   : > { %1245 = vst.msk [vmem:[#allocation2 + $0xd0] sm:$0xff] %vm746_vm0, %v1132_v15  ;;  %v1134_v19 = vpop.f32.mrb[5].mxu1  ;;  %v1036_v27 = vpop.f32.mrb[4].mxu0 }
 0x168   : > { %v1135_v0 = vpop.f32.mrb[6].mxu1  ;;  %1221 = vst.msk [vmem:[#allocation2 + $0x10] sm:$0xff] %vm746_vm0, %v1036_v27  ;;  %v1038_v34 = vpop.f32.mrb[5].mxu0 }
 0x169   : > { %1246 = vst.msk [vmem:[#allocation2 + $0xd8] sm:$0xff] %vm746_vm0, %v1135_v0  ;;  %v1137_v22 = vpop.f32.mrb[7].mxu1  ;;  %v1039_v40 = vpop.f32.mrb[6].mxu0 }
 0x16a   : > { %1222 = vst.msk [vmem:[#allocation2 + $0x18] sm:$0xff] %vm746_vm0, %v1039_v40  ;;  %v1041_v23 = vpop.f32.mrb[7].mxu0 }
 0x16b   : > { %1524 = vmatmul.mubr.bf16.gmra.mrb[112].mxu1 %v4155_v47 }
 0x16c   : > { %2089 = vmatmul.mubr.bf16.gmra.mrb[112].mxu0 %v4155_v47  ;;  %3398 = vmatprep.mubr.msk.bf16.mxu1 %vm746_vm0, %v3707_v39 }
 0x16d   : > { %3458 = vmatprep.mubr.msk.bf16.mxu0 %vm746_vm0, %v3707_v39 }
 0x16e   : > { %v1140_v21 = vpop.f32.mrb[8].mxu1 }
 0x16f   : > { %1247 = vst.msk [vmem:[#allocation2 + $0xe0] sm:$0xff] %vm746_vm0, %v1140_v21  ;;  %v1142_v42 = vpop.f32.mrb[9].mxu1  ;;  %v1044_v25 = vpop.f32.mrb[8].mxu0 }
 0x170   : > { %v1143_v17 = vpop.f32.mrb[10].mxu1  ;;  %1223 = vst.msk [vmem:[#allocation2 + $0x20] sm:$0xff] %vm746_vm0, %v1044_v25  ;;  %v1046_v41 = vpop.f32.mrb[9].mxu0 }
 0x171   : > { %1248 = vst.msk [vmem:[#allocation2 + $0xe8] sm:$0xff] %vm746_vm0, %v1143_v17  ;;  %v1145_v43 = vpop.f32.mrb[11].mxu1  ;;  %v1047_v28 = vpop.f32.mrb[10].mxu0 }
 0x172   : > { %1224 = vst.msk [vmem:[#allocation2 + $0x28] sm:$0xff] %vm746_vm0, %v1047_v28  ;;  %v1049_v47 = vpop.f32.mrb[11].mxu0 }
 0x173   : > { %1532 = vmatmul.mubr.bf16.gmra.mrb[116].mxu1 %v4186_v56 }
 0x174   : > { %2097 = vmatmul.mubr.bf16.gmra.mrb[116].mxu0 %v4186_v56  ;;  %3399 = vmatprep.mubr.msk.bf16.mxu1 %vm746_vm0, %v3708_v6 }
 0x175   : > { %3459 = vmatprep.mubr.msk.bf16.mxu0 %vm746_vm0, %v3708_v6 }
 0x176   : > { %v1148_v49 = vpop.f32.mrb[12].mxu1 }
 0x177   : > { %1249 = vst.msk [vmem:[#allocation2 + $0xf0] sm:$0xff] %vm746_vm0, %v1148_v49  ;;  %v1150_v50 = vpop.f32.mrb[13].mxu1  ;;  %v1052_v31 = vpop.f32.mrb[12].mxu0 }
 0x178   : > { %v1151_v51 = vpop.f32.mrb[14].mxu1  ;;  %1225 = vst.msk [vmem:[#allocation2 + $0x30] sm:$0xff] %vm746_vm0, %v1052_v31  ;;  %v1054_v57 = vpop.f32.mrb[13].mxu0 }
 0x179   : > { %1250 = vst.msk [vmem:[#allocation2 + $0xf8] sm:$0xff] %vm746_vm0, %v1151_v51  ;;  %v1153_v10 = vpop.f32.mrb[15].mxu1  ;;  %v1055_v33 = vpop.f32.mrb[14].mxu0 }
 0x17a   : > { %1226 = vst.msk [vmem:[#allocation2 + $0x38] sm:$0xff] %vm746_vm0, %v1055_v33  ;;  %v1057_v56 = vpop.f32.mrb[15].mxu0 }
 0x17b   : > { %1540 = vmatmul.mubr.bf16.gmra.mrb[120].mxu1 %v4218_v63  ;;  %v1684_v56 = vlaneseq }
 0x17c   : > { %2105 = vmatmul.mubr.bf16.gmra.mrb[120].mxu0 %v4218_v63  ;;  %3400 = vmatprep.mubr.msk.bf16.mxu1 %vm746_vm0, %v3709_v5 }
 0x17d   : > { %3460 = vmatprep.mubr.msk.bf16.mxu0 %vm746_vm0, %v3709_v5 }
 0x17e   : > { %v1156_v2 = vpop.f32.mrb[16].mxu1 }
 0x17f   : > { %1251 = vst.msk [vmem:[#allocation2 + $0x100] sm:$0xff] %vm746_vm0, %v1156_v2  ;;  %v1158_v20 = vpop.f32.mrb[17].mxu1  ;;  %v1060_v35 = vpop.f32.mrb[16].mxu0 }
 0x180   : > { %v1159_v53 = vpop.f32.mrb[18].mxu1  ;;  %1227 = vst.msk [vmem:[#allocation2 + $0x40] sm:$0xff] %vm746_vm0, %v1060_v35  ;;  %v1062_v55 = vpop.f32.mrb[17].mxu0  ;;  %v4551_v35 = vshrl.u32 %v1684_v56, 7 }
 0x181   : > { %1252 = vst.msk [vmem:[#allocation2 + $0x108] sm:$0xff] %vm746_vm0, %v1159_v53  ;;  %v1161_v32 = vpop.f32.mrb[19].mxu1  ;;  %v1063_v7 = vpop.f32.mrb[18].mxu0 }
 0x182   : > { %1228 = vst.msk [vmem:[#allocation2 + $0x48] sm:$0xff] %vm746_vm0, %v1063_v7  ;;  %v1065_v63 = vpop.f32.mrb[19].mxu0  ;;  %vm1686_vm1 = vcmp.lt.s32.totalorder %v4551_v35, 1  ;;  %vm2249_vm2 = vcmp.lt.s32.totalorder %v4551_v35, 7 }
 0x183   : > { %1548 = vmatmul.mubr.bf16.gmra.mrb[124].mxu1 %v4240_v3 }
 0x184   : > { %2113 = vmatmul.mubr.bf16.gmra.mrb[124].mxu0 %v4240_v3  ;;  %3401 = vmatprep.mubr.msk.bf16.mxu1 %vm746_vm0, %v3710_v36 }
 0x185   : > { %3461 = vmatprep.mubr.msk.bf16.mxu0 %vm746_vm0, %v3710_v36 }
 0x186   : > { %v1164_v14 = vpop.f32.mrb[20].mxu1 }
 0x187   : > { %1253 = vst.msk [vmem:[#allocation2 + $0x110] sm:$0xff] %vm746_vm0, %v1164_v14  ;;  %v1166_v61 = vpop.f32.mrb[21].mxu1  ;;  %v1068_v29 = vpop.f32.mrb[20].mxu0 }
 0x188   : > { %v1167_v38 = vpop.f32.mrb[22].mxu1  ;;  %1229 = vst.msk [vmem:[#allocation2 + $0x50] sm:$0xff] %vm746_vm0, %v1068_v29  ;;  %v1070_v1 = vpop.f32.mrb[21].mxu0 }
 0x189   : > { %1254 = vst.msk [vmem:[#allocation2 + $0x118] sm:$0xff] %vm746_vm0, %v1167_v38  ;;  %v1169_v9 = vpop.f32.mrb[23].mxu1  ;;  %v1071_v26 = vpop.f32.mrb[22].mxu0 }
 0x18a   : > { %1230 = vst.msk [vmem:[#allocation2 + $0x58] sm:$0xff] %vm746_vm0, %v1071_v26  ;;  %v1073_v3 = vpop.f32.mrb[23].mxu0  ;;  %v1589_v26 = vld [vmem:[#allocation2 + $0x8] sm:$0xff] }
 0x18b   : > { %1556 = vmatmul.mubr.bf16.gmra.mrb[128].mxu1 %v4256_v30 }
 0x18c   : > { %2121 = vmatmul.mubr.bf16.gmra.mrb[128].mxu0 %v4256_v30  ;;  %3402 = vmatprep.mubr.msk.bf16.mxu1 %vm746_vm0, %v4258_v37 }
 0x18d   : > { %3462 = vmatprep.mubr.msk.bf16.mxu0 %vm746_vm0, %v4258_v37 }
 0x18e   : > { %v1172_v46 = vpop.f32.mrb[24].mxu1 }
 0x18f   : > { %1255 = vst.msk [vmem:[#allocation2 + $0x120] sm:$0xff] %vm746_vm0, %v1172_v46  ;;  %v1174_v60 = vpop.f32.mrb[25].mxu1  ;;  %v1076_v12 = vpop.f32.mrb[24].mxu0 }
 0x190   : > { %v1175_v4 = vpop.f32.mrb[26].mxu1  ;;  %1231 = vst.msk [vmem:[#allocation2 + $0x60] sm:$0xff] %vm746_vm0, %v1076_v12  ;;  %v1078_v48 = vpop.f32.mrb[25].mxu0 }
 0x191   : > { %1256 = vst.msk [vmem:[#allocation2 + $0x128] sm:$0xff] %vm746_vm0, %v1175_v4  ;;  %v1177_v8 = vpop.f32.mrb[27].mxu1  ;;  %v1079_v59 = vpop.f32.mrb[26].mxu0 }
 0x192   : > { %1232 = vst.msk [vmem:[#allocation2 + $0x68] sm:$0xff] %vm746_vm0, %v1079_v59  ;;  %v1081_v30 = vpop.f32.mrb[27].mxu0 }
 0x193   : > { %1564 = vmatmul.mubr.bf16.gmra.mrb[132].mxu1 %v4274_v44 }
 0x194   : > { %2129 = vmatmul.mubr.bf16.gmra.mrb[132].mxu0 %v4274_v44  ;;  %3403 = vmatprep.mubr.msk.bf16.mxu1 %vm746_vm0, %v4276_v45 }
 0x195   : > { %3463 = vmatprep.mubr.msk.bf16.mxu0 %vm746_vm0, %v4276_v45 }
 0x196   : > { %v1180_v37 = vpop.f32.mrb[28].mxu1 }
 0x197   : > { %1257 = vst.msk [vmem:[#allocation2 + $0x130] sm:$0xff] %vm746_vm0, %v1180_v37  ;;  %v1182_v11 = vpop.f32.mrb[29].mxu1  ;;  %v1084_v16 = vpop.f32.mrb[28].mxu0 }
 0x198   : > { %v1183_v13 = vpop.f32.mrb[30].mxu1  ;;  %1233 = vst.msk [vmem:[#allocation2 + $0x70] sm:$0xff] %vm746_vm0, %v1084_v16  ;;  %v1086_v24 = vpop.f32.mrb[29].mxu0  ;;  %v1590_v11 = vld [vmem:[#allocation2 + $0x10] sm:$0xff] }
 0x199   : > { %1258 = vst.msk [vmem:[#allocation2 + $0x138] sm:$0xff] %vm746_vm0, %v1183_v13  ;;  %v1185_v18 = vpop.f32.mrb[31].mxu1  ;;  %v1087_v52 = vpop.f32.mrb[30].mxu0 }
 0x19a   : > { %1234 = vst.msk [vmem:[#allocation2 + $0x78] sm:$0xff] %vm746_vm0, %v1087_v52  ;;  %v1089_v44 = vpop.f32.mrb[31].mxu0 }
 0x19b   : > { %1572 = vmatmul.mubr.bf16.gmra.mrb[136].mxu1 %v4292_v54 }
 0x19c   : > { %2137 = vmatmul.mubr.bf16.gmra.mrb[136].mxu0 %v4292_v54  ;;  %3404 = vmatprep.mubr.msk.bf16.mxu1 %vm746_vm0, %v4294_v58 }
 0x19d   : > { %3464 = vmatprep.mubr.msk.bf16.mxu0 %vm746_vm0, %v4294_v58 }
 0x19e   : > { %v1188_v45 = vpop.f32.mrb[32].mxu1 }
 0x19f   : > { %1259 = vst.msk [vmem:[#allocation2 + $0x140] sm:$0xff] %vm746_vm0, %v1188_v45  ;;  %v1190_v15 = vpop.f32.mrb[33].mxu1  ;;  %v1092_v19 = vpop.f32.mrb[32].mxu0 }
 0x1a0   : > { %v1191_v27 = vpop.f32.mrb[34].mxu1  ;;  %1235 = vst.msk [vmem:[#allocation2 + $0x80] sm:$0xff] %vm746_vm0, %v1092_v19  ;;  %v1094_v0 = vpop.f32.mrb[33].mxu0  ;;  %v1591_v19 = vld [vmem:[#allocation2 + $0x18] sm:$0xff] }
 0x1a1   : > { %1260 = vst.msk [vmem:[#allocation2 + $0x148] sm:$0xff] %vm746_vm0, %v1191_v27  ;;  %v1193_v34 = vpop.f32.mrb[35].mxu1  ;;  %v1095_v22 = vpop.f32.mrb[34].mxu0 }
 0x1a2   : > { %1236 = vst.msk [vmem:[#allocation2 + $0x88] sm:$0xff] %vm746_vm0, %v1095_v22  ;;  %v1097_v54 = vpop.f32.mrb[35].mxu0 }
 0x1a3   : > { %1580 = vmatmul.mubr.bf16.gmra.mrb[140].mxu1 %v4316_v62 }
 0x1a4   : > { %2145 = vmatmul.mubr.bf16.gmra.mrb[140].mxu0 %v4316_v62 }
 0x1a6   : > { %v1196_v58 = vpop.f32.mrb[36].mxu1 }
 0x1a7   : > { %1261 = vst.msk [vmem:[#allocation2 + $0x150] sm:$0xff] %vm746_vm0, %v1196_v58  ;;  %v1198_v40 = vpop.f32.mrb[37].mxu1  ;;  %v1100_v23 = vpop.f32.mrb[36].mxu0 }
 0x1a8   : > { %v1199_v39 = vpop.f32.mrb[38].mxu1  ;;  %1237 = vst.msk [vmem:[#allocation2 + $0x90] sm:$0xff] %vm746_vm0, %v1100_v23  ;;  %v1102_v21 = vpop.f32.mrb[37].mxu0 }
 0x1a9   : > { %1262 = vst.msk [vmem:[#allocation2 + $0x158] sm:$0xff] %vm746_vm0, %v1199_v39  ;;  %v1201_v42 = vpop.f32.mrb[39].mxu1  ;;  %v1103_v25 = vpop.f32.mrb[38].mxu0 }
 0x1aa   : > { %1238 = vst.msk [vmem:[#allocation2 + $0x98] sm:$0xff] %vm746_vm0, %v1103_v25  ;;  %v1105_v17 = vpop.f32.mrb[39].mxu0 }
 0x1ab   : > { %v1592_v17 = vld [vmem:[#allocation2 + $0x20] sm:$0xff] }
 0x1ae   : > { %v1204_v41 = vpop.f32.mrb[40].mxu1 }
 0x1af   : > { %1263 = vst.msk [vmem:[#allocation2 + $0x160] sm:$0xff] %vm746_vm0, %v1204_v41  ;;  %v1206_v62 = vpop.f32.mrb[41].mxu1  ;;  %v1108_v43 = vpop.f32.mrb[40].mxu0 }
 0x1b0   : > { %v1207_v28 = vpop.f32.mrb[42].mxu1  ;;  %1239 = vst.msk [vmem:[#allocation2 + $0xa0] sm:$0xff] %vm746_vm0, %v1108_v43  ;;  %v1110_v47 = vpop.f32.mrb[41].mxu0 }
 0x1b1   : > { %1264 = vst.msk [vmem:[#allocation2 + $0x168] sm:$0xff] %vm746_vm0, %v1207_v28  ;;  %v1209_v6 = vpop.f32.mrb[43].mxu1  ;;  %v1111_v49 = vpop.f32.mrb[42].mxu0 }
 0x1b2   : > { %1240 = vst.msk [vmem:[#allocation2 + $0xa8] sm:$0xff] %vm746_vm0, %v1111_v49  ;;  %v1113_v50 = vpop.f32.mrb[43].mxu0 }
 0x1b6   : > { %v1212_v31 = vpop.f32.mrb[44].mxu1 }
 0x1b7   : > { %1265 = vst.msk [vmem:[#allocation2 + $0x170] sm:$0xff] %vm746_vm0, %v1212_v31  ;;  %v1214_v51 = vpop.f32.mrb[45].mxu1  ;;  %v1116_v57 = vpop.f32.mrb[44].mxu0 }
 0x1b8   : > { %v1215_v10 = vpop.f32.mrb[46].mxu1  ;;  %1241 = vst.msk [vmem:[#allocation2 + $0xb0] sm:$0xff] %vm746_vm0, %v1116_v57  ;;  %v1118_v33 = vpop.f32.mrb[45].mxu0  ;;  %v1593_v51 = vld [vmem:[#allocation2 + $0x28] sm:$0xff] }
 0x1b9   : > { %1266 = vst.msk [vmem:[#allocation2 + $0x178] sm:$0xff] %vm746_vm0, %v1215_v10  ;;  %v1217_v5 = vpop.f32.mrb[47].mxu1  ;;  %v1119_v2 = vpop.f32.mrb[46].mxu0 }
 0x1ba   : > { %1242 = vst.msk [vmem:[#allocation2 + $0xb8] sm:$0xff] %vm746_vm0, %v1119_v2  ;;  %v1121_v20 = vpop.f32.mrb[47].mxu0  ;;  %v4595_v2 = vld [vmem:[%s5042_s4] ss:$0 sm:$0xff] }
 0x1be   : > { %v4553_v53 = vpop.f32.mrb[48].mxu1 }
 0x1bf   : > { %v4555_v55 = vpop.f32.mrb[48].mxu0  ;;  %v1399_v32 = vpop.f32.mrb[49].mxu1  ;;  %v1636_v36 = vrot.slane %v4553_v53, 7 }
 0x1c0   : > { %v1964_v7 = vpop.f32.mrb[49].mxu0  ;;  %v1400_v63 = vpop.f32.mrb[50].mxu1  ;;  %v2201_v38 = vrot.slane %v4555_v55, 1 }
 0x1c1   : > { %v1637_v14 = vrot.slane %v1400_v63, 7  ;;  %v1965_v61 = vpop.f32.mrb[50].mxu0  ;;  %v1402_v29 = vpop.f32.mrb[51].mxu1 }
 0x1c2   : > { %v2202_v1 = vrot.slane %v1965_v61, 1  ;;  %v1967_v9 = vpop.f32.mrb[51].mxu0  ;;  %v2601_v7 = vpop.permute.xlu1 %2600 }
 0x1c3   : > { %v1733_v3 = vsel %vm1686_vm1, %v1636_v36, %v1637_v14 }
 0x1c4   : > { %v1736_v46 = vadd.f32 %v1733_v3, %v1589_v26  ;;  %v4569_v60 = vsel %vm2249_vm2, %v2201_v38, %v2202_v1 }
 0x1c6   : > { %1784 = vst.msk [vmem:[#allocation2 + $0x8] sm:$0xff] %vm746_vm0, %v1736_v46  ;;  %v1405_v12 = vpop.f32.mrb[52].mxu1  ;;  %v1594_v46 = vld [vmem:[#allocation2 + $0x30] sm:$0xff] }
 0x1c7   : > { %v1638_v4 = vrot.slane %v1405_v12, 7  ;;  %v1970_v48 = vpop.f32.mrb[52].mxu0  ;;  %v1407_v8 = vpop.f32.mrb[53].mxu1 }
 0x1c8   : > { %v2203_v59 = vrot.slane %v1970_v48, 1  ;;  %v1972_v30 = vpop.f32.mrb[53].mxu0  ;;  %v1408_v37 = vpop.f32.mrb[54].mxu1 }
 0x1c9   : > { %v1732_v16 = vsel %vm1686_vm1, %v1637_v14, %v1638_v4  ;;  %v1639_v13 = vrot.slane %v1408_v37, 7  ;;  %v1973_v24 = vpop.f32.mrb[54].mxu0  ;;  %v1410_v18 = vpop.f32.mrb[55].mxu1 }
 0x1ca   : > { %v1737_v52 = vadd.f32 %v1732_v16, %v1590_v11  ;;  %v2295_v44 = vsel %vm2249_vm2, %v2202_v1, %v2203_v59  ;;  %v2204_v45 = vrot.slane %v1973_v24, 1  ;;  %v1975_v15 = vpop.f32.mrb[55].mxu0  ;;  %v1595_v24 = vld [vmem:[#allocation2 + $0x38] sm:$0xff] }
 0x1cb   : > { %v1731_v27 = vsel %vm1686_vm1, %v1638_v4, %v1639_v13 }
 0x1cc   : > { %1785 = vst.msk [vmem:[#allocation2 + $0x10] sm:$0xff] %vm746_vm0, %v1737_v52  ;;  %v1738_v0 = vadd.f32 %v1731_v27, %v1591_v19  ;;  %v2294_v34 = vsel %vm2249_vm2, %v2203_v59, %v2204_v45  ;;  %v4610_v27 = vpop.permute.xlu0 %2595 }
 0x1cd   : > { %v2154_v22 = vld [vmem:[#allocation2 + $0x8] sm:$0xff] }
 0x1ce   : > { %v2299_v54 = vadd.f32 %v2295_v44, %v2154_v22  ;;  %1786 = vst.msk [vmem:[#allocation2 + $0x18] sm:$0xff] %vm746_vm0, %v1738_v0  ;;  %v1413_v58 = vpop.f32.mrb[56].mxu1 }
 0x1cf   : > { %v1640_v40 = vrot.slane %v1413_v58, 7  ;;  %v1978_v23 = vpop.f32.mrb[56].mxu0  ;;  %v1415_v39 = vpop.f32.mrb[57].mxu1 }
 0x1d0   : > { %2347 = vst.msk [vmem:[#allocation2 + $0x8] sm:$0xff] %vm746_vm0, %v2299_v54  ;;  %v2205_v21 = vrot.slane %v1978_v23, 1  ;;  %v1980_v42 = vpop.f32.mrb[57].mxu0  ;;  %v1416_v25 = vpop.f32.mrb[58].mxu1 }
 0x1d1   : > { %v1730_v41 = vsel %vm1686_vm1, %v1639_v13, %v1640_v40  ;;  %v1641_v62 = vrot.slane %v1416_v25, 7  ;;  %v1981_v43 = vpop.f32.mrb[58].mxu0  ;;  %v1418_v28 = vpop.f32.mrb[59].mxu1 }
 0x1d2   : > { %v1739_v47 = vadd.f32 %v1730_v41, %v1592_v17  ;;  %v2293_v6 = vsel %vm2249_vm2, %v2204_v45, %v2205_v21  ;;  %v2206_v49 = vrot.slane %v1981_v43, 1  ;;  %v1983_v50 = vpop.f32.mrb[59].mxu0  ;;  %v2606_v58 = vpop.permute.xlu1 %2605  ;;  %v1596_v28 = vld [vmem:[#allocation2 + $0x40] sm:$0xff] }
 0x1d3   : > { %v2155_v31 = vld [vmem:[#allocation2 + $0x10] sm:$0xff]  ;;  %v1729_v57 = vsel %vm1686_vm1, %v1640_v40, %v1641_v62 }
 0x1d4   : > { %v2300_v10 = vadd.f32 %v2294_v34, %v2155_v31  ;;  %1787 = vst.msk [vmem:[#allocation2 + $0x20] sm:$0xff] %vm746_vm0, %v1739_v47  ;;  %v1740_v33 = vadd.f32 %v1729_v57, %v1593_v51  ;;  %v2292_v56 = vsel %vm2249_vm2, %v2205_v21, %v2206_v49 }
 0x1d5   : > { %v2156_v5 = vld [vmem:[#allocation2 + $0x18] sm:$0xff] }
 0x1d6   : > { %2348 = vst.msk [vmem:[#allocation2 + $0x10] sm:$0xff] %vm746_vm0, %v2300_v10  ;;  %v2301_v20 = vadd.f32 %v2293_v6, %v2156_v5  ;;  %1788 = vst.msk [vmem:[#allocation2 + $0x28] sm:$0xff] %vm746_vm0, %v1740_v33  ;;  %v1421_v32 = vpop.f32.mrb[60].mxu1  ;;  %v2611_v5 = vpop.permute.xlu0 %2610 }
 0x1d7   : > { %v1642_v63 = vrot.slane %v1421_v32, 7  ;;  %v1986_v14 = vpop.f32.mrb[60].mxu0  ;;  %v1423_v61 = vpop.f32.mrb[61].mxu1  ;;  %v2395_v29 = vld [vmem:[#allocation2 + $0x8] sm:$0xff] }
 0x1d8   : > { %2349 = vst.msk [vmem:[#allocation2 + $0x18] sm:$0xff] %vm746_vm0, %v2301_v20  ;;  %v2207_v1 = vrot.slane %v1986_v14, 1  ;;  %v1988_v9 = vpop.f32.mrb[61].mxu0  ;;  %v1424_v26 = vpop.f32.mrb[62].mxu1  ;;  %v2450_v3 = vadd.f32 %v4595_v2, %v2395_v29  ;;  %v1597_v20 = vld [vmem:[#allocation2 + $0x48] sm:$0xff] }
 0x1d9   : > { %v1728_v12 = vsel %vm1686_vm1, %v1641_v62, %v1642_v63  ;;  %v1643_v4 = vrot.slane %v1424_v26, 7  ;;  %v1989_v48 = vpop.f32.mrb[62].mxu0  ;;  %v1426_v8 = vpop.f32.mrb[63].mxu1 }
 0x1da   : > { %v1741_v59 = vadd.f32 %v1728_v12, %v1594_v46  ;;  %v2291_v30 = vsel %vm2249_vm2, %v2206_v49, %v2207_v1  ;;  %v2208_v37 = vrot.slane %v1989_v48, 1  ;;  %v1991_v11 = vpop.f32.mrb[63].mxu0  ;;  %v2498_v16 = vmax.f32 %v2450_v3, 0.0  ;;  %v2616_v12 = vpop.permute.xlu1 %2615 }
 0x1db   : > { %v2157_v13 = vld [vmem:[#allocation2 + $0x20] sm:$0xff]  ;;  %v1727_v18 = vsel %vm1686_vm1, %v1642_v63, %v1643_v4 }
 0x1dc   : > { %v2302_v52 = vadd.f32 %v2292_v56, %v2157_v13  ;;  %1789 = vst.msk [vmem:[#allocation2 + $0x30] sm:$0xff] %vm746_vm0, %v1741_v59  ;;  %v1742_v44 = vadd.f32 %v1727_v18, %v1595_v24  ;;  %v2290_v45 = vsel %vm2249_vm2, %v2207_v1, %v2208_v37  ;;  %v2834_v15 = vmul.f32 %v2601_v7, %v2498_v16 }
 0x1dd   : > { %v2158_v19 = vld [vmem:[#allocation2 + $0x28] sm:$0xff]  ;;  %v2396_v0 = vld [vmem:[#allocation2 + $0x10] sm:$0xff] }
 0x1de   : > { %2350 = vst.msk [vmem:[#allocation2 + $0x20] sm:$0xff] %vm746_vm0, %v2302_v52  ;;  %v2303_v34 = vadd.f32 %v2291_v30, %v2158_v19  ;;  %1790 = vst.msk [vmem:[#allocation2 + $0x38] sm:$0xff] %vm746_vm0, %v1742_v44  ;;  %v3523_v22 = vpack.c.bf16 %v2834_v15, %v2834_v15  ;;  %v1429_v54 = vpop.f32.mrb[64].mxu1  ;;  %v2451_v40 = vadd.f32 %v4595_v2, %v2396_v0  ;;  %v1598_v52 = vld [vmem:[#allocation2 + $0x50] sm:$0xff] }
 0x1df   : > { %v1644_v23 = vrot.slane %v1429_v54, 7  ;;  %v1994_v39 = vpop.f32.mrb[64].mxu0  ;;  %v2397_v21 = vld [vmem:[#allocation2 + $0x18] sm:$0xff]  ;;  %v1431_v42 = vpop.f32.mrb[65].mxu1 }
 0x1e0   : > { %2351 = vst.msk [vmem:[#allocation2 + $0x28] sm:$0xff] %vm746_vm0, %v2303_v34  ;;  %v2209_v25 = vrot.slane %v1994_v39, 1  ;;  %v2452_v17 = vadd.f32 %v4595_v2, %v2397_v21  ;;  %v2499_v41 = vmax.f32 %v2451_v40, 0.0  ;;  %v1996_v62 = vpop.f32.mrb[65].mxu0  ;;  %v1432_v43 = vpop.f32.mrb[66].mxu1  ;;  %v1599_v39 = vld [vmem:[#allocation2 + $0x58] sm:$0xff] }
 0x1e1   : > { %3075 = vst.msk [vmem:[%s4616_s14 + $0x4] sm:$0xf] %vm3073_vm3, %v3523_v22  ;;  %v1726_v47 = vsel %vm1686_vm1, %v1643_v4, %v1644_v23  ;;  %v1645_v6 = vrot.slane %v1432_v43, 7  ;;  %v1997_v49 = vpop.f32.mrb[66].mxu0  ;;  %v1434_v50 = vpop.f32.mrb[67].mxu1 }
 0x1e2   : > { %v1743_v31 = vadd.f32 %v1726_v47, %v1596_v28  ;;  %v2289_v51 = vsel %vm2249_vm2, %v2208_v37, %v2209_v25  ;;  %v2500_v57 = vmax.f32 %v2452_v17, 0.0  ;;  %v2835_v10 = vmul.f32 %v2606_v58, %v2499_v41  ;;  %v1999_v33 = vpop.f32.mrb[67].mxu0  ;;  %v2626_v50 = vpop.permute.xlu1 %2625 }
 0x1e3   : > { %v2159_v56 = vld [vmem:[#allocation2 + $0x30] sm:$0xff]  ;;  %v1725_v32 = vsel %vm1686_vm1, %v1644_v23, %v1645_v6  ;;  %v2210_v7 = vrot.slane %v1997_v49, 1  ;;  %v2621_v23 = vpop.permute.xlu0 %2620 }
 0x1e4   : > { %v2304_v63 = vadd.f32 %v2290_v45, %v2159_v56  ;;  %1791 = vst.msk [vmem:[#allocation2 + $0x40] sm:$0xff] %vm746_vm0, %v1743_v31  ;;  %v2836_v14 = vmul.f32 %v2611_v5, %v2500_v57  ;;  %v3524_v61 = vpack.c.bf16 %v2835_v10, %v2835_v10  ;;  %v1744_v29 = vadd.f32 %v1725_v32, %v1597_v20 }
 0x1e5   : > { %v2160_v1 = vld [vmem:[#allocation2 + $0x38] sm:$0xff]  ;;  %v2288_v9 = vsel %vm2249_vm2, %v2209_v25, %v2210_v7  ;;  %v2398_v26 = vld [vmem:[#allocation2 + $0x20] sm:$0xff] }
 0x1e6   : > { %2352 = vst.msk [vmem:[#allocation2 + $0x30] sm:$0xff] %vm746_vm0, %v2304_v63  ;;  %v2305_v3 = vadd.f32 %v2289_v51, %v2160_v1  ;;  %v3525_v46 = vpack.c.bf16 %v2836_v14, %v2836_v14  ;;  %1792 = vst.msk [vmem:[#allocation2 + $0x48] sm:$0xff] %vm746_vm0, %v1744_v29  ;;  %v2453_v4 = vadd.f32 %v4595_v2, %v2398_v26  ;;  %v1437_v48 = vpop.f32.mrb[68].mxu1  ;;  %v1600_v14 = vld [vmem:[#allocation2 + $0x60] sm:$0xff] }
 0x1e7   : > { %3076 = vst.msk [vmem:[%s4616_s14 + $0x8] sm:$0xf] %vm3073_vm3, %v3524_v61  ;;  %v2399_v8 = vld [vmem:[#allocation2 + $0x28] sm:$0xff]  ;;  %v1646_v59 = vrot.slane %v1437_v48, 7  ;;  %v2002_v30 = vpop.f32.mrb[68].mxu0  ;;  %v1439_v37 = vpop.f32.mrb[69].mxu1 }
 0x1e8   : > { %2353 = vst.msk [vmem:[#allocation2 + $0x38] sm:$0xff] %vm746_vm0, %v2305_v3  ;;  %v2454_v11 = vadd.f32 %v4595_v2, %v2399_v8  ;;  %v2501_v16 = vmax.f32 %v2453_v4, 0.0  ;;  %v2211_v13 = vrot.slane %v2002_v30, 1  ;;  %v2004_v24 = vpop.f32.mrb[69].mxu0  ;;  %v1440_v18 = vpop.f32.mrb[70].mxu1 }
 0x1e9   : > { %3077 = vst.msk [vmem:[%s4616_s14 + $0xc] sm:$0xf] %vm3073_vm3, %v3525_v46  ;;  %v1724_v44 = vsel %vm1686_vm1, %v1645_v6, %v1646_v59  ;;  %v1647_v45 = vrot.slane %v1440_v18, 7  ;;  %v2005_v15 = vpop.f32.mrb[70].mxu0  ;;  %v1442_v19 = vpop.f32.mrb[71].mxu1 }
 0x1ea   : > { %v2502_v0 = vmax.f32 %v2454_v11, 0.0  ;;  %v2837_v34 = vmul.f32 %v2616_v12, %v2501_v16  ;;  %v1745_v22 = vadd.f32 %v1724_v44, %v1598_v52  ;;  %v2287_v54 = vsel %vm2249_vm2, %v2210_v7, %v2211_v13  ;;  %v2007_v58 = vpop.f32.mrb[71].mxu0  ;;  %v2631_v48 = vpop.permute.xlu0 %2630 }
 0x1eb   : > { %v2161_v40 = vld [vmem:[#allocation2 + $0x40] sm:$0xff]  ;;  %v1723_v21 = vsel %vm1686_vm1, %v1646_v59, %v1647_v45  ;;  %v2212_v42 = vrot.slane %v2005_v15, 1  ;;  %v1601_v59 = vld [vmem:[#allocation2 + $0x68] sm:$0xff]  ;;  %v2636_v15 = vpop.permute.xlu1 %2635 }
 0x1ec   : > { %v2306_v25 = vadd.f32 %v2288_v9, %v2161_v40  ;;  %v2838_v17 = vmul.f32 %v2621_v23, %v2502_v0  ;;  %v3526_v41 = vpack.c.bf16 %v2837_v34, %v2837_v34  ;;  %1793 = vst.msk [vmem:[#allocation2 + $0x50] sm:$0xff] %vm746_vm0, %v1745_v22  ;;  %v1746_v62 = vadd.f32 %v1723_v21, %v1599_v39 }
 0x1ed   : > { %v2162_v43 = vld [vmem:[#allocation2 + $0x48] sm:$0xff]  ;;  %v2400_v28 = vld [vmem:[#allocation2 + $0x30] sm:$0xff]  ;;  %v2286_v47 = vsel %vm2249_vm2, %v2211_v13, %v2212_v42 }
 0x1ee   : > { %2354 = vst.msk [vmem:[#allocation2 + $0x40] sm:$0xff] %vm746_vm0, %v2306_v25  ;;  %v3527_v6 = vpack.c.bf16 %v2838_v17, %v2838_v17  ;;  %v2307_v49 = vadd.f32 %v2287_v54, %v2162_v43  ;;  %v2455_v31 = vadd.f32 %v4595_v2, %v2400_v28  ;;  %1794 = vst.msk [vmem:[#allocation2 + $0x58] sm:$0xff] %vm746_vm0, %v1746_v62  ;;  %v1445_v51 = vpop.f32.mrb[72].mxu1  ;;  %v1602_v17 = vld [vmem:[#allocation2 + $0x70] sm:$0xff] }
 0x1ef   : > { %3078 = vst.msk [vmem:[%s4616_s14 + $0x10] sm:$0xf] %vm3073_vm3, %v3526_v41  ;;  %v2401_v57 = vld [vmem:[#allocation2 + $0x38] sm:$0xff]  ;;  %v1648_v10 = vrot.slane %v1445_v51, 7  ;;  %v2010_v33 = vpop.f32.mrb[72].mxu0  ;;  %v1447_v56 = vpop.f32.mrb[73].mxu1 }
 0x1f0   : > { %3079 = vst.msk [vmem:[%s4616_s14 + $0x14] sm:$0xf] %vm3073_vm3, %v3527_v6  ;;  %v2456_v5 = vadd.f32 %v4595_v2, %v2401_v57  ;;  %v2503_v20 = vmax.f32 %v2455_v31, 0.0  ;;  %v2213_v32 = vrot.slane %v2010_v33, 1  ;;  %v2012_v7 = vpop.f32.mrb[73].mxu0  ;;  %v1448_v63 = vpop.f32.mrb[74].mxu1 }
 0x1f1   : > { %2355 = vst.msk [vmem:[#allocation2 + $0x48] sm:$0xff] %vm746_vm0, %v2307_v49  ;;  %v1722_v61 = vsel %vm1686_vm1, %v1647_v45, %v1648_v10  ;;  %v1649_v29 = vrot.slane %v1448_v63, 7  ;;  %v2013_v1 = vpop.f32.mrb[74].mxu0  ;;  %v1450_v9 = vpop.f32.mrb[75].mxu1 }
 0x1f2   : > { %v2504_v26 = vmax.f32 %v2456_v5, 0.0  ;;  %v2839_v3 = vmul.f32 %v2626_v50, %v2503_v20  ;;  %v1747_v46 = vadd.f32 %v1722_v61, %v1600_v14  ;;  %v2285_v12 = vsel %vm2249_vm2, %v2212_v42, %v2213_v32  ;;  %v2015_v4 = vpop.f32.mrb[75].mxu0  ;;  %v2641_v51 = vpop.permute.xlu0 %2640 }
 0x1f3   : > { %v2163_v8 = vld [vmem:[#allocation2 + $0x50] sm:$0xff]  ;;  %v1721_v30 = vsel %vm1686_vm1, %v1648_v10, %v1649_v29  ;;  %v2214_v37 = vrot.slane %v2013_v1, 1  ;;  %v1603_v10 = vld [vmem:[#allocation2 + $0x78] sm:$0xff]  ;;  %v2646_v1 = vpop.permute.xlu1 %2645 }
 0x1f4   : > { %v2840_v11 = vmul.f32 %v2631_v48, %v2504_v26  ;;  %v3528_v16 = vpack.c.bf16 %v2839_v3, %v2839_v3  ;;  %v2308_v13 = vadd.f32 %v2286_v47, %v2163_v8  ;;  %1795 = vst.msk [vmem:[#allocation2 + $0x60] sm:$0xff] %vm746_vm0, %v1747_v46  ;;  %v1748_v24 = vadd.f32 %v1721_v30, %v1601_v59 }
 0x1f5   : > { %v2402_v18 = vld [vmem:[#allocation2 + $0x40] sm:$0xff]  ;;  %v2164_v52 = vld [vmem:[#allocation2 + $0x58] sm:$0xff]  ;;  %v2284_v44 = vsel %vm2249_vm2, %v2213_v32, %v2214_v37 }
 0x1f6   : > { %v3529_v45 = vpack.c.bf16 %v2840_v11, %v2840_v11  ;;  %3080 = vst.msk [vmem:[%s4616_s14 + $0x18] sm:$0xf] %vm3073_vm3, %v3528_v16  ;;  %v2457_v19 = vadd.f32 %v4595_v2, %v2402_v18  ;;  %v2309_v0 = vadd.f32 %v2285_v12, %v2164_v52  ;;  %v1453_v34 = vpop.f32.mrb[76].mxu1  ;;  %v1604_v16 = vld [vmem:[#allocation2 + $0x80] sm:$0xff] }
 0x1f7   : > { %2356 = vst.msk [vmem:[#allocation2 + $0x50] sm:$0xff] %vm746_vm0, %v2308_v13  ;;  %1796 = vst.msk [vmem:[#allocation2 + $0x68] sm:$0xff] %vm746_vm0, %v1748_v24  ;;  %v1650_v54 = vrot.slane %v1453_v34, 7  ;;  %v2018_v58 = vpop.f32.mrb[76].mxu0  ;;  %v1455_v40 = vpop.f32.mrb[77].mxu1 }
 0x1f8   : > { %v2403_v22 = vld [vmem:[#allocation2 + $0x48] sm:$0xff]  ;;  %3081 = vst.msk [vmem:[%s4616_s14 + $0x1c] sm:$0xf] %vm3073_vm3, %v3529_v45  ;;  %v2505_v39 = vmax.f32 %v2457_v19, 0.0  ;;  %v2215_v21 = vrot.slane %v2018_v58, 1  ;;  %v2020_v42 = vpop.f32.mrb[77].mxu0  ;;  %v2651_v34 = vpop.permute.xlu0 %2650 }
 0x1f9   : > { %v2458_v23 = vadd.f32 %v4595_v2, %v2403_v22  ;;  %2357 = vst.msk [vmem:[#allocation2 + $0x58] sm:$0xff] %vm746_vm0, %v2309_v0  ;;  %v1456_v25 = vpop.f32.mrb[78].mxu1  ;;  %v1720_v41 = vsel %vm1686_vm1, %v1649_v29, %v1650_v54  ;;  %v2021_v43 = vpop.f32.mrb[78].mxu0 }
 0x1fa   : > { %v1651_v62 = vrot.slane %v1456_v25, 7  ;;  %v1458_v28 = vpop.f32.mrb[79].mxu1  ;;  %v2841_v6 = vmul.f32 %v2636_v15, %v2505_v39  ;;  %v1749_v49 = vadd.f32 %v1720_v41, %v1602_v17  ;;  %v2283_v50 = vsel %vm2249_vm2, %v2214_v37, %v2215_v21  ;;  %v2023_v31 = vpop.f32.mrb[79].mxu0 }
 0x1fb   : > { %v2506_v47 = vmax.f32 %v2458_v23, 0.0  ;;  %v2165_v57 = vld [vmem:[#allocation2 + $0x60] sm:$0xff]  ;;  %v2216_v56 = vrot.slane %v2021_v43, 1  ;;  %v2656_v43 = vpop.permute.xlu1 %2655 }
 0x1fc   : > { %v1719_v33 = vsel %vm1686_vm1, %v1650_v54, %v1651_v62  ;;  %v3530_v20 = vpack.c.bf16 %v2841_v6, %v2841_v6  ;;  %v2310_v32 = vadd.f32 %v2284_v44, %v2165_v57  ;;  %1797 = vst.msk [vmem:[#allocation2 + $0x70] sm:$0xff] %vm746_vm0, %v1749_v49  ;;  %v1605_v54 = vld [vmem:[#allocation2 + $0x88] sm:$0xff] }
 0x1fd   : > { %v2842_v5 = vmul.f32 %v2641_v51, %v2506_v47  ;;  %v1750_v7 = vadd.f32 %v1719_v33, %v1603_v10  ;;  %v2282_v61 = vsel %vm2249_vm2, %v2215_v21, %v2216_v56 }
 0x1fe   : > { %v2404_v63 = vld [vmem:[#allocation2 + $0x50] sm:$0xff]  ;;  %v2166_v14 = vld [vmem:[#allocation2 + $0x68] sm:$0xff]  ;;  %3082 = vst.msk [vmem:[%s4616_s14 + $0x20] sm:$0xf] %vm3073_vm3, %v3530_v20  ;;  %v1461_v3 = vpop.f32.mrb[80].mxu1 }
 0x1ff   : > { %v3531_v29 = vpack.c.bf16 %v2842_v5, %v2842_v5  ;;  %v2459_v9 = vadd.f32 %v4595_v2, %v2404_v63  ;;  %2358 = vst.msk [vmem:[#allocation2 + $0x60] sm:$0xff] %vm746_vm0, %v2310_v32  ;;  %v2311_v26 = vadd.f32 %v2283_v50, %v2166_v14  ;;  %1798 = vst.msk [vmem:[#allocation2 + $0x78] sm:$0xff] %vm746_vm0, %v1750_v7  ;;  %v1652_v12 = vrot.slane %v1461_v3, 7  ;;  %v2026_v4 = vpop.f32.mrb[80].mxu0  ;;  %v1463_v48 = vpop.f32.mrb[81].mxu1  ;;  %v1606_v20 = vld [vmem:[#allocation2 + $0x90] sm:$0xff] }
 0x200   : > { %v2405_v46 = vld [vmem:[#allocation2 + $0x58] sm:$0xff]  ;;  %v2217_v30 = vrot.slane %v2026_v4, 1  ;;  %v2028_v37 = vpop.f32.mrb[81].mxu0  ;;  %v1464_v11 = vpop.f32.mrb[82].mxu1 }
 0x201   : > { %3083 = vst.msk [vmem:[%s4616_s14 + $0x24] sm:$0xf] %vm3073_vm3, %v3531_v29  ;;  %v2460_v8 = vadd.f32 %v4595_v2, %v2405_v46  ;;  %v2507_v59 = vmax.f32 %v2459_v9, 0.0  ;;  %v1718_v13 = vsel %vm1686_vm1, %v1651_v62, %v1652_v12  ;;  %v1653_v24 = vrot.slane %v1464_v11, 7  ;;  %v2029_v18 = vpop.f32.mrb[82].mxu0  ;;  %v1466_v52 = vpop.f32.mrb[83].mxu1 }
 0x202   : > { %2359 = vst.msk [vmem:[#allocation2 + $0x68] sm:$0xff] %vm746_vm0, %v2311_v26  ;;  %v1751_v15 = vadd.f32 %v1718_v13, %v1604_v16  ;;  %v2281_v19 = vsel %vm2249_vm2, %v2216_v56, %v2217_v30  ;;  %v2031_v0 = vpop.f32.mrb[83].mxu0  ;;  %v2218_v40 = vrot.slane %v2029_v18, 1  ;;  %v2661_v3 = vpop.permute.xlu0 %2660 }
 0x203   : > { %v2508_v44 = vmax.f32 %v2460_v8, 0.0  ;;  %v2843_v45 = vmul.f32 %v2646_v1, %v2507_v59  ;;  %v2167_v22 = vld [vmem:[#allocation2 + $0x70] sm:$0xff]  ;;  %v1717_v58 = vsel %vm1686_vm1, %v1652_v12, %v1653_v24  ;;  %v1607_v12 = vld [vmem:[#allocation2 + $0x98] sm:$0xff]  ;;  %v2666_v18 = vpop.permute.xlu1 %2665 }
 0x204   : > { %v2312_v21 = vadd.f32 %v2282_v61, %v2167_v22  ;;  %1799 = vst.msk [vmem:[#allocation2 + $0x80] sm:$0xff] %vm746_vm0, %v1751_v15  ;;  %v1752_v42 = vadd.f32 %v1717_v58, %v1605_v54  ;;  %v2280_v41 = vsel %vm2249_vm2, %v2217_v30, %v2218_v40 }
 0x205   : > { %v2844_v23 = vmul.f32 %v2651_v34, %v2508_v44  ;;  %v3532_v39 = vpack.c.bf16 %v2843_v45, %v2843_v45 }
 0x206   : > { %v2406_v25 = vld [vmem:[#allocation2 + $0x60] sm:$0xff]  ;;  %v2168_v17 = vld [vmem:[#allocation2 + $0x78] sm:$0xff]  ;;  %2360 = vst.msk [vmem:[#allocation2 + $0x70] sm:$0xff] %vm746_vm0, %v2312_v21  ;;  %1800 = vst.msk [vmem:[#allocation2 + $0x88] sm:$0xff] %vm746_vm0, %v1752_v42  ;;  %v1469_v6 = vpop.f32.mrb[84].mxu1 }
 0x207   : > { %v3533_v62 = vpack.c.bf16 %v2844_v23, %v2844_v23  ;;  %3084 = vst.msk [vmem:[%s4616_s14 + $0x28] sm:$0xf] %vm3073_vm3, %v3532_v39  ;;  %v2461_v28 = vadd.f32 %v4595_v2, %v2406_v25  ;;  %v2313_v47 = vadd.f32 %v2281_v19, %v2168_v17  ;;  %v1654_v50 = vrot.slane %v1469_v6, 7  ;;  %v2034_v31 = vpop.f32.mrb[84].mxu0  ;;  %v1471_v51 = vpop.f32.mrb[85].mxu1  ;;  %v1608_v39 = vld [vmem:[#allocation2 + $0xa0] sm:$0xff] }
 0x208   : > { %v2219_v33 = vrot.slane %v2034_v31, 1  ;;  %v2036_v56 = vpop.f32.mrb[85].mxu0  ;;  %v1472_v5 = vpop.f32.mrb[86].mxu1 }
 0x209   : > { %v2407_v49 = vld [vmem:[#allocation2 + $0x68] sm:$0xff]  ;;  %3085 = vst.msk [vmem:[%s4616_s14 + $0x2c] sm:$0xf] %vm3073_vm3, %v3533_v62  ;;  %v2509_v57 = vmax.f32 %v2461_v28, 0.0  ;;  %v1716_v32 = vsel %vm1686_vm1, %v1653_v24, %v1654_v50  ;;  %v1655_v7 = vrot.slane %v1472_v5, 7  ;;  %v2037_v63 = vpop.f32.mrb[86].mxu0  ;;  %v2671_v6 = vpop.permute.xlu0 %2670 }
 0x20a   : > { %v2462_v10 = vadd.f32 %v4595_v2, %v2407_v49  ;;  %2361 = vst.msk [vmem:[#allocation2 + $0x78] sm:$0xff] %vm746_vm0, %v2313_v47  ;;  %v1474_v14 = vpop.f32.mrb[87].mxu1  ;;  %v1753_v1 = vadd.f32 %v1716_v32, %v1606_v20  ;;  %v2279_v9 = vsel %vm2249_vm2, %v2218_v40, %v2219_v33  ;;  %v2039_v26 = vpop.f32.mrb[87].mxu0  ;;  %v2220_v48 = vrot.slane %v2037_v63, 1 }
 0x20b   : > { %v2845_v61 = vmul.f32 %v2656_v43, %v2509_v57  ;;  %v2169_v46 = vld [vmem:[#allocation2 + $0x80] sm:$0xff]  ;;  %v1715_v4 = vsel %vm1686_vm1, %v1654_v50, %v1655_v7  ;;  %v1609_v50 = vld [vmem:[#allocation2 + $0xa8] sm:$0xff] }
 0x20c   : > { %v2510_v29 = vmax.f32 %v2462_v10, 0.0  ;;  %v2314_v30 = vadd.f32 %v2280_v41, %v2169_v46  ;;  %1801 = vst.msk [vmem:[#allocation2 + $0x90] sm:$0xff] %vm746_vm0, %v1753_v1  ;;  %v1754_v37 = vadd.f32 %v1715_v4, %v1607_v12  ;;  %v2278_v13 = vsel %vm2249_vm2, %v2219_v33, %v2220_v48 }
 0x20d   : > { %v3534_v8 = vpack.c.bf16 %v2845_v61, %v2845_v61  ;;  %v2408_v11 = vld [vmem:[#allocation2 + $0x70] sm:$0xff]  ;;  %v2170_v16 = vld [vmem:[#allocation2 + $0x88] sm:$0xff] }
 0x20e   : > { %v2846_v59 = vmul.f32 %v2661_v3, %v2510_v29  ;;  %v2463_v52 = vadd.f32 %v4595_v2, %v2408_v11  ;;  %2362 = vst.msk [vmem:[#allocation2 + $0x80] sm:$0xff] %vm746_vm0, %v2314_v30  ;;  %v2315_v44 = vadd.f32 %v2279_v9, %v2170_v16  ;;  %1802 = vst.msk [vmem:[#allocation2 + $0x98] sm:$0xff] %vm746_vm0, %v1754_v37  ;;  %v1477_v45 = vpop.f32.mrb[88].mxu1 }
 0x20f   : > { %3086 = vst.msk [vmem:[%s4616_s14 + $0x30] sm:$0xf] %vm3073_vm3, %v3534_v8  ;;  %v1656_v19 = vrot.slane %v1477_v45, 7  ;;  %v2042_v0 = vpop.f32.mrb[88].mxu0  ;;  %v1479_v34 = vpop.f32.mrb[89].mxu1 }
 0x210   : > { %v3535_v24 = vpack.c.bf16 %v2846_v59, %v2846_v59  ;;  %v2511_v22 = vmax.f32 %v2463_v52, 0.0  ;;  %2363 = vst.msk [vmem:[#allocation2 + $0x88] sm:$0xff] %vm746_vm0, %v2315_v44  ;;  %v2221_v58 = vrot.slane %v2042_v0, 1  ;;  %v2044_v40 = vpop.f32.mrb[89].mxu0  ;;  %v1480_v23 = vpop.f32.mrb[90].mxu1  ;;  %v1610_v59 = vld [vmem:[#allocation2 + $0xb0] sm:$0xff] }
 0x211   : > { %v2409_v15 = vld [vmem:[#allocation2 + $0x78] sm:$0xff]  ;;  %v1714_v21 = vsel %vm1686_vm1, %v1655_v7, %v1656_v19  ;;  %v1657_v42 = vrot.slane %v1480_v23, 7  ;;  %v2045_v25 = vpop.f32.mrb[90].mxu0  ;;  %v1482_v17 = vpop.f32.mrb[91].mxu1 }
 0x212   : > { %3087 = vst.msk [vmem:[%s4616_s14 + $0x34] sm:$0xf] %vm3073_vm3, %v3535_v24  ;;  %v2464_v54 = vadd.f32 %v4595_v2, %v2409_v15  ;;  %v2847_v41 = vmul.f32 %v2666_v18, %v2511_v22  ;;  %v1755_v43 = vadd.f32 %v1714_v21, %v1608_v39  ;;  %v2277_v28 = vsel %vm2249_vm2, %v2220_v48, %v2221_v58  ;;  %v2047_v47 = vpop.f32.mrb[91].mxu0  ;;  %v2676_v7 = vpop.permute.xlu1 %2675 }
 0x213   : > { %v2171_v49 = vld [vmem:[#allocation2 + $0x90] sm:$0xff]  ;;  %v1713_v31 = vsel %vm1686_vm1, %v1656_v19, %v1657_v42  ;;  %v2222_v51 = vrot.slane %v2045_v25, 1  ;;  %v2681_v45 = vpop.permute.xlu0 %2680  ;;  %v1611_v19 = vld [vmem:[#allocation2 + $0xb8] sm:$0xff] }
 0x214   : > { %v2512_v62 = vmax.f32 %v2464_v54, 0.0  ;;  %v3536_v57 = vpack.c.bf16 %v2847_v41, %v2847_v41  ;;  %v2316_v33 = vadd.f32 %v2278_v13, %v2171_v49  ;;  %1803 = vst.msk [vmem:[#allocation2 + $0xa0] sm:$0xff] %vm746_vm0, %v1755_v43  ;;  %v1756_v56 = vadd.f32 %v1713_v31, %v1609_v50 }
 0x215   : > { %v2410_v5 = vld [vmem:[#allocation2 + $0x80] sm:$0xff]  ;;  %v2172_v20 = vld [vmem:[#allocation2 + $0x98] sm:$0xff]  ;;  %v2276_v32 = vsel %vm2249_vm2, %v2221_v58, %v2222_v51 }
 0x216   : > { %v2848_v10 = vmul.f32 %v2671_v6, %v2512_v62  ;;  %3088 = vst.msk [vmem:[%s4616_s14 + $0x38] sm:$0xf] %vm3073_vm3, %v3536_v57  ;;  %v2465_v14 = vadd.f32 %v4595_v2, %v2410_v5  ;;  %v2317_v61 = vadd.f32 %v2277_v28, %v2172_v20  ;;  %v1485_v29 = vpop.f32.mrb[92].mxu1 }
 0x217   : > { %2364 = vst.msk [vmem:[#allocation2 + $0x90] sm:$0xff] %vm746_vm0, %v2316_v33  ;;  %1804 = vst.msk [vmem:[#allocation2 + $0xa8] sm:$0xff] %vm746_vm0, %v1756_v56  ;;  %v2411_v1 = vld [vmem:[#allocation2 + $0x88] sm:$0xff]  ;;  %v1658_v9 = vrot.slane %v1485_v29, 7  ;;  %v2050_v26 = vpop.f32.mrb[92].mxu0  ;;  %v1487_v3 = vpop.f32.mrb[93].mxu1 }
 0x218   : > { %v3537_v63 = vpack.c.bf16 %v2848_v10, %v2848_v10  ;;  %v2513_v46 = vmax.f32 %v2465_v14, 0.0  ;;  %v2466_v12 = vadd.f32 %v4595_v2, %v2411_v1  ;;  %2365 = vst.msk [vmem:[#allocation2 + $0x98] sm:$0xff] %vm746_vm0, %v2317_v61  ;;  %v2223_v4 = vrot.slane %v2050_v26, 1  ;;  %v2052_v48 = vpop.f32.mrb[93].mxu0  ;;  %v1488_v8 = vpop.f32.mrb[94].mxu1  ;;  %v1612_v10 = vld [vmem:[#allocation2 + $0xc0] sm:$0xff] }
 0x219   : > { %v1712_v30 = vsel %vm1686_vm1, %v1657_v42, %v1658_v9  ;;  %v1659_v37 = vrot.slane %v1488_v8, 7  ;;  %v2053_v11 = vpop.f32.mrb[94].mxu0  ;;  %v1490_v16 = vpop.f32.mrb[95].mxu1 }
 0x21a   : > { %3089 = vst.msk [vmem:[%s4616_s14 + $0x3c] sm:$0xf] %vm3073_vm3, %v3537_v63  ;;  %v2849_v13 = vmul.f32 %v2676_v7, %v2513_v46  ;;  %v2514_v24 = vmax.f32 %v2466_v12, 0.0  ;;  %v1757_v18 = vadd.f32 %v1712_v30, %v1610_v59  ;;  %v2275_v52 = vsel %vm2249_vm2, %v2222_v51, %v2223_v4  ;;  %v2055_v44 = vpop.f32.mrb[95].mxu0  ;;  %v2686_v42 = vpop.permute.xlu1 %2685 }
 0x21b   : > { %v2173_v15 = vld [vmem:[#allocation2 + $0xa0] sm:$0xff]  ;;  %v1711_v0 = vsel %vm1686_vm1, %v1658_v9, %v1659_v37  ;;  %v2224_v34 = vrot.slane %v2053_v11, 1  ;;  %v2691_v29 = vpop.permute.xlu0 %2690  ;;  %v1613_v9 = vld [vmem:[#allocation2 + $0xc8] sm:$0xff] }
 0x21c   : > { %v3538_v22 = vpack.c.bf16 %v2849_v13, %v2849_v13  ;;  %v2850_v54 = vmul.f32 %v2681_v45, %v2514_v24  ;;  %v2318_v58 = vadd.f32 %v2276_v32, %v2173_v15  ;;  %1805 = vst.msk [vmem:[#allocation2 + $0xb0] sm:$0xff] %vm746_vm0, %v1757_v18  ;;  %v1758_v40 = vadd.f32 %v1711_v0, %v1611_v19 }
 0x21d   : > { %v2274_v21 = vsel %vm2249_vm2, %v2223_v4, %v2224_v34 }
 0x21e   : > { %v2412_v23 = vld [vmem:[#allocation2 + $0x90] sm:$0xff]  ;;  %v2174_v39 = vld [vmem:[#allocation2 + $0xa8] sm:$0xff]  ;;  %3090 = vst.msk [vmem:[%s4616_s14 + $0x40] sm:$0xf] %vm3073_vm3, %v3538_v22  ;;  %v3539_v25 = vpack.c.bf16 %v2850_v54, %v2850_v54  ;;  %v1493_v62 = vpop.f32.mrb[96].mxu1 }
 0x21f   : > { %v2467_v17 = vadd.f32 %v4595_v2, %v2412_v23  ;;  %2366 = vst.msk [vmem:[#allocation2 + $0xa0] sm:$0xff] %vm746_vm0, %v2318_v58  ;;  %v2319_v41 = vadd.f32 %v2275_v52, %v2174_v39  ;;  %1806 = vst.msk [vmem:[#allocation2 + $0xb8] sm:$0xff] %vm746_vm0, %v1758_v40  ;;  %v2413_v43 = vld [vmem:[#allocation2 + $0x98] sm:$0xff]  ;;  %v1660_v28 = vrot.slane %v1493_v62, 7  ;;  %v2058_v47 = vpop.f32.mrb[96].mxu0  ;;  %v1495_v6 = vpop.f32.mrb[97].mxu1 }
 0x220   : > { %3091 = vst.msk [vmem:[%s4616_s14 + $0x44] sm:$0xf] %vm3073_vm3, %v3539_v25  ;;  %v2468_v50 = vadd.f32 %v4595_v2, %v2413_v43  ;;  %v2225_v31 = vrot.slane %v2058_v47, 1  ;;  %v2060_v51 = vpop.f32.mrb[97].mxu0  ;;  %v1496_v57 = vpop.f32.mrb[98].mxu1  ;;  %v1614_v54 = vld [vmem:[#allocation2 + $0xd0] sm:$0xff] }
 0x221   : > { %v2515_v49 = vmax.f32 %v2467_v17, 0.0  ;;  %2367 = vst.msk [vmem:[#allocation2 + $0xa8] sm:$0xff] %vm746_vm0, %v2319_v41  ;;  %v1710_v33 = vsel %vm1686_vm1, %v1659_v37, %v1660_v28  ;;  %v1661_v56 = vrot.slane %v1496_v57, 7  ;;  %v2061_v5 = vpop.f32.mrb[98].mxu0  ;;  %v1498_v20 = vpop.f32.mrb[99].mxu1 }
 0x222   : > { %v2516_v7 = vmax.f32 %v2468_v50, 0.0  ;;  %v1759_v63 = vadd.f32 %v1710_v33, %v1612_v10  ;;  %v2273_v14 = vsel %vm2249_vm2, %v2224_v34, %v2225_v31  ;;  %v2063_v61 = vpop.f32.mrb[99].mxu0  ;;  %v2226_v3 = vrot.slane %v2061_v5, 1  ;;  %v2696_v37 = vpop.permute.xlu1 %2695 }
 0x223   : > { %v2851_v32 = vmul.f32 %v2686_v42, %v2515_v49  ;;  %v2175_v1 = vld [vmem:[#allocation2 + $0xb0] sm:$0xff]  ;;  %v1709_v26 = vsel %vm1686_vm1, %v1660_v28, %v1661_v56  ;;  %v2701_v62 = vpop.permute.xlu0 %2700  ;;  %v1615_v28 = vld [vmem:[#allocation2 + $0xd8] sm:$0xff] }
 0x224   : > { %v2852_v12 = vmul.f32 %v2691_v29, %v2516_v7  ;;  %v2320_v4 = vadd.f32 %v2274_v21, %v2175_v1  ;;  %1807 = vst.msk [vmem:[#allocation2 + $0xc0] sm:$0xff] %vm746_vm0, %v1759_v63  ;;  %v1760_v48 = vadd.f32 %v1709_v26, %v1613_v9  ;;  %v2272_v30 = vsel %vm2249_vm2, %v2225_v31, %v2226_v3 }
 0x225   : > { %v3540_v46 = vpack.c.bf16 %v2851_v32, %v2851_v32 }
 0x226   : > { %v2414_v8 = vld [vmem:[#allocation2 + $0xa0] sm:$0xff]  ;;  %v2176_v59 = vld [vmem:[#allocation2 + $0xb8] sm:$0xff]  ;;  %v3541_v11 = vpack.c.bf16 %v2852_v12, %v2852_v12  ;;  %2368 = vst.msk [vmem:[#allocation2 + $0xb0] sm:$0xff] %vm746_vm0, %v2320_v4  ;;  %1808 = vst.msk [vmem:[#allocation2 + $0xc8] sm:$0xff] %vm746_vm0, %v1760_v48  ;;  %v1501_v24 = vpop.f32.mrb[100].mxu1 }
 0x227   : > { %3092 = vst.msk [vmem:[%s4616_s14 + $0x48] sm:$0xf] %vm3073_vm3, %v3540_v46  ;;  %v2469_v16 = vadd.f32 %v4595_v2, %v2414_v8  ;;  %v2321_v13 = vadd.f32 %v2273_v14, %v2176_v59  ;;  %v1662_v52 = vrot.slane %v1501_v24, 7  ;;  %v2066_v44 = vpop.f32.mrb[100].mxu0  ;;  %v1503_v45 = vpop.f32.mrb[101].mxu1  ;;  %v1616_v12 = vld [vmem:[#allocation2 + $0xe0] sm:$0xff] }
 0x228   : > { %v2415_v18 = vld [vmem:[#allocation2 + $0xa8] sm:$0xff]  ;;  %3093 = vst.msk [vmem:[%s4616_s14 + $0x4c] sm:$0xf] %vm3073_vm3, %v3541_v11  ;;  %v2227_v0 = vrot.slane %v2066_v44, 1  ;;  %v2068_v34 = vpop.f32.mrb[101].mxu0  ;;  %v1504_v22 = vpop.f32.mrb[102].mxu1 }
 0x229   : > { %v2517_v15 = vmax.f32 %v2469_v16, 0.0  ;;  %v2470_v19 = vadd.f32 %v4595_v2, %v2415_v18  ;;  %2369 = vst.msk [vmem:[#allocation2 + $0xb8] sm:$0xff] %vm746_vm0, %v2321_v13  ;;  %v1708_v58 = vsel %vm1686_vm1, %v1661_v56, %v1662_v52  ;;  %v1663_v40 = vrot.slane %v1504_v22, 7  ;;  %v2069_v23 = vpop.f32.mrb[102].mxu0  ;;  %v1506_v39 = vpop.f32.mrb[103].mxu1 }
 0x22a   : > { %v1761_v25 = vadd.f32 %v1708_v58, %v1614_v54  ;;  %v2271_v17 = vsel %vm2249_vm2, %v2226_v3, %v2227_v0  ;;  %v2071_v41 = vpop.f32.mrb[103].mxu0  ;;  %v2228_v6 = vrot.slane %v2069_v23, 1  ;;  %v2706_v56 = vpop.permute.xlu1 %2705 }
 0x22b   : > { %v2853_v21 = vmul.f32 %v2696_v37, %v2517_v15  ;;  %v2518_v42 = vmax.f32 %v2470_v19, 0.0  ;;  %v2177_v43 = vld [vmem:[#allocation2 + $0xc0] sm:$0xff]  ;;  %v1707_v47 = vsel %vm1686_vm1, %v1662_v52, %v1663_v40  ;;  %v2711_v24 = vpop.permute.xlu0 %2710  ;;  %v1617_v52 = vld [vmem:[#allocation2 + $0xe8] sm:$0xff] }
 0x22c   : > { %v2322_v31 = vadd.f32 %v2272_v30, %v2177_v43  ;;  %1809 = vst.msk [vmem:[#allocation2 + $0xd0] sm:$0xff] %vm746_vm0, %v1761_v25  ;;  %v1762_v51 = vadd.f32 %v1707_v47, %v1615_v28  ;;  %v2270_v33 = vsel %vm2249_vm2, %v2227_v0, %v2228_v6  ;;  %v4824_v28 = vld [vmem:[%s5042_s4] ss:$0 sm:$0xff] }
 0x22d   : > { %v3542_v49 = vpack.c.bf16 %v2853_v21, %v2853_v21  ;;  %v2854_v50 = vmul.f32 %v2701_v62, %v2518_v42  ;;  %v2416_v57 = vld [vmem:[#allocation2 + $0xb0] sm:$0xff]  ;;  %v2178_v10 = vld [vmem:[#allocation2 + $0xc8] sm:$0xff] }
 0x22e   : > { %v2471_v20 = vadd.f32 %v4595_v2, %v2416_v57  ;;  %2370 = vst.msk [vmem:[#allocation2 + $0xc0] sm:$0xff] %vm746_vm0, %v2322_v31  ;;  %v2323_v32 = vadd.f32 %v2271_v17, %v2178_v10  ;;  %1810 = vst.msk [vmem:[#allocation2 + $0xd8] sm:$0xff] %vm746_vm0, %v1762_v51  ;;  %v1509_v7 = vpop.f32.mrb[104].mxu1 }
 0x22f   : > { %3094 = vst.msk [vmem:[%s4616_s14 + $0x50] sm:$0xf] %vm3073_vm3, %v3542_v49  ;;  %v3543_v5 = vpack.c.bf16 %v2854_v50, %v2854_v50  ;;  %v1664_v14 = vrot.slane %v1509_v7, 7  ;;  %v2074_v61 = vpop.f32.mrb[104].mxu0  ;;  %v1511_v29 = vpop.f32.mrb[105].mxu1  ;;  %v1618_v50 = vld [vmem:[#allocation2 + $0xf0] sm:$0xff] }
 0x230   : > { %v2417_v63 = vld [vmem:[#allocation2 + $0xb8] sm:$0xff]  ;;  %v2519_v1 = vmax.f32 %v2471_v20, 0.0  ;;  %2371 = vst.msk [vmem:[#allocation2 + $0xc8] sm:$0xff] %vm746_vm0, %v2323_v32  ;;  %v2229_v26 = vrot.slane %v2074_v61, 1  ;;  %v2076_v3 = vpop.f32.mrb[105].mxu0  ;;  %v1512_v46 = vpop.f32.mrb[106].mxu1 }
 0x231   : > { %3095 = vst.msk [vmem:[%s4616_s14 + $0x54] sm:$0xf] %vm3073_vm3, %v3543_v5  ;;  %v2472_v9 = vadd.f32 %v4595_v2, %v2417_v63  ;;  %v1706_v4 = vsel %vm1686_vm1, %v1663_v40, %v1664_v14  ;;  %v1665_v48 = vrot.slane %v1512_v46, 7  ;;  %v2077_v8 = vpop.f32.mrb[106].mxu0  ;;  %v1514_v59 = vpop.f32.mrb[107].mxu1 }
 0x232   : > { %v2855_v30 = vmul.f32 %v2706_v56, %v2519_v1  ;;  %v1763_v11 = vadd.f32 %v1706_v4, %v1616_v12  ;;  %v2269_v16 = vsel %vm2249_vm2, %v2228_v6, %v2229_v26  ;;  %v2079_v13 = vpop.f32.mrb[107].mxu0  ;;  %v2230_v45 = vrot.slane %v2077_v8, 1  ;;  %v2716_v40 = vpop.permute.xlu1 %2715 }
 0x233   : > { %v2520_v37 = vmax.f32 %v2472_v9, 0.0  ;;  %v2179_v18 = vld [vmem:[#allocation2 + $0xd0] sm:$0xff]  ;;  %v1705_v44 = vsel %vm1686_vm1, %v1664_v14, %v1665_v48  ;;  %v2721_v7 = vpop.permute.xlu0 %2720  ;;  %v1619_v14 = vld [vmem:[#allocation2 + $0xf8] sm:$0xff] }
 0x234   : > { %v3544_v15 = vpack.c.bf16 %v2855_v30, %v2855_v30  ;;  %v2324_v0 = vadd.f32 %v2270_v33, %v2179_v18  ;;  %1811 = vst.msk [vmem:[#allocation2 + $0xe0] sm:$0xff] %vm746_vm0, %v1763_v11  ;;  %v1764_v34 = vadd.f32 %v1705_v44, %v1617_v52  ;;  %v2268_v58 = vsel %vm2249_vm2, %v2229_v26, %v2230_v45 }
 0x235   : > { %v2856_v19 = vmul.f32 %v2711_v24, %v2520_v37  ;;  %v2418_v22 = vld [vmem:[#allocation2 + $0xc0] sm:$0xff]  ;;  %v2180_v54 = vld [vmem:[#allocation2 + $0xd8] sm:$0xff] }
 0x236   : > { %3096 = vst.msk [vmem:[%s4616_s14 + $0x58] sm:$0xf] %vm3073_vm3, %v3544_v15  ;;  %v2473_v39 = vadd.f32 %v4595_v2, %v2418_v22  ;;  %v2325_v21 = vadd.f32 %v2269_v16, %v2180_v54  ;;  %v1517_v42 = vpop.f32.mrb[108].mxu1 }
 0x237   : > { %v3545_v23 = vpack.c.bf16 %v2856_v19, %v2856_v19  ;;  %2372 = vst.msk [vmem:[#allocation2 + $0xd0] sm:$0xff] %vm746_vm0, %v2324_v0  ;;  %1812 = vst.msk [vmem:[#allocation2 + $0xe8] sm:$0xff] %vm746_vm0, %v1764_v34  ;;  %v2419_v25 = vld [vmem:[#allocation2 + $0xc8] sm:$0xff]  ;;  %v1666_v17 = vrot.slane %v1517_v42, 7  ;;  %v2082_v41 = vpop.f32.mrb[108].mxu0  ;;  %v1519_v62 = vpop.f32.mrb[109].mxu1 }
 0x238   : > { %v2521_v43 = vmax.f32 %v2473_v39, 0.0  ;;  %v2474_v2 = vadd.f32 %v4824_v28, %v2419_v25  ;;  %2373 = vst.msk [vmem:[#allocation2 + $0xd8] sm:$0xff] %vm746_vm0, %v2325_v21  ;;  %v2231_v47 = vrot.slane %v2082_v41, 1  ;;  %v2084_v6 = vpop.f32.mrb[109].mxu0  ;;  %v1520_v49 = vpop.f32.mrb[110].mxu1  ;;  %v1620_v19 = vld [vmem:[#allocation2 + $0x100] sm:$0xff] }
 0x239   : > { %3097 = vst.msk [vmem:[%s4616_s14 + $0x5c] sm:$0xf] %vm3073_vm3, %v3545_v23  ;;  %v1704_v31 = vsel %vm1686_vm1, %v1665_v48, %v1666_v17  ;;  %v1667_v51 = vrot.slane %v1520_v49, 7  ;;  %v2085_v57 = vpop.f32.mrb[110].mxu0  ;;  %v1522_v10 = vpop.f32.mrb[111].mxu1 }
 0x23a   : > { %v2857_v33 = vmul.f32 %v2716_v40, %v2521_v43  ;;  %v2522_v56 = vmax.f32 %v2474_v2, 0.0  ;;  %v1765_v5 = vadd.f32 %v1704_v31, %v1618_v50  ;;  %v2267_v20 = vsel %vm2249_vm2, %v2230_v45, %v2231_v47  ;;  %v2087_v32 = vpop.f32.mrb[111].mxu0  ;;  %v2726_v48 = vpop.permute.xlu1 %2725 }
 0x23b   : > { %v2181_v63 = vld [vmem:[#allocation2 + $0xe0] sm:$0xff]  ;;  %v1703_v61 = vsel %vm1686_vm1, %v1666_v17, %v1667_v51  ;;  %v2232_v29 = vrot.slane %v2085_v57, 1  ;;  %v2731_v42 = vpop.permute.xlu0 %2730  ;;  %v1621_v17 = vld [vmem:[#allocation2 + $0x108] sm:$0xff] }
 0x23c   : > { %v3546_v1 = vpack.c.bf16 %v2857_v33, %v2857_v33  ;;  %v2858_v9 = vmul.f32 %v2721_v7, %v2522_v56  ;;  %v2326_v26 = vadd.f32 %v2268_v58, %v2181_v63  ;;  %1813 = vst.msk [vmem:[#allocation2 + $0xf0] sm:$0xff] %vm746_vm0, %v1765_v5  ;;  %v1766_v3 = vadd.f32 %v1703_v61, %v1619_v14 }
 0x23d   : > { %v2266_v4 = vsel %vm2249_vm2, %v2231_v47, %v2232_v29 }
 0x23e   : > { %v2420_v46 = vld [vmem:[#allocation2 + $0xd0] sm:$0xff]  ;;  %v2182_v12 = vld [vmem:[#allocation2 + $0xe8] sm:$0xff]  ;;  %3098 = vst.msk [vmem:[%s4616_s14 + $0x60] sm:$0xf] %vm3073_vm3, %v3546_v1  ;;  %v3547_v8 = vpack.c.bf16 %v2858_v9, %v2858_v9  ;;  %v1525_v37 = vpop.f32.mrb[112].mxu1 }
 0x23f   : > { %v2475_v59 = vadd.f32 %v4824_v28, %v2420_v46  ;;  %2374 = vst.msk [vmem:[#allocation2 + $0xe0] sm:$0xff] %vm746_vm0, %v2326_v26  ;;  %v2327_v30 = vadd.f32 %v2267_v20, %v2182_v12  ;;  %1814 = vst.msk [vmem:[#allocation2 + $0xf8] sm:$0xff] %vm746_vm0, %v1766_v3  ;;  %v2421_v11 = vld [vmem:[#allocation2 + $0xd8] sm:$0xff]  ;;  %v1668_v16 = vrot.slane %v1525_v37, 7  ;;  %v2090_v13 = vpop.f32.mrb[112].mxu0  ;;  %v1527_v24 = vpop.f32.mrb[113].mxu1 }
 0x240   : > { %3099 = vst.msk [vmem:[%s4616_s14 + $0x64] sm:$0xf] %vm3073_vm3, %v3547_v8  ;;  %v2476_v52 = vadd.f32 %v4824_v28, %v2421_v11  ;;  %v2233_v44 = vrot.slane %v2090_v13, 1  ;;  %v2092_v45 = vpop.f32.mrb[113].mxu0  ;;  %v1528_v15 = vpop.f32.mrb[114].mxu1  ;;  %v1622_v9 = vld [vmem:[#allocation2 + $0x110] sm:$0xff] }
 0x241   : > { %v2523_v18 = vmax.f32 %v2475_v59, 0.0  ;;  %2375 = vst.msk [vmem:[#allocation2 + $0xe8] sm:$0xff] %vm746_vm0, %v2327_v30  ;;  %v1702_v0 = vsel %vm1686_vm1, %v1667_v51, %v1668_v16  ;;  %v1669_v34 = vrot.slane %v1528_v15, 7  ;;  %v2093_v22 = vpop.f32.mrb[114].mxu0  ;;  %v1530_v54 = vpop.f32.mrb[115].mxu1 }
 0x242   : > { %v2524_v40 = vmax.f32 %v2476_v52, 0.0  ;;  %v1767_v23 = vadd.f32 %v1702_v0, %v1620_v19  ;;  %v2265_v39 = vsel %vm2249_vm2, %v2232_v29, %v2233_v44  ;;  %v2095_v21 = vpop.f32.mrb[115].mxu0  ;;  %v2234_v62 = vrot.slane %v2093_v22, 1  ;;  %v2736_v51 = vpop.permute.xlu1 %2735 }
 0x243   : > { %v2859_v58 = vmul.f32 %v2726_v48, %v2523_v18  ;;  %v2183_v25 = vld [vmem:[#allocation2 + $0xf0] sm:$0xff]  ;;  %v1701_v41 = vsel %vm1686_vm1, %v1668_v16, %v1669_v34  ;;  %v2741_v37 = vpop.permute.xlu0 %2740  ;;  %v1623_v16 = vld [vmem:[#allocation2 + $0x118] sm:$0xff] }
 0x244   : > { %v2860_v2 = vmul.f32 %v2731_v42, %v2524_v40  ;;  %v2328_v47 = vadd.f32 %v2266_v4, %v2183_v25  ;;  %1815 = vst.msk [vmem:[#allocation2 + $0x100] sm:$0xff] %vm746_vm0, %v1767_v23  ;;  %v1768_v6 = vadd.f32 %v1701_v41, %v1621_v17  ;;  %v2264_v31 = vsel %vm2249_vm2, %v2233_v44, %v2234_v62 }
 0x245   : > { %v3548_v43 = vpack.c.bf16 %v2859_v58, %v2859_v58 }
 0x246   : > { %v2422_v49 = vld [vmem:[#allocation2 + $0xe0] sm:$0xff]  ;;  %v2184_v50 = vld [vmem:[#allocation2 + $0xf8] sm:$0xff]  ;;  %v3549_v57 = vpack.c.bf16 %v2860_v2, %v2860_v2  ;;  %2376 = vst.msk [vmem:[#allocation2 + $0xf0] sm:$0xff] %vm746_vm0, %v2328_v47  ;;  %1816 = vst.msk [vmem:[#allocation2 + $0x108] sm:$0xff] %vm746_vm0, %v1768_v6  ;;  %v1533_v56 = vpop.f32.mrb[116].mxu1 }
 0x247   : > { %3100 = vst.msk [vmem:[%s4616_s14 + $0x68] sm:$0xf] %vm3073_vm3, %v3548_v43  ;;  %v2477_v10 = vadd.f32 %v4824_v28, %v2422_v49  ;;  %v2329_v33 = vadd.f32 %v2265_v39, %v2184_v50  ;;  %v1670_v20 = vrot.slane %v1533_v56, 7  ;;  %v2098_v32 = vpop.f32.mrb[116].mxu0  ;;  %v1535_v7 = vpop.f32.mrb[117].mxu1  ;;  %v1624_v2 = vld [vmem:[#allocation2 + $0x120] sm:$0xff] }
 0x248   : > { %v2423_v5 = vld [vmem:[#allocation2 + $0xe8] sm:$0xff]  ;;  %3101 = vst.msk [vmem:[%s4616_s14 + $0x6c] sm:$0xf] %vm3073_vm3, %v3549_v57  ;;  %v2235_v61 = vrot.slane %v2098_v32, 1  ;;  %v2100_v29 = vpop.f32.mrb[117].mxu0  ;;  %v1536_v1 = vpop.f32.mrb[118].mxu1 }
 0x249   : > { %v2525_v63 = vmax.f32 %v2477_v10, 0.0  ;;  %v2478_v14 = vadd.f32 %v4824_v28, %v2423_v5  ;;  %2377 = vst.msk [vmem:[#allocation2 + $0xf8] sm:$0xff] %vm746_vm0, %v2329_v33  ;;  %v1700_v26 = vsel %vm1686_vm1, %v1669_v34, %v1670_v20  ;;  %v1671_v3 = vrot.slane %v1536_v1, 7  ;;  %v2101_v46 = vpop.f32.mrb[118].mxu0  ;;  %v1538_v12 = vpop.f32.mrb[119].mxu1 }
 0x24a   : > { %v1769_v8 = vadd.f32 %v1700_v26, %v1622_v9  ;;  %v2263_v59 = vsel %vm2249_vm2, %v2234_v62, %v2235_v61  ;;  %v2103_v30 = vpop.f32.mrb[119].mxu0  ;;  %v2236_v24 = vrot.slane %v2101_v46, 1  ;;  %v2746_v34 = vpop.permute.xlu1 %2745 }
 0x24b   : > { %v2861_v4 = vmul.f32 %v2736_v51, %v2525_v63  ;;  %v2526_v48 = vmax.f32 %v2478_v14, 0.0  ;;  %v2185_v11 = vld [vmem:[#allocation2 + $0x100] sm:$0xff]  ;;  %v1699_v13 = vsel %vm1686_vm1, %v1670_v20, %v1671_v3  ;;  %v2751_v56 = vpop.permute.xlu0 %2750  ;;  %v1625_v20 = vld [vmem:[#allocation2 + $0x128] sm:$0xff] }
 0x24c   : > { %v2330_v44 = vadd.f32 %v2264_v31, %v2185_v11  ;;  %1817 = vst.msk [vmem:[#allocation2 + $0x110] sm:$0xff] %vm746_vm0, %v1769_v8  ;;  %v1770_v45 = vadd.f32 %v1699_v13, %v1623_v16  ;;  %v2262_v0 = vsel %vm2249_vm2, %v2235_v61, %v2236_v24 }
 0x24d   : > { %v3550_v18 = vpack.c.bf16 %v2861_v4, %v2861_v4  ;;  %v2862_v52 = vmul.f32 %v2741_v37, %v2526_v48  ;;  %v2424_v15 = vld [vmem:[#allocation2 + $0xf0] sm:$0xff]  ;;  %v2186_v19 = vld [vmem:[#allocation2 + $0x108] sm:$0xff] }
 0x24e   : > { %v2479_v54 = vadd.f32 %v4824_v28, %v2424_v15  ;;  %2378 = vst.msk [vmem:[#allocation2 + $0x100] sm:$0xff] %vm746_vm0, %v2330_v44  ;;  %v2331_v58 = vadd.f32 %v2263_v59, %v2186_v19  ;;  %1818 = vst.msk [vmem:[#allocation2 + $0x118] sm:$0xff] %vm746_vm0, %v1770_v45  ;;  %v1541_v40 = vpop.f32.mrb[120].mxu1 }
 0x24f   : > { %3102 = vst.msk [vmem:[%s4616_s14 + $0x70] sm:$0xf] %vm3073_vm3, %v3550_v18  ;;  %v3551_v22 = vpack.c.bf16 %v2862_v52, %v2862_v52  ;;  %v1672_v39 = vrot.slane %v1541_v40, 7  ;;  %v2106_v21 = vpop.f32.mrb[120].mxu0  ;;  %v1543_v42 = vpop.f32.mrb[121].mxu1  ;;  %v1626_v52 = vld [vmem:[#allocation2 + $0x130] sm:$0xff] }
 0x250   : > { %v2425_v23 = vld [vmem:[#allocation2 + $0xf8] sm:$0xff]  ;;  %v2527_v25 = vmax.f32 %v2479_v54, 0.0  ;;  %2379 = vst.msk [vmem:[#allocation2 + $0x108] sm:$0xff] %vm746_vm0, %v2331_v58  ;;  %v2237_v41 = vrot.slane %v2106_v21, 1  ;;  %v2108_v62 = vpop.f32.mrb[121].mxu0  ;;  %v1544_v43 = vpop.f32.mrb[122].mxu1 }
 0x251   : > { %3103 = vst.msk [vmem:[%s4616_s14 + $0x74] sm:$0xf] %vm3073_vm3, %v3551_v22  ;;  %v2480_v17 = vadd.f32 %v4824_v28, %v2425_v23  ;;  %v1698_v47 = vsel %vm1686_vm1, %v1671_v3, %v1672_v39  ;;  %v1673_v6 = vrot.slane %v1544_v43, 7  ;;  %v2109_v49 = vpop.f32.mrb[122].mxu0  ;;  %v1546_v50 = vpop.f32.mrb[123].mxu1 }
 0x252   : > { %v2863_v31 = vmul.f32 %v2746_v34, %v2527_v25  ;;  %v1771_v57 = vadd.f32 %v1698_v47, %v1624_v2  ;;  %v2261_v10 = vsel %vm2249_vm2, %v2236_v24, %v2237_v41  ;;  %v2111_v33 = vpop.f32.mrb[123].mxu0  ;;  %v2238_v7 = vrot.slane %v2109_v49, 1  ;;  %v2756_v3 = vpop.permute.xlu1 %2755 }
 0x253   : > { %v2528_v51 = vmax.f32 %v2480_v17, 0.0  ;;  %v2187_v5 = vld [vmem:[#allocation2 + $0x110] sm:$0xff]  ;;  %v1697_v32 = vsel %vm1686_vm1, %v1672_v39, %v1673_v6  ;;  %v2761_v40 = vpop.permute.xlu0 %2760  ;;  %v1627_v39 = vld [vmem:[#allocation2 + $0x138] sm:$0xff] }
 0x254   : > { %v3552_v63 = vpack.c.bf16 %v2863_v31, %v2863_v31  ;;  %v2332_v61 = vadd.f32 %v2262_v0, %v2187_v5  ;;  %1819 = vst.msk [vmem:[#allocation2 + $0x120] sm:$0xff] %vm746_vm0, %v1771_v57  ;;  %v1772_v29 = vadd.f32 %v1697_v32, %v1625_v20  ;;  %v2260_v26 = vsel %vm2249_vm2, %v2237_v41, %v2238_v7 }
 0x255   : > { %v2864_v14 = vmul.f32 %v2751_v56, %v2528_v51  ;;  %v2426_v1 = vld [vmem:[#allocation2 + $0x100] sm:$0xff]  ;;  %v2188_v9 = vld [vmem:[#allocation2 + $0x118] sm:$0xff] }
 0x256   : > { %3104 = vst.msk [vmem:[%s4616_s14 + $0x78] sm:$0xf] %vm3073_vm3, %v3552_v63  ;;  %v2481_v12 = vadd.f32 %v4824_v28, %v2426_v1  ;;  %v2333_v4 = vadd.f32 %v2261_v10, %v2188_v9  ;;  %v1549_v48 = vpop.f32.mrb[124].mxu1 }
 0x257   : > { %v3553_v46 = vpack.c.bf16 %v2864_v14, %v2864_v14  ;;  %2380 = vst.msk [vmem:[#allocation2 + $0x110] sm:$0xff] %vm746_vm0, %v2332_v61  ;;  %1820 = vst.msk [vmem:[#allocation2 + $0x128] sm:$0xff] %vm746_vm0, %v1772_v29  ;;  %v2427_v8 = vld [vmem:[#allocation2 + $0x108] sm:$0xff]  ;;  %v1674_v59 = vrot.slane %v1549_v48, 7  ;;  %v2114_v30 = vpop.f32.mrb[124].mxu0  ;;  %v1551_v37 = vpop.f32.mrb[125].mxu1 }
 0x258   : > { %v2529_v11 = vmax.f32 %v2481_v12, 0.0  ;;  %v2482_v16 = vadd.f32 %v4824_v28, %v2427_v8  ;;  %2381 = vst.msk [vmem:[#allocation2 + $0x118] sm:$0xff] %vm746_vm0, %v2333_v4  ;;  %v2239_v13 = vrot.slane %v2114_v30, 1  ;;  %v2116_v24 = vpop.f32.mrb[125].mxu0  ;;  %v1552_v18 = vpop.f32.mrb[126].mxu1  ;;  %v1628_v14 = vld [vmem:[#allocation2 + $0x140] sm:$0xff] }
 0x259   : > { %3105 = vst.msk [vmem:[%s4616_s14 + $0x7c] sm:$0xf] %vm3073_vm3, %v3553_v46  ;;  %v1696_v44 = vsel %vm1686_vm1, %v1673_v6, %v1674_v59  ;;  %v1675_v45 = vrot.slane %v1552_v18, 7  ;;  %v2117_v15 = vpop.f32.mrb[126].mxu0  ;;  %v1554_v19 = vpop.f32.mrb[127].mxu1 }
 0x25a   : > { %v2865_v0 = vmul.f32 %v2756_v3, %v2529_v11  ;;  %v2530_v34 = vmax.f32 %v2482_v16, 0.0  ;;  %v1773_v22 = vadd.f32 %v1696_v44, %v1626_v52  ;;  %v2259_v54 = vsel %vm2249_vm2, %v2238_v7, %v2239_v13  ;;  %v2119_v58 = vpop.f32.mrb[127].mxu0  ;;  %v2766_v6 = vpop.permute.xlu1 %2765 }
 0x25b   : > { %v2189_v23 = vld [vmem:[#allocation2 + $0x120] sm:$0xff]  ;;  %v1695_v21 = vsel %vm1686_vm1, %v1674_v59, %v1675_v45  ;;  %v2240_v42 = vrot.slane %v2117_v15, 1  ;;  %v2771_v48 = vpop.permute.xlu0 %2770  ;;  %v1629_v59 = vld [vmem:[#allocation2 + $0x148] sm:$0xff] }
 0x25c   : > { %v3554_v25 = vpack.c.bf16 %v2865_v0, %v2865_v0  ;;  %v2866_v17 = vmul.f32 %v2761_v40, %v2530_v34  ;;  %v2334_v41 = vadd.f32 %v2260_v26, %v2189_v23  ;;  %1821 = vst.msk [vmem:[#allocation2 + $0x130] sm:$0xff] %vm746_vm0, %v1773_v22  ;;  %v1774_v62 = vadd.f32 %v1695_v21, %v1627_v39 }
 0x25d   : > { %v2258_v47 = vsel %vm2249_vm2, %v2239_v13, %v2240_v42 }
 0x25e   : > { %v2428_v43 = vld [vmem:[#allocation2 + $0x110] sm:$0xff]  ;;  %v2190_v2 = vld [vmem:[#allocation2 + $0x128] sm:$0xff]  ;;  %3106 = vst.msk [vmem:[%s4616_s14 + $0x80] sm:$0xf] %vm3073_vm3, %v3554_v25  ;;  %v3555_v49 = vpack.c.bf16 %v2866_v17, %v2866_v17  ;;  %v1557_v51 = vpop.f32.mrb[128].mxu1 }
 0x25f   : > { %v2483_v50 = vadd.f32 %v4824_v28, %v2428_v43  ;;  %2382 = vst.msk [vmem:[#allocation2 + $0x120] sm:$0xff] %vm746_vm0, %v2334_v41  ;;  %v2335_v31 = vadd.f32 %v2259_v54, %v2190_v2  ;;  %1822 = vst.msk [vmem:[#allocation2 + $0x138] sm:$0xff] %vm746_vm0, %v1774_v62  ;;  %v2429_v57 = vld [vmem:[#allocation2 + $0x118] sm:$0xff]  ;;  %v1676_v10 = vrot.slane %v1557_v51, 7  ;;  %v2122_v33 = vpop.f32.mrb[128].mxu0  ;;  %v1559_v56 = vpop.f32.mrb[129].mxu1 }
 0x260   : > { %3107 = vst.msk [vmem:[%s4616_s14 + $0x84] sm:$0xf] %vm3073_vm3, %v3555_v49  ;;  %v2484_v20 = vadd.f32 %v4824_v28, %v2429_v57  ;;  %v2241_v32 = vrot.slane %v2122_v33, 1  ;;  %v2124_v7 = vpop.f32.mrb[129].mxu0  ;;  %v1560_v63 = vpop.f32.mrb[130].mxu1  ;;  %v1630_v17 = vld [vmem:[#allocation2 + $0x150] sm:$0xff] }
 0x261   : > { %v2531_v5 = vmax.f32 %v2483_v50, 0.0  ;;  %2383 = vst.msk [vmem:[#allocation2 + $0x128] sm:$0xff] %vm746_vm0, %v2335_v31  ;;  %v1694_v61 = vsel %vm1686_vm1, %v1675_v45, %v1676_v10  ;;  %v1677_v29 = vrot.slane %v1560_v63, 7  ;;  %v2125_v1 = vpop.f32.mrb[130].mxu0  ;;  %v1562_v9 = vpop.f32.mrb[131].mxu1 }
 0x262   : > { %v2532_v3 = vmax.f32 %v2484_v20, 0.0  ;;  %v1775_v46 = vadd.f32 %v1694_v61, %v1628_v14  ;;  %v2257_v12 = vsel %vm2249_vm2, %v2240_v42, %v2241_v32  ;;  %v2127_v4 = vpop.f32.mrb[131].mxu0  ;;  %v2242_v37 = vrot.slane %v2125_v1, 1  ;;  %v2776_v45 = vpop.permute.xlu1 %2775 }
 0x263   : > { %v2867_v26 = vmul.f32 %v2766_v6, %v2531_v5  ;;  %v2191_v8 = vld [vmem:[#allocation2 + $0x130] sm:$0xff]  ;;  %v1693_v30 = vsel %vm1686_vm1, %v1676_v10, %v1677_v29  ;;  %v2781_v51 = vpop.permute.xlu0 %2780  ;;  %v1631_v10 = vld [vmem:[#allocation2 + $0x158] sm:$0xff] }
 0x264   : > { %v2868_v16 = vmul.f32 %v2771_v48, %v2532_v3  ;;  %v2336_v13 = vadd.f32 %v2258_v47, %v2191_v8  ;;  %1823 = vst.msk [vmem:[#allocation2 + $0x140] sm:$0xff] %vm746_vm0, %v1775_v46  ;;  %v1776_v24 = vadd.f32 %v1693_v30, %v1629_v59  ;;  %v2256_v44 = vsel %vm2249_vm2, %v2241_v32, %v2242_v37 }
 0x265   : > { %v3556_v11 = vpack.c.bf16 %v2867_v26, %v2867_v26 }
 0x266   : > { %v2430_v18 = vld [vmem:[#allocation2 + $0x120] sm:$0xff]  ;;  %v2192_v52 = vld [vmem:[#allocation2 + $0x138] sm:$0xff]  ;;  %v3557_v15 = vpack.c.bf16 %v2868_v16, %v2868_v16  ;;  %2384 = vst.msk [vmem:[#allocation2 + $0x130] sm:$0xff] %vm746_vm0, %v2336_v13  ;;  %1824 = vst.msk [vmem:[#allocation2 + $0x148] sm:$0xff] %vm746_vm0, %v1776_v24  ;;  %v1565_v34 = vpop.f32.mrb[132].mxu1 }
 0x267   : > { %3108 = vst.msk [vmem:[%s4616_s14 + $0x88] sm:$0xf] %vm3073_vm3, %v3556_v11  ;;  %v2485_v19 = vadd.f32 %v4824_v28, %v2430_v18  ;;  %v2337_v0 = vadd.f32 %v2257_v12, %v2192_v52  ;;  %v1678_v54 = vrot.slane %v1565_v34, 7  ;;  %v2130_v58 = vpop.f32.mrb[132].mxu0  ;;  %v1567_v40 = vpop.f32.mrb[133].mxu1  ;;  %v1632_v16 = vld [vmem:[#allocation2 + $0x160] sm:$0xff] }
 0x268   : > { %v2431_v22 = vld [vmem:[#allocation2 + $0x128] sm:$0xff]  ;;  %3109 = vst.msk [vmem:[%s4616_s14 + $0x8c] sm:$0xf] %vm3073_vm3, %v3557_v15  ;;  %v2243_v21 = vrot.slane %v2130_v58, 1  ;;  %v2132_v42 = vpop.f32.mrb[133].mxu0  ;;  %v1568_v25 = vpop.f32.mrb[134].mxu1 }
 0x269   : > { %v2533_v23 = vmax.f32 %v2485_v19, 0.0  ;;  %v2486_v39 = vadd.f32 %v4824_v28, %v2431_v22  ;;  %2385 = vst.msk [vmem:[#allocation2 + $0x138] sm:$0xff] %vm746_vm0, %v2337_v0  ;;  %v1692_v41 = vsel %vm1686_vm1, %v1677_v29, %v1678_v54  ;;  %v1679_v62 = vrot.slane %v1568_v25, 7  ;;  %v2133_v43 = vpop.f32.mrb[134].mxu0  ;;  %v1570_v2 = vpop.f32.mrb[135].mxu1 }
 0x26a   : > { %v1777_v49 = vadd.f32 %v1692_v41, %v1630_v17  ;;  %v2255_v50 = vsel %vm2249_vm2, %v2242_v37, %v2243_v21  ;;  %v2135_v31 = vpop.f32.mrb[135].mxu0  ;;  %v2244_v56 = vrot.slane %v2133_v43, 1  ;;  %v2786_v29 = vpop.permute.xlu1 %2785 }
 0x26b   : > { %v2869_v47 = vmul.f32 %v2776_v45, %v2533_v23  ;;  %v2534_v6 = vmax.f32 %v2486_v39, 0.0  ;;  %v2193_v57 = vld [vmem:[#allocation2 + $0x140] sm:$0xff]  ;;  %v1691_v33 = vsel %vm1686_vm1, %v1678_v54, %v1679_v62  ;;  %v2791_v34 = vpop.permute.xlu0 %2790  ;;  %v1633_v54 = vld [vmem:[#allocation2 + $0x168] sm:$0xff] }
 0x26c   : > { %v2338_v32 = vadd.f32 %v2256_v44, %v2193_v57  ;;  %1825 = vst.msk [vmem:[#allocation2 + $0x150] sm:$0xff] %vm746_vm0, %v1777_v49  ;;  %v1778_v7 = vadd.f32 %v1691_v33, %v1631_v10  ;;  %v2254_v61 = vsel %vm2249_vm2, %v2243_v21, %v2244_v56 }
 0x26d   : > { %v3558_v5 = vpack.c.bf16 %v2869_v47, %v2869_v47  ;;  %v2870_v20 = vmul.f32 %v2781_v51, %v2534_v6  ;;  %v2432_v63 = vld [vmem:[#allocation2 + $0x130] sm:$0xff]  ;;  %v2194_v14 = vld [vmem:[#allocation2 + $0x148] sm:$0xff] }
 0x26e   : > { %v2487_v9 = vadd.f32 %v4824_v28, %v2432_v63  ;;  %2386 = vst.msk [vmem:[#allocation2 + $0x140] sm:$0xff] %vm746_vm0, %v2338_v32  ;;  %v2339_v26 = vadd.f32 %v2255_v50, %v2194_v14  ;;  %1826 = vst.msk [vmem:[#allocation2 + $0x158] sm:$0xff] %vm746_vm0, %v1778_v7  ;;  %v1573_v3 = vpop.f32.mrb[136].mxu1 }
 0x26f   : > { %3110 = vst.msk [vmem:[%s4616_s14 + $0x90] sm:$0xf] %vm3073_vm3, %v3558_v5  ;;  %v3559_v1 = vpack.c.bf16 %v2870_v20, %v2870_v20  ;;  %v1680_v12 = vrot.slane %v1573_v3, 7  ;;  %v2138_v4 = vpop.f32.mrb[136].mxu0  ;;  %v1575_v48 = vpop.f32.mrb[137].mxu1  ;;  %v1634_v20 = vld [vmem:[#allocation2 + $0x170] sm:$0xff] }
 0x270   : > { %v2433_v46 = vld [vmem:[#allocation2 + $0x138] sm:$0xff]  ;;  %v2535_v8 = vmax.f32 %v2487_v9, 0.0  ;;  %2387 = vst.msk [vmem:[#allocation2 + $0x148] sm:$0xff] %vm746_vm0, %v2339_v26  ;;  %v2245_v30 = vrot.slane %v2138_v4, 1  ;;  %v2140_v37 = vpop.f32.mrb[137].mxu0  ;;  %v1576_v11 = vpop.f32.mrb[138].mxu1 }
 0x271   : > { %3111 = vst.msk [vmem:[%s4616_s14 + $0x94] sm:$0xf] %vm3073_vm3, %v3559_v1  ;;  %v2488_v59 = vadd.f32 %v4824_v28, %v2433_v46  ;;  %v1690_v13 = vsel %vm1686_vm1, %v1679_v62, %v1680_v12  ;;  %v1681_v24 = vrot.slane %v1576_v11, 7  ;;  %v2141_v18 = vpop.f32.mrb[138].mxu0  ;;  %v1578_v52 = vpop.f32.mrb[139].mxu1  ;;  %v1635_v11 = vld [vmem:[#allocation2 + $0x178] sm:$0xff] }
 0x272   : > { %v2871_v44 = vmul.f32 %v2786_v29, %v2535_v8  ;;  %v1779_v15 = vadd.f32 %v1690_v13, %v1632_v16  ;;  %v2253_v19 = vsel %vm2249_vm2, %v2244_v56, %v2245_v30  ;;  %v2143_v0 = vpop.f32.mrb[139].mxu0  ;;  %v2246_v40 = vrot.slane %v2141_v18, 1  ;;  %v2796_v62 = vpop.permute.xlu1 %2795 }
 0x273   : > { %v2536_v45 = vmax.f32 %v2488_v59, 0.0  ;;  %v2195_v22 = vld [vmem:[#allocation2 + $0x150] sm:$0xff]  ;;  %v1689_v58 = vsel %vm1686_vm1, %v1680_v12, %v1681_v24  ;;  %v2801_v3 = vpop.permute.xlu0 %2800  ;;  %v1588_v12 = vld [vmem:[#allocation2] sm:$0xff] }
 0x274   : > { %v3560_v23 = vpack.c.bf16 %v2871_v44, %v2871_v44  ;;  %v2340_v21 = vadd.f32 %v2254_v61, %v2195_v22  ;;  %1827 = vst.msk [vmem:[#allocation2 + $0x160] sm:$0xff] %vm746_vm0, %v1779_v15  ;;  %v1780_v42 = vadd.f32 %v1689_v58, %v1633_v54  ;;  %v2252_v41 = vsel %vm2249_vm2, %v2245_v30, %v2246_v40 }
 0x275   : > { %v2872_v39 = vmul.f32 %v2791_v34, %v2536_v45  ;;  %v2434_v25 = vld [vmem:[#allocation2 + $0x140] sm:$0xff]  ;;  %v2196_v17 = vld [vmem:[#allocation2 + $0x158] sm:$0xff] }
 0x276   : > { %3112 = vst.msk [vmem:[%s4616_s14 + $0x98] sm:$0xf] %vm3073_vm3, %v3560_v23  ;;  %v2489_v2 = vadd.f32 %v4824_v28, %v2434_v25  ;;  %v2341_v47 = vadd.f32 %v2253_v19, %v2196_v17  ;;  %v1581_v6 = vpop.f32.mrb[140].mxu1 }
 0x277   : > { %v3561_v43 = vpack.c.bf16 %v2872_v39, %v2872_v39  ;;  %2388 = vst.msk [vmem:[#allocation2 + $0x150] sm:$0xff] %vm746_vm0, %v2340_v21  ;;  %1828 = vst.msk [vmem:[#allocation2 + $0x168] sm:$0xff] %vm746_vm0, %v1780_v42  ;;  %v2435_v49 = vld [vmem:[#allocation2 + $0x148] sm:$0xff]  ;;  %v1682_v50 = vrot.slane %v1581_v6, 7  ;;  %v2146_v31 = vpop.f32.mrb[140].mxu0  ;;  %v1583_v51 = vpop.f32.mrb[141].mxu1 }
 0x278   : > { %v2537_v57 = vmax.f32 %v2489_v2, 0.0  ;;  %v2490_v10 = vadd.f32 %v4824_v28, %v2435_v49  ;;  %2389 = vst.msk [vmem:[#allocation2 + $0x158] sm:$0xff] %vm746_vm0, %v2341_v47  ;;  %v2247_v33 = vrot.slane %v2146_v31, 1  ;;  %v2148_v56 = vpop.f32.mrb[141].mxu0  ;;  %v1584_v5 = vpop.f32.mrb[142].mxu1 }
 0x279   : > { %3113 = vst.msk [vmem:[%s4616_s14 + $0x9c] sm:$0xf] %vm3073_vm3, %v3561_v43  ;;  %v1688_v32 = vsel %vm1686_vm1, %v1681_v24, %v1682_v50  ;;  %v1683_v7 = vrot.slane %v1584_v5, 7  ;;  %v2149_v63 = vpop.f32.mrb[142].mxu0  ;;  %v1586_v14 = vpop.f32.mrb[143].mxu1 }
 0x27a   : > { %v2873_v61 = vmul.f32 %v2796_v62, %v2537_v57  ;;  %v2538_v29 = vmax.f32 %v2490_v10, 0.0  ;;  %v1781_v1 = vadd.f32 %v1688_v32, %v1634_v20  ;;  %v2251_v9 = vsel %vm2249_vm2, %v2246_v40, %v2247_v33  ;;  %v2151_v26 = vpop.f32.mrb[143].mxu0  ;;  %v2811_v34 = vpop.permute.xlu0 %2810 }
 0x27b   : > { %v2197_v46 = vld [vmem:[#allocation2 + $0x160] sm:$0xff]  ;;  %v1687_v4 = vsel %vm1686_vm1, %v1682_v50, %v1683_v7  ;;  %v1734_v48 = vsel %vm1686_vm1, %v1683_v7, %v1636_v36  ;;  %v2248_v8 = vrot.slane %v2149_v63, 1 }
 0x27c   : > { %v3562_v59 = vpack.c.bf16 %v2873_v61, %v2873_v61  ;;  %v2874_v30 = vmul.f32 %v2801_v3, %v2538_v29  ;;  %v2342_v37 = vadd.f32 %v2252_v41, %v2197_v46  ;;  %1829 = vst.msk [vmem:[#allocation2 + $0x170] sm:$0xff] %vm746_vm0, %v1781_v1  ;;  %v1735_v16 = vadd.f32 %v1734_v48, %v1588_v12 }
 0x27d   : > { %v1782_v18 = vadd.f32 %v1687_v4, %v1635_v11  ;;  %v2250_v52 = vsel %vm2249_vm2, %v2247_v33, %v2248_v8  ;;  %v2297_v53 = vsel %vm2249_vm2, %v2248_v8, %v2201_v38  ;;  %v2806_v38 = vpop.permute.xlu1 %2805 }
 0x27e   : > { %v2436_v13 = vld [vmem:[#allocation2 + $0x150] sm:$0xff]  ;;  %v2198_v24 = vld [vmem:[#allocation2 + $0x168] sm:$0xff]  ;;  %3114 = vst.msk [vmem:[%s4616_s14 + $0xa0] sm:$0xf] %vm3073_vm3, %v3562_v59  ;;  %v3563_v36 = vpack.c.bf16 %v2874_v30, %v2874_v30 }
 0x27f   : > { %v2491_v44 = vadd.f32 %v4824_v28, %v2436_v13  ;;  %2390 = vst.msk [vmem:[#allocation2 + $0x160] sm:$0xff] %vm746_vm0, %v2342_v37  ;;  %v2343_v45 = vadd.f32 %v2251_v9, %v2198_v24  ;;  %1783 = vst.msk [vmem:[#allocation2] sm:$0xff] %vm746_vm0, %v1735_v16  ;;  %v2437_v15 = vld [vmem:[#allocation2 + $0x158] sm:$0xff] }
 0x280   : > { %1830 = vst.msk [vmem:[#allocation2 + $0x178] sm:$0xff] %vm746_vm0, %v1782_v18  ;;  %v2492_v35 = vadd.f32 %v4824_v28, %v2437_v15 }
 0x281   : > { %3115 = vst.msk [vmem:[%s4616_s14 + $0xa4] sm:$0xf] %vm3073_vm3, %v3563_v36  ;;  %v2539_v55 = vmax.f32 %v2491_v44, 0.0  ;;  %v2816_v47 = vpop.permute.xlu1 %2815 }
 0x282   : > { %2391 = vst.msk [vmem:[#allocation2 + $0x168] sm:$0xff] %vm746_vm0, %v2343_v45  ;;  %v2540_v0 = vmax.f32 %v2492_v35, 0.0 }
 0x283   : > { %v2875_v19 = vmul.f32 %v2806_v38, %v2539_v55  ;;  %v2199_v22 = vld [vmem:[#allocation2 + $0x170] sm:$0xff] }
 0x284   : > { %v2876_v58 = vmul.f32 %v2811_v34, %v2540_v0  ;;  %v2344_v40 = vadd.f32 %v2250_v52, %v2199_v22 }
 0x285   : > { %v3564_v54 = vpack.c.bf16 %v2875_v19, %v2875_v19  ;;  %v2826_v32 = vpop.permute.xlu1 %2825 }
 0x286   : > { %v2438_v23 = vld [vmem:[#allocation2 + $0x160] sm:$0xff]  ;;  %v3565_v21 = vpack.c.bf16 %v2876_v58, %v2876_v58  ;;  %2392 = vst.msk [vmem:[#allocation2 + $0x170] sm:$0xff] %vm746_vm0, %v2344_v40 }
 0x287   : > { %v2153_v39 = vld [vmem:[#allocation2] sm:$0xff]  ;;  %3116 = vst.msk [vmem:[%s4616_s14 + $0xa8] sm:$0xf] %vm3073_vm3, %v3564_v54  ;;  %v2493_v42 = vadd.f32 %v4824_v28, %v2438_v23  ;;  %v2200_v17 = vld [vmem:[#allocation2 + $0x178] sm:$0xff] }
 0x288   : > { %v2298_v25 = vadd.f32 %v4569_v60, %v2153_v39  ;;  %v2345_v62 = vadd.f32 %v2297_v53, %v2200_v17  ;;  %3117 = vst.msk [vmem:[%s4616_s14 + $0xac] sm:$0xf] %vm3073_vm3, %v3565_v21  ;;  %v2821_v60 = vpop.permute.xlu0 %2820 }
 0x289   : > { %v2439_v41 = vld [vmem:[#allocation2 + $0x168] sm:$0xff]  ;;  %v2541_v43 = vmax.f32 %v2493_v42, 0.0 }
 0x28a   : > { %v2494_v2 = vadd.f32 %v4824_v28, %v2439_v41  ;;  %2346 = vst.msk [vmem:[#allocation2] sm:$0xff] %vm746_vm0, %v2298_v25  ;;  %2393 = vst.msk [vmem:[#allocation2 + $0x178] sm:$0xff] %vm746_vm0, %v2345_v62 }
 0x28b   : > { %v2877_v6 = vmul.f32 %v2816_v47, %v2541_v43 }
 0x28c   : > { %v2542_v49 = vmax.f32 %v2494_v2, 0.0  ;;  %v2831_v29 = vpop.permute.xlu0 %2830 }
 0x28d   : > { %v3566_v50 = vpack.c.bf16 %v2877_v6, %v2877_v6  ;;  %v2440_v51 = vld [vmem:[#allocation2 + $0x170] sm:$0xff] }
 0x28e   : > { %v2878_v31 = vmul.f32 %v2821_v60, %v2542_v49  ;;  %v2495_v10 = vadd.f32 %v4824_v28, %v2440_v51 }
 0x28f   : > { %3118 = vst.msk [vmem:[%s4616_s14 + $0xb0] sm:$0xf] %vm3073_vm3, %v3566_v50 }
 0x290   : > { %v3567_v57 = vpack.c.bf16 %v2878_v31, %v2878_v31  ;;  %v2543_v20 = vmax.f32 %v2495_v10, 0.0 }
 0x291   : > { %v2394_v33 = vld [vmem:[#allocation2] sm:$0xff]  ;;  %v2441_v5 = vld [vmem:[#allocation2 + $0x178] sm:$0xff] }
 0x292   : > { %3119 = vst.msk [vmem:[%s4616_s14 + $0xb4] sm:$0xf] %vm3073_vm3, %v3567_v57  ;;  %v2449_v56 = vadd.f32 %v4824_v28, %v2394_v33  ;;  %v2496_v7 = vadd.f32 %v4824_v28, %v2441_v5  ;;  %v2879_v14 = vmul.f32 %v2826_v32, %v2543_v20 }
 0x294   : > { %v2497_v63 = vmax.f32 %v2449_v56, 0.0  ;;  %v2544_v61 = vmax.f32 %v2496_v7, 0.0  ;;  %v3568_v9 = vpack.c.bf16 %v2879_v14, %v2879_v14 }
 0x296   : > { %v2833_v1 = vmul.f32 %v4610_v27, %v2497_v63  ;;  %v2880_v26 = vmul.f32 %v2831_v29, %v2544_v61  ;;  %3120 = vst.msk [vmem:[%s4616_s14 + $0xb8] sm:$0xf] %vm3073_vm3, %v3568_v9 }
 0x298   : > { %v3522_v3 = vpack.c.bf16 %v2833_v1, %v2833_v1  ;;  %v3569_v46 = vpack.c.bf16 %v2880_v26, %v2880_v26 }
 0x29a   : > { %3074 = vst.msk [vmem:[%s4616_s14] sm:$0xf] %vm3073_vm3, %v3522_v3  ;;  %3121 = vst.msk [vmem:[%s4616_s14 + $0xbc] sm:$0xf] %vm3073_vm3, %v3569_v46 }
 0x29b PF: > { %s16_s25 = sadd.s32 1, %s3750_s25   ;;  %s5050_s1 = sld [smem:[#allocation3_spill]] }
 0x29c   : > { %p13_p1 = scmp.ge.s32.totalorder %s16_s25, 18   ;;  %s5051_s26 = sld [smem:[#allocation4_spill]] }
 0x29d   : > { %s5052_s21 = smov %s3742_s23  ;;  %s5053_s22 = smov %s3746_s24 }
 0x29e   :  { %15 = sbr.rel (!%p13_p1) target bundleno = 3 (0x3), region = 85 }
 0x2a1   : > { %s5054_s23 = smov %s5050_s1 }
 0x2a2   : > { %s5055_s24 = smov %s5051_s26 }

// kernel: vgg_loss.8
= control target key start
LH: loop header
LB: loop body
LE: loop exit
PB: predicated region body
PF: predicated region fallthrough
CT: control target
= control target key end

     0   :  { %s3056_s21 = smov 0   ;;  %s3058_s22 = smov 0   ;;  %s3950_s0 = inlined_call_operand.vmem [shape: bf16[4,512,64], index: 0, kind: input, shape index: {}, may-alias: {0,1,2}]   ;;  %s3951_s1 = inlined_call_operand.vmem [shape: bf16[4,512,64], index: 1, kind: input, shape index: {}, may-alias: {0,1,2}]   ;;  %s3952_s2 = inlined_call_operand.vmem [shape: bf16[4,512,64], index: 2, kind: input, shape index: {}, may-alias: {0,1,2}]   ;;  %s3953_s3 = inlined_call_operand.vmem [shape: bf16[3,192,128], index: 3, kind: input, shape index: {}]   ;;  %s3954_s4 = inlined_call_operand.vmem [shape: f32[1,128], index: 4, kind: input, shape index: {}]   ;;  %s3955_s5 = inlined_call_operand.vmem [shape: f32[512,1], index: 5, kind: input, shape index: {}]   ;;  %s3956_s6 = inlined_call_operand.vmem [shape: bf16[4,512,128], index: 6, kind: output, shape index: {}]  }
   0x1   :  { %3958 = sst [smem:[#allocation3_spill]] %s3951_s1  ;;  %s3060_s23 = smov 0  }
   0x2   :  { %s3062_s24 = smov 0   ;;  %s3064_s25 = smov 0  }
   0x3 LB: > { %s25_s26 = sadd.s32 1, %s3009_s23  ;;  %s28_s27 = sadd.s32 1, %s3013_s24  ;;  %s3017_s25 = sphi %s3064_s25, %s16_s25   ;;  %s3013_s24 = sphi %s3062_s24, %s3964_s24   ;;  %s3009_s23 = sphi %s3060_s23, %s3963_s23   ;;  %s3005_s22 = sphi %s3058_s22, %s3962_s22   ;;  %s3001_s21 = sphi %s3056_s21, %s3961_s21  }
   0x4   : > { %p26_p0 = scmp.ge.s32.totalorder %s25_s26, 2  ;;  %p2521_p1 = scmp.ge.s32.totalorder %s3017_s25, 1 }
   0x5   : > { %p310_p2 = scmp.lt.s32.totalorder %s3017_s25, 9 }
   0x6   : > { %s3966_s26 = smov (%p26_p0, %s25_s26), 0  ;;  %s3968_s27 = smov (!%p26_p0, %s28_s27), %s3013_s24 }
   0x7   : > { %p311_p3 = pnand %p2521_p1, %p310_p2  ;;  %p30_p4 = scmp.ge.s32.totalorder %s3968_s27, 4 }
   0x8   : > { %p384_p5 = scmp.lt.s32.totalorder (!%p311_p3), %s3005_s22, 3  ;;  %s2527_s28 = sshll.u32 (!%p311_p3), %s3001_s21, 5  ;;  %v2943_v0 = vld [vmem:[%s3953_s3 + $0x60] sm:$0xff] (!%p311_p3)   ;;  %v3019_v1 = vmov (!%p311_p3), 0   ;;  %v2944_v2 = vld [vmem:[%s3953_s3 + $0x68] sm:$0xff] (!%p311_p3)   ;;  %v2945_v3 = vld [vmem:[%s3953_s3 + $0x70] sm:$0xff] (!%p311_p3)  }
   0x9   : > { %s3970_s27 = smov (%p30_p4, %s3968_s27), 0  ;;  %314 = sbr.rel (%p311_p3) target bundleno = 554 (0x22a), region = 44 }
   0xa   : > { %p400_p6 = scmp.lt.s32.totalorder (!%p311_p3), %s2527_s28, 63  ;;  %2859 = vmatprep.subr.bf16.mxu1 (!%p311_p3), %v3019_v1  ;;  %854 = vmatprep.subr.bf16.mxu0 (!%p311_p3), %v3019_v1  ;;  %s3959_s1 = sld [smem:[#allocation3_spill]] (!%p311_p3)  ;;  %v2946_v5 = vld [vmem:[%s3953_s3 + $0x78] sm:$0xff] (!%p311_p3)   ;;  %v2947_v9 = vld [vmem:[%s3953_s3 + $0x80] sm:$0xff] (!%p311_p3)   ;;  %vm656_vm0 = vcmask (!%p311_p3), 523264   ;;  %v2948_v12 = vld [vmem:[%s3953_s3 + $0x88] sm:$0xff] (!%p311_p3)  }
   0xb   : > { %2871 = vmatpush1.bf16.msra.mxu1 (!%p311_p3), %v2943_v0  ;;  %855 = vmatpush1.bf16.msra.mxu0 (!%p311_p3), %v2943_v0  ;;  %s3020_s19 = smov (!%p311_p3), 64   ;;  %v2949_v15 = vld [vmem:[%s3953_s3 + $0x90] sm:$0xff] (!%p311_p3)   ;;  %v2950_v19 = vld [vmem:[%s3953_s3 + $0x98] sm:$0xff] (!%p311_p3)   ;;  %v2951_v22 = vld [vmem:[%s3953_s3 + $0xa0] sm:$0xff] (!%p311_p3)   ;;  %p474_p7 = scmp.gt.s32.totalorder (!%p311_p3), %s3001_s21, 0 }
   0xc   : > { %2860 = vmatprep.subr.bf16.mxu1 (!%p311_p3), %v3019_v1  ;;  %856 = vmatprep.subr.bf16.mxu0 (!%p311_p3), %v3019_v1  ;;  %v2952_v25 = vld [vmem:[%s3953_s3 + $0xa8] sm:$0xff] (!%p311_p3)   ;;  %v2953_v27 = vld [vmem:[%s3953_s3 + $0xb0] sm:$0xff] (!%p311_p3)   ;;  %v2954_v28 = vld [vmem:[%s3953_s3 + $0xb8] sm:$0xff] (!%p311_p3)   ;;  %p487_p11 = scmp.lt.s32.totalorder (!%p311_p3), %s3001_s21, 1 }
   0xd   : > { %2926 = vset.pattern.permute.xlu1 (!%p311_p3), %v3019_v1  ;;  %2925 = vset.pattern.permute.xlu0 (!%p311_p3), %v3019_v1  ;;  %v2955_v34 = vld [vmem:[%s3953_s3] sm:$0xff] (!%p311_p3)   ;;  %v2957_v42 = vld [vmem:[%s3953_s3 + $0x8] sm:$0xff] (!%p311_p3)   ;;  %v2959_v50 = vld [vmem:[%s3953_s3 + $0x10] sm:$0xff] (!%p311_p3)  }
   0xe   : > { %v2956_v41 = vld [vmem:[%s3953_s3 + $0xc0] sm:$0xff] (!%p311_p3)   ;;  %v2958_v48 = vld [vmem:[%s3953_s3 + $0xc8] sm:$0xff] (!%p311_p3)   ;;  %v2960_v53 = vld [vmem:[%s3953_s3 + $0xd0] sm:$0xff] (!%p311_p3)  }
   0xf   : > { %2872 = vmatpush1.bf16.msra.mxu1 (!%p311_p3), %v2944_v2  ;;  %857 = vmatpush1.bf16.msra.mxu0 (!%p311_p3), %v2944_v2  ;;  %v2961_v54 = vld [vmem:[%s3953_s3 + $0x18] sm:$0xff] (!%p311_p3)   ;;  %v2963_v59 = vld [vmem:[%s3953_s3 + $0x20] sm:$0xff] (!%p311_p3)   ;;  %v2965_v63 = vld [vmem:[%s3953_s3 + $0x28] sm:$0xff] (!%p311_p3)  }
  0x10   : > { %s3972_s22 = smov (!%p384_p5, %s3005_s22), 3  ;;  %s3974_s28 = smov (!%p400_p6, %s2527_s28), 63  ;;  %2861 = vmatprep.subr.bf16.mxu1 %v3019_v1  ;;  %858 = vmatprep.subr.bf16.mxu0 %v3019_v1  ;;  %v2962_v57 = vld [vmem:[%s3953_s3 + $0xd8] sm:$0xff]   ;;  %v2964_v61 = vld [vmem:[%s3953_s3 + $0xe0] sm:$0xff]   ;;  %v2966_v2 = vld [vmem:[%s3953_s3 + $0xe8] sm:$0xff]  }
  0x11   : > { %s3101_s9 = sshll.u32 %s3972_s22, 6 }
  0x12   : > { %s403_s10 = sadd.s32 %s3101_s9, %s3974_s28 }
  0x13   : > { %s3107_s11 = sshll.u32 %s403_s10, 2  ;;  %2873 = vmatpush1.bf16.msra.mxu1 %v2945_v3  ;;  %859 = vmatpush1.bf16.msra.mxu0 %v2945_v3 }
  0x14   : > { %s3116_s16 = scalar_lea.vmem %s3959_s1, %s3107_s11  ;;  %2862 = vmatprep.subr.bf16.mxu1 %v3019_v1  ;;  %860 = vmatprep.subr.bf16.mxu0 %v3019_v1 }
  0x15   : > { %v3121_v4 = vld [vmem:[%s3116_s16 + $0x40] sm:$0xff]   ;;  %v3132_v7 = vld [vmem:[%s3116_s16 + $0x48] sm:$0xff]   ;;  %v3147_v10 = vld [vmem:[%s3116_s16 + $0x50] sm:$0xff]   ;;  %s475_s29 = scalar_select %p474_p7, 1, 0 }
  0x16   : > { %v3127_v6 = vld [vmem:[%s3116_s16] sm:$0xff]   ;;  %640 = vrot.lane.b32.xlu0 %v3121_v4, %s3020_s19  ;;  %642 = vrot.lane.b32.xlu1 %v3132_v7, %s3020_s19  ;;  %v3138_v8 = vld [vmem:[%s3116_s16 + $0x8] sm:$0xff]  }
  0x17   : > { %2874 = vmatpush1.bf16.msra.mxu1 %v2946_v5  ;;  %v3150_v11 = vld [vmem:[%s3116_s16 + $0x10] sm:$0xff]   ;;  %861 = vmatpush1.bf16.msra.mxu0 %v2946_v5  ;;  %v3166_v13 = vld [vmem:[%s3116_s16 + $0x58] sm:$0xff]   ;;  %v3181_v16 = vld [vmem:[%s3116_s16 + $0x60] sm:$0xff]   ;;  %s476_s7 = scvt.s32.f32 %s475_s29 }
  0x18   : > { %2863 = vmatprep.subr.bf16.mxu1 %v3019_v1  ;;  %862 = vmatprep.subr.bf16.mxu0 %v3019_v1  ;;  %v3172_v14 = vld [vmem:[%s3116_s16 + $0x18] sm:$0xff]   ;;  %v3187_v17 = vld [vmem:[%s3116_s16 + $0x20] sm:$0xff]   ;;  %v3191_v18 = vld [vmem:[%s3116_s16 + $0x68] sm:$0xff]  }
  0x19   : > { %2603 = vmatprep.mubr.msk.bf16.mxu1 %vm656_vm0, %v3147_v10  ;;  %2595 = vmatprep.mubr.msk.bf16.mxu0 %vm656_vm0, %v3150_v11  ;;  %v3202_v20 = vld [vmem:[%s3116_s16 + $0x28] sm:$0xff]   ;;  %v3208_v21 = vld [vmem:[%s3116_s16 + $0x70] sm:$0xff]   ;;  %v3221_v24 = vld [vmem:[%s3116_s16 + $0x78] sm:$0xff]   ;;  %s479_s8 = sshrl.u32 %s476_s7, 16  ;;  %p478_p10 = scmp.ne.f32.partialorder %s476_s7, %s476_s7 }
  0x1a   : > { %624 = vrot.lane.b32.xlu0 %v3127_v6, %s3020_s19  ;;  %626 = vrot.lane.b32.xlu1 %v3138_v8, %s3020_s19  ;;  %v3217_v23 = vld [vmem:[%s3116_s16 + $0x30] sm:$0xff]   ;;  %v3232_v26 = vld [vmem:[%s3116_s16 + $0x38] sm:$0xff]   ;;  %s480_s10 = sand.u32 1, %s479_s8 }
  0x1b   : > { %2875 = vmatpush1.bf16.msra.mxu1 %v2947_v9  ;;  %863 = vmatpush1.bf16.msra.mxu0 %v2947_v9  ;;  %s481_s12 = sadd.s32 32767, %s480_s10  ;;  %s3960_s10 = sshll.u32 %s3001_s21, 3  ;;  %v2967_v5 = vld [vmem:[%s3953_s3 + $0x30] sm:$0xff]  }
  0x1c   : > { %2864 = vmatprep.subr.bf16.mxu1 %v3019_v1  ;;  %864 = vmatprep.subr.bf16.mxu0 %v3019_v1  ;;  %s482_s14 = sadd.s32 %s481_s12, %s476_s7  ;;  %s2731_s12 = sadd.s32 8, %s3960_s10  ;;  %v2968_v9 = vld [vmem:[%s3953_s3 + $0xf0] sm:$0xff]  }
  0x1d   : > { %s483_s15 = sand.u32 4294901760, %s482_s14  ;;  %p409_p12 = scmp.lt.s32.totalorder %s2731_s12, 15 }
  0x1e   : > { %644 = vrot.lane.b32.xlu0 %v3147_v10, %s3020_s19  ;;  %628 = vrot.lane.b32.xlu1 %v3150_v11, %s3020_s19  ;;  %s3980_s15 = smov (%p478_p10, %s483_s15), 2143289344  ;;  %s3751_s10 = scalar_lea.vmem %s3956_s6, %s3107_s11 }
  0x1f   : > { %2876 = vmatpush1.bf16.msra.mxu1 %v2948_v12  ;;  %865 = vmatpush1.bf16.msra.mxu0 %v2948_v12  ;;  %s486_s18 = sshrl.u32 %s3980_s15, 16  ;;  %s3982_s12 = smov (!%p409_p12, %s2731_s12), 15 }
  0x20   : > { %2865 = vmatprep.subr.bf16.mxu1 %v3019_v1  ;;  %866 = vmatprep.subr.bf16.mxu0 %v3019_v1  ;;  %s504_s16 = sshll.u32 %s486_s18, 16 }
  0x21   : > { %s505_s1 = sor.u32 %s504_s16, %s486_s18 }
  0x22   : > { %646 = vrot.lane.b32.xlu0 %v3166_v13, %s3020_s19  ;;  %630 = vrot.lane.b32.xlu1 %v3172_v14, %s3020_s19  ;;  %v506_v31 = vstv %s505_s1  ;;  %s2531_s1 = sshll.u32 %s3982_s12, 2 }
  0x23   : > { %2877 = vmatpush1.bf16.msra.mxu1 %v2949_v15  ;;  %867 = vmatpush1.bf16.msra.mxu0 %v2949_v15  ;;  %p414_p13 = scmp.lt.s32.totalorder %s2531_s1, 63  ;;  %v2969_v15 = vld [vmem:[%s3953_s3 + $0x38] sm:$0xff]  }
  0x24   : > { %2866 = vmatprep.subr.bf16.mxu1 %v3019_v1  ;;  %868 = vmatprep.subr.bf16.mxu0 %v3019_v1 }
  0x25   : > { %s3984_s1 = smov (!%p414_p13, %s2531_s1), 63 }
  0x26   : > { %648 = vrot.lane.b32.xlu0 %v3181_v16, %s3020_s19  ;;  %632 = vrot.lane.b32.xlu1 %v3187_v17, %s3020_s19 }
  0x27   : > { %2878 = vmatpush1.bf16.msra.mxu1 %v2950_v19  ;;  %869 = vmatpush1.bf16.msra.mxu0 %v2950_v19  ;;  %v2970_v19 = vld [vmem:[%s3953_s3 + $0xf8] sm:$0xff]  }
  0x28   : > { %2867 = vmatprep.subr.bf16.mxu1 %v3019_v1  ;;  %870 = vmatprep.subr.bf16.mxu0 %v3019_v1 }
  0x2a   : > { %650 = vrot.lane.b32.xlu0 %v3191_v18, %s3020_s19  ;;  %634 = vrot.lane.b32.xlu1 %v3202_v20, %s3020_s19 }
  0x2b   : > { %2879 = vmatpush1.bf16.msra.mxu1 %v2951_v22  ;;  %871 = vmatpush1.bf16.msra.mxu0 %v2951_v22 }
  0x2c   : > { %2868 = vmatprep.subr.bf16.mxu1 %v3019_v1  ;;  %872 = vmatprep.subr.bf16.mxu0 %v3019_v1 }
  0x2e   : > { %652 = vrot.lane.b32.xlu0 %v3208_v21, %s3020_s19  ;;  %636 = vrot.lane.b32.xlu1 %v3217_v23, %s3020_s19 }
  0x2f   : > { %2880 = vmatpush1.bf16.msra.mxu1 %v2952_v25  ;;  %873 = vmatpush1.bf16.msra.mxu0 %v2952_v25  ;;  %v2971_v25 = vld [vmem:[%s3953_s3 + $0x40] sm:$0xff]  }
  0x30   : > { %2869 = vmatprep.subr.bf16.mxu1 %v3019_v1  ;;  %874 = vmatprep.subr.bf16.mxu0 %v3019_v1 }
  0x32   : > { %654 = vrot.lane.b32.xlu0 %v3221_v24, %s3020_s19  ;;  %638 = vrot.lane.b32.xlu1 %v3232_v26, %s3020_s19  ;;  %s3957_s19 = sshll.u32 %s3001_s21, 3 }
  0x33   : > { %2881 = vmatpush1.bf16.msra.mxu1 %v2953_v27  ;;  %875 = vmatpush1.bf16.msra.mxu0 %v2953_v27  ;;  %s2523_s30 = sadd.s32 4294967295, %s3957_s19 }
  0x34   : > { %2870 = vmatprep.subr.bf16.mxu1 %v3019_v1  ;;  %876 = vmatprep.subr.bf16.mxu0 %v3019_v1  ;;  %p381_p8 = scmp.gt.s32.totalorder %s2523_s30, 0 }
  0x36   : > { %s3976_s30 = smov (!%p381_p8, %s2523_s30), 0 }
  0x37   : > { %2882 = vmatpush1.bf16.msra.mxu1 %v2954_v28  ;;  %877 = vmatpush1.bf16.msra.mxu0 %v2954_v28  ;;  %s2524_s13 = sshll.u32 %s3976_s30, 2 }
  0x38   : > { %1143 = vmatprep.subr.bf16.mxu1 %v3019_v1  ;;  %1564 = vmatprep.subr.bf16.mxu0 %v3019_v1  ;;  %p386_p9 = scmp.lt.s32.totalorder %s2524_s13, 63 }
  0x39   : > { %s488_s30 = scalar_select %p487_p11, 1, 0 }
  0x3a   : > { %s3978_s13 = smov (!%p386_p9, %s2524_s13), 63 }
  0x3b   : > { %s389_s17 = sadd.s32 %s3101_s9, %s3978_s13  ;;  %s3265_s13 = scvt.s32.f32 %s488_s30 }
  0x3c   : > { %s2526_s20 = sshll.u32 %s389_s17, 2  ;;  %s417_s30 = sadd.s32 %s3101_s9, %s3984_s1 }
  0x3d   : > { %s391_s19 = scalar_lea.vmem %s3950_s0, %s2526_s20  ;;  %s492_s15 = sshrl.u32 %s3265_s13, 16 }
  0x3e   : > { %v500_v29 = vld [vmem:[%s391_s19] sm:$0xf]  ;;  %v501_v30 = vld [vmem:[%s391_s19 + $0x4] sm:$0xf]  ;;  %v502_v36 = vld [vmem:[%s391_s19 + $0x8] sm:$0xf]  ;;  %p491_p0 = scmp.ne.f32.partialorder %s3265_s13, %s3265_s13 }
  0x3f   : > { %v508_v32 = vmul.bf16 %v506_v31, %v500_v29  ;;  %v509_v33 = vmul.bf16 %v506_v31, %v501_v30  ;;  %v503_v37 = vld [vmem:[%s391_s19 + $0xc] sm:$0xf]  ;;  %v510_v43 = vmul.bf16 %v506_v31, %v502_v36  ;;  %s493_s22 = sand.u32 1, %s492_s15 }
  0x40   : > { %v511_v44 = vmul.bf16 %v506_v31, %v503_v37  ;;  %s494_s29 = sadd.s32 32767, %s493_s22 }
  0x41   : > { %v2539_v39 = vcombine.low %v508_v32, %v509_v33  ;;  %s495_s14 = sadd.s32 %s494_s29, %s3265_s13  ;;  %v2972_v33 = vld [vmem:[%s3953_s3 + $0x100] sm:$0xff]  }
  0x42   : > { %v2540_v49 = vcombine.low %v510_v43, %v511_v44  ;;  %s496_s17 = sand.u32 4294901760, %s495_s14  ;;  %s2533_s14 = sshll.u32 %s417_s30, 2 }
  0x43   : > { %s3986_s17 = smov (%p491_p0, %s496_s17), 2143289344  ;;  %s3387_s13 = scalar_lea.vmem %s3952_s2, %s2533_s14 }
  0x44   : > { %s499_s7 = sshrl.u32 %s3986_s17, 16  ;;  %v512_v27 = vld [vmem:[%s3387_s13] sm:$0xf]  ;;  %v513_v28 = vld [vmem:[%s3387_s13 + $0x4] sm:$0xf]  ;;  %s2535_s30 = sshll.u32 %s3974_s28, 3 }
  0x45   : > { %s516_s21 = sshll.u32 %s499_s7, 16 }
  0x46   : > { %s517_s18 = sor.u32 %s516_s21, %s499_s7  ;;  %s3420_s21 = scalar_lea.vmem %s3955_s5, %s2535_s30 }
  0x47   : > { %v518_v29 = vstv %s517_s18  ;;  %v1990_v36 = vld [vmem:[%s3420_s21 + $0x8] sm:$0xff]  ;;  %v1989_v37 = vld [vmem:[%s3420_s21] sm:$0xff]  ;;  %v1992_v43 = vld [vmem:[%s3420_s21 + $0x18] sm:$0xff] }
  0x48   : > { %v520_v31 = vmul.bf16 %v518_v29, %v512_v27  ;;  %v521_v32 = vmul.bf16 %v518_v29, %v513_v28  ;;  %2028 = vperm.xlu1 %2926, %v1990_v36   ;;  %2023 = vperm.xlu0 %2925, %v1989_v37   ;;  %v2001_v28 = vld [vmem:[%s3420_s21 + $0x60] sm:$0xff]  ;;  %v2007_v36 = vld [vmem:[%s3420_s21 + $0x90] sm:$0xff] }
  0x49   : > { %v2009_v37 = vld [vmem:[%s3420_s21 + $0xa0] sm:$0xff] }
  0x4c   : > { %2038 = vperm.xlu0 %2925, %v1992_v43   ;;  %v2014_v43 = vld [vmem:[%s3420_s21 + $0xc8] sm:$0xff] }
  0x88   : > { %v641_v35 = vpop.permute.xlu0 %640  ;;  %v643_v40 = vpop.permute.xlu1 %642 }
  0x89   : > { %v3269_v38 = vsel %vm656_vm0, %v3217_v23, %v641_v35  ;;  %v3290_v47 = vsel %vm656_vm0, %v3232_v26, %v643_v40  ;;  %v2973_v35 = vld [vmem:[%s3953_s3 + $0x48] sm:$0xff]  }
  0x8a   : > { %951 = vmatmul.mubr.bf16.vlgmr.msra.gmra.mrb[0].mxu1 %v3269_v38 }
  0x8b   : > { %1144 = vmatpush1.bf16.msra.mxu1 %v2955_v34  ;;  %2604 = vmatprep.mubr.msk.bf16.mxu1 %vm656_vm0, %v3166_v13 }
  0x8c   : > { %v625_v45 = vpop.permute.xlu0 %624  ;;  %1145 = vmatprep.subr.bf16.mxu1 %v3019_v1  ;;  %v627_v51 = vpop.permute.xlu1 %626 }
  0x8d   : > { %v3283_v46 = vsel %vm656_vm0, %v2539_v39, %v625_v45  ;;  %v3304_v52 = vsel %vm656_vm0, %v2540_v49, %v627_v51  ;;  %v1991_v39 = vld [vmem:[%s3420_s21 + $0x10] sm:$0xff]  ;;  %v514_v45 = vld [vmem:[%s3387_s13 + $0x8] sm:$0xf] }
  0x8e   : > { %887 = vmatmul.mubr.bf16.vlgmr.msra.gmra.mrb[0].mxu0 %v3283_v46  ;;  %v2975_v49 = vld [vmem:[%s3953_s3 + $0x50] sm:$0xff]   ;;  %2033 = vperm.xlu1 %2926, %v1991_v39   ;;  %v2010_v39 = vld [vmem:[%s3420_s21 + $0xa8] sm:$0xff] }
  0x8f   : > { %1565 = vmatpush1.bf16.msra.mxu0 %v2956_v41  ;;  %1146 = vmatpush1.bf16.msra.mxu1 %v2957_v42  ;;  %v3437_v41 = vcombine.low %v520_v31, %v521_v32  ;;  %v2974_v42 = vld [vmem:[%s3953_s3 + $0x108] sm:$0xff]   ;;  %v2003_v32 = vld [vmem:[%s3420_s21 + $0x70] sm:$0xff] }
  0x90   : > { %1566 = vmatprep.subr.bf16.mxu0 %v3019_v1  ;;  %2596 = vmatprep.mubr.msk.bf16.mxu0 %vm656_vm0, %v3172_v14  ;;  %v645_v55 = vpop.permute.xlu0 %644  ;;  %v629_v58 = vpop.permute.xlu1 %628  ;;  %v2002_v31 = vld [vmem:[%s3420_s21 + $0x68] sm:$0xff] }
  0x91   : > { %1147 = vmatprep.subr.bf16.mxu1 %v3019_v1  ;;  %v3321_v56 = vsel %vm656_vm0, %v3121_v4, %v645_v55  ;;  %v3338_v60 = vsel %vm656_vm0, %v3127_v6, %v629_v58  ;;  %v2976_v55 = vld [vmem:[%s3953_s3 + $0x110] sm:$0xff]  }
  0x92   : > { %959 = vmatmul.mubr.bf16.gmra.mrb[4].mxu1 %v3290_v47 }
  0x93   : > { %1567 = vmatpush1.bf16.msra.mxu0 %v2958_v48  ;;  %1148 = vmatpush1.bf16.msra.mxu1 %v2959_v50  ;;  %v515_v48 = vld [vmem:[%s3387_s13 + $0xc] sm:$0xf]  ;;  %v1993_v50 = vld [vmem:[%s3420_s21 + $0x20] sm:$0xff] }
  0x94   : > { %1568 = vmatprep.subr.bf16.mxu0 %v3019_v1  ;;  %2605 = vmatprep.mubr.msk.bf16.mxu1 %vm656_vm0, %v3181_v16  ;;  %v647_v62 = vpop.permute.xlu0 %646  ;;  %v631_v3 = vpop.permute.xlu1 %630 }
  0x95   : > { %1149 = vmatprep.subr.bf16.mxu1 %v3019_v1  ;;  %v3355_v0 = vsel %vm656_vm0, %v3132_v7, %v647_v62  ;;  %v3372_v6 = vsel %vm656_vm0, %v3138_v8, %v631_v3  ;;  %2043 = vperm.xlu1 %2926, %v1993_v50   ;;  %v1996_v3 = vld [vmem:[%s3420_s21 + $0x38] sm:$0xff] }
  0x96   : > { %895 = vmatmul.mubr.bf16.gmra.mrb[4].mxu0 %v3304_v52 }
  0x97   : > { %1569 = vmatpush1.bf16.msra.mxu0 %v2960_v53  ;;  %1150 = vmatpush1.bf16.msra.mxu1 %v2961_v54  ;;  %v522_v53 = vmul.bf16 %v518_v29, %v514_v45  ;;  %v523_v54 = vmul.bf16 %v518_v29, %v515_v48  ;;  %v2018_v45 = vld [vmem:[%s3420_s21 + $0xe8] sm:$0xff] }
  0x98   : > { %2597 = vmatprep.mubr.msk.bf16.mxu0 %vm656_vm0, %v3187_v17  ;;  %1570 = vmatprep.subr.bf16.mxu0 %v3019_v1  ;;  %v649_v12 = vpop.permute.xlu0 %648  ;;  %v633_v22 = vpop.permute.xlu1 %632 }
  0x99   : > { %1151 = vmatprep.subr.bf16.mxu1 %v3019_v1  ;;  %v3392_v8 = vsel %vm656_vm0, %v3147_v10, %v649_v12  ;;  %v3410_v30 = vsel %vm656_vm0, %v3150_v11, %v633_v22 }
  0x9a   : > { %967 = vmatmul.mubr.bf16.gmra.mrb[8].mxu1 %v3321_v56 }
  0x9b   : > { %1571 = vmatpush1.bf16.msra.mxu0 %v2962_v57  ;;  %2606 = vmatprep.mubr.msk.bf16.mxu1 %vm656_vm0, %v3191_v18  ;;  %v1994_v57 = vld [vmem:[%s3420_s21 + $0x28] sm:$0xff] }
  0x9c   : > { %1152 = vmatpush1.bf16.msra.mxu1 %v2963_v59  ;;  %1572 = vmatprep.subr.bf16.mxu0 %v3019_v1  ;;  %v651_v34 = vpop.permute.xlu0 %650  ;;  %v635_v44 = vpop.permute.xlu1 %634  ;;  %v2977_v59 = vld [vmem:[%s3953_s3 + $0x58] sm:$0xff]  }
  0x9d   : > { %1153 = vmatprep.subr.bf16.mxu1 %v3019_v1  ;;  %v3433_v40 = vsel %vm656_vm0, %v3166_v13, %v651_v34  ;;  %v3454_v51 = vsel %vm656_vm0, %v3172_v14, %v635_v44  ;;  %2048 = vperm.xlu0 %2925, %v1994_v57   ;;  %v2005_v34 = vld [vmem:[%s3420_s21 + $0x80] sm:$0xff] }
  0x9e   : > { %903 = vmatmul.mubr.bf16.gmra.mrb[8].mxu0 %v3338_v60  ;;  %v2017_v44 = vld [vmem:[%s3420_s21 + $0xe0] sm:$0xff] }
  0x9f   : > { %1573 = vmatpush1.bf16.msra.mxu0 %v2964_v61  ;;  %2598 = vmatprep.mubr.msk.bf16.mxu0 %vm656_vm0, %v3202_v20  ;;  %v1995_v61 = vld [vmem:[%s3420_s21 + $0x30] sm:$0xff] }
  0xa0   : > { %1154 = vmatpush1.bf16.msra.mxu1 %v2965_v63  ;;  %1574 = vmatprep.subr.bf16.mxu0 %v3019_v1  ;;  %v653_v58 = vpop.permute.xlu0 %652  ;;  %v3475_v63 = vcombine.low %v522_v53, %v523_v54 }
  0xa1   : > { %1155 = vmatprep.subr.bf16.mxu1 %v3019_v1  ;;  %v3471_v62 = vsel %vm656_vm0, %v3181_v16, %v653_v58  ;;  %2053 = vperm.xlu1 %2926, %v1995_v61  }
  0xa2   : > { %975 = vmatmul.mubr.bf16.gmra.mrb[12].mxu1 %v3355_v0  ;;  %2058 = vperm.xlu0 %2925, %v1996_v3  }
  0xa3   : > { %2607 = vmatprep.mubr.msk.bf16.mxu1 %vm656_vm0, %v3208_v21  ;;  %1575 = vmatpush1.bf16.msra.mxu0 %v2966_v2  ;;  %v2978_v2 = vld [vmem:[%s3953_s3 + $0x118] sm:$0xff]  }
  0xa4   : > { %1156 = vmatpush1.bf16.msra.mxu1 %v2967_v5  ;;  %1576 = vmatprep.subr.bf16.mxu0 %v3019_v1  ;;  %v637_v5 = vpop.permute.xlu1 %636 }
  0xa5   : > { %1157 = vmatprep.subr.bf16.mxu1 %v3019_v1  ;;  %v3486_v12 = vsel %vm656_vm0, %v3187_v17, %v637_v5 }
  0xa6   : > { %911 = vmatmul.mubr.bf16.gmra.mrb[12].mxu0 %v3372_v6 }
  0xa7   : > { %2599 = vmatprep.mubr.msk.bf16.mxu0 %vm656_vm0, %v3217_v23  ;;  %1577 = vmatpush1.bf16.msra.mxu0 %v2968_v9  ;;  %v1997_v9 = vld [vmem:[%s3420_s21 + $0x40] sm:$0xff] }
  0xa8   : > { %1158 = vmatpush1.bf16.msra.mxu1 %v2969_v15  ;;  %1578 = vmatprep.subr.bf16.mxu0 %v3019_v1  ;;  %v1998_v15 = vld [vmem:[%s3420_s21 + $0x48] sm:$0xff]  ;;  %v639_v27 = vpop.permute.xlu1 %638 }
  0xa9   : > { %1159 = vmatprep.subr.bf16.mxu1 %v3019_v1  ;;  %2063 = vperm.xlu1 %2926, %v1997_v9   ;;  %v3504_v29 = vsel %vm656_vm0, %v3202_v20, %v639_v27 }
  0xaa   : > { %983 = vmatmul.mubr.bf16.gmra.mrb[16].mxu1 %v3392_v8  ;;  %2068 = vperm.xlu0 %2925, %v1998_v15  }
  0xab   : > { %2608 = vmatprep.mubr.msk.bf16.mxu1 %vm656_vm0, %v3221_v24  ;;  %1579 = vmatpush1.bf16.msra.mxu0 %v2970_v19  ;;  %v655_v19 = vpop.permute.xlu0 %654 }
  0xac   : > { %1160 = vmatpush1.bf16.msra.mxu1 %v2971_v25  ;;  %1580 = vmatprep.subr.bf16.mxu0 %v3019_v1  ;;  %v3495_v22 = vsel %vm656_vm0, %v3191_v18, %v655_v19  ;;  %v2000_v25 = vld [vmem:[%s3420_s21 + $0x58] sm:$0xff] }
  0xad   : > { %1161 = vmatprep.subr.bf16.mxu1 %v3019_v1 }
  0xae   : > { %919 = vmatmul.mubr.bf16.gmra.mrb[16].mxu0 %v3410_v30  ;;  %2078 = vperm.xlu0 %2925, %v2000_v25  }
  0xaf   : > { %2600 = vmatprep.mubr.msk.bf16.mxu0 %vm656_vm0, %v3232_v26  ;;  %1581 = vmatpush1.bf16.msra.mxu0 %v2972_v33  ;;  %v2004_v33 = vld [vmem:[%s3420_s21 + $0x78] sm:$0xff] }
  0xb0   : > { %1162 = vmatpush1.bf16.msra.mxu1 %v2973_v35  ;;  %1582 = vmatprep.subr.bf16.mxu0 %v3019_v1  ;;  %v2006_v35 = vld [vmem:[%s3420_s21 + $0x88] sm:$0xff] }
  0xb1   : > { %1163 = vmatprep.subr.bf16.mxu1 %v3019_v1 }
  0xb2   : > { %991 = vmatmul.mubr.bf16.gmra.mrb[20].mxu1 %v3433_v40  ;;  %2088 = vperm.xlu0 %2925, %v2002_v31  }
  0xb3   : > { %2609 = vmatprep.mubr.msk.bf16.mxu1 %vm656_vm0, %v3437_v41  ;;  %1583 = vmatpush1.bf16.msra.mxu0 %v2974_v42  ;;  %v2013_v42 = vld [vmem:[%s3420_s21 + $0xc0] sm:$0xff] }
  0xb4   : > { %1164 = vmatpush1.bf16.msra.mxu1 %v2975_v49  ;;  %1584 = vmatprep.subr.bf16.mxu0 %v3019_v1 }
  0xb5   : > { %1165 = vmatprep.subr.bf16.mxu1 %v3019_v1 }
  0xb6   : > { %927 = vmatmul.mubr.bf16.gmra.mrb[20].mxu0 %v3454_v51  ;;  %2098 = vperm.xlu0 %2925, %v2004_v33  }
  0xb7   : > { %2601 = vmatprep.mubr.msk.bf16.mxu0 %vm656_vm0, %v3121_v4  ;;  %1585 = vmatpush1.bf16.msra.mxu0 %v2976_v55 }
  0xb8   : > { %1166 = vmatpush1.bf16.msra.mxu1 %v2977_v59  ;;  %1586 = vmatprep.subr.bf16.mxu0 %v3019_v1  ;;  %v1999_v1 = vld [vmem:[%s3420_s21 + $0x50] sm:$0xff] }
  0xb9   : > { %2073 = vperm.xlu1 %2926, %v1999_v1  }
  0xba   : > { %999 = vmatmul.mubr.bf16.gmra.mrb[24].mxu1 %v3471_v62  ;;  %2108 = vperm.xlu0 %2925, %v2006_v35  }
  0xbb   : > { %2610 = vmatprep.mubr.msk.bf16.mxu1 %vm656_vm0, %v3475_v63  ;;  %1587 = vmatpush1.bf16.msra.mxu0 %v2978_v2 }
  0xbd   : > { %2083 = vperm.xlu1 %2926, %v2001_v28  }
  0xbe   : > { %935 = vmatmul.mubr.bf16.gmra.mrb[24].mxu0 %v3486_v12 }
  0xbf   : > { %2602 = vmatprep.mubr.msk.bf16.mxu0 %vm656_vm0, %v3132_v7 }
  0xc1   : > { %2093 = vperm.xlu1 %2926, %v2003_v32  }
  0xc2   : > { %1007 = vmatmul.mubr.bf16.gmra.mrb[28].mxu1 %v3495_v22 }
  0xc3   : > { %2623 = vmatprep.mubr.msk.bf16.mxu1 %vm656_vm0, %v3150_v11 }
  0xc5   : > { %2103 = vperm.xlu1 %2926, %v2005_v34  }
  0xc6   : > { %943 = vmatmul.mubr.bf16.gmra.mrb[28].mxu0 %v3504_v29 }
  0xc7   : > { %2675 = vmatprep.mubr.msk.bf16.mxu0 %vm656_vm0, %v3150_v11  ;;  %v2008_v11 = vld [vmem:[%s3420_s21 + $0x98] sm:$0xff] }
  0xc8   : > { %2118 = vperm.xlu0 %2925, %v2008_v11  }
  0xc9   : > { %2113 = vperm.xlu1 %2926, %v2007_v36  }
  0xca   : > { %1176 = vmatmul.mubr.bf16.vlgmr.msra.gmra.mrb[32].mxu1 %v3283_v46 }
  0xcb   : > { %2624 = vmatprep.mubr.msk.bf16.mxu1 %vm656_vm0, %v3172_v14 }
  0xcc   : > { %2128 = vperm.xlu0 %2925, %v2010_v39  }
  0xcd   : > { %2123 = vperm.xlu1 %2926, %v2009_v37  }
  0xce   : > { %1597 = vmatmul.mubr.bf16.vlgmr.msra.gmra.mrb[32].mxu0 %v3283_v46  ;;  %v2011_v46 = vld [vmem:[%s3420_s21 + $0xb0] sm:$0xff] }
  0xcf   : > { %2676 = vmatprep.mubr.msk.bf16.mxu0 %vm656_vm0, %v3172_v14  ;;  %v2012_v14 = vld [vmem:[%s3420_s21 + $0xb8] sm:$0xff] }
  0xd0   : > { %2138 = vperm.xlu0 %2925, %v2012_v14  }
  0xd1   : > { %2133 = vperm.xlu1 %2926, %v2011_v46  }
  0xd2   : > { %1184 = vmatmul.mubr.bf16.gmra.mrb[36].mxu1 %v3304_v52 }
  0xd3   : > { %2625 = vmatprep.mubr.msk.bf16.mxu1 %vm656_vm0, %v3187_v17 }
  0xd4   : > { %2148 = vperm.xlu0 %2925, %v2014_v43  }
  0xd5   : > { %2143 = vperm.xlu1 %2926, %v2013_v42  }
  0xd6   : > { %1605 = vmatmul.mubr.bf16.gmra.mrb[36].mxu0 %v3304_v52  ;;  %v2016_v52 = vld [vmem:[%s3420_s21 + $0xd8] sm:$0xff] }
  0xd7   : > { %2677 = vmatprep.mubr.msk.bf16.mxu0 %vm656_vm0, %v3187_v17  ;;  %v2015_v17 = vld [vmem:[%s3420_s21 + $0xd0] sm:$0xff] }
  0xd8   : > { %2158 = vperm.xlu0 %2925, %v2016_v52   ;;  %v1368_v52 = vlaneseq }
  0xd9   : > { %2153 = vperm.xlu1 %2926, %v2015_v17  }
  0xda   : > { %1192 = vmatmul.mubr.bf16.gmra.mrb[40].mxu1 %v3338_v60 }
  0xdb   : > { %2626 = vmatprep.mubr.msk.bf16.mxu1 %vm656_vm0, %v3202_v20 }
  0xdc   : > { %2168 = vperm.xlu0 %2925, %v2018_v45  }
  0xdd   : > { %2163 = vperm.xlu1 %2926, %v2017_v44  }
  0xde   : > { %1613 = vmatmul.mubr.bf16.gmra.mrb[40].mxu0 %v3338_v60  ;;  %v2019_v60 = vld [vmem:[%s3420_s21 + $0xf0] sm:$0xff] }
  0xdf   : > { %2678 = vmatprep.mubr.msk.bf16.mxu0 %vm656_vm0, %v3202_v20  ;;  %v2020_v20 = vld [vmem:[%s3420_s21 + $0xf8] sm:$0xff] }
  0xe0   : > { %2178 = vperm.xlu0 %2925, %v2020_v20  }
  0xe1   : > { %2173 = vperm.xlu1 %2926, %v2019_v60  }
  0xe2   : > { %1200 = vmatmul.mubr.bf16.gmra.mrb[44].mxu1 %v3372_v6 }
  0xe3   : > { %2627 = vmatprep.mubr.msk.bf16.mxu1 %vm656_vm0, %v3217_v23 }
  0xe6   : > { %1621 = vmatmul.mubr.bf16.gmra.mrb[44].mxu0 %v3372_v6 }
  0xe7   : > { %2679 = vmatprep.mubr.msk.bf16.mxu0 %vm656_vm0, %v3217_v23 }
  0xea   : > { %1208 = vmatmul.mubr.bf16.gmra.mrb[48].mxu1 %v3410_v30 }
  0xeb   : > { %2628 = vmatprep.mubr.msk.bf16.mxu1 %vm656_vm0, %v3232_v26 }
  0xee   : > { %1629 = vmatmul.mubr.bf16.gmra.mrb[48].mxu0 %v3410_v30 }
  0xef   : > { %2680 = vmatprep.mubr.msk.bf16.mxu0 %vm656_vm0, %v3232_v26 }
  0xf2   : > { %1216 = vmatmul.mubr.bf16.gmra.mrb[52].mxu1 %v3454_v51 }
  0xf3   : > { %2629 = vmatprep.mubr.msk.bf16.mxu1 %vm656_vm0, %v3121_v4 }
  0xf6   : > { %1637 = vmatmul.mubr.bf16.gmra.mrb[52].mxu0 %v3454_v51 }
  0xf7   : > { %2681 = vmatprep.mubr.msk.bf16.mxu0 %vm656_vm0, %v3121_v4 }
  0xfa   : > { %1224 = vmatmul.mubr.bf16.gmra.mrb[56].mxu1 %v3486_v12 }
  0xfb   : > { %2630 = vmatprep.mubr.msk.bf16.mxu1 %vm656_vm0, %v3132_v7 }
  0xfe   : > { %1645 = vmatmul.mubr.bf16.gmra.mrb[56].mxu0 %v3486_v12 }
  0xff   : > { %2682 = vmatprep.mubr.msk.bf16.mxu0 %vm656_vm0, %v3132_v7 }
 0x102   : > { %1232 = vmatmul.mubr.bf16.gmra.mrb[60].mxu1 %v3504_v29 }
 0x103   : > { %2631 = vmatprep.mubr.msk.bf16.mxu1 %vm656_vm0, %v3147_v10 }
 0x106   : > { %1653 = vmatmul.mubr.bf16.gmra.mrb[60].mxu0 %v3504_v29 }
 0x107   : > { %2683 = vmatprep.mubr.msk.bf16.mxu0 %vm656_vm0, %v3147_v10 }
 0x10a   : > { %1240 = vmatmul.mubr.bf16.gmra.mrb[64].mxu1 %v3269_v38 }
 0x10b   : > { %2632 = vmatprep.mubr.msk.bf16.mxu1 %vm656_vm0, %v3166_v13 }
 0x10e   : > { %1661 = vmatmul.mubr.bf16.gmra.mrb[64].mxu0 %v3269_v38 }
 0x10f   : > { %2684 = vmatprep.mubr.msk.bf16.mxu0 %vm656_vm0, %v3166_v13 }
 0x112   : > { %1248 = vmatmul.mubr.bf16.gmra.mrb[68].mxu1 %v3290_v47 }
 0x113   : > { %2633 = vmatprep.mubr.msk.bf16.mxu1 %vm656_vm0, %v3181_v16 }
 0x116   : > { %1669 = vmatmul.mubr.bf16.gmra.mrb[68].mxu0 %v3290_v47 }
 0x117   : > { %2685 = vmatprep.mubr.msk.bf16.mxu0 %vm656_vm0, %v3181_v16 }
 0x11a   : > { %1256 = vmatmul.mubr.bf16.gmra.mrb[72].mxu1 %v3321_v56 }
 0x11b   : > { %2634 = vmatprep.mubr.msk.bf16.mxu1 %vm656_vm0, %v3191_v18 }
 0x11e   : > { %1677 = vmatmul.mubr.bf16.gmra.mrb[72].mxu0 %v3321_v56 }
 0x11f   : > { %2686 = vmatprep.mubr.msk.bf16.mxu0 %vm656_vm0, %v3191_v18 }
 0x122   : > { %1264 = vmatmul.mubr.bf16.gmra.mrb[76].mxu1 %v3355_v0 }
 0x123   : > { %2635 = vmatprep.mubr.msk.bf16.mxu1 %vm656_vm0, %v3208_v21 }
 0x126   : > { %1685 = vmatmul.mubr.bf16.gmra.mrb[76].mxu0 %v3355_v0 }
 0x127   : > { %2687 = vmatprep.mubr.msk.bf16.mxu0 %vm656_vm0, %v3208_v21 }
 0x12a   : > { %1272 = vmatmul.mubr.bf16.gmra.mrb[80].mxu1 %v3392_v8 }
 0x12b   : > { %2636 = vmatprep.mubr.msk.bf16.mxu1 %vm656_vm0, %v3221_v24 }
 0x12e   : > { %1693 = vmatmul.mubr.bf16.gmra.mrb[80].mxu0 %v3392_v8 }
 0x12f   : > { %2688 = vmatprep.mubr.msk.bf16.mxu0 %vm656_vm0, %v3221_v24 }
 0x132   : > { %1280 = vmatmul.mubr.bf16.gmra.mrb[84].mxu1 %v3433_v40 }
 0x133   : > { %2637 = vmatprep.mubr.msk.bf16.mxu1 %vm656_vm0, %v3437_v41 }
 0x136   : > { %1701 = vmatmul.mubr.bf16.gmra.mrb[84].mxu0 %v3433_v40 }
 0x137   : > { %2689 = vmatprep.mubr.msk.bf16.mxu0 %vm656_vm0, %v3437_v41 }
 0x13a   : > { %1288 = vmatmul.mubr.bf16.gmra.mrb[88].mxu1 %v3471_v62 }
 0x13b   : > { %2638 = vmatprep.mubr.msk.bf16.mxu1 %vm656_vm0, %v3475_v63 }
 0x13e   : > { %1709 = vmatmul.mubr.bf16.gmra.mrb[88].mxu0 %v3471_v62 }
 0x13f   : > { %2690 = vmatprep.mubr.msk.bf16.mxu0 %vm656_vm0, %v3475_v63 }
 0x142   : > { %1296 = vmatmul.mubr.bf16.gmra.mrb[92].mxu1 %v3495_v22 }
 0x146   : > { %1717 = vmatmul.mubr.bf16.gmra.mrb[92].mxu0 %v3495_v22 }
 0x15d   : > { %v3622_v4 = vpop.f32.mrb[0].mxu1 }
 0x15e   : > { %v954_v7 = vpop.f32.mrb[1].mxu1 }
 0x15f   : > { %v3624_v10 = vpop.f32.mrb[2].mxu1  ;;  %v3686_v7 = vshrl.u32 %v1368_v52, 7 }
 0x160   : > { %v957_v13 = vpop.f32.mrb[3].mxu1 }
 0x161   : > { %v3626_v16 = vpop.f32.mrb[0].mxu0  ;;  %vm1370_vm1 = vcmp.lt.s32.totalorder %v3686_v7, 1  ;;  %vm1789_vm2 = vcmp.lt.s32.totalorder %v3686_v7, 7 }
 0x162   : > { %v890_v18 = vpop.f32.mrb[1].mxu0 }
 0x163   : > { %v3628_v21 = vpop.f32.mrb[2].mxu0 }
 0x164   : > { %v893_v23 = vpop.f32.mrb[3].mxu0 }
 0x165   : > { %v3630_v24 = vpop.f32.mrb[4].mxu1 }
 0x166   : > { %v962_v26 = vpop.f32.mrb[5].mxu1 }
 0x167   : > { %v3632_v38 = vpop.f32.mrb[6].mxu1 }
 0x168   : > { %v965_v47 = vpop.f32.mrb[7].mxu1 }
 0x169   : > { %v3634_v56 = vpop.f32.mrb[4].mxu0 }
 0x16a   : > { %v898_v0 = vpop.f32.mrb[5].mxu0 }
 0x16b   : > { %v3636_v6 = vpop.f32.mrb[6].mxu0 }
 0x16c   : > { %v901_v8 = vpop.f32.mrb[7].mxu0 }
 0x16d   : > { %v3638_v30 = vpop.f32.mrb[8].mxu1 }
 0x16e   : > { %v970_v40 = vpop.f32.mrb[9].mxu1 }
 0x16f   : > { %v3640_v41 = vpop.f32.mrb[10].mxu1 }
 0x170   : > { %v973_v48 = vpop.f32.mrb[11].mxu1 }
 0x171   : > { %v3642_v49 = vpop.f32.mrb[8].mxu0 }
 0x172   : > { %v906_v50 = vpop.f32.mrb[9].mxu0 }
 0x173   : > { %v3644_v51 = vpop.f32.mrb[10].mxu0 }
 0x174   : > { %v909_v53 = vpop.f32.mrb[11].mxu0 }
 0x175   : > { %v3646_v54 = vpop.f32.mrb[12].mxu1 }
 0x176   : > { %v978_v55 = vpop.f32.mrb[13].mxu1 }
 0x177   : > { %v3648_v57 = vpop.f32.mrb[14].mxu1 }
 0x178   : > { %v981_v58 = vpop.f32.mrb[15].mxu1 }
 0x179   : > { %v3650_v59 = vpop.f32.mrb[12].mxu0 }
 0x17a   : > { %v914_v61 = vpop.f32.mrb[13].mxu0 }
 0x17b   : > { %v3652_v62 = vpop.f32.mrb[14].mxu0 }
 0x17c   : > { %v917_v63 = vpop.f32.mrb[15].mxu0 }
 0x17d   : > { %v3654_v2 = vpop.f32.mrb[16].mxu1 }
 0x17e   : > { %v986_v3 = vpop.f32.mrb[17].mxu1 }
 0x17f   : > { %v3656_v5 = vpop.f32.mrb[18].mxu1 }
 0x180   : > { %v989_v9 = vpop.f32.mrb[19].mxu1 }
 0x181   : > { %v3658_v12 = vpop.f32.mrb[16].mxu0 }
 0x182   : > { %v922_v15 = vpop.f32.mrb[17].mxu0 }
 0x183   : > { %v3660_v19 = vpop.f32.mrb[18].mxu0 }
 0x184   : > { %v925_v1 = vpop.f32.mrb[19].mxu0 }
 0x185   : > { %v3662_v22 = vpop.f32.mrb[20].mxu1 }
 0x186   : > { %v994_v25 = vpop.f32.mrb[21].mxu1 }
 0x187   : > { %v3664_v27 = vpop.f32.mrb[22].mxu1 }
 0x188   : > { %v997_v28 = vpop.f32.mrb[23].mxu1 }
 0x189   : > { %v3666_v29 = vpop.f32.mrb[20].mxu0 }
 0x18a   : > { %v930_v31 = vpop.f32.mrb[21].mxu0 }
 0x18b   : > { %v3668_v32 = vpop.f32.mrb[22].mxu0 }
 0x18c   : > { %v933_v33 = vpop.f32.mrb[23].mxu0 }
 0x18d   : > { %v3670_v34 = vpop.f32.mrb[24].mxu1 }
 0x18e   : > { %v1002_v35 = vpop.f32.mrb[25].mxu1 }
 0x18f   : > { %v3672_v36 = vpop.f32.mrb[26].mxu1 }
 0x190   : > { %v1005_v11 = vpop.f32.mrb[27].mxu1 }
 0x191   : > { %v3674_v37 = vpop.f32.mrb[24].mxu0 }
 0x192   : > { %v938_v39 = vpop.f32.mrb[25].mxu0 }
 0x193   : > { %v3676_v46 = vpop.f32.mrb[26].mxu0 }
 0x194   : > { %v941_v14 = vpop.f32.mrb[27].mxu0 }
 0x195   : > { %v3678_v42 = vpop.f32.mrb[28].mxu1 }
 0x196   : > { %v1010_v43 = vpop.f32.mrb[29].mxu1 }
 0x197   : > { %v3680_v17 = vpop.f32.mrb[30].mxu1 }
 0x198   : > { %v1013_v44 = vpop.f32.mrb[31].mxu1 }
 0x199   : > { %v3682_v45 = vpop.f32.mrb[28].mxu0 }
 0x19a   : > { %v946_v60 = vpop.f32.mrb[29].mxu0 }
 0x19b   : > { %v3684_v20 = vpop.f32.mrb[30].mxu0 }
 0x19c   : > { %v949_v13 = vpop.f32.mrb[31].mxu0 }
 0x19d   : > { %v3688_v18 = vpop.f32.mrb[32].mxu1 }
 0x19e   : > { %v1179_v23 = vpop.f32.mrb[33].mxu1  ;;  %v1336_v47 = vrot.slane %v3688_v18, 7 }
 0x19f   : > { %v1180_v26 = vpop.f32.mrb[34].mxu1 }
 0x1a0   : > { %v1337_v0 = vrot.slane %v1180_v26, 7  ;;  %v1182_v8 = vpop.f32.mrb[35].mxu1 }
 0x1a1   : > { %v3692_v40 = vpop.f32.mrb[32].mxu0 }
 0x1a2   : > { %v1401_v48 = vsel %vm1370_vm1, %v1336_v47, %v1337_v0  ;;  %v1600_v50 = vpop.f32.mrb[33].mxu0  ;;  %v1757_v58 = vrot.slane %v3692_v40, 1 }
 0x1a3   : > { %v1404_v53 = vadd.f32 %v1401_v48, %v3628_v21  ;;  %v1601_v55 = vpop.f32.mrb[34].mxu0 }
 0x1a4   : > { %v1758_v61 = vrot.slane %v1601_v55, 1  ;;  %v1603_v63 = vpop.f32.mrb[35].mxu0 }
 0x1a5   : > { %v1185_v3 = vpop.f32.mrb[36].mxu1 }
 0x1a6   : > { %v3705_v9 = vsel %vm1789_vm2, %v1757_v58, %v1758_v61  ;;  %v1338_v15 = vrot.slane %v1185_v3, 7  ;;  %v1187_v1 = vpop.f32.mrb[37].mxu1 }
 0x1a7   : > { %v1188_v25 = vpop.f32.mrb[38].mxu1 }
 0x1a8   : > { %v1400_v21 = vsel %vm1370_vm1, %v1337_v0, %v1338_v15  ;;  %v1339_v28 = vrot.slane %v1188_v25, 7  ;;  %v1190_v31 = vpop.f32.mrb[39].mxu1 }
 0x1a9   : > { %v1405_v33 = vadd.f32 %v1400_v21, %v3634_v56  ;;  %v1606_v35 = vpop.f32.mrb[36].mxu0  ;;  %v3729_v21 = vpop.permute.xlu1 %2028 }
 0x1aa   : > { %v1399_v11 = vsel %vm1370_vm1, %v1338_v15, %v1339_v28  ;;  %v1759_v39 = vrot.slane %v1606_v35, 1  ;;  %v1608_v14 = vpop.f32.mrb[37].mxu0  ;;  %v3733_v35 = vpop.permute.xlu0 %2023 }
 0x1ab   : > { %v1406_v43 = vadd.f32 %v1399_v11, %v3636_v6  ;;  %v1609_v52 = vpop.f32.mrb[38].mxu0 }
 0x1ac   : > { %v1819_v44 = vsel %vm1789_vm2, %v1758_v61, %v1759_v39  ;;  %v1760_v60 = vrot.slane %v1609_v52, 1  ;;  %v1611_v13 = vpop.f32.mrb[39].mxu0 }
 0x1ad   : > { %v3715_v23 = vadd.f32 %v1819_v44, %v1404_v53  ;;  %v1193_v26 = vpop.f32.mrb[40].mxu1  ;;  %v3725_v53 = vld [vmem:[%s3954_s4] ss:$0 sm:$0xff] }
 0x1ae   : > { %v1818_v56 = vsel %vm1789_vm2, %v1759_v39, %v1760_v60  ;;  %v1340_v0 = vrot.slane %v1193_v26, 7  ;;  %v1195_v8 = vpop.f32.mrb[41].mxu1 }
 0x1af   : > { %v1196_v48 = vpop.f32.mrb[42].mxu1  ;;  %v1824_v50 = vadd.f32 %v1818_v56, %v1405_v33 }
 0x1b0   : > { %v1398_v55 = vsel %vm1370_vm1, %v1339_v28, %v1340_v0  ;;  %v1341_v6 = vrot.slane %v1196_v48, 7  ;;  %v1198_v63 = vpop.f32.mrb[43].mxu1 }
 0x1b1   : > { %v1407_v3 = vadd.f32 %v1398_v55, %v3642_v49  ;;  %v1614_v61 = vpop.f32.mrb[40].mxu0  ;;  %v1927_v28 = vadd.f32 %v3725_v53, %v1824_v50  ;;  %v2034_v55 = vpop.permute.xlu1 %2033 }
 0x1b2   : > { %v1397_v15 = vsel %vm1370_vm1, %v1340_v0, %v1341_v6  ;;  %v1761_v1 = vrot.slane %v1614_v61, 1  ;;  %v1616_v25 = vpop.f32.mrb[41].mxu0 }
 0x1b3   : > { %v1408_v31 = vadd.f32 %v1397_v15, %v3644_v51  ;;  %v1617_v33 = vpop.f32.mrb[42].mxu0  ;;  %v1959_v56 = vmax.f32 %v1927_v28, 0.0  ;;  %v2039_v15 = vpop.permute.xlu0 %2038 }
 0x1b4   : > { %v1817_v49 = vsel %vm1789_vm2, %v1760_v60, %v1761_v1  ;;  %v1762_v11 = vrot.slane %v1617_v33, 1  ;;  %v1619_v39 = vpop.f32.mrb[43].mxu0 }
 0x1b5   : > { %v1825_v14 = vadd.f32 %v1817_v49, %v1406_v43  ;;  %v1201_v52 = vpop.f32.mrb[44].mxu1  ;;  %v2183_v33 = vmul.f32 %v2034_v55, %v1959_v56 }
 0x1b6   : > { %v1816_v44 = vsel %vm1789_vm2, %v1761_v1, %v1762_v11  ;;  %v1342_v13 = vrot.slane %v1201_v52, 7  ;;  %v1203_v26 = vpop.f32.mrb[45].mxu1 }
 0x1b7   : > { %v1928_v51 = vadd.f32 %v3725_v53, %v1825_v14  ;;  %v1826_v0 = vadd.f32 %v1816_v44, %v1407_v3  ;;  %v1204_v8 = vpop.f32.mrb[46].mxu1 }
 0x1b8   : > { %v1396_v48 = vsel %vm1370_vm1, %v1341_v6, %v1342_v13  ;;  %v1343_v50 = vrot.slane %v1204_v8, 7  ;;  %v1206_v60 = vpop.f32.mrb[47].mxu1 }
 0x1b9   : > { %v1960_v63 = vmax.f32 %v1928_v51, 0.0  ;;  %v1409_v43 = vadd.f32 %v1396_v48, %v3650_v59  ;;  %v1622_v61 = vpop.f32.mrb[44].mxu0  ;;  %v1929_v49 = vadd.f32 %v3725_v53, %v1826_v0 }
 0x1ba   : > { %v1395_v1 = vsel %vm1370_vm1, %v1342_v13, %v1343_v50  ;;  %v1763_v25 = vrot.slane %v1622_v61, 1  ;;  %v1624_v28 = vpop.f32.mrb[45].mxu0  ;;  %v2044_v61 = vpop.permute.xlu1 %2043 }
 0x1bb   : > { %v2184_v3 = vmul.f32 %v2039_v15, %v1960_v63  ;;  %v1410_v6 = vadd.f32 %v1395_v1, %v3652_v62  ;;  %v1625_v39 = vpop.f32.mrb[46].mxu0  ;;  %v1961_v0 = vmax.f32 %v1929_v49, 0.0  ;;  %v2049_v28 = vpop.permute.xlu0 %2048 }
 0x1bc   : > { %v1815_v59 = vsel %vm1789_vm2, %v1762_v11, %v1763_v25  ;;  %v1764_v14 = vrot.slane %v1625_v39, 1  ;;  %v1627_v52 = vpop.f32.mrb[47].mxu0 }
 0x1bd   : > { %v2772_v44 = vpack.c.bf16 %v2184_v3, %v2183_v33  ;;  %v1827_v13 = vadd.f32 %v1815_v59, %v1408_v31  ;;  %v1209_v26 = vpop.f32.mrb[48].mxu1  ;;  %v2185_v49 = vmul.f32 %v2044_v61, %v1961_v0 }
 0x1be   : > { %v1814_v56 = vsel %vm1789_vm2, %v1763_v25, %v1764_v14  ;;  %v1344_v51 = vrot.slane %v1209_v26, 7  ;;  %v1211_v62 = vpop.f32.mrb[49].mxu1  ;;  %v2054_v61 = vpop.permute.xlu1 %2053 }
 0x1bf   : > { %2844 = vst [vmem:[%s3751_s10 + $0x8] sm:$0xff] %v2772_v44   ;;  %v1930_v8 = vadd.f32 %v3725_v53, %v1827_v13  ;;  %v1828_v48 = vadd.f32 %v1814_v56, %v1409_v43  ;;  %v1212_v60 = vpop.f32.mrb[50].mxu1 }
 0x1c0   : > { %v1394_v55 = vsel %vm1370_vm1, %v1343_v50, %v1344_v51  ;;  %v1345_v11 = vrot.slane %v1212_v60, 7  ;;  %v1214_v63 = vpop.f32.mrb[51].mxu1 }
 0x1c1   : > { %v1962_v15 = vmax.f32 %v1930_v8, 0.0  ;;  %v1411_v31 = vadd.f32 %v1394_v55, %v3658_v12  ;;  %v1630_v1 = vpop.f32.mrb[48].mxu0  ;;  %v1931_v39 = vadd.f32 %v3725_v53, %v1828_v48 }
 0x1c2   : > { %v1393_v25 = vsel %vm1370_vm1, %v1344_v51, %v1345_v11  ;;  %v1765_v33 = vrot.slane %v1630_v1, 1  ;;  %v1632_v3 = vpop.f32.mrb[49].mxu0 }
 0x1c3   : > { %v2186_v43 = vmul.f32 %v2049_v28, %v1962_v15  ;;  %v1412_v50 = vadd.f32 %v1393_v25, %v3660_v19  ;;  %v1633_v59 = vpop.f32.mrb[50].mxu0  ;;  %v1963_v0 = vmax.f32 %v1931_v39, 0.0  ;;  %v2059_v28 = vpop.permute.xlu0 %2058 }
 0x1c4   : > { %v1813_v52 = vsel %vm1789_vm2, %v1764_v14, %v1765_v33  ;;  %v1766_v44 = vrot.slane %v1633_v59, 1  ;;  %v1635_v12 = vpop.f32.mrb[51].mxu0 }
 0x1c5   : > { %v2777_v13 = vpack.c.bf16 %v2186_v43, %v2185_v49  ;;  %v1829_v26 = vadd.f32 %v1813_v52, %v1410_v6  ;;  %v1217_v56 = vpop.f32.mrb[52].mxu1  ;;  %v2187_v49 = vmul.f32 %v2054_v61, %v1963_v0 }
 0x1c6   : > { %v1812_v51 = vsel %vm1789_vm2, %v1765_v33, %v1766_v44  ;;  %v1346_v62 = vrot.slane %v1217_v56, 7  ;;  %v1219_v8 = vpop.f32.mrb[53].mxu1 }
 0x1c7   : > { %2845 = vst [vmem:[%s3751_s10 + $0x10] sm:$0xff] %v2777_v13   ;;  %v1932_v48 = vadd.f32 %v3725_v53, %v1829_v26  ;;  %v1830_v60 = vadd.f32 %v1812_v51, %v1411_v31  ;;  %v1220_v19 = vpop.f32.mrb[54].mxu1 }
 0x1c8   : > { %v1392_v55 = vsel %vm1370_vm1, %v1345_v11, %v1346_v62  ;;  %v1347_v14 = vrot.slane %v1220_v19, 7  ;;  %v1222_v63 = vpop.f32.mrb[55].mxu1 }
 0x1c9   : > { %v1964_v15 = vmax.f32 %v1932_v48, 0.0  ;;  %v1413_v6 = vadd.f32 %v1392_v55, %v3666_v29  ;;  %v1638_v1 = vpop.f32.mrb[52].mxu0  ;;  %v1933_v43 = vadd.f32 %v3725_v53, %v1830_v60  ;;  %v2064_v55 = vpop.permute.xlu1 %2063 }
 0x1ca   : > { %v1391_v25 = vsel %vm1370_vm1, %v1346_v62, %v1347_v14  ;;  %v1767_v33 = vrot.slane %v1638_v1, 1  ;;  %v1640_v3 = vpop.f32.mrb[53].mxu0 }
 0x1cb   : > { %v2188_v31 = vmul.f32 %v2059_v28, %v1964_v15  ;;  %v1414_v11 = vadd.f32 %v1391_v25, %v3668_v32  ;;  %v1641_v39 = vpop.f32.mrb[54].mxu0  ;;  %v1965_v8 = vmax.f32 %v1933_v43, 0.0  ;;  %v2069_v15 = vpop.permute.xlu0 %2068 }
 0x1cc   : > { %v1811_v59 = vsel %vm1789_vm2, %v1766_v44, %v1767_v33  ;;  %v1768_v52 = vrot.slane %v1641_v39, 1  ;;  %v1643_v29 = vpop.f32.mrb[55].mxu0 }
 0x1cd   : > { %v2782_v12 = vpack.c.bf16 %v2188_v31, %v2187_v49  ;;  %v1831_v13 = vadd.f32 %v1811_v59, %v1412_v50  ;;  %v1225_v26 = vpop.f32.mrb[56].mxu1 }
 0x1ce   : > { %v1810_v56 = vsel %vm1789_vm2, %v1767_v33, %v1768_v52  ;;  %v1348_v51 = vrot.slane %v1225_v26, 7  ;;  %v1227_v62 = vpop.f32.mrb[57].mxu1  ;;  %v2189_v33 = vmul.f32 %v2064_v55, %v1965_v8 }
 0x1cf   : > { %2846 = vst [vmem:[%s3751_s10 + $0x18] sm:$0xff] %v2782_v12   ;;  %v1934_v0 = vadd.f32 %v3725_v53, %v1831_v13  ;;  %v1832_v48 = vadd.f32 %v1810_v56, %v1413_v6  ;;  %v1228_v32 = vpop.f32.mrb[58].mxu1 }
 0x1d0   : > { %v1390_v60 = vsel %vm1370_vm1, %v1347_v14, %v1348_v51  ;;  %v1349_v44 = vrot.slane %v1228_v32, 7  ;;  %v1230_v19 = vpop.f32.mrb[59].mxu1 }
 0x1d1   : > { %v1966_v63 = vmax.f32 %v1934_v0, 0.0  ;;  %v1415_v50 = vadd.f32 %v1390_v60, %v3674_v37  ;;  %v1646_v61 = vpop.f32.mrb[56].mxu0  ;;  %v1935_v3 = vadd.f32 %v3725_v53, %v1832_v48  ;;  %v2074_v48 = vpop.permute.xlu1 %2073 }
 0x1d2   : > { %v1389_v1 = vsel %vm1370_vm1, %v1348_v51, %v1349_v44  ;;  %v1769_v28 = vrot.slane %v1646_v61, 1  ;;  %v1648_v25 = vpop.f32.mrb[57].mxu0  ;;  %v2079_v19 = vpop.permute.xlu0 %2078 }
 0x1d3   : > { %v2190_v6 = vmul.f32 %v2069_v15, %v1966_v63  ;;  %v1416_v14 = vadd.f32 %v1389_v1, %v3676_v46  ;;  %v1649_v49 = vpop.f32.mrb[58].mxu0  ;;  %v1967_v56 = vmax.f32 %v1935_v3, 0.0 }
 0x1d4   : > { %v1809_v31 = vsel %vm1789_vm2, %v1768_v52, %v1769_v28  ;;  %v1770_v43 = vrot.slane %v1649_v49, 1  ;;  %v1651_v37 = vpop.f32.mrb[59].mxu0 }
 0x1d5   : > { %v2787_v39 = vpack.c.bf16 %v2190_v6, %v2189_v33  ;;  %v1833_v59 = vadd.f32 %v1809_v31, %v1414_v11  ;;  %v1233_v29 = vpop.f32.mrb[60].mxu1  ;;  %v2191_v15 = vmul.f32 %v2074_v48, %v1967_v56  ;;  %v2084_v56 = vpop.permute.xlu1 %2083 }
 0x1d6   : > { %v1808_v12 = vsel %vm1789_vm2, %v1769_v28, %v1770_v43  ;;  %v1350_v13 = vrot.slane %v1233_v29, 7  ;;  %v1235_v26 = vpop.f32.mrb[61].mxu1 }
 0x1d7   : > { %2847 = vst [vmem:[%s3751_s10 + $0x20] sm:$0xff] %v2787_v39   ;;  %v1936_v51 = vadd.f32 %v3725_v53, %v1833_v59  ;;  %v1834_v62 = vadd.f32 %v1808_v12, %v1415_v50  ;;  %v1236_v46 = vpop.f32.mrb[62].mxu1 }
 0x1d8   : > { %v1388_v8 = vsel %vm1370_vm1, %v1349_v44, %v1350_v13  ;;  %v1351_v52 = vrot.slane %v1236_v46, 7  ;;  %v1238_v0 = vpop.f32.mrb[63].mxu1  ;;  %v2089_v46 = vpop.permute.xlu0 %2088 }
 0x1d9   : > { %v1968_v32 = vmax.f32 %v1936_v51, 0.0  ;;  %v1417_v11 = vadd.f32 %v1388_v8, %v3682_v45  ;;  %v1654_v60 = vpop.f32.mrb[60].mxu0  ;;  %v1937_v1 = vadd.f32 %v3725_v53, %v1834_v62 }
 0x1da   : > { %v1387_v55 = vsel %vm1370_vm1, %v1350_v13, %v1351_v52  ;;  %v1771_v63 = vrot.slane %v1654_v60, 1  ;;  %v1656_v61 = vpop.f32.mrb[61].mxu0 }
 0x1db   : > { %v2192_v50 = vmul.f32 %v2079_v19, %v1968_v32  ;;  %v1418_v44 = vadd.f32 %v1387_v55, %v3684_v20  ;;  %v1657_v28 = vpop.f32.mrb[62].mxu0  ;;  %v1969_v59 = vmax.f32 %v1937_v1, 0.0 }
 0x1dc   : > { %v1807_v25 = vsel %vm1789_vm2, %v1770_v43, %v1771_v63  ;;  %v1772_v33 = vrot.slane %v1657_v28, 1  ;;  %v1659_v45 = vpop.f32.mrb[63].mxu0 }
 0x1dd   : > { %v2792_v6 = vpack.c.bf16 %v2192_v50, %v2191_v15  ;;  %v1835_v3 = vadd.f32 %v1807_v25, %v1416_v14  ;;  %v1241_v49 = vpop.f32.mrb[64].mxu1  ;;  %v2193_v32 = vmul.f32 %v2084_v56, %v1969_v59 }
 0x1de   : > { %v1806_v31 = vsel %vm1789_vm2, %v1771_v63, %v1772_v33  ;;  %v1352_v37 = vrot.slane %v1241_v49, 7  ;;  %v1243_v39 = vpop.f32.mrb[65].mxu1 }
 0x1df   : > { %2848 = vst [vmem:[%s3751_s10 + $0x28] sm:$0xff] %v2792_v6   ;;  %v1938_v29 = vadd.f32 %v3725_v53, %v1835_v3  ;;  %v1836_v12 = vadd.f32 %v1806_v31, %v1417_v11  ;;  %v1244_v20 = vpop.f32.mrb[66].mxu1 }
 0x1e0   : > { %v1386_v13 = vsel %vm1370_vm1, %v1351_v52, %v1352_v37  ;;  %v1353_v43 = vrot.slane %v1244_v20, 7  ;;  %v1246_v26 = vpop.f32.mrb[67].mxu1 }
 0x1e1   : > { %v1970_v51 = vmax.f32 %v1938_v29, 0.0  ;;  %v1419_v14 = vadd.f32 %v1386_v13, %v3622_v4  ;;  %v1662_v62 = vpop.f32.mrb[64].mxu0  ;;  %v1939_v60 = vadd.f32 %v3725_v53, %v1836_v12  ;;  %v2099_v29 = vpop.permute.xlu0 %2098 }
 0x1e2   : > { %v1385_v8 = vsel %vm1370_vm1, %v1352_v37, %v1353_v43  ;;  %v1773_v0 = vrot.slane %v1662_v62, 1  ;;  %v1664_v48 = vpop.f32.mrb[65].mxu0  ;;  %v2094_v37 = vpop.permute.xlu1 %2093 }
 0x1e3   : > { %v2194_v11 = vmul.f32 %v2089_v46, %v1970_v51  ;;  %v1420_v52 = vadd.f32 %v1385_v8, %v3624_v10  ;;  %v1665_v19 = vpop.f32.mrb[66].mxu0  ;;  %v1971_v45 = vmax.f32 %v1939_v60, 0.0 }
 0x1e4   : > { %v1805_v55 = vsel %vm1789_vm2, %v1772_v33, %v1773_v0  ;;  %v1774_v63 = vrot.slane %v1665_v19, 1  ;;  %v1667_v4 = vpop.f32.mrb[67].mxu0 }
 0x1e5   : > { %v2797_v61 = vpack.c.bf16 %v2194_v11, %v2193_v32  ;;  %v1837_v15 = vadd.f32 %v1805_v55, %v1418_v44  ;;  %v1249_v50 = vpop.f32.mrb[68].mxu1  ;;  %v2195_v26 = vmul.f32 %v2094_v37, %v1971_v45 }
 0x1e6   : > { %v1804_v1 = vsel %vm1789_vm2, %v1773_v0, %v1774_v63  ;;  %v1354_v28 = vrot.slane %v1249_v50, 7  ;;  %v1251_v25 = vpop.f32.mrb[69].mxu1  ;;  %v2104_v50 = vpop.permute.xlu1 %2103 }
 0x1e7   : > { %2849 = vst [vmem:[%s3751_s10 + $0x30] sm:$0xff] %v2797_v61   ;;  %v1940_v6 = vadd.f32 %v3725_v53, %v1837_v15  ;;  %v1838_v3 = vadd.f32 %v1804_v1, %v1419_v14  ;;  %v1252_v10 = vpop.f32.mrb[70].mxu1  ;;  %v2109_v25 = vpop.permute.xlu0 %2108 }
 0x1e8   : > { %v1384_v49 = vsel %vm1370_vm1, %v1353_v43, %v1354_v28  ;;  %v1355_v33 = vrot.slane %v1252_v10, 7  ;;  %v1254_v31 = vpop.f32.mrb[71].mxu1 }
 0x1e9   : > { %v1972_v39 = vmax.f32 %v1940_v6, 0.0  ;;  %v1421_v44 = vadd.f32 %v1384_v49, %v3630_v24  ;;  %v1670_v59 = vpop.f32.mrb[68].mxu0  ;;  %v1941_v51 = vadd.f32 %v3725_v53, %v1838_v3 }
 0x1ea   : > { %v1383_v12 = vsel %vm1370_vm1, %v1354_v28, %v1355_v33  ;;  %v1775_v20 = vrot.slane %v1670_v59, 1  ;;  %v1672_v13 = vpop.f32.mrb[69].mxu0 }
 0x1eb   : > { %v2196_v56 = vmul.f32 %v2099_v29, %v1972_v39  ;;  %v1422_v43 = vadd.f32 %v1383_v12, %v3632_v38  ;;  %v1673_v14 = vpop.f32.mrb[70].mxu0  ;;  %v1973_v19 = vmax.f32 %v1941_v51, 0.0 }
 0x1ec   : > { %v1803_v62 = vsel %vm1789_vm2, %v1774_v63, %v1775_v20  ;;  %v1776_v46 = vrot.slane %v1673_v14, 1  ;;  %v1675_v24 = vpop.f32.mrb[71].mxu0 }
 0x1ed   : > { %v2802_v8 = vpack.c.bf16 %v2196_v56, %v2195_v26  ;;  %v1839_v0 = vadd.f32 %v1803_v62, %v1420_v52  ;;  %v1257_v48 = vpop.f32.mrb[72].mxu1  ;;  %v2197_v10 = vmul.f32 %v2104_v50, %v1973_v19 }
 0x1ee   : > { %v1802_v32 = vsel %vm1789_vm2, %v1775_v20, %v1776_v46  ;;  %v1356_v11 = vrot.slane %v1257_v48, 7  ;;  %v1259_v60 = vpop.f32.mrb[73].mxu1 }
 0x1ef   : > { %2850 = vst [vmem:[%s3751_s10 + $0x38] sm:$0xff] %v2802_v8   ;;  %v1942_v55 = vadd.f32 %v3725_v53, %v1839_v0  ;;  %v1840_v4 = vadd.f32 %v1802_v32, %v1421_v44  ;;  %v1260_v38 = vpop.f32.mrb[74].mxu1  ;;  %v2114_v8 = vpop.permute.xlu1 %2113 }
 0x1f0   : > { %v1382_v61 = vsel %vm1370_vm1, %v1355_v33, %v1356_v11  ;;  %v1357_v63 = vrot.slane %v1260_v38, 7  ;;  %v1262_v15 = vpop.f32.mrb[75].mxu1  ;;  %v2119_v32 = vpop.permute.xlu0 %2118 }
 0x1f1   : > { %v1974_v1 = vmax.f32 %v1942_v55, 0.0  ;;  %v1423_v52 = vadd.f32 %v1382_v61, %v3638_v30  ;;  %v1678_v28 = vpop.f32.mrb[72].mxu0  ;;  %v1943_v31 = vadd.f32 %v3725_v53, %v1840_v4 }
 0x1f2   : > { %v1381_v45 = vsel %vm1370_vm1, %v1356_v11, %v1357_v63  ;;  %v1777_v6 = vrot.slane %v1678_v28, 1  ;;  %v1680_v3 = vpop.f32.mrb[73].mxu0 }
 0x1f3   : > { %v2198_v49 = vmul.f32 %v2109_v25, %v1974_v1  ;;  %v1424_v33 = vadd.f32 %v1381_v45, %v3640_v41  ;;  %v1681_v37 = vpop.f32.mrb[74].mxu0  ;;  %v1975_v56 = vmax.f32 %v1943_v31, 0.0 }
 0x1f4   : > { %v1801_v39 = vsel %vm1789_vm2, %v1776_v46, %v1777_v6  ;;  %v1778_v44 = vrot.slane %v1681_v37, 1  ;;  %v1683_v30 = vpop.f32.mrb[75].mxu0 }
 0x1f5   : > { %v2807_v59 = vpack.c.bf16 %v2198_v49, %v2197_v10  ;;  %v1841_v29 = vadd.f32 %v1801_v39, %v1422_v43  ;;  %v1265_v12 = vpop.f32.mrb[76].mxu1  ;;  %v2199_v55 = vmul.f32 %v2114_v8, %v1975_v56 }
 0x1f6   : > { %v1800_v20 = vsel %vm1789_vm2, %v1777_v6, %v1778_v44  ;;  %v1358_v13 = vrot.slane %v1265_v12, 7  ;;  %v1267_v26 = vpop.f32.mrb[77].mxu1 }
 0x1f7   : > { %2851 = vst [vmem:[%s3751_s10 + $0x40] sm:$0xff] %v2807_v59   ;;  %v1944_v51 = vadd.f32 %v3725_v53, %v1841_v29  ;;  %v1842_v14 = vadd.f32 %v1800_v20, %v1423_v52  ;;  %v1268_v41 = vpop.f32.mrb[78].mxu1  ;;  %v2129_v29 = vpop.permute.xlu0 %2128 }
 0x1f8   : > { %v1380_v62 = vsel %vm1370_vm1, %v1357_v63, %v1358_v13  ;;  %v1359_v46 = vrot.slane %v1268_v41, 7  ;;  %v1270_v24 = vpop.f32.mrb[79].mxu1 }
 0x1f9   : > { %v1976_v0 = vmax.f32 %v1944_v51, 0.0  ;;  %v1425_v43 = vadd.f32 %v1380_v62, %v3646_v54  ;;  %v1686_v48 = vpop.f32.mrb[76].mxu0  ;;  %v1945_v38 = vadd.f32 %v3725_v53, %v1842_v14 }
 0x1fa   : > { %v1379_v11 = vsel %vm1370_vm1, %v1358_v13, %v1359_v46  ;;  %v1779_v60 = vrot.slane %v1686_v48, 1  ;;  %v1688_v19 = vpop.f32.mrb[77].mxu0 }
 0x1fb   : > { %v2200_v4 = vmul.f32 %v2119_v32, %v1976_v0  ;;  %v1426_v61 = vadd.f32 %v1379_v11, %v3648_v57  ;;  %v1689_v63 = vpop.f32.mrb[78].mxu0  ;;  %v1977_v3 = vmax.f32 %v1945_v38, 0.0 }
 0x1fc   : > { %v1799_v15 = vsel %vm1789_vm2, %v1778_v44, %v1779_v60  ;;  %v1780_v50 = vrot.slane %v1689_v63, 1  ;;  %v1691_v54 = vpop.f32.mrb[79].mxu0  ;;  %v2124_v44 = vpop.permute.xlu1 %2123 }
 0x1fd   : > { %v2812_v1 = vpack.c.bf16 %v2200_v4, %v2199_v55  ;;  %v1843_v52 = vadd.f32 %v1799_v15, %v1424_v33  ;;  %v1273_v28 = vpop.f32.mrb[80].mxu1  ;;  %v2201_v26 = vmul.f32 %v2124_v44, %v1977_v3  ;;  %v2139_v54 = vpop.permute.xlu0 %2138 }
 0x1fe   : > { %v1798_v25 = vsel %vm1789_vm2, %v1779_v60, %v1780_v50  ;;  %v1360_v45 = vrot.slane %v1273_v28, 7  ;;  %v1275_v6 = vpop.f32.mrb[81].mxu1 }
 0x1ff   : > { %2852 = vst [vmem:[%s3751_s10 + $0x48] sm:$0xff] %v2812_v1   ;;  %v1946_v10 = vadd.f32 %v3725_v53, %v1843_v52  ;;  %v1844_v49 = vadd.f32 %v1798_v25, %v1425_v43  ;;  %v1276_v57 = vpop.f32.mrb[82].mxu1 }
 0x200   : > { %v1378_v31 = vsel %vm1370_vm1, %v1359_v46, %v1360_v45  ;;  %v1361_v37 = vrot.slane %v1276_v57, 7  ;;  %v1278_v39 = vpop.f32.mrb[83].mxu1  ;;  %v2134_v63 = vpop.permute.xlu1 %2133 }
 0x201   : > { %v1978_v30 = vmax.f32 %v1946_v10, 0.0  ;;  %v1427_v33 = vadd.f32 %v1378_v31, %v3654_v2  ;;  %v1694_v59 = vpop.f32.mrb[80].mxu0  ;;  %v1947_v51 = vadd.f32 %v3725_v53, %v1844_v49 }
 0x202   : > { %v1377_v12 = vsel %vm1370_vm1, %v1360_v45, %v1361_v37  ;;  %v1781_v20 = vrot.slane %v1694_v59, 1  ;;  %v1696_v13 = vpop.f32.mrb[81].mxu0 }
 0x203   : > { %v2202_v56 = vmul.f32 %v2129_v29, %v1978_v30  ;;  %v1428_v14 = vadd.f32 %v1377_v12, %v3656_v5  ;;  %v1697_v41 = vpop.f32.mrb[82].mxu0  ;;  %v1979_v11 = vmax.f32 %v1947_v51, 0.0 }
 0x204   : > { %v1797_v62 = vsel %vm1789_vm2, %v1780_v50, %v1781_v20  ;;  %v1782_v46 = vrot.slane %v1697_v41, 1  ;;  %v1699_v2 = vpop.f32.mrb[83].mxu0 }
 0x205   : > { %v2817_v24 = vpack.c.bf16 %v2202_v56, %v2201_v26  ;;  %v1845_v8 = vadd.f32 %v1797_v62, %v1426_v61  ;;  %v1281_v0 = vpop.f32.mrb[84].mxu1  ;;  %v2203_v25 = vmul.f32 %v2134_v63, %v1979_v11  ;;  %v2144_v56 = vpop.permute.xlu1 %2143 }
 0x206   : > { %v1796_v43 = vsel %vm1789_vm2, %v1781_v20, %v1782_v46  ;;  %v1362_v48 = vrot.slane %v1281_v0, 7  ;;  %v1283_v32 = vpop.f32.mrb[85].mxu1  ;;  %v2149_v62 = vpop.permute.xlu0 %2148 }
 0x207   : > { %2853 = vst [vmem:[%s3751_s10 + $0x50] sm:$0xff] %v2817_v24   ;;  %v1948_v60 = vadd.f32 %v3725_v53, %v1845_v8  ;;  %v1846_v19 = vadd.f32 %v1796_v43, %v1427_v33  ;;  %v1284_v5 = vpop.f32.mrb[86].mxu1 }
 0x208   : > { %v1376_v55 = vsel %vm1370_vm1, %v1361_v37, %v1362_v48  ;;  %v1363_v4 = vrot.slane %v1284_v5, 7  ;;  %v1286_v38 = vpop.f32.mrb[87].mxu1 }
 0x209   : > { %v1980_v15 = vmax.f32 %v1948_v60, 0.0  ;;  %v1429_v61 = vadd.f32 %v1376_v55, %v3662_v22  ;;  %v1702_v50 = vpop.f32.mrb[84].mxu0  ;;  %v1949_v6 = vadd.f32 %v3725_v53, %v1846_v19 }
 0x20a   : > { %v1375_v1 = vsel %vm1370_vm1, %v1362_v48, %v1363_v4  ;;  %v1783_v52 = vrot.slane %v1702_v50, 1  ;;  %v1704_v28 = vpop.f32.mrb[85].mxu0 }
 0x20b   : > { %v2204_v45 = vmul.f32 %v2139_v54, %v1980_v15  ;;  %v1430_v3 = vadd.f32 %v1375_v1, %v3664_v27  ;;  %v1705_v10 = vpop.f32.mrb[86].mxu0  ;;  %v1981_v59 = vmax.f32 %v1949_v6, 0.0  ;;  %v2154_v15 = vpop.permute.xlu1 %2153 }
 0x20c   : > { %v1795_v49 = vsel %vm1789_vm2, %v1782_v46, %v1783_v52  ;;  %v1784_v57 = vrot.slane %v1705_v10, 1  ;;  %v1707_v22 = vpop.f32.mrb[87].mxu0  ;;  %v2159_v1 = vpop.permute.xlu0 %2158 }
 0x20d   : > { %v2822_v31 = vpack.c.bf16 %v2204_v45, %v2203_v25  ;;  %v1847_v37 = vadd.f32 %v1795_v49, %v1428_v14  ;;  %v1289_v39 = vpop.f32.mrb[88].mxu1  ;;  %v2205_v8 = vmul.f32 %v2144_v56, %v1981_v59  ;;  %v1926_v45 = vadd.f32 %v3725_v53, %v3715_v23 }
 0x20e   : > { %v1794_v44 = vsel %vm1789_vm2, %v1783_v52, %v1784_v57  ;;  %v1364_v30 = vrot.slane %v1289_v39, 7  ;;  %v1291_v33 = vpop.f32.mrb[89].mxu1 }
 0x20f   : > { %2854 = vst [vmem:[%s3751_s10 + $0x58] sm:$0xff] %v2822_v31   ;;  %v1950_v29 = vadd.f32 %v3725_v53, %v1847_v37  ;;  %v1848_v12 = vadd.f32 %v1794_v44, %v1429_v61  ;;  %v1292_v27 = vpop.f32.mrb[90].mxu1 }
 0x210   : > { %v1374_v20 = vsel %vm1370_vm1, %v1363_v4, %v1364_v30  ;;  %v1365_v13 = vrot.slane %v1292_v27, 7  ;;  %v1294_v26 = vpop.f32.mrb[91].mxu1 }
 0x211   : > { %v1982_v51 = vmax.f32 %v1950_v29, 0.0  ;;  %v1431_v14 = vadd.f32 %v1374_v20, %v3670_v34  ;;  %v1710_v41 = vpop.f32.mrb[88].mxu0  ;;  %v1951_v43 = vadd.f32 %v3725_v53, %v1848_v12  ;;  %v2164_v20 = vpop.permute.xlu1 %2163 }
 0x212   : > { %v1373_v46 = vsel %vm1370_vm1, %v1364_v30, %v1365_v13  ;;  %v1785_v2 = vrot.slane %v1710_v41, 1  ;;  %v1712_v24 = vpop.f32.mrb[89].mxu0 }
 0x213   : > { %v2206_v0 = vmul.f32 %v2149_v62, %v1982_v51  ;;  %v1432_v48 = vadd.f32 %v1373_v46, %v3672_v36  ;;  %v1713_v32 = vpop.f32.mrb[90].mxu0  ;;  %v1983_v61 = vmax.f32 %v1951_v43, 0.0 }
 0x214   : > { %v1793_v11 = vsel %vm1789_vm2, %v1784_v57, %v1785_v2  ;;  %v1786_v60 = vrot.slane %v1713_v32, 1  ;;  %v1715_v34 = vpop.f32.mrb[91].mxu0 }
 0x215   : > { %v2827_v19 = vpack.c.bf16 %v2206_v0, %v2205_v8  ;;  %v1849_v5 = vadd.f32 %v1793_v11, %v1430_v3  ;;  %v1297_v55 = vpop.f32.mrb[92].mxu1  ;;  %v2207_v39 = vmul.f32 %v2154_v15, %v1983_v61  ;;  %v2174_v43 = vpop.permute.xlu1 %2173 }
 0x216   : > { %v1792_v4 = vsel %vm1789_vm2, %v1785_v2, %v1786_v60  ;;  %v1366_v38 = vrot.slane %v1297_v55, 7  ;;  %v1299_v63 = vpop.f32.mrb[93].mxu1 }
 0x217   : > { %2855 = vst [vmem:[%s3751_s10 + $0x60] sm:$0xff] %v2827_v19   ;;  %v1952_v50 = vadd.f32 %v3725_v53, %v1849_v5  ;;  %v1850_v36 = vadd.f32 %v1792_v4, %v1431_v14  ;;  %v1300_v54 = vpop.f32.mrb[94].mxu1 }
 0x218   : > { %v1372_v52 = vsel %vm1370_vm1, %v1365_v13, %v1366_v38  ;;  %v1367_v28 = vrot.slane %v1300_v54, 7  ;;  %v1302_v25 = vpop.f32.mrb[95].mxu1  ;;  %v2169_v13 = vpop.permute.xlu0 %2168 }
 0x219   : > { %v1984_v6 = vmax.f32 %v1952_v50, 0.0  ;;  %v1433_v3 = vadd.f32 %v1372_v52, %v3678_v42  ;;  %v1718_v10 = vpop.f32.mrb[92].mxu0  ;;  %v1953_v49 = vadd.f32 %v3725_v53, %v1850_v36 }
 0x21a   : > { %v1371_v57 = vsel %vm1370_vm1, %v1366_v38, %v1367_v28  ;;  %v1402_v22 = vsel %vm1370_vm1, %v1367_v28, %v1336_v47  ;;  %v1787_v31 = vrot.slane %v1718_v10, 1  ;;  %v1720_v37 = vpop.f32.mrb[93].mxu0  ;;  %v1958_v47 = vmax.f32 %v1926_v45, 0.0 }
 0x21b   : > { %v2208_v44 = vmul.f32 %v2159_v1, %v1984_v6  ;;  %v1403_v23 = vadd.f32 %v1402_v22, %v3626_v16  ;;  %v1434_v42 = vadd.f32 %v1371_v57, %v3680_v17  ;;  %v1721_v30 = vpop.f32.mrb[94].mxu0  ;;  %v1985_v26 = vmax.f32 %v1953_v49, 0.0 }
 0x21c   : > { %v1791_v33 = vsel %vm1789_vm2, %v1786_v60, %v1787_v31  ;;  %v1788_v59 = vrot.slane %v1721_v30, 1  ;;  %v1723_v29 = vpop.f32.mrb[95].mxu0  ;;  %v2182_v40 = vmul.f32 %v3729_v21, %v1958_v47 }
 0x21d   : > { %v2832_v12 = vpack.c.bf16 %v2208_v44, %v2207_v39  ;;  %v1822_v18 = vadd.f32 %v3705_v9, %v1403_v23  ;;  %v1851_v27 = vadd.f32 %v1791_v33, %v1432_v48  ;;  %v2209_v7 = vmul.f32 %v2164_v20, %v1985_v26  ;;  %v2179_v48 = vpop.permute.xlu0 %2178 }
 0x21e   : > { %v1790_v56 = vsel %vm1789_vm2, %v1787_v31, %v1788_v59  ;;  %v1821_v16 = vsel %vm1789_vm2, %v1788_v59, %v1757_v58 }
 0x21f   : > { %2856 = vst [vmem:[%s3751_s10 + $0x68] sm:$0xff] %v2832_v12   ;;  %v1925_v17 = vadd.f32 %v3725_v53, %v1822_v18  ;;  %v1954_v51 = vadd.f32 %v3725_v53, %v1851_v27  ;;  %v1852_v14 = vadd.f32 %v1790_v56, %v1433_v3  ;;  %v1853_v9 = vadd.f32 %v1821_v16, %v1434_v42 }
 0x221   : > { %v1957_v41 = vmax.f32 %v1925_v17, 0.0  ;;  %v1986_v62 = vmax.f32 %v1954_v51, 0.0  ;;  %v1955_v46 = vadd.f32 %v3725_v53, %v1852_v14  ;;  %v1956_v2 = vadd.f32 %v3725_v53, %v1853_v9 }
 0x223   : > { %v2181_v58 = vmul.f32 %v3733_v35, %v1957_v41  ;;  %v2210_v24 = vmul.f32 %v2169_v13, %v1986_v62  ;;  %v1987_v8 = vmax.f32 %v1955_v46, 0.0  ;;  %v1988_v0 = vmax.f32 %v1956_v2, 0.0 }
 0x225   : > { %v2767_v32 = vpack.c.bf16 %v2182_v40, %v2181_v58  ;;  %v2837_v11 = vpack.c.bf16 %v2210_v24, %v2209_v7  ;;  %v2211_v60 = vmul.f32 %v2174_v43, %v1987_v8  ;;  %v2212_v34 = vmul.f32 %v2179_v48, %v1988_v0 }
 0x227   : > { %2768 = vst [vmem:[%s3751_s10] sm:$0xff] %v2767_v32   ;;  %2857 = vst [vmem:[%s3751_s10 + $0x70] sm:$0xff] %v2837_v11   ;;  %v2842_v19 = vpack.c.bf16 %v2212_v34, %v2211_v60 }
 0x229   : > { %2858 = vst [vmem:[%s3751_s10 + $0x78] sm:$0xff] %v2842_v19  }
 0x22a PF: > { %s16_s25 = sadd.s32 1, %s3017_s25   ;;  %s3961_s21 = smov %s3009_s23 }
 0x22b   : > { %p13_p1 = scmp.ge.s32.totalorder %s16_s25, 10   ;;  %s3962_s22 = smov %s3013_s24 }
 0x22c   : > { %s3963_s23 = smov %s3966_s26  ;;  %s3964_s24 = smov %s3970_s27 }
 0x22d   :  { %15 = sbr.rel (!%p13_p1) target bundleno = 3 (0x3), region = 85 }

// kernel: vgg_loss.11
= control target key start
LH: loop header
LB: loop body
LE: loop exit
PB: predicated region body
PF: predicated region fallthrough
CT: control target
= control target key end

     0   :  { %s1161_s9 = smov 0   ;;  %s1163_s10 = smov 0   ;;  %s1534_s0 = inlined_call_operand.vmem [shape: bf16[4,512,128], index: 0, kind: input, shape index: {}, may-alias: {0,1}]   ;;  %s1535_s1 = inlined_call_operand.vmem [shape: bf16[4,512,128], index: 1, kind: input, shape index: {}, may-alias: {0,1}]   ;;  %s1536_s2 = inlined_call_operand.vmem [shape: f32[2,8,128], index: 2, kind: output, shape index: {}]  }
   0x1   :  { %s1165_s11 = smov 0  }
   0x2 LB: > { %s24_s12 = sadd.s32 1, %s1140_s10  ;;  %p767_p0 = scmp.ge.s32.totalorder %s1144_s11, 1  ;;  %s1144_s11 = sphi %s1165_s11, %s12_s11   ;;  %s1140_s10 = sphi %s1163_s10, %s1594_s10   ;;  %s1136_s9 = sphi %s1161_s9, %s1593_s9  }
   0x3   : > { %p26_p1 = scmp.ge.s32.totalorder %s24_s12, 2  ;;  %p152_p2 = scmp.lt.s32.totalorder %s1144_s11, 3 }
   0x5   : > { %s1596_s12 = smov (%p26_p1, %s24_s12), 0  ;;  %p153_p3 = pnand %p767_p0, %p152_p2 }
   0x7   : > { %156 = sbr.rel (%p153_p3) target bundleno = 387 (0x183), region = 28 }
   0xe   : > { %p188_p4 = scmp.lt.s32.totalorder %s1136_s9, 3  ;;  %s197_s14 = sadd.s32 2, %s1136_s9 }
   0xf   : > { %p199_p5 = scmp.lt.s32.totalorder %s197_s14, 3  ;;  %p209_p6 = scmp.lt.s32.totalorder %s1136_s9, 1 }
  0x10   : > { %s189_s13 = scalar_select %p188_p4, %s1136_s9, 3 }
  0x11   : > { %s1598_s14 = smov (!%p199_p5, %s197_s14), 3  ;;  %s1600_s9 = smov (!%p209_p6, %s1136_s9), 1 }
  0x12   : > { %s775_s15 = sshll.u32 %s189_s13, 8  ;;  %s776_s19 = sshll.u32 %s1598_s14, 8 }
  0x13   : > { %s1187_s18 = scalar_lea.vmem %s1534_s0, %s775_s15  ;;  %s1243_s22 = scalar_lea.vmem %s1535_s1, %s776_s19 }
  0x14   : > { %v1190_v0 = vld [vmem:[%s1187_s18] sm:$0xff]   ;;  %v1193_v1 = vld [vmem:[%s1187_s18 + $0x8] sm:$0xff]   ;;  %v1196_v2 = vld [vmem:[%s1187_s18 + $0x10] sm:$0xff]   ;;  %s772_s23 = sshll.u32 %s1600_s9, 3 }
  0x15   : > { %1545 = vst [vmem:[#allocation2_spill] sm:$0xff] %v1196_v2  ;;  %v1199_v3 = vld [vmem:[%s1187_s18 + $0x18] sm:$0xff]   ;;  %v1202_v4 = vld [vmem:[%s1187_s18 + $0x88] sm:$0xff]   ;;  %v1205_v5 = vld [vmem:[%s1187_s18 + $0x90] sm:$0xff]   ;;  %v1552_v2 = vunpack.c.h.bf16 %v1193_v1  ;;  %s212_s27 = scalar_lea.vmem %s1536_s2, %s772_s23 }
  0x16   : > { %1546 = vst [vmem:[#allocation3_spill] sm:$0xff] %v1199_v3  ;;  %v1208_v6 = vld [vmem:[%s1187_s18 + $0x98] sm:$0xff]   ;;  %v1215_v11 = vld [vmem:[%s1187_s18 + $0xa0] sm:$0xff]   ;;  %v1218_v12 = vld [vmem:[%s1187_s18 + $0xa8] sm:$0xff]  }
  0x17   : > { %v1225_v17 = vld [vmem:[%s1187_s18 + $0xb0] sm:$0xff]   ;;  %v1228_v18 = vld [vmem:[%s1187_s18 + $0xb8] sm:$0xff]   ;;  %v1235_v23 = vld [vmem:[%s1187_s18 + $0xc0] sm:$0xff]  }
  0x18   : > { %v1238_v24 = vld [vmem:[%s1187_s18 + $0xc8] sm:$0xff]   ;;  %v1250_v29 = vld [vmem:[%s1187_s18 + $0xd0] sm:$0xff]   ;;  %v1253_v30 = vld [vmem:[%s1187_s18 + $0xd8] sm:$0xff]  }
  0x19   : > { %v1260_v35 = vld [vmem:[%s1187_s18 + $0xe0] sm:$0xff]   ;;  %v1263_v36 = vld [vmem:[%s1187_s18 + $0xe8] sm:$0xff]   ;;  %v1270_v41 = vld [vmem:[%s1187_s18 + $0xf0] sm:$0xff]  }
  0x1a   : > { %v1273_v42 = vld [vmem:[%s1187_s18 + $0xf8] sm:$0xff]   ;;  %v1280_v47 = vld [vmem:[%s1243_s22] sm:$0xff]   ;;  %v1283_v48 = vld [vmem:[%s1243_s22 + $0x8] sm:$0xff]  }
  0x1b   : > { %v1290_v53 = vld [vmem:[%s1243_s22 + $0x10] sm:$0xff]   ;;  %v1293_v54 = vld [vmem:[%s1243_s22 + $0x18] sm:$0xff]   ;;  %v1080_v59 = vld [vmem:[%s1243_s22 + $0x88] sm:$0xff]   ;;  %v907_v62 = vunpack.c.l.bf16 %v1280_v47  ;;  %v908_v63 = vunpack.c.h.bf16 %v1280_v47  ;;  %v911_v15 = vunpack.c.l.bf16 %v1283_v48  ;;  %v912_v56 = vunpack.c.h.bf16 %v1283_v48 }
  0x1c   : > { %1547 = vst [vmem:[#allocation4_spill] sm:$0xff] %v1290_v53  ;;  %1548 = vst [vmem:[#allocation5_spill] sm:$0xff] %v1293_v54  ;;  %v1081_v60 = vld [vmem:[%s1243_s22 + $0x90] sm:$0xff]   ;;  %v1082_v14 = vld [vmem:[%s1243_s22 + $0x98] sm:$0xff]   ;;  %v975_v51 = vunpack.c.l.bf16 %v1080_v59  ;;  %v976_v50 = vunpack.c.h.bf16 %v1080_v59  ;;  %v1550_v54 = vunpack.c.h.bf16 %v1190_v0 }
  0x1d   : > { %v1083_v13 = vld [vmem:[%s1243_s22 + $0xa0] sm:$0xff]   ;;  %v1084_v55 = vld [vmem:[%s1243_s22 + $0xa8] sm:$0xff]   ;;  %v1085_v52 = vld [vmem:[%s1243_s22 + $0xb0] sm:$0xff]   ;;  %v979_v47 = vunpack.c.l.bf16 %v1081_v60  ;;  %v980_v49 = vunpack.c.h.bf16 %v1081_v60  ;;  %v983_v44 = vunpack.c.l.bf16 %v1082_v14  ;;  %v984_v48 = vunpack.c.h.bf16 %v1082_v14 }
  0x1e   : > { %v1086_v46 = vld [vmem:[%s1243_s22 + $0xb8] sm:$0xff]   ;;  %v1087_v45 = vld [vmem:[%s1243_s22 + $0xc0] sm:$0xff]   ;;  %v987_v57 = vunpack.c.l.bf16 %v1083_v13  ;;  %v988_v43 = vunpack.c.h.bf16 %v1083_v13  ;;  %v1088_v40 = vld [vmem:[%s1243_s22 + $0xc8] sm:$0xff]   ;;  %v991_v39 = vunpack.c.l.bf16 %v1084_v55  ;;  %v992_v61 = vunpack.c.h.bf16 %v1084_v55 }
  0x1f   : > { %v1089_v58 = vld [vmem:[%s1243_s22 + $0xd0] sm:$0xff]   ;;  %v995_v38 = vunpack.c.l.bf16 %v1085_v52  ;;  %v996_v37 = vunpack.c.h.bf16 %v1085_v52  ;;  %v1090_v34 = vld [vmem:[%s1243_s22 + $0xd8] sm:$0xff]   ;;  %v1091_v59 = vld [vmem:[%s1243_s22 + $0xe0] sm:$0xff]   ;;  %v999_v33 = vunpack.c.l.bf16 %v1086_v46  ;;  %v1000_v32 = vunpack.c.h.bf16 %v1086_v46 }
  0x20   : > { %v1003_v60 = vunpack.c.l.bf16 %v1087_v45  ;;  %v1004_v31 = vunpack.c.h.bf16 %v1087_v45  ;;  %v1092_v28 = vld [vmem:[%s1243_s22 + $0xe8] sm:$0xff]   ;;  %v1093_v27 = vld [vmem:[%s1243_s22 + $0xf0] sm:$0xff]   ;;  %v1007_v26 = vunpack.c.l.bf16 %v1088_v40  ;;  %v1008_v14 = vunpack.c.h.bf16 %v1088_v40  ;;  %v1094_v13 = vld [vmem:[%s1243_s22 + $0xf8] sm:$0xff]  }
  0x21   : > { %v1011_v25 = vunpack.c.l.bf16 %v1089_v58  ;;  %v1012_v22 = vunpack.c.h.bf16 %v1089_v58  ;;  %v1015_v21 = vunpack.c.l.bf16 %v1090_v34  ;;  %v1016_v20 = vunpack.c.h.bf16 %v1090_v34 }
  0x22   : > { %v1019_v19 = vunpack.c.l.bf16 %v1091_v59  ;;  %v1020_v16 = vunpack.c.h.bf16 %v1091_v59  ;;  %v1023_v55 = vunpack.c.l.bf16 %v1092_v28  ;;  %v1024_v10 = vunpack.c.h.bf16 %v1092_v28 }
  0x23   : > { %v1027_v52 = vunpack.c.l.bf16 %v1093_v27  ;;  %v1028_v9 = vunpack.c.h.bf16 %v1093_v27  ;;  %v1031_v8 = vunpack.c.l.bf16 %v1094_v13  ;;  %v1032_v7 = vunpack.c.h.bf16 %v1094_v13 }
  0x24   : > { %v1549_v46 = vunpack.c.l.bf16 %v1190_v0  ;;  %v475_v3 = vsub.f32 %v1550_v54, %v908_v63  ;;  %v1551_v40 = vunpack.c.l.bf16 %v1193_v1  ;;  %v477_v34 = vsub.f32 %v1552_v2, %v912_v56 }
  0x25   : > { %v1553_v59 = vunpack.c.l.bf16 %v1202_v4  ;;  %v1554_v27 = vunpack.c.h.bf16 %v1202_v4  ;;  %v1555_v13 = vunpack.c.l.bf16 %v1205_v5  ;;  %v1556_v0 = vunpack.c.h.bf16 %v1205_v5 }
  0x26   : > { %v474_v45 = vsub.f32 %v1549_v46, %v907_v62  ;;  %v476_v58 = vsub.f32 %v1551_v40, %v911_v15  ;;  %v1557_v15 = vunpack.c.l.bf16 %v1208_v6  ;;  %v1558_v2 = vunpack.c.h.bf16 %v1208_v6 }
  0x27   : > { %v1332_v53 = vsub.f32 %v1553_v59, %v975_v51  ;;  %v1336_v28 = vsub.f32 %v1554_v27, %v976_v50  ;;  %v1340_v62 = vsub.f32 %v1555_v13, %v979_v47  ;;  %v1344_v54 = vsub.f32 %v1556_v0, %v980_v49 }
  0x28   : > { %v1348_v1 = vsub.f32 %v1557_v15, %v983_v44  ;;  %v1352_v51 = vsub.f32 %v1558_v2, %v984_v48  ;;  %v1559_v4 = vunpack.c.l.bf16 %v1215_v11  ;;  %v1560_v56 = vunpack.c.h.bf16 %v1215_v11 }
  0x29   : > { %v1561_v5 = vunpack.c.l.bf16 %v1218_v12  ;;  %v1562_v47 = vunpack.c.h.bf16 %v1218_v12  ;;  %v1563_v6 = vunpack.c.l.bf16 %v1225_v17  ;;  %v1564_v46 = vunpack.c.h.bf16 %v1225_v17 }
  0x2a   : > { %v1356_v50 = vsub.f32 %v1559_v4, %v987_v57  ;;  %v1360_v63 = vsub.f32 %v1560_v56, %v988_v43  ;;  %v1565_v11 = vunpack.c.l.bf16 %v1228_v18  ;;  %v1567_v12 = vunpack.c.l.bf16 %v1235_v23 }
  0x2b   : > { %v1364_v49 = vsub.f32 %v1561_v5, %v991_v39  ;;  %v1368_v44 = vsub.f32 %v1562_v47, %v992_v61  ;;  %v1372_v48 = vsub.f32 %v1563_v6, %v995_v38  ;;  %v1376_v57 = vsub.f32 %v1564_v46, %v996_v37  ;;  %v1585_v47 = vld [vmem:[#allocation2_spill] sm:$0xff] }
  0x2c   : > { %v1380_v43 = vsub.f32 %v1565_v11, %v999_v33  ;;  %v1566_v39 = vunpack.c.h.bf16 %v1228_v18  ;;  %v1388_v61 = vsub.f32 %v1567_v12, %v1003_v60  ;;  %v1568_v38 = vunpack.c.h.bf16 %v1235_v23  ;;  %v1067_v12 = vld [vmem:[%s1243_s22 + $0x20] sm:$0xff]  }
  0x2d   : > { %v1569_v17 = vunpack.c.l.bf16 %v1238_v24  ;;  %v1570_v27 = vunpack.c.h.bf16 %v1238_v24  ;;  %v1571_v18 = vunpack.c.l.bf16 %v1250_v29  ;;  %v1572_v13 = vunpack.c.h.bf16 %v1250_v29 }
  0x2e   : > { %v1384_v40 = vsub.f32 %v1566_v39, %v1000_v32  ;;  %v1392_v59 = vsub.f32 %v1568_v38, %v1004_v31  ;;  %v1573_v23 = vunpack.c.l.bf16 %v1253_v30  ;;  %v1574_v0 = vunpack.c.h.bf16 %v1253_v30  ;;  %v1036_v30 = vld [vmem:[%s1187_s18 + $0x20] sm:$0xff]   ;;  %v1588_v38 = vld [vmem:[#allocation5_spill] sm:$0xff] }
  0x2f   : > { %v1396_v37 = vsub.f32 %v1569_v17, %v1007_v26  ;;  %v1400_v33 = vsub.f32 %v1570_v27, %v1008_v14  ;;  %v1404_v32 = vsub.f32 %v1571_v18, %v1011_v25  ;;  %v1408_v60 = vsub.f32 %v1572_v13, %v1012_v22 }
  0x30   : > { %v1412_v31 = vsub.f32 %v1573_v23, %v1015_v21  ;;  %v1416_v26 = vsub.f32 %v1574_v0, %v1016_v20  ;;  %v1575_v24 = vunpack.c.l.bf16 %v1260_v35  ;;  %v1576_v25 = vunpack.c.h.bf16 %v1260_v35  ;;  %v1037_v23 = vld [vmem:[%s1187_s18 + $0x28] sm:$0xff]  }
  0x31   : > { %v1577_v22 = vunpack.c.l.bf16 %v1263_v36  ;;  %v1578_v21 = vunpack.c.h.bf16 %v1263_v36  ;;  %v1579_v20 = vunpack.c.l.bf16 %v1270_v41  ;;  %v1586_v6 = vunpack.c.l.bf16 %v1585_v47 }
  0x32   : > { %v1420_v14 = vsub.f32 %v1575_v24, %v1019_v19  ;;  %v1424_v15 = vsub.f32 %v1576_v25, %v1020_v16  ;;  %v1580_v19 = vunpack.c.h.bf16 %v1270_v41  ;;  %v1581_v16 = vunpack.c.l.bf16 %v1273_v42  ;;  %v1587_v41 = vld [vmem:[#allocation3_spill] sm:$0xff] }
  0x33   : > { %v1428_v29 = vsub.f32 %v1577_v22, %v1023_v55  ;;  %v1432_v2 = vsub.f32 %v1578_v21, %v1024_v10  ;;  %v1437_v4 = vsub.f32 %v1579_v20, %v1027_v52  ;;  %v1582_v55 = vunpack.c.h.bf16 %v1273_v42  ;;  %v1583_v10 = vld [vmem:[#allocation4_spill] sm:$0xff]  ;;  %v1068_v21 = vld [vmem:[%s1243_s22 + $0x28] sm:$0xff]  }
  0x34   : > { %v1441_v56 = vsub.f32 %v1580_v19, %v1028_v9  ;;  %v1445_v35 = vsub.f32 %v1581_v16, %v1031_v8  ;;  %v1584_v36 = vunpack.c.l.bf16 %v1583_v10  ;;  %v538_v11 = vand.u32 2147483647, %v474_v45 }
  0x35   : > { %v1449_v5 = vsub.f32 %v1582_v55, %v1032_v7  ;;  %v539_v52 = vand.u32 2147483647, %v475_v3  ;;  %v540_v39 = vand.u32 2147483647, %v476_v58  ;;  %v792_v9 = vunpack.c.h.bf16 %v1587_v41 }
  0x36   : > { %v478_v46 = vsub.f32 %v1586_v6, %v1584_v36  ;;  %v920_v17 = vunpack.c.h.bf16 %v1588_v38  ;;  %v1589_v8 = vunpack.c.h.bf16 %v1583_v10  ;;  %v1590_v42 = vunpack.c.h.bf16 %v1585_v47  ;;  %v1038_v10 = vld [vmem:[%s1187_s18 + $0x30] sm:$0xff]  }
  0x37   : > { %v541_v27 = vand.u32 2147483647, %v477_v34  ;;  %v603_v18 = vadd.f32 %v539_v52, %v538_v11  ;;  %v795_v13 = vunpack.c.l.bf16 %v1036_v30  ;;  %v923_v0 = vunpack.c.l.bf16 %v1067_v12 }
  0x38   : > { %v479_v7 = vsub.f32 %v1590_v42, %v1589_v8  ;;  %v1591_v45 = vunpack.c.l.bf16 %v1588_v38  ;;  %v1592_v3 = vunpack.c.l.bf16 %v1587_v41  ;;  %v542_v24 = vand.u32 2147483647, %v478_v46  ;;  %v1069_v41 = vld [vmem:[%s1243_s22 + $0x30] sm:$0xff]  }
  0x39   : > { %v604_v25 = vadd.f32 %v603_v18, %v540_v39  ;;  %v796_v22 = vunpack.c.h.bf16 %v1036_v30  ;;  %v924_v20 = vunpack.c.h.bf16 %v1067_v12  ;;  %v481_v19 = vsub.f32 %v792_v9, %v920_v17  ;;  %v1039_v12 = vld [vmem:[%s1187_s18 + $0x38] sm:$0xff]  }
  0x3a   : > { %v480_v58 = vsub.f32 %v1592_v3, %v1591_v45  ;;  %v543_v16 = vand.u32 2147483647, %v479_v7  ;;  %v799_v34 = vunpack.c.l.bf16 %v1037_v23  ;;  %v927_v36 = vunpack.c.l.bf16 %v1068_v21  ;;  %v1070_v18 = vld [vmem:[%s1243_s22 + $0x38] sm:$0xff]  }
  0x3b   : > { %v605_v55 = vadd.f32 %v604_v25, %v541_v27  ;;  %v482_v47 = vsub.f32 %v795_v13, %v923_v0  ;;  %v800_v52 = vunpack.c.h.bf16 %v1037_v23  ;;  %v928_v38 = vunpack.c.h.bf16 %v1068_v21 }
  0x3c   : > { %v544_v6 = vand.u32 2147483647, %v480_v58  ;;  %v483_v8 = vsub.f32 %v796_v22, %v924_v20  ;;  %v545_v46 = vand.u32 2147483647, %v481_v19  ;;  %v803_v39 = vunpack.c.l.bf16 %v1038_v10  ;;  %v1040_v58 = vld [vmem:[%s1187_s18 + $0x40] sm:$0xff]  }
  0x3d   : > { %v606_v11 = vadd.f32 %v605_v55, %v542_v24  ;;  %v931_v9 = vunpack.c.l.bf16 %v1069_v41  ;;  %v484_v17 = vsub.f32 %v799_v34, %v927_v36  ;;  %v546_v42 = vand.u32 2147483647, %v482_v47  ;;  %v1071_v19 = vld [vmem:[%s1243_s22 + $0x40] sm:$0xff]   ;;  %v1041_v47 = vld [vmem:[%s1187_s18 + $0x48] sm:$0xff]  }
  0x3e   : > { %v804_v27 = vunpack.c.h.bf16 %v1038_v10  ;;  %v932_v13 = vunpack.c.h.bf16 %v1069_v41  ;;  %v485_v0 = vsub.f32 %v800_v52, %v928_v38  ;;  %v547_v45 = vand.u32 2147483647, %v483_v8  ;;  %v1072_v8 = vld [vmem:[%s1243_s22 + $0x48] sm:$0xff]  }
  0x3f   : > { %v607_v30 = vadd.f32 %v606_v11, %v543_v16  ;;  %v807_v3 = vunpack.c.l.bf16 %v1039_v12  ;;  %v935_v24 = vunpack.c.l.bf16 %v1070_v18  ;;  %v486_v25 = vsub.f32 %v803_v39, %v931_v9 }
  0x40   : > { %v548_v22 = vand.u32 2147483647, %v484_v17  ;;  %v808_v20 = vunpack.c.h.bf16 %v1039_v12  ;;  %v936_v16 = vunpack.c.h.bf16 %v1070_v18  ;;  %v487_v55 = vsub.f32 %v804_v27, %v932_v13  ;;  %v1042_v17 = vld [vmem:[%s1187_s18 + $0x50] sm:$0xff]  }
  0x41   : > { %v608_v7 = vadd.f32 %v607_v30, %v544_v6  ;;  %v549_v34 = vand.u32 2147483647, %v485_v0  ;;  %v811_v36 = vunpack.c.l.bf16 %v1040_v58  ;;  %v939_v6 = vunpack.c.l.bf16 %v1071_v19  ;;  %v1073_v0 = vld [vmem:[%s1243_s22 + $0x50] sm:$0xff]  }
  0x42   : > { %v488_v11 = vsub.f32 %v807_v3, %v935_v24  ;;  %v550_v52 = vand.u32 2147483647, %v486_v25  ;;  %v812_v38 = vunpack.c.h.bf16 %v1040_v58  ;;  %v489_v30 = vsub.f32 %v808_v20, %v936_v16  ;;  %v1043_v25 = vld [vmem:[%s1187_s18 + $0x58] sm:$0xff]  }
  0x43   : > { %v609_v23 = vadd.f32 %v608_v7, %v545_v46  ;;  %v940_v46 = vunpack.c.h.bf16 %v1071_v19  ;;  %v551_v39 = vand.u32 2147483647, %v487_v55  ;;  %v815_v9 = vunpack.c.l.bf16 %v1041_v47  ;;  %v1074_v55 = vld [vmem:[%s1243_s22 + $0x58] sm:$0xff]  }
  0x44   : > { %v490_v7 = vsub.f32 %v811_v36, %v939_v6  ;;  %v552_v27 = vand.u32 2147483647, %v488_v11  ;;  %v816_v13 = vunpack.c.h.bf16 %v1041_v47  ;;  %v553_v3 = vand.u32 2147483647, %v489_v30  ;;  %v1044_v11 = vld [vmem:[%s1187_s18 + $0x60] sm:$0xff]  }
  0x45   : > { %v610_v21 = vadd.f32 %v609_v23, %v546_v42  ;;  %v943_v42 = vunpack.c.l.bf16 %v1072_v8  ;;  %v491_v23 = vsub.f32 %v812_v38, %v940_v46  ;;  %v819_v24 = vunpack.c.l.bf16 %v1042_v17  ;;  %v1075_v30 = vld [vmem:[%s1243_s22 + $0x60] sm:$0xff]  }
  0x46   : > { %v554_v20 = vand.u32 2147483647, %v490_v7  ;;  %v820_v16 = vunpack.c.h.bf16 %v1042_v17  ;;  %v823_v6 = vunpack.c.l.bf16 %v1043_v25  ;;  %v824_v46 = vunpack.c.h.bf16 %v1043_v25  ;;  %v1045_v7 = vld [vmem:[%s1187_s18 + $0x68] sm:$0xff]  }
  0x47   : > { %v611_v10 = vadd.f32 %v610_v21, %v547_v45  ;;  %v944_v45 = vunpack.c.h.bf16 %v1072_v8  ;;  %v492_v21 = vsub.f32 %v815_v9, %v943_v42  ;;  %v555_v36 = vand.u32 2147483647, %v491_v23  ;;  %v1076_v23 = vld [vmem:[%s1243_s22 + $0x68] sm:$0xff]  }
  0x48   : > { %v827_v42 = vunpack.c.l.bf16 %v1044_v11 }
  0x49   : > { %v612_v41 = vadd.f32 %v611_v10, %v548_v22  ;;  %v947_v22 = vunpack.c.l.bf16 %v1073_v0  ;;  %v493_v10 = vsub.f32 %v816_v13, %v944_v45  ;;  %v556_v38 = vand.u32 2147483647, %v492_v21  ;;  %v1046_v21 = vld [vmem:[%s1187_s18 + $0x70] sm:$0xff]  }
  0x4a   : > { %v828_v45 = vunpack.c.h.bf16 %v1044_v11 }
  0x4b   : > { %v613_v12 = vadd.f32 %v612_v41, %v549_v34  ;;  %v948_v34 = vunpack.c.h.bf16 %v1073_v0  ;;  %v494_v41 = vsub.f32 %v819_v24, %v947_v22  ;;  %v557_v9 = vand.u32 2147483647, %v493_v10  ;;  %v1077_v10 = vld [vmem:[%s1243_s22 + $0x70] sm:$0xff]  }
  0x4c   : > { %v831_v22 = vunpack.c.l.bf16 %v1045_v7 }
  0x4d   : > { %v614_v18 = vadd.f32 %v613_v12, %v550_v52  ;;  %v951_v52 = vunpack.c.l.bf16 %v1074_v55  ;;  %v495_v12 = vsub.f32 %v820_v16, %v948_v34  ;;  %v558_v13 = vand.u32 2147483647, %v494_v41  ;;  %v1047_v41 = vld [vmem:[%s1187_s18 + $0x78] sm:$0xff]  }
  0x4e   : > { %v832_v34 = vunpack.c.h.bf16 %v1045_v7  ;;  %v839_v7 = vunpack.c.l.bf16 %v1047_v41 }
  0x4f   : > { %v615_v58 = vadd.f32 %v614_v18, %v551_v39  ;;  %v952_v39 = vunpack.c.h.bf16 %v1074_v55  ;;  %v496_v18 = vsub.f32 %v823_v6, %v951_v52  ;;  %v559_v24 = vand.u32 2147483647, %v495_v12  ;;  %v1078_v12 = vld [vmem:[%s1243_s22 + $0x78] sm:$0xff]  }
  0x50   : > { %v835_v52 = vunpack.c.l.bf16 %v1046_v21 }
  0x51   : > { %v616_v19 = vadd.f32 %v615_v58, %v552_v27  ;;  %v955_v27 = vunpack.c.l.bf16 %v1075_v30  ;;  %v497_v58 = vsub.f32 %v824_v46, %v952_v39  ;;  %v560_v16 = vand.u32 2147483647, %v496_v18  ;;  %v1048_v18 = vld [vmem:[%s1187_s18 + $0x80] sm:$0xff]  }
  0x52   : > { %v836_v39 = vunpack.c.h.bf16 %v1046_v21 }
  0x53   : > { %v617_v47 = vadd.f32 %v616_v19, %v553_v3  ;;  %v956_v3 = vunpack.c.h.bf16 %v1075_v30  ;;  %v498_v19 = vsub.f32 %v827_v42, %v955_v27  ;;  %v561_v6 = vand.u32 2147483647, %v497_v58  ;;  %v1079_v58 = vld [vmem:[%s1243_s22 + $0x80] sm:$0xff]  }
  0x55   : > { %v618_v8 = vadd.f32 %v617_v47, %v554_v20  ;;  %v959_v20 = vunpack.c.l.bf16 %v1076_v23  ;;  %v499_v47 = vsub.f32 %v828_v45, %v956_v3  ;;  %v562_v46 = vand.u32 2147483647, %v498_v19 }
  0x56   : > { %v840_v3 = vunpack.c.h.bf16 %v1047_v41  ;;  %v843_v19 = vunpack.c.l.bf16 %v1048_v18 }
  0x57   : > { %v619_v17 = vadd.f32 %v618_v8, %v555_v36  ;;  %v960_v36 = vunpack.c.h.bf16 %v1076_v23  ;;  %v500_v8 = vsub.f32 %v831_v22, %v959_v20  ;;  %v563_v42 = vand.u32 2147483647, %v499_v47 }
  0x59   : > { %v620_v0 = vadd.f32 %v619_v17, %v556_v38  ;;  %v963_v38 = vunpack.c.l.bf16 %v1077_v10  ;;  %v501_v17 = vsub.f32 %v832_v34, %v960_v36  ;;  %v564_v45 = vand.u32 2147483647, %v500_v8 }
  0x5a   : > { %v844_v34 = vunpack.c.h.bf16 %v1048_v18  ;;  %v972_v36 = vunpack.c.h.bf16 %v1079_v58 }
  0x5b   : > { %v621_v25 = vadd.f32 %v620_v0, %v557_v9  ;;  %v964_v9 = vunpack.c.h.bf16 %v1077_v10  ;;  %v502_v0 = vsub.f32 %v835_v52, %v963_v38  ;;  %v565_v22 = vand.u32 2147483647, %v501_v17 }
  0x5c   : > { %v507_v8 = vsub.f32 %v844_v34, %v972_v36 }
  0x5d   : > { %v622_v55 = vadd.f32 %v621_v25, %v558_v13  ;;  %v967_v13 = vunpack.c.l.bf16 %v1078_v12  ;;  %v503_v25 = vsub.f32 %v836_v39, %v964_v9 }
  0x5e   : > { %v571_v9 = vand.u32 2147483647, %v507_v8 }
  0x5f   : > { %v623_v11 = vadd.f32 %v622_v55, %v559_v24  ;;  %v968_v24 = vunpack.c.h.bf16 %v1078_v12  ;;  %v504_v21 = vsub.f32 %v839_v7, %v967_v13  ;;  %v566_v55 = vand.u32 2147483647, %v502_v0 }
  0x60   : > { %v573_v7 = vand.u32 2147483647, %v1336_v28  ;;  %v574_v13 = vand.u32 2147483647, %v1340_v62  ;;  %v580_v28 = vand.u32 2147483647, %v1364_v49 }
  0x61   : > { %v624_v30 = vadd.f32 %v623_v11, %v560_v16  ;;  %v971_v16 = vunpack.c.l.bf16 %v1079_v58  ;;  %v505_v47 = vsub.f32 %v840_v3, %v968_v24  ;;  %v568_v52 = vand.u32 2147483647, %v504_v21 }
  0x62   : > { %v576_v3 = vand.u32 2147483647, %v1348_v1  ;;  %v577_v24 = vand.u32 2147483647, %v1352_v51  ;;  %v581_v62 = vand.u32 2147483647, %v1368_v44 }
  0x63   : > { %v625_v27 = vadd.f32 %v624_v30, %v561_v6  ;;  %v567_v6 = vand.u32 2147483647, %v503_v25  ;;  %v506_v30 = vsub.f32 %v843_v19, %v971_v16  ;;  %v569_v41 = vand.u32 2147483647, %v505_v47 }
  0x64   : > { %v583_v1 = vand.u32 2147483647, %v1376_v57  ;;  %v584_v51 = vand.u32 2147483647, %v1380_v43  ;;  %v587_v49 = vand.u32 2147483647, %v1392_v59 }
  0x65   : > { %v626_v23 = vadd.f32 %v625_v27, %v562_v46  ;;  %v570_v12 = vand.u32 2147483647, %v506_v30  ;;  %v588_v44 = vand.u32 2147483647, %v1396_v37  ;;  %v590_v57 = vand.u32 2147483647, %v1404_v32 }
  0x66   : > { %v591_v43 = vand.u32 2147483647, %v1408_v60  ;;  %v594_v59 = vand.u32 2147483647, %v1420_v14  ;;  %v595_v37 = vand.u32 2147483647, %v1424_v15 }
  0x67   : > { %v627_v20 = vadd.f32 %v626_v23, %v563_v42  ;;  %v572_v42 = vand.u32 2147483647, %v1332_v53  ;;  %v579_v53 = vand.u32 2147483647, %v1360_v63  ;;  %v586_v63 = vand.u32 2147483647, %v1388_v61 }
  0x68   : > { %v593_v61 = vand.u32 2147483647, %v1416_v26  ;;  %v597_v32 = vand.u32 2147483647, %v1432_v2  ;;  %v598_v60 = vand.u32 2147483647, %v1437_v4 }
  0x69   : > { %v628_v10 = vadd.f32 %v627_v20, %v564_v45  ;;  %v575_v45 = vand.u32 2147483647, %v1344_v54  ;;  %v582_v54 = vand.u32 2147483647, %v1372_v48  ;;  %v589_v48 = vand.u32 2147483647, %v1400_v33 }
  0x6a   : > { %v596_v33 = vand.u32 2147483647, %v1428_v29  ;;  %v600_v26 = vand.u32 2147483647, %v1445_v35  ;;  %v601_v15 = vand.u32 2147483647, %v1449_v5 }
  0x6b   : > { %v629_v11 = vadd.f32 %v628_v10, %v565_v22  ;;  %v578_v22 = vand.u32 2147483647, %v1356_v50  ;;  %v585_v50 = vand.u32 2147483647, %v1384_v40  ;;  %v592_v40 = vand.u32 2147483647, %v1412_v31 }
  0x6c   : > { %v599_v31 = vand.u32 2147483647, %v1441_v56 }
  0x6d   : > { %v630_v38 = vadd.f32 %v629_v11, %v566_v55 }
  0x6f   : > { %v631_v46 = vadd.f32 %v630_v38, %v567_v6 }
  0x71   : > { %v632_v39 = vadd.f32 %v631_v46, %v568_v52 }
  0x73   : > { %v633_v17 = vadd.f32 %v632_v39, %v569_v41 }
  0x75   : > { %v634_v27 = vadd.f32 %v633_v17, %v570_v12 }
  0x77   : > { %v635_v18 = vadd.f32 %v634_v27, %v571_v9 }
  0x79   : > { %v636_v0 = vadd.f32 %v635_v18, %v572_v42 }
  0x7b   : > { %v637_v23 = vadd.f32 %v636_v0, %v573_v7 }
  0x7d   : > { %v638_v58 = vadd.f32 %v637_v23, %v574_v13 }
  0x7f   : > { %v639_v25 = vadd.f32 %v638_v58, %v575_v45 }
  0x81   : > { %v640_v20 = vadd.f32 %v639_v25, %v576_v3 }
  0x83   : > { %v641_v19 = vadd.f32 %v640_v20, %v577_v24 }
  0x85   : > { %v642_v16 = vadd.f32 %v641_v19, %v578_v22 }
  0x87   : > { %v643_v21 = vadd.f32 %v642_v16, %v579_v53 }
  0x89   : > { %v644_v55 = vadd.f32 %v643_v21, %v580_v28 }
  0x8b   : > { %v645_v10 = vadd.f32 %v644_v55, %v581_v62 }
  0x8d   : > { %v646_v34 = vadd.f32 %v645_v10, %v582_v54 }
  0x8f   : > { %v647_v36 = vadd.f32 %v646_v34, %v583_v1 }
  0x91   : > { %v648_v47 = vadd.f32 %v647_v36, %v584_v51 }
  0x93   : > { %v649_v6 = vadd.f32 %v648_v47, %v585_v50 }
  0x95   : > { %v650_v11 = vadd.f32 %v649_v6, %v586_v63 }
  0x97   : > { %v651_v30 = vadd.f32 %v650_v11, %v587_v49 }
  0x99   : > { %v652_v52 = vadd.f32 %v651_v30, %v588_v44 }
  0x9b   : > { %v653_v38 = vadd.f32 %v652_v52, %v589_v48 }
  0x9d   : > { %v654_v8 = vadd.f32 %v653_v38, %v590_v57 }
  0x9f   : > { %v655_v41 = vadd.f32 %v654_v8, %v591_v43 }
  0xa1   : > { %v656_v46 = vadd.f32 %v655_v41, %v592_v40 }
  0xa3   : > { %v657_v12 = vadd.f32 %v656_v46, %v593_v61 }
  0xa5   : > { %v658_v39 = vadd.f32 %v657_v12, %v594_v59 }
  0xa7   : > { %v659_v9 = vadd.f32 %v658_v39, %v595_v37 }
  0xa9   : > { %v660_v17 = vadd.f32 %v659_v9, %v596_v33 }
  0xab   : > { %v661_v42 = vadd.f32 %v660_v17, %v597_v32 }
  0xad   : > { %v662_v14 = vadd.f32 %v661_v42, %v598_v60 }
  0xaf   : > { %v663_v27 = vadd.f32 %v662_v14, %v599_v31 }
  0xb1   : > { %v664_v7 = vadd.f32 %v663_v27, %v600_v26 }
  0xb3   : > { %v665_v29 = vadd.f32 %v664_v7, %v601_v15 }
  0xb5   : > { %666 = vadd.xlane.f32.xlu0 %v665_v29 }
 0x142   : > { %v667_v18 = vpop.xlane.xlu0 %666 }
 0x143   : > { %v668_v2 = vrot.slane %v667_v18, 4 }
 0x145   : > { %v669_v13 = vadd.f32 %v668_v2, %v667_v18 }
 0x147   : > { %v670_v0 = vrot.slane %v669_v13, 2 }
 0x149   : > { %v671_v4 = vadd.f32 %v670_v0, %v669_v13 }
 0x14b   : > { %v672_v45 = vrot.slane %v671_v4, 1 }
 0x14d   : > { %v673_v23 = vadd.f32 %v672_v45, %v671_v4 }
 0x14f   : > { %1095 = vpush %v673_v23 }
 0x180   : > { %s1096_s24 = spop %1095 }
 0x181   : > { %v675_v56 = vstv %s1096_s24 }
 0x182   : > { %677 = vst [vmem:[%s212_s27] sm:$0xff] %v675_v56 }
 0x183 PF: > { %s12_s11 = sadd.s32 1, %s1144_s11   ;;  %s1593_s9 = smov %s1140_s10 }
 0x184   : > { %p9_p7 = scmp.ge.s32.totalorder %s12_s11, 4   ;;  %s1594_s10 = smov %s1596_s12 }
 0x186   :  { %11 = sbr.rel (!%p9_p7) target bundleno = 2 (0x2), region = 65 }

// kernel: vgg_loss.9
= control target key start
LH: loop header
LB: loop body
LE: loop exit
PB: predicated region body
PF: predicated region fallthrough
CT: control target
= control target key end

     0   :  { %s4335_s21 = smov 0   ;;  %s4337_s22 = smov 0   ;;  %s5473_s0 = inlined_call_operand.vmem [shape: bf16[4,512,128], index: 0, kind: input, shape index: {}, may-alias: {0,1,2}]   ;;  %s5474_s1 = inlined_call_operand.vmem [shape: bf16[4,512,128], index: 1, kind: input, shape index: {}, may-alias: {0,1,2}]   ;;  %s5475_s2 = inlined_call_operand.vmem [shape: bf16[4,512,128], index: 2, kind: input, shape index: {}, may-alias: {0,1,2}]   ;;  %s5476_s3 = inlined_call_operand.vmem [shape: bf16[3,384,128], index: 3, kind: input, shape index: {}]   ;;  %s5477_s4 = inlined_call_operand.vmem [shape: f32[1,128], index: 4, kind: input, shape index: {}]   ;;  %s5478_s5 = inlined_call_operand.vmem [shape: f32[512,1], index: 5, kind: input, shape index: {}]   ;;  %s5479_s6 = inlined_call_operand.vmem [shape: bf16[4,512,128], index: 6, kind: output, shape index: {}]  }
   0x1   :  { %5482 = sst [smem:[#allocation17_spill]] %s5474_s1  ;;  %s4339_s23 = smov 0  }
   0x2   :  { %s4341_s24 = smov 0   ;;  %s4343_s25 = smov 0  }
   0x3 LB: > { %s25_s26 = sadd.s32 1, %s4289_s23  ;;  %s28_s27 = sadd.s32 1, %s4293_s24  ;;  %s4297_s25 = sphi %s4343_s25, %s16_s25   ;;  %s4293_s24 = sphi %s4341_s24, %s5517_s24   ;;  %s4289_s23 = sphi %s4339_s23, %s5516_s23   ;;  %s4285_s22 = sphi %s4337_s22, %s5515_s22   ;;  %s4281_s21 = sphi %s4335_s21, %s5514_s21  }
   0x4   : > { %p26_p0 = scmp.ge.s32.totalorder %s25_s26, 2  ;;  %p3179_p1 = scmp.ge.s32.totalorder %s4297_s25, 1 }
   0x5   : > { %p310_p2 = scmp.lt.s32.totalorder %s4297_s25, 9 }
   0x6   : > { %s5519_s26 = smov (%p26_p0, %s25_s26), 0  ;;  %s5521_s27 = smov (!%p26_p0, %s28_s27), %s4293_s24 }
   0x7   : > { %p311_p3 = pnand %p3179_p1, %p310_p2  ;;  %p30_p4 = scmp.ge.s32.totalorder %s5521_s27, 4 }
   0x9   : > { %s5523_s27 = smov (%p30_p4, %s5521_s27), 0  ;;  %314 = sbr.rel (%p311_p3) target bundleno = 565 (0x235), region = 44 }
  0x10   : > { %v4164_v0 = vld [vmem:[%s5476_s3 + $0x100] sm:$0xff]   ;;  %p384_p5 = scmp.lt.s32.totalorder %s4285_s22, 3  ;;  %s3185_s8 = sshll.u32 %s4281_s21, 5  ;;  %v4166_v2 = vld [vmem:[%s5476_s3 + $0x108] sm:$0xff]   ;;  %v4168_v4 = vld [vmem:[%s5476_s3 + $0x110] sm:$0xff]  }
  0x11   : > { %v4165_v1 = vld [vmem:[%s5476_s3 + $0xc0] sm:$0xff]   ;;  %3553 = vmatprep.subr.bf16.mxu0 %v4164_v0  ;;  %4105 = vmatprep.subr.bf16.mxu1 %v4164_v0  ;;  %v4167_v3 = vld [vmem:[%s5476_s3 + $0xc8] sm:$0xff]   ;;  %p400_p6 = scmp.lt.s32.totalorder %s3185_s8, 63  ;;  %s3180_s16 = sshll.u32 %s4281_s21, 3  ;;  %v4169_v5 = vld [vmem:[%s5476_s3 + $0xd0] sm:$0xff]  }
  0x12   : > { %s5525_s22 = smov (!%p384_p5, %s4285_s22), 3  ;;  %3554 = vmatpush3.bf16.msra.mxu0 %v4165_v1  ;;  %4113 = vmatpush3.bf16.msra.mxu1 %v4165_v1  ;;  %s3181_s20 = sadd.s32 4294967295, %s3180_s16  ;;  %v4170_v6 = vld [vmem:[%s5476_s3 + $0x118] sm:$0xff]   ;;  %v4172_v8 = vld [vmem:[%s5476_s3 + $0x120] sm:$0xff]   ;;  %v4174_v10 = vld [vmem:[%s5476_s3 + $0x128] sm:$0xff]  }
  0x13   : > { %3555 = vmatprep.subr.bf16.mxu0 %v4166_v2  ;;  %4106 = vmatprep.subr.bf16.mxu1 %v4166_v2  ;;  %s5527_s8 = smov (!%p400_p6, %s3185_s8), 63  ;;  %s4385_s15 = sshll.u32 %s5525_s22, 6  ;;  %v4171_v7 = vld [vmem:[%s5476_s3 + $0xd8] sm:$0xff]   ;;  %v4173_v9 = vld [vmem:[%s5476_s3 + $0xe0] sm:$0xff]   ;;  %v4175_v13 = vld [vmem:[%s5476_s3 + $0xe8] sm:$0xff]  }
  0x14   : > { %s403_s19 = sadd.s32 %s4385_s15, %s5527_s8  ;;  %p381_p7 = scmp.gt.s32.totalorder %s3181_s20, 0  ;;  %v4176_v14 = vld [vmem:[%s5476_s3 + $0x130] sm:$0xff]   ;;  %v4178_v16 = vld [vmem:[%s5476_s3 + $0x138] sm:$0xff]   ;;  %v4183_v18 = vld [vmem:[%s5476_s3 + $0x140] sm:$0xff]  }
  0x15   : > { %s4396_s30 = sshll.u32 %s403_s19, 2  ;;  %s3425_s11 = sadd.s32 8, %s3180_s16  ;;  %v4177_v15 = vld [vmem:[%s5476_s3 + $0xf0] sm:$0xff]   ;;  %v4179_v17 = vld [vmem:[%s5476_s3 + $0xf8] sm:$0xff]   ;;  %v4184_v19 = vld [vmem:[%s5476_s3 + $0x80] sm:$0xff]  }
  0x16   : > { %3556 = vmatpush3.bf16.msra.mxu0 %v4167_v3  ;;  %4114 = vmatpush3.bf16.msra.mxu1 %v4167_v3  ;;  %s5529_s20 = smov (!%p381_p7, %s3181_s20), 0  ;;  %s5483_s1 = sld [smem:[#allocation17_spill]]  ;;  %v4185_v24 = vld [vmem:[%s5476_s3 + $0x148] sm:$0xff]   ;;  %v4189_v31 = vld [vmem:[%s5476_s3 + $0x150] sm:$0xff]   ;;  %v4190_v38 = vld [vmem:[%s5476_s3 + $0x158] sm:$0xff]  }
  0x17   : > { %3557 = vmatprep.subr.bf16.mxu0 %v4168_v4  ;;  %4107 = vmatprep.subr.bf16.mxu1 %v4168_v4  ;;  %s3182_s19 = sshll.u32 %s5529_s20, 2  ;;  %p474_p9 = scmp.gt.s32.totalorder %s4281_s21, 0  ;;  %v4191_v34 = vld [vmem:[%s5476_s3 + $0x88] sm:$0xff]   ;;  %v4199_v39 = vld [vmem:[%s5476_s3 + $0x90] sm:$0xff]   ;;  %v4194_v41 = vld [vmem:[%s5476_s3 + $0x160] sm:$0xff]  }
  0x18   : > { %p386_p8 = scmp.lt.s32.totalorder %s3182_s19, 63  ;;  %p409_p10 = scmp.lt.s32.totalorder %s3425_s11, 15  ;;  %v4204_v43 = vld [vmem:[%s5476_s3 + $0x98] sm:$0xff]   ;;  %v4195_v45 = vld [vmem:[%s5476_s3 + $0x168] sm:$0xff]   ;;  %v4210_v46 = vld [vmem:[%s5476_s3 + $0xa0] sm:$0xff]  }
  0x19   : > { %s475_s12 = scalar_select %p474_p9, 1, 0  ;;  %v4198_v47 = vld [vmem:[%s5476_s3 + $0x170] sm:$0xff]   ;;  %v4217_v49 = vld [vmem:[%s5476_s3 + $0xa8] sm:$0xff]   ;;  %v4200_v50 = vld [vmem:[%s5476_s3 + $0x178] sm:$0xff]  }
  0x1a   : > { %3558 = vmatpush3.bf16.msra.mxu0 %v4169_v5  ;;  %4115 = vmatpush3.bf16.msra.mxu1 %v4169_v5  ;;  %s5531_s19 = smov (!%p386_p8, %s3182_s19), 63  ;;  %s5533_s11 = smov (!%p409_p10, %s3425_s11), 15  ;;  %v4220_v51 = vld [vmem:[%s5476_s3 + $0xb0] sm:$0xff]   ;;  %v4202_v52 = vld [vmem:[%s5476_s3 + $0x40] sm:$0xff]   ;;  %v4225_v55 = vld [vmem:[%s5476_s3 + $0xb8] sm:$0xff]  }
  0x1b   : > { %3559 = vmatprep.subr.bf16.mxu0 %v4170_v6  ;;  %4108 = vmatprep.subr.bf16.mxu1 %v4170_v6  ;;  %s389_s9 = sadd.s32 %s4385_s15, %s5531_s19  ;;  %s3189_s10 = sshll.u32 %s5533_s11, 2  ;;  %v4203_v54 = vld [vmem:[%s5476_s3] sm:$0xff]   ;;  %v4206_v56 = vld [vmem:[%s5476_s3 + $0x48] sm:$0xff]   ;;  %v4211_v58 = vld [vmem:[%s5476_s3 + $0x50] sm:$0xff]  }
  0x1c   : > { %s4411_s18 = scalar_lea.vmem %s5483_s1, %s4396_s30  ;;  %p414_p11 = scmp.lt.s32.totalorder %s3189_s10, 63  ;;  %v4207_v57 = vld [vmem:[%s5476_s3 + $0x8] sm:$0xff]   ;;  %v4228_v59 = vld [vmem:[%s5476_s3 + $0x1c0] sm:$0xff]   ;;  %v4212_v62 = vld [vmem:[%s5476_s3 + $0x10] sm:$0xff]  }
  0x1d   : > { %v4418_v11 = vld [vmem:[%s4411_s18] sm:$0xff]   ;;  %s3184_s17 = sshll.u32 %s389_s9, 2  ;;  %s476_s28 = scvt.s32.f32 %s475_s12  ;;  %v4458_v20 = vld [vmem:[%s4411_s18 + $0x50] sm:$0xff]   ;;  %v4461_v23 = vld [vmem:[%s4411_s18 + $0x68] sm:$0xff]  }
  0x1e   : > { %3560 = vmatpush3.bf16.msra.mxu0 %v4171_v7  ;;  %4116 = vmatpush3.bf16.msra.mxu1 %v4171_v7  ;;  %v4421_v12 = vld [vmem:[%s4411_s18 + $0x60] sm:$0xff]   ;;  %s5535_s10 = smov (!%p414_p11, %s3189_s10), 63  ;;  %s391_s19 = scalar_lea.vmem %s5473_s0, %s3184_s17  ;;  %v4468_v26 = vld [vmem:[%s4411_s18 + $0x8] sm:$0xff]   ;;  %v4475_v32 = vld [vmem:[%s4411_s18 + $0x58] sm:$0xff]  }
  0x1f   : > { %3561 = vmatprep.subr.bf16.mxu0 %v4172_v8  ;;  %4109 = vmatprep.subr.bf16.mxu1 %v4172_v8  ;;  %p478_p12 = scmp.ne.f32.partialorder %s476_s28, %s476_s28  ;;  %s479_s20 = sshrl.u32 %s476_s28, 16  ;;  %v500_v21 = vld [vmem:[%s391_s19] sm:$0xf]  ;;  %v501_v22 = vld [vmem:[%s391_s19 + $0x4] sm:$0xf]  ;;  %v4483_v35 = vld [vmem:[%s4411_s18 + $0x70] sm:$0xff]  }
  0x20   : > { %869 = vmatprep.mubr.bf16.mxu0 %v4418_v11  ;;  %965 = vmatprep.mubr.bf16.mxu1 %v4421_v12  ;;  %s480_s22 = sand.u32 1, %s479_s20  ;;  %s417_s12 = sadd.s32 %s4385_s15, %s5535_s10  ;;  %v502_v27 = vld [vmem:[%s391_s19 + $0x8] sm:$0xf]  ;;  %v503_v28 = vld [vmem:[%s391_s19 + $0xc] sm:$0xf]  ;;  %v4501_v42 = vld [vmem:[%s4411_s18 + $0x10] sm:$0xff]  }
  0x21   : > { %s481_s13 = sadd.s32 32767, %s480_s22  ;;  %v4507_v44 = vld [vmem:[%s4411_s18 + $0x78] sm:$0xff]   ;;  %v4542_v53 = vld [vmem:[%s4411_s18 + $0x20] sm:$0xff]   ;;  %p487_p13 = scmp.lt.s32.totalorder %s4281_s21, 1  ;;  %v4568_v60 = vld [vmem:[%s4411_s18 + $0x28] sm:$0xff]  }
  0x22   : > { %3562 = vmatpush3.bf16.msra.mxu0 %v4173_v9  ;;  %4117 = vmatpush3.bf16.msra.mxu1 %v4173_v9  ;;  %s482_s20 = sadd.s32 %s481_s13, %s476_s28  ;;  %v4523_v48 = vld [vmem:[%s4411_s18 + $0x18] sm:$0xff]   ;;  %v4571_v61 = vld [vmem:[%s4411_s18 + $0x30] sm:$0xff]   ;;  %v4218_v1 = vld [vmem:[%s5476_s3 + $0x60] sm:$0xff]   ;;  %s3191_s14 = sshll.u32 %s417_s12, 2 }
  0x23   : > { %3563 = vmatprep.subr.bf16.mxu0 %v4174_v10  ;;  %4110 = vmatprep.subr.bf16.mxu1 %v4174_v10  ;;  %s483_s1 = sand.u32 4294901760, %s482_s20  ;;  %v4215_v63 = vld [vmem:[%s5476_s3 + $0x58] sm:$0xff]   ;;  %v4596_v3 = vld [vmem:[%s4411_s18 + $0x40] sm:$0xff]   ;;  %v4221_v5 = vld [vmem:[%s5476_s3 + $0x68] sm:$0xff]   ;;  %s419_s20 = scalar_lea.vmem %s5475_s2, %s3191_s14 }
  0x24   : > { %s5537_s1 = smov (%p478_p12, %s483_s1), 2143289344  ;;  %v4216_v0 = vld [vmem:[%s5476_s3 + $0x18] sm:$0xff]   ;;  %v4219_v4 = vld [vmem:[%s5476_s3 + $0x20] sm:$0xff]   ;;  %v4222_v6 = vld [vmem:[%s5476_s3 + $0x28] sm:$0xff]  }
  0x25   : > { %s486_s22 = sshrl.u32 %s5537_s1, 16  ;;  %v4593_v2 = vld [vmem:[%s4411_s18 + $0x38] sm:$0xff]   ;;  %v4223_v7 = vld [vmem:[%s5476_s3 + $0x70] sm:$0xff]   ;;  %v4616_v8 = vld [vmem:[%s4411_s18 + $0x48] sm:$0xff]  }
  0x26   : > { %3564 = vmatpush3.bf16.msra.mxu0 %v4175_v13  ;;  %4118 = vmatpush3.bf16.msra.mxu1 %v4175_v13  ;;  %s504_s17 = sshll.u32 %s486_s22, 16  ;;  %v4224_v9 = vld [vmem:[%s5476_s3 + $0x30] sm:$0xff]   ;;  %v4226_v10 = vld [vmem:[%s5476_s3 + $0x78] sm:$0xff]  }
  0x27   : > { %3565 = vmatprep.subr.bf16.mxu0 %v4176_v14  ;;  %4111 = vmatprep.subr.bf16.mxu1 %v4176_v14  ;;  %s505_s28 = sor.u32 %s504_s17, %s486_s22  ;;  %v4227_v13 = vld [vmem:[%s5476_s3 + $0x38] sm:$0xff]   ;;  %v4230_v14 = vld [vmem:[%s5476_s3 + $0x200] sm:$0xff]  }
  0x28   : > { %v506_v25 = vstv %s505_s28  ;;  %s488_s21 = scalar_select %p487_p13, 1, 0 }
  0x29   : > { %v508_v29 = vmul.bf16 %v506_v25, %v500_v21  ;;  %v509_v30 = vmul.bf16 %v506_v25, %v501_v22  ;;  %v510_v36 = vmul.bf16 %v506_v25, %v502_v27  ;;  %v511_v37 = vmul.bf16 %v506_v25, %v503_v28  ;;  %v514_v22 = vld [vmem:[%s419_s20 + $0x8] sm:$0xf] }
  0x2a   : > { %3566 = vmatpush3.bf16.msra.mxu0 %v4177_v15  ;;  %4119 = vmatpush3.bf16.msra.mxu1 %v4177_v15  ;;  %s4580_s29 = scvt.s32.f32 %s488_s21  ;;  %v512_v15 = vld [vmem:[%s419_s20] sm:$0xf] }
  0x2b   : > { %3567 = vmatprep.subr.bf16.mxu0 %v4178_v16  ;;  %4112 = vmatprep.subr.bf16.mxu1 %v4178_v16  ;;  %v4477_v33 = vcombine.low %v508_v29, %v509_v30  ;;  %v4495_v40 = vcombine.low %v510_v36, %v511_v37  ;;  %v513_v16 = vld [vmem:[%s419_s20 + $0x4] sm:$0xf]  ;;  %v4235_v29 = vld [vmem:[%s5476_s3 + $0x208] sm:$0xff]   ;;  %v4240_v30 = vld [vmem:[%s5476_s3 + $0x210] sm:$0xff]  }
  0x2c   : > { %s492_s22 = sshrl.u32 %s4580_s29, 16  ;;  %p491_p0 = scmp.ne.f32.partialorder %s4580_s29, %s4580_s29  ;;  %v4245_v36 = vld [vmem:[%s5476_s3 + $0x218] sm:$0xff]   ;;  %v4232_v37 = vld [vmem:[%s5476_s3 + $0x188] sm:$0xff]  }
  0x2d   : > { %s493_s17 = sand.u32 1, %s492_s22 }
  0x2e   : > { %3568 = vmatpush3.bf16.msra.mxu0 %v4179_v17  ;;  %4120 = vmatpush3.bf16.msra.mxu1 %v4179_v17  ;;  %s494_s1 = sadd.s32 32767, %s493_s17 }
  0x2f   : > { %3961 = vmatprep.subr.bf16.mxu1 %v4183_v18  ;;  %4009 = vmatprep.subr.bf16.mxu0 %v4184_v19  ;;  %s495_s19 = sadd.s32 %s494_s1, %s4580_s29 }
  0x30   : > { %s496_s7 = sand.u32 4294901760, %s495_s19 }
  0x31   : > { %966 = vmatmul.mubr.bf16.vlgmr.msra.gmra.mrb[0].mxu1 %v4458_v20  ;;  %870 = vmatmul.mubr.bf16.vlgmr.msra.gmra.mrb[0].mxu0 %v4477_v33  ;;  %s5539_s7 = smov (%p491_p0, %s496_s7), 2143289344 }
  0x32   : > { %3962 = vmatpush3.bf16.msra.mxu1 %v4183_v18  ;;  %973 = vmatprep.mubr.bf16.mxu1 %v4461_v23  ;;  %s499_s13 = sshrl.u32 %s5539_s7, 16 }
  0x33   : > { %3963 = vmatprep.subr.bf16.mxu1 %v4185_v24  ;;  %4010 = vmatpush3.bf16.msra.mxu0 %v4184_v19  ;;  %s516_s16 = sshll.u32 %s499_s13, 16 }
  0x34   : > { %877 = vmatprep.mubr.bf16.mxu0 %v4468_v26  ;;  %4011 = vmatprep.subr.bf16.mxu0 %v4191_v34  ;;  %s517_s22 = sor.u32 %s516_s16, %s499_s13  ;;  %s3193_s13 = sshll.u32 %s5527_s8, 3 }
  0x35   : > { %v518_v17 = vstv %s517_s22  ;;  %s4755_s11 = scalar_lea.vmem %s5478_s5, %s3193_s13  ;;  %s5272_s22 = scalar_lea.vmem %s5479_s6, %s4396_s30 }
  0x36   : > { %3964 = vmatpush3.bf16.msra.mxu1 %v4185_v24  ;;  %v520_v18 = vmul.bf16 %v518_v17, %v512_v15  ;;  %v521_v19 = vmul.bf16 %v518_v17, %v513_v16  ;;  %v515_v24 = vld [vmem:[%s419_s20 + $0xc] sm:$0xf]  ;;  %v522_v25 = vmul.bf16 %v518_v17, %v514_v22  ;;  %v2659_v15 = vld [vmem:[%s4755_s11 + $0x60] sm:$0xff]  ;;  %v2662_v16 = vld [vmem:[%s4755_s11 + $0x78] sm:$0xff] }
  0x37   : > { %3965 = vmatprep.subr.bf16.mxu1 %v4189_v31  ;;  %4012 = vmatpush3.bf16.msra.mxu0 %v4191_v34  ;;  %v523_v27 = vmul.bf16 %v518_v17, %v515_v24  ;;  %v4231_v34 = vld [vmem:[%s5476_s3 + $0x1c8] sm:$0xff]   ;;  %v2661_v17 = vld [vmem:[%s4755_s11 + $0x70] sm:$0xff]  ;;  %v2667_v24 = vld [vmem:[%s4755_s11 + $0xa0] sm:$0xff] }
  0x38   : > { %4013 = vmatprep.subr.bf16.mxu0 %v4199_v39  ;;  %v4650_v21 = vcombine.low %v520_v18, %v521_v19  ;;  %v2663_v18 = vld [vmem:[%s4755_s11 + $0x80] sm:$0xff]  ;;  %v2666_v19 = vld [vmem:[%s4755_s11 + $0x98] sm:$0xff]  ;;  %v2665_v22 = vld [vmem:[%s4755_s11 + $0x90] sm:$0xff] }
  0x39   : > { %974 = vmatmul.mubr.bf16.gmra.mrb[4].mxu1 %v4475_v32  ;;  %878 = vmatmul.mubr.bf16.gmra.mrb[4].mxu0 %v4495_v40  ;;  %v4656_v28 = vcombine.low %v522_v25, %v523_v27  ;;  %v2670_v25 = vld [vmem:[%s4755_s11 + $0xb8] sm:$0xff]  ;;  %v2669_v27 = vld [vmem:[%s4755_s11 + $0xb0] sm:$0xff] }
  0x3a   : > { %3966 = vmatpush3.bf16.msra.mxu1 %v4189_v31  ;;  %981 = vmatprep.mubr.bf16.mxu1 %v4483_v35  ;;  %v4229_v31 = vld [vmem:[%s5476_s3 + $0x180] sm:$0xff]  }
  0x3b   : > { %3967 = vmatprep.subr.bf16.mxu1 %v4190_v38  ;;  %885 = vmatprep.mubr.bf16.mxu0 %v4501_v42 }
  0x3c   : > { %4014 = vmatpush3.bf16.msra.mxu0 %v4199_v39  ;;  %v4248_v39 = vld [vmem:[%s5476_s3 + $0x220] sm:$0xff]  }
  0x3d   : > { %4015 = vmatprep.subr.bf16.mxu0 %v4204_v43 }
  0x3e   : > { %3968 = vmatpush3.bf16.msra.mxu1 %v4190_v38  ;;  %v4233_v38 = vld [vmem:[%s5476_s3 + $0x1d0] sm:$0xff]  }
  0x3f   : > { %3969 = vmatprep.subr.bf16.mxu1 %v4194_v41 }
  0x40   : > { %4016 = vmatpush3.bf16.msra.mxu0 %v4204_v43  ;;  %v4236_v43 = vld [vmem:[%s5476_s3 + $0x1d8] sm:$0xff]  }
  0x41   : > { %982 = vmatmul.mubr.bf16.gmra.mrb[8].mxu1 %v4421_v12  ;;  %4017 = vmatprep.subr.bf16.mxu0 %v4210_v46 }
  0x42   : > { %3970 = vmatpush3.bf16.msra.mxu1 %v4194_v41  ;;  %989 = vmatprep.mubr.bf16.mxu1 %v4507_v44  ;;  %v4234_v41 = vld [vmem:[%s5476_s3 + $0x190] sm:$0xff]  }
  0x43   : > { %3971 = vmatprep.subr.bf16.mxu1 %v4195_v45  ;;  %886 = vmatmul.mubr.bf16.gmra.mrb[8].mxu0 %v4418_v11 }
  0x44   : > { %893 = vmatprep.mubr.bf16.mxu0 %v4523_v48  ;;  %4018 = vmatpush3.bf16.msra.mxu0 %v4210_v46  ;;  %v4237_v46 = vld [vmem:[%s5476_s3 + $0x198] sm:$0xff]  }
  0x45   : > { %4019 = vmatprep.subr.bf16.mxu0 %v4217_v49 }
  0x46   : > { %3972 = vmatpush3.bf16.msra.mxu1 %v4195_v45  ;;  %v4249_v45 = vld [vmem:[%s5476_s3 + $0x228] sm:$0xff]  }
  0x47   : > { %3973 = vmatprep.subr.bf16.mxu1 %v4198_v47 }
  0x48   : > { %4020 = vmatpush3.bf16.msra.mxu0 %v4217_v49  ;;  %v4250_v49 = vld [vmem:[%s5476_s3 + $0x230] sm:$0xff]  }
  0x49   : > { %990 = vmatmul.mubr.bf16.gmra.mrb[12].mxu1 %v4461_v23  ;;  %4021 = vmatprep.subr.bf16.mxu0 %v4220_v51 }
  0x4a   : > { %3974 = vmatpush3.bf16.msra.mxu1 %v4198_v47  ;;  %3977 = vmatprep.mubr.bf16.mxu1 %v4501_v42  ;;  %v4238_v47 = vld [vmem:[%s5476_s3 + $0x1e0] sm:$0xff]  }
  0x4b   : > { %3975 = vmatprep.subr.bf16.mxu1 %v4200_v50  ;;  %894 = vmatmul.mubr.bf16.gmra.mrb[12].mxu0 %v4468_v26 }
  0x4c   : > { %901 = vmatprep.mubr.bf16.mxu0 %v4542_v53  ;;  %4022 = vmatpush3.bf16.msra.mxu0 %v4220_v51  ;;  %v4241_v51 = vld [vmem:[%s5476_s3 + $0x1e8] sm:$0xff]  }
  0x4d   : > { %4023 = vmatprep.subr.bf16.mxu0 %v4225_v55 }
  0x4e   : > { %3976 = vmatpush3.bf16.msra.mxu1 %v4200_v50  ;;  %v4239_v50 = vld [vmem:[%s5476_s3 + $0x1a0] sm:$0xff]  }
  0x4f   : > { %3689 = vmatprep.subr.bf16.mxu1 %v4202_v52  ;;  %v4251_v52 = vld [vmem:[%s5476_s3 + $0x238] sm:$0xff]  }
  0x50   : > { %4024 = vmatpush3.bf16.msra.mxu0 %v4225_v55  ;;  %v4243_v55 = vld [vmem:[%s5476_s3 + $0x1f0] sm:$0xff]  }
  0x51   : > { %3978 = vmatmul.mubr.bf16.vlgmr.msra.gmra.mrb[16].mxu1 %v4523_v48  ;;  %3825 = vmatprep.subr.bf16.mxu0 %v4228_v59  ;;  %v4299_v59 = vmov 0  }
  0x52   : > { %3690 = vmatpush3.bf16.msra.mxu1 %v4203_v54  ;;  %3981 = vmatprep.mubr.bf16.mxu1 %v4542_v53  ;;  %v4242_v54 = vld [vmem:[%s5476_s3 + $0x1a8] sm:$0xff]  }
  0x53   : > { %3691 = vmatprep.subr.bf16.mxu1 %v4206_v56  ;;  %902 = vmatmul.mubr.bf16.gmra.mrb[16].mxu0 %v4501_v42  ;;  %v4244_v56 = vld [vmem:[%s5476_s3 + $0x1b0] sm:$0xff]  }
  0x54   : > { %909 = vmatprep.mubr.bf16.mxu0 %v4568_v60  ;;  %4163 = vset.pattern.permute.xlu1 %v4299_v59 }
  0x55   : > { %4162 = vset.pattern.permute.xlu0 %v4299_v59 }
  0x56   : > { %3692 = vmatpush3.bf16.msra.mxu1 %v4207_v57  ;;  %v4246_v57 = vld [vmem:[%s5476_s3 + $0x1f8] sm:$0xff]  }
  0x57   : > { %3693 = vmatprep.subr.bf16.mxu1 %v4211_v58  ;;  %v4247_v58 = vld [vmem:[%s5476_s3 + $0x1b8] sm:$0xff]  }
  0x59   : > { %3982 = vmatmul.mubr.bf16.gmra.mrb[20].mxu1 %v4568_v60 }
  0x5a   : > { %3985 = vmatprep.mubr.bf16.mxu1 %v4571_v61  ;;  %3694 = vmatpush3.bf16.msra.mxu1 %v4212_v62  ;;  %v2649_v62 = vld [vmem:[%s4755_s11 + $0x10] sm:$0xff] }
  0x5b   : > { %3695 = vmatprep.subr.bf16.mxu1 %v4215_v63  ;;  %910 = vmatmul.mubr.bf16.gmra.mrb[20].mxu0 %v4523_v48  ;;  %v2650_v63 = vld [vmem:[%s4755_s11 + $0x18] sm:$0xff] }
  0x5c   : > { %917 = vmatprep.mubr.bf16.mxu0 %v4571_v61  ;;  %2691 = vperm.xlu1 %4163, %v2649_v62  }
  0x5e   : > { %3696 = vmatpush3.bf16.msra.mxu1 %v4216_v0  ;;  %v2648_v0 = vld [vmem:[%s4755_s11 + $0x8] sm:$0xff] }
  0x5f   : > { %3697 = vmatprep.subr.bf16.mxu1 %v4218_v1  ;;  %v2652_v1 = vld [vmem:[%s4755_s11 + $0x28] sm:$0xff] }
  0x60   : > { %2696 = vperm.xlu1 %4163, %v2650_v63  }
  0x61   : > { %3986 = vmatmul.mubr.bf16.gmra.mrb[24].mxu1 %v4593_v2 }
  0x62   : > { %3989 = vmatprep.mubr.bf16.mxu1 %v4596_v3  ;;  %3698 = vmatpush3.bf16.msra.mxu1 %v4219_v4  ;;  %v2651_v4 = vld [vmem:[%s4755_s11 + $0x20] sm:$0xff] }
  0x63   : > { %3699 = vmatprep.subr.bf16.mxu1 %v4221_v5  ;;  %918 = vmatmul.mubr.bf16.gmra.mrb[24].mxu0 %v4542_v53  ;;  %v2654_v5 = vld [vmem:[%s4755_s11 + $0x38] sm:$0xff] }
  0x64   : > { %925 = vmatprep.mubr.bf16.mxu0 %v4593_v2  ;;  %2706 = vperm.xlu1 %4163, %v2652_v1  }
  0x66   : > { %3700 = vmatpush3.bf16.msra.mxu1 %v4222_v6  ;;  %v2653_v6 = vld [vmem:[%s4755_s11 + $0x30] sm:$0xff] }
  0x67   : > { %3701 = vmatprep.subr.bf16.mxu1 %v4223_v7  ;;  %v2656_v7 = vld [vmem:[%s4755_s11 + $0x48] sm:$0xff] }
  0x68   : > { %2716 = vperm.xlu1 %4163, %v2654_v5  }
  0x69   : > { %3990 = vmatmul.mubr.bf16.gmra.mrb[28].mxu1 %v4616_v8 }
  0x6a   : > { %3993 = vmatprep.mubr.bf16.mxu1 %v4458_v20  ;;  %3702 = vmatpush3.bf16.msra.mxu1 %v4224_v9  ;;  %v2655_v9 = vld [vmem:[%s4755_s11 + $0x40] sm:$0xff] }
  0x6b   : > { %3703 = vmatprep.subr.bf16.mxu1 %v4226_v10  ;;  %926 = vmatmul.mubr.bf16.gmra.mrb[28].mxu0 %v4568_v60  ;;  %v2658_v10 = vld [vmem:[%s4755_s11 + $0x58] sm:$0xff] }
  0x6c   : > { %933 = vmatprep.mubr.bf16.mxu0 %v4596_v3  ;;  %2726 = vperm.xlu1 %4163, %v2656_v7  }
  0x6e   : > { %3704 = vmatpush3.bf16.msra.mxu1 %v4227_v13  ;;  %v2657_v13 = vld [vmem:[%s4755_s11 + $0x50] sm:$0xff] }
  0x6f   : > { %4057 = vmatprep.subr.bf16.mxu1 %v4230_v14 }
  0x70   : > { %2736 = vperm.xlu1 %4163, %v2658_v10  }
  0x71   : > { %3994 = vmatmul.mubr.bf16.gmra.mrb[32].mxu1 %v4475_v32 }
  0x72   : > { %3997 = vmatprep.mubr.bf16.mxu1 %v4421_v12 }
  0x73   : > { %934 = vmatmul.mubr.bf16.gmra.mrb[32].mxu0 %v4571_v61 }
  0x74   : > { %941 = vmatprep.mubr.bf16.mxu0 %v4616_v8 }
  0x79   : > { %3998 = vmatmul.mubr.bf16.gmra.mrb[36].mxu1 %v4461_v23 }
  0x7a   : > { %4001 = vmatprep.mubr.bf16.mxu1 %v4483_v35 }
  0x7b   : > { %942 = vmatmul.mubr.bf16.gmra.mrb[36].mxu0 %v4593_v2 }
  0x7c   : > { %949 = vmatprep.mubr.bf16.mxu0 %v4458_v20 }
  0x81   : > { %4002 = vmatmul.mubr.bf16.gmra.mrb[40].mxu1 %v4507_v44 }
  0x82   : > { %4005 = vmatprep.mubr.bf16.mxu1 %v4650_v21 }
  0x83   : > { %950 = vmatmul.mubr.bf16.gmra.mrb[40].mxu0 %v4596_v3 }
  0x84   : > { %957 = vmatprep.mubr.bf16.mxu0 %v4475_v32 }
  0x89   : > { %4006 = vmatmul.mubr.bf16.gmra.mrb[44].mxu1 %v4656_v28 }
  0x8a   : > { %1415 = vmatprep.mubr.bf16.mxu1 %v4418_v11 }
  0x8b   : > { %958 = vmatmul.mubr.bf16.gmra.mrb[44].mxu0 %v4616_v8 }
  0x8c   : > { %4025 = vmatprep.mubr.bf16.mxu0 %v4501_v42 }
  0x91   : > { %1416 = vmatmul.mubr.bf16.vlgmr.msra.gmra.mrb[48].mxu1 %v4477_v33 }
  0x92   : > { %4058 = vmatpush3.bf16.msra.mxu1 %v4230_v14  ;;  %1423 = vmatprep.mubr.bf16.mxu1 %v4468_v26  ;;  %v2660_v14 = vld [vmem:[%s4755_s11 + $0x68] sm:$0xff] }
  0x93   : > { %4059 = vmatprep.subr.bf16.mxu1 %v4235_v29  ;;  %4026 = vmatmul.mubr.bf16.vlgmr.msra.gmra.mrb[48].mxu0 %v4523_v48 }
  0x94   : > { %3826 = vmatpush3.bf16.msra.mxu0 %v4229_v31  ;;  %4029 = vmatprep.mubr.bf16.mxu0 %v4542_v53  ;;  %v2671_v31 = vld [vmem:[%s4755_s11 + $0xc0] sm:$0xff] }
  0x95   : > { %3827 = vmatprep.subr.bf16.mxu0 %v4231_v34  ;;  %2746 = vperm.xlu1 %4163, %v2660_v14   ;;  %v2674_v34 = vld [vmem:[%s4755_s11 + $0xd8] sm:$0xff] }
  0x96   : > { %4060 = vmatpush3.bf16.msra.mxu1 %v4235_v29  ;;  %v4806_v29 = vld [vmem:[%s4411_s18 + $0x60] sm:$0xff]  }
  0x97   : > { %4061 = vmatprep.subr.bf16.mxu1 %v4240_v30 }
  0x98   : > { %3828 = vmatpush3.bf16.msra.mxu0 %v4232_v37  ;;  %v2676_v37 = vld [vmem:[%s4755_s11 + $0xe8] sm:$0xff] }
  0x99   : > { %1424 = vmatmul.mubr.bf16.gmra.mrb[52].mxu1 %v4495_v40  ;;  %3829 = vmatprep.subr.bf16.mxu0 %v4233_v38  ;;  %v2675_v38 = vld [vmem:[%s4755_s11 + $0xe0] sm:$0xff] }
  0x9a   : > { %1431 = vmatprep.mubr.bf16.mxu1 %v4501_v42  ;;  %4062 = vmatpush3.bf16.msra.mxu1 %v4240_v30  ;;  %v2672_v30 = vld [vmem:[%s4755_s11 + $0xc8] sm:$0xff] }
  0x9b   : > { %4063 = vmatprep.subr.bf16.mxu1 %v4245_v36  ;;  %4030 = vmatmul.mubr.bf16.gmra.mrb[52].mxu0 %v4568_v60 }
  0x9c   : > { %4033 = vmatprep.mubr.bf16.mxu0 %v4571_v61  ;;  %3830 = vmatpush3.bf16.msra.mxu0 %v4234_v41  ;;  %v2677_v41 = vld [vmem:[%s4755_s11 + $0xf0] sm:$0xff] }
  0x9d   : > { %3831 = vmatprep.subr.bf16.mxu0 %v4236_v43  ;;  %2756 = vperm.xlu1 %4163, %v2662_v16  }
  0x9e   : > { %4064 = vmatpush3.bf16.msra.mxu1 %v4245_v36  ;;  %v2673_v36 = vld [vmem:[%s4755_s11 + $0xd0] sm:$0xff] }
  0x9f   : > { %4065 = vmatprep.subr.bf16.mxu1 %v4248_v39 }
  0xa0   : > { %3832 = vmatpush3.bf16.msra.mxu0 %v4237_v46 }
  0xa1   : > { %1432 = vmatmul.mubr.bf16.gmra.mrb[56].mxu1 %v4418_v11  ;;  %3833 = vmatprep.subr.bf16.mxu0 %v4238_v47 }
  0xa2   : > { %1439 = vmatprep.mubr.bf16.mxu1 %v4523_v48  ;;  %4066 = vmatpush3.bf16.msra.mxu1 %v4248_v39  ;;  %v2678_v39 = vld [vmem:[%s4755_s11 + $0xf8] sm:$0xff] }
  0xa3   : > { %4067 = vmatprep.subr.bf16.mxu1 %v4249_v45  ;;  %4034 = vmatmul.mubr.bf16.gmra.mrb[56].mxu0 %v4593_v2 }
  0xa4   : > { %4037 = vmatprep.mubr.bf16.mxu0 %v4596_v3  ;;  %3834 = vmatpush3.bf16.msra.mxu0 %v4239_v50 }
  0xa5   : > { %3835 = vmatprep.subr.bf16.mxu0 %v4241_v51 }
  0xa6   : > { %4068 = vmatpush3.bf16.msra.mxu1 %v4249_v45 }
  0xa7   : > { %4069 = vmatprep.subr.bf16.mxu1 %v4250_v49 }
  0xa8   : > { %3836 = vmatpush3.bf16.msra.mxu0 %v4242_v54 }
  0xa9   : > { %1440 = vmatmul.mubr.bf16.gmra.mrb[60].mxu1 %v4468_v26  ;;  %3837 = vmatprep.subr.bf16.mxu0 %v4243_v55 }
  0xaa   : > { %1447 = vmatprep.mubr.bf16.mxu1 %v4542_v53  ;;  %4070 = vmatpush3.bf16.msra.mxu1 %v4250_v49 }
  0xab   : > { %4071 = vmatprep.subr.bf16.mxu1 %v4251_v52  ;;  %4038 = vmatmul.mubr.bf16.gmra.mrb[60].mxu0 %v4616_v8 }
  0xac   : > { %4041 = vmatprep.mubr.bf16.mxu0 %v4458_v20  ;;  %3838 = vmatpush3.bf16.msra.mxu0 %v4244_v56 }
  0xad   : > { %3839 = vmatprep.subr.bf16.mxu0 %v4246_v57 }
  0xae   : > { %4072 = vmatpush3.bf16.msra.mxu1 %v4251_v52 }
  0xb0   : > { %3840 = vmatpush3.bf16.msra.mxu0 %v4247_v58 }
  0xb1   : > { %1448 = vmatmul.mubr.bf16.gmra.mrb[64].mxu1 %v4501_v42 }
  0xb2   : > { %1455 = vmatprep.mubr.bf16.mxu1 %v4568_v60 }
  0xb3   : > { %4042 = vmatmul.mubr.bf16.gmra.mrb[64].mxu0 %v4475_v32 }
  0xb4   : > { %4045 = vmatprep.mubr.bf16.mxu0 %v4421_v12  ;;  %v2647_v12 = vld [vmem:[%s4755_s11] sm:$0xff] }
  0xb5   : > { %2681 = vperm.xlu0 %4162, %v2647_v12  }
  0xb9   : > { %1456 = vmatmul.mubr.bf16.gmra.mrb[68].mxu1 %v4523_v48  ;;  %2686 = vperm.xlu0 %4162, %v2648_v0  }
  0xba   : > { %1463 = vmatprep.mubr.bf16.mxu1 %v4571_v61 }
  0xbb   : > { %4046 = vmatmul.mubr.bf16.gmra.mrb[68].mxu0 %v4461_v23 }
  0xbc   : > { %4049 = vmatprep.mubr.bf16.mxu0 %v4483_v35 }
  0xbd   : > { %2701 = vperm.xlu0 %4162, %v2651_v4  }
  0xc1   : > { %1464 = vmatmul.mubr.bf16.gmra.mrb[72].mxu1 %v4542_v53  ;;  %2711 = vperm.xlu0 %4162, %v2653_v6  }
  0xc2   : > { %1471 = vmatprep.mubr.bf16.mxu1 %v4593_v2 }
  0xc3   : > { %4050 = vmatmul.mubr.bf16.gmra.mrb[72].mxu0 %v4507_v44 }
  0xc4   : > { %4053 = vmatprep.mubr.bf16.mxu0 %v4650_v21 }
  0xc5   : > { %2721 = vperm.xlu0 %4162, %v2655_v9  }
  0xc9   : > { %1472 = vmatmul.mubr.bf16.gmra.mrb[76].mxu1 %v4568_v60  ;;  %2731 = vperm.xlu0 %4162, %v2657_v13  }
  0xca   : > { %1479 = vmatprep.mubr.bf16.mxu1 %v4596_v3 }
  0xcb   : > { %4054 = vmatmul.mubr.bf16.gmra.mrb[76].mxu0 %v4656_v28 }
  0xcc   : > { %2093 = vmatprep.mubr.bf16.mxu0 %v4418_v11  ;;  %v2664_v11 = vld [vmem:[%s4755_s11 + $0x88] sm:$0xff] }
  0xcd   : > { %2741 = vperm.xlu0 %4162, %v2659_v15   ;;  %2766 = vperm.xlu1 %4163, %v2664_v11  }
  0xd1   : > { %1480 = vmatmul.mubr.bf16.gmra.mrb[80].mxu1 %v4571_v61  ;;  %2751 = vperm.xlu0 %4162, %v2661_v17  }
  0xd2   : > { %1487 = vmatprep.mubr.bf16.mxu1 %v4616_v8  ;;  %2776 = vperm.xlu1 %4163, %v2666_v19  }
  0xd3   : > { %2094 = vmatmul.mubr.bf16.vlgmr.msra.gmra.mrb[80].mxu0 %v4477_v33  ;;  %v2668_v33 = vld [vmem:[%s4755_s11 + $0xa8] sm:$0xff] }
  0xd4   : > { %2101 = vmatprep.mubr.bf16.mxu0 %v4468_v26 }
  0xd5   : > { %2761 = vperm.xlu0 %4162, %v2663_v18  }
  0xd6   : > { %2786 = vperm.xlu1 %4163, %v2668_v33  }
  0xd9   : > { %1488 = vmatmul.mubr.bf16.gmra.mrb[84].mxu1 %v4593_v2  ;;  %2771 = vperm.xlu0 %4162, %v2665_v22   ;;  %v4254_v22 = vld [vmem:[%s4411_s18 + $0x50] sm:$0xff]  }
  0xda   : > { %1495 = vmatprep.mubr.bf16.mxu1 %v4458_v20  ;;  %2796 = vperm.xlu1 %4163, %v2670_v25  }
  0xdb   : > { %2102 = vmatmul.mubr.bf16.gmra.mrb[84].mxu0 %v4495_v40  ;;  %v4252_v40 = vld [vmem:[%s4411_s18] sm:$0xff]  }
  0xdc   : > { %2109 = vmatprep.mubr.bf16.mxu0 %v4501_v42 }
  0xdd   : > { %2781 = vperm.xlu0 %4162, %v2667_v24  }
  0xde   : > { %2806 = vperm.xlu1 %4163, %v2672_v30  }
  0xe1   : > { %1496 = vmatmul.mubr.bf16.gmra.mrb[88].mxu1 %v4596_v3  ;;  %2791 = vperm.xlu0 %4162, %v2669_v27  }
  0xe2   : > { %1503 = vmatprep.mubr.bf16.mxu1 %v4475_v32  ;;  %2816 = vperm.xlu1 %4163, %v2674_v34  }
  0xe3   : > { %2110 = vmatmul.mubr.bf16.gmra.mrb[88].mxu0 %v4252_v40 }
  0xe4   : > { %2117 = vmatprep.mubr.bf16.mxu0 %v4523_v48 }
  0xe5   : > { %2801 = vperm.xlu0 %4162, %v2671_v31  }
  0xe6   : > { %2826 = vperm.xlu1 %4163, %v2676_v37  }
  0xe9   : > { %1504 = vmatmul.mubr.bf16.gmra.mrb[92].mxu1 %v4616_v8  ;;  %2811 = vperm.xlu0 %4162, %v2673_v36  }
  0xea   : > { %1511 = vmatprep.mubr.bf16.mxu1 %v4806_v29  ;;  %2836 = vperm.xlu1 %4163, %v2678_v39   ;;  %v4255_v39 = vld [vmem:[%s4411_s18 + $0x58] sm:$0xff]  }
  0xeb   : > { %2118 = vmatmul.mubr.bf16.gmra.mrb[92].mxu0 %v4468_v26 }
  0xec   : > { %2125 = vmatprep.mubr.bf16.mxu0 %v4542_v53 }
  0xed   : > { %2821 = vperm.xlu0 %4162, %v2675_v38  }
  0xf1   : > { %1512 = vmatmul.mubr.bf16.gmra.mrb[96].mxu1 %v4458_v20  ;;  %2831 = vperm.xlu0 %4162, %v2677_v41  }
  0xf2   : > { %1519 = vmatprep.mubr.bf16.mxu1 %v4461_v23 }
  0xf3   : > { %2126 = vmatmul.mubr.bf16.gmra.mrb[96].mxu0 %v4501_v42 }
  0xf4   : > { %2133 = vmatprep.mubr.bf16.mxu0 %v4568_v60 }
  0xf9   : > { %1520 = vmatmul.mubr.bf16.gmra.mrb[100].mxu1 %v4475_v32 }
  0xfa   : > { %1527 = vmatprep.mubr.bf16.mxu1 %v4483_v35 }
  0xfb   : > { %2134 = vmatmul.mubr.bf16.gmra.mrb[100].mxu0 %v4523_v48 }
  0xfc   : > { %2141 = vmatprep.mubr.bf16.mxu0 %v4571_v61 }
 0x101   : > { %1528 = vmatmul.mubr.bf16.gmra.mrb[104].mxu1 %v4806_v29 }
 0x102   : > { %1535 = vmatprep.mubr.bf16.mxu1 %v4507_v44 }
 0x103   : > { %2142 = vmatmul.mubr.bf16.gmra.mrb[104].mxu0 %v4542_v53 }
 0x104   : > { %v3641_v20 = vpop.f32.mrb[0].mxu1  ;;  %2149 = vmatprep.mubr.bf16.mxu0 %v4593_v2  ;;  %v3569_v32 = vpop.f32.mrb[0].mxu0 }
 0x105   : > { %v3642_v26 = vpop.f32.mrb[1].mxu1  ;;  %v3570_v35 = vpop.f32.mrb[1].mxu0 }
 0x106   : > { %v4829_v43 = vadd.f32 %v3642_v26, %v3641_v20  ;;  %v3644_v45 = vpop.f32.mrb[2].mxu1  ;;  %v3571_v49 = vadd.f32 %v3570_v35, %v3569_v32  ;;  %v3572_v44 = vpop.f32.mrb[2].mxu0 }
 0x107   : > { %v3645_v46 = vpop.f32.mrb[3].mxu1  ;;  %v3573_v51 = vpop.f32.mrb[3].mxu0 }
 0x108   : > { %v4832_v47 = vadd.f32 %v3645_v46, %v3644_v45  ;;  %v3574_v54 = vadd.f32 %v3573_v51, %v3572_v44 }
 0x109   : > { %1536 = vmatmul.mubr.bf16.gmra.mrb[108].mxu1 %v4461_v23 }
 0x10a   : > { %4073 = vmatprep.mubr.bf16.mxu1 %v4501_v42 }
 0x10b   : > { %2150 = vmatmul.mubr.bf16.gmra.mrb[108].mxu0 %v4568_v60 }
 0x10c   : > { %v3647_v50 = vpop.f32.mrb[4].mxu1  ;;  %2157 = vmatprep.mubr.bf16.mxu0 %v4596_v3  ;;  %v3575_v23 = vpop.f32.mrb[4].mxu0 }
 0x10d   : > { %v3648_v52 = vpop.f32.mrb[5].mxu1  ;;  %v3576_v42 = vpop.f32.mrb[5].mxu0 }
 0x10e   : > { %v4837_v55 = vadd.f32 %v3648_v52, %v3647_v50  ;;  %v3650_v56 = vpop.f32.mrb[6].mxu1  ;;  %v3577_v59 = vadd.f32 %v3576_v42, %v3575_v23  ;;  %v3578_v62 = vpop.f32.mrb[6].mxu0 }
 0x10f   : > { %v3651_v57 = vpop.f32.mrb[7].mxu1  ;;  %v3579_v63 = vpop.f32.mrb[7].mxu0 }
 0x110   : > { %v4840_v58 = vadd.f32 %v3651_v57, %v3650_v56  ;;  %v3580_v1 = vadd.f32 %v3579_v63, %v3578_v62 }
 0x111   : > { %4074 = vmatmul.mubr.bf16.vlgmr.msra.gmra.mrb[112].mxu1 %v4523_v48 }
 0x112   : > { %4077 = vmatprep.mubr.bf16.mxu1 %v4542_v53 }
 0x113   : > { %2158 = vmatmul.mubr.bf16.gmra.mrb[112].mxu0 %v4571_v61 }
 0x114   : > { %v3653_v12 = vpop.f32.mrb[8].mxu1  ;;  %2165 = vmatprep.mubr.bf16.mxu0 %v4616_v8 }
 0x115   : > { %v3654_v0 = vpop.f32.mrb[9].mxu1 }
 0x116   : > { %v4845_v4 = vadd.f32 %v3654_v0, %v3653_v12  ;;  %v3656_v5 = vpop.f32.mrb[10].mxu1  ;;  %v3581_v48 = vpop.f32.mrb[8].mxu0 }
 0x117   : > { %v3657_v6 = vpop.f32.mrb[11].mxu1  ;;  %v3582_v53 = vpop.f32.mrb[9].mxu0 }
 0x118   : > { %v4848_v7 = vadd.f32 %v3657_v6, %v3656_v5  ;;  %v3583_v9 = vadd.f32 %v3582_v53, %v3581_v48  ;;  %v3584_v10 = vpop.f32.mrb[10].mxu0  ;;  %v4256_v53 = vld [vmem:[%s4411_s18 + $0x68] sm:$0xff]  }
 0x119   : > { %4078 = vmatmul.mubr.bf16.gmra.mrb[116].mxu1 %v4568_v60  ;;  %v3585_v14 = vpop.f32.mrb[11].mxu0 }
 0x11a   : > { %4081 = vmatprep.mubr.bf16.mxu1 %v4571_v61  ;;  %v3586_v16 = vadd.f32 %v3585_v14, %v3584_v10  ;;  %v4257_v10 = vld [vmem:[%s4411_s18 + $0x70] sm:$0xff]  }
 0x11b   : > { %2166 = vmatmul.mubr.bf16.gmra.mrb[116].mxu0 %v4593_v2 }
 0x11c   : > { %v3659_v13 = vpop.f32.mrb[12].mxu1  ;;  %2173 = vmatprep.mubr.bf16.mxu0 %v4254_v22 }
 0x11d   : > { %v3660_v15 = vpop.f32.mrb[13].mxu1 }
 0x11e   : > { %v4853_v17 = vadd.f32 %v3660_v15, %v3659_v13  ;;  %v3662_v11 = vpop.f32.mrb[14].mxu1  ;;  %v3587_v60 = vpop.f32.mrb[12].mxu0 }
 0x11f   : > { %v3663_v18 = vpop.f32.mrb[15].mxu1  ;;  %v3588_v61 = vpop.f32.mrb[13].mxu0 }
 0x120   : > { %v4856_v19 = vadd.f32 %v3663_v18, %v3662_v11  ;;  %v3589_v33 = vadd.f32 %v3588_v61, %v3587_v60  ;;  %v3590_v24 = vpop.f32.mrb[14].mxu0 }
 0x121   : > { %4082 = vmatmul.mubr.bf16.gmra.mrb[120].mxu1 %v4593_v2  ;;  %v3591_v27 = vpop.f32.mrb[15].mxu0 }
 0x122   : > { %4085 = vmatprep.mubr.bf16.mxu1 %v4596_v3  ;;  %v3592_v31 = vadd.f32 %v3591_v27, %v3590_v24 }
 0x123   : > { %2174 = vmatmul.mubr.bf16.gmra.mrb[120].mxu0 %v4596_v3 }
 0x124   : > { %v3979_v25 = vpop.f32.mrb[16].mxu1  ;;  %2181 = vmatprep.mubr.bf16.mxu0 %v4255_v39 }
 0x125   : > { %v4861_v40 = vadd.f32 %v3979_v25, %v3577_v59  ;;  %v1032_v30 = vpop.f32.mrb[17].mxu1  ;;  %v4258_v25 = vld [vmem:[%s4411_s18 + $0x78] sm:$0xff]  }
 0x126   : > { %v4863_v34 = vadd.f32 %v3571_v49, %v1032_v30  ;;  %v3980_v36 = vpop.f32.mrb[18].mxu1  ;;  %v3593_v41 = vpop.f32.mrb[16].mxu0 }
 0x127   : > { %v4866_v37 = vadd.f32 %v3980_v36, %v3580_v1  ;;  %v1035_v2 = vpop.f32.mrb[19].mxu1  ;;  %v3594_v20 = vpop.f32.mrb[17].mxu0 }
 0x128   : > { %v4868_v38 = vadd.f32 %v3574_v54, %v1035_v2  ;;  %v3595_v26 = vadd.f32 %v3594_v20, %v3593_v41  ;;  %v3596_v45 = vpop.f32.mrb[18].mxu0 }
 0x129   : > { %4086 = vmatmul.mubr.bf16.gmra.mrb[124].mxu1 %v4616_v8  ;;  %v3597_v32 = vpop.f32.mrb[19].mxu0 }
 0x12a   : > { %4089 = vmatprep.mubr.bf16.mxu1 %v4254_v22  ;;  %v3598_v3 = vadd.f32 %v3597_v32, %v3596_v45 }
 0x12b   : > { %2182 = vmatmul.mubr.bf16.gmra.mrb[124].mxu0 %v4616_v8 }
 0x12c   : > { %v3983_v46 = vpop.f32.mrb[20].mxu1  ;;  %2189 = vmatprep.mubr.bf16.mxu0 %v4806_v29 }
 0x12d   : > { %v4872_v35 = vadd.f32 %v3983_v46, %v3589_v33  ;;  %v1048_v49 = vpop.f32.mrb[21].mxu1 }
 0x12e   : > { %v4874_v44 = vadd.f32 %v3583_v9, %v1048_v49  ;;  %v3984_v50 = vpop.f32.mrb[22].mxu1  ;;  %v3599_v56 = vpop.f32.mrb[20].mxu0 }
 0x12f   : > { %v4877_v51 = vadd.f32 %v3984_v50, %v3592_v31  ;;  %v1051_v52 = vpop.f32.mrb[23].mxu1  ;;  %v3600_v57 = vpop.f32.mrb[21].mxu0 }
 0x130   : > { %v4879_v54 = vadd.f32 %v3586_v16, %v1051_v52  ;;  %v3601_v23 = vadd.f32 %v3600_v57, %v3599_v56  ;;  %v3602_v42 = vpop.f32.mrb[22].mxu0 }
 0x131   : > { %4090 = vmatmul.mubr.bf16.gmra.mrb[128].mxu1 %v4255_v39  ;;  %v3603_v62 = vpop.f32.mrb[23].mxu0 }
 0x132   : > { %4093 = vmatprep.mubr.bf16.mxu1 %v4806_v29  ;;  %v3604_v8 = vadd.f32 %v3603_v62, %v3602_v42 }
 0x133   : > { %2190 = vmatmul.mubr.bf16.gmra.mrb[128].mxu0 %v4254_v22 }
 0x134   : > { %v3987_v59 = vpop.f32.mrb[24].mxu1  ;;  %2197 = vmatprep.mubr.bf16.mxu0 %v4256_v53 }
 0x135   : > { %v1064_v12 = vpop.f32.mrb[25].mxu1  ;;  %v4883_v63 = vadd.f32 %v3987_v59, %v3601_v23 }
 0x136   : > { %v4885_v0 = vadd.f32 %v3595_v26, %v1064_v12  ;;  %v3988_v1 = vpop.f32.mrb[26].mxu1  ;;  %v3605_v9 = vpop.f32.mrb[24].mxu0 }
 0x137   : > { %v1067_v5 = vpop.f32.mrb[27].mxu1  ;;  %v4887_v6 = vadd.f32 %v3988_v1, %v3604_v8  ;;  %v3606_v13 = vpop.f32.mrb[25].mxu0 }
 0x138   : > { %v4889_v48 = vadd.f32 %v3598_v3, %v1067_v5  ;;  %v3607_v14 = vadd.f32 %v3606_v13, %v3605_v9  ;;  %v3608_v15 = vpop.f32.mrb[26].mxu0 }
 0x139   : > { %4094 = vmatmul.mubr.bf16.gmra.mrb[132].mxu1 %v4256_v53  ;;  %v3609_v11 = vpop.f32.mrb[27].mxu0 }
 0x13a   : > { %4097 = vmatprep.mubr.bf16.mxu1 %v4257_v10  ;;  %v3610_v60 = vadd.f32 %v3609_v11, %v3608_v15 }
 0x13b   : > { %2198 = vmatmul.mubr.bf16.gmra.mrb[132].mxu0 %v4255_v39 }
 0x13c   : > { %v3991_v16 = vpop.f32.mrb[28].mxu1  ;;  %2205 = vmatprep.mubr.bf16.mxu0 %v4257_v10 }
 0x13d   : > { %v1080_v18 = vpop.f32.mrb[29].mxu1 }
 0x13e   : > { %v4893_v22 = vadd.f32 %v3607_v14, %v1080_v18  ;;  %v3992_v61 = vpop.f32.mrb[30].mxu1  ;;  %v3611_v27 = vpop.f32.mrb[28].mxu0 }
 0x13f   : > { %v1083_v33 = vpop.f32.mrb[31].mxu1  ;;  %v3612_v30 = vpop.f32.mrb[29].mxu0 }
 0x140   : > { %v4895_v24 = vadd.f32 %v3610_v60, %v1083_v33  ;;  %v3613_v31 = vadd.f32 %v3612_v30, %v3611_v27  ;;  %v3614_v36 = vpop.f32.mrb[30].mxu0 }
 0x141   : > { %4098 = vmatmul.mubr.bf16.gmra.mrb[136].mxu1 %v4258_v25  ;;  %v3615_v41 = vpop.f32.mrb[31].mxu0 }
 0x142   : > { %4101 = vmatprep.mubr.bf16.mxu1 %v4650_v21  ;;  %v4899_v26 = vadd.f32 %v3991_v16, %v3613_v31  ;;  %v3616_v45 = vadd.f32 %v3615_v41, %v3614_v36 }
 0x143   : > { %2206 = vmatmul.mubr.bf16.gmra.mrb[136].mxu0 %v4806_v29 }
 0x144   : > { %v3995_v2 = vpop.f32.mrb[32].mxu1  ;;  %v4902_v32 = vadd.f32 %v3992_v61, %v3616_v45  ;;  %2213 = vmatprep.mubr.bf16.mxu0 %v4258_v25 }
 0x145   : > { %v1096_v20 = vpop.f32.mrb[33].mxu1 }
 0x146   : > { %v3996_v46 = vpop.f32.mrb[34].mxu1  ;;  %v3617_v49 = vpop.f32.mrb[32].mxu0 }
 0x147   : > { %v1099_v39 = vpop.f32.mrb[35].mxu1  ;;  %v3618_v21 = vpop.f32.mrb[33].mxu0 }
 0x148   : > { %v3619_v3 = vadd.f32 %v3618_v21, %v3617_v49  ;;  %v3620_v50 = vpop.f32.mrb[34].mxu0 }
 0x149   : > { %4102 = vmatmul.mubr.bf16.gmra.mrb[140].mxu1 %v4656_v28  ;;  %v3621_v56 = vpop.f32.mrb[35].mxu0 }
 0x14a   : > { %v4905_v23 = vadd.f32 %v3619_v3, %v1096_v20  ;;  %v3622_v42 = vadd.f32 %v3621_v56, %v3620_v50 }
 0x14b   : > { %2214 = vmatmul.mubr.bf16.gmra.mrb[140].mxu0 %v4256_v53 }
 0x14c   : > { %v3999_v52 = vpop.f32.mrb[36].mxu1  ;;  %v4907_v29 = vadd.f32 %v3622_v42, %v1099_v39 }
 0x14d   : > { %v1112_v57 = vpop.f32.mrb[37].mxu1 }
 0x14e   : > { %v4000_v59 = vpop.f32.mrb[38].mxu1  ;;  %v3623_v12 = vpop.f32.mrb[36].mxu0 }
 0x14f   : > { %v1115_v62 = vpop.f32.mrb[39].mxu1  ;;  %v3624_v8 = vpop.f32.mrb[37].mxu0 }
 0x150   : > { %v3625_v1 = vadd.f32 %v3624_v8, %v3623_v12  ;;  %v3626_v5 = vpop.f32.mrb[38].mxu0 }
 0x151   : > { %v3627_v9 = vpop.f32.mrb[39].mxu0 }
 0x152   : > { %v4912_v14 = vadd.f32 %v3995_v2, %v3625_v1  ;;  %v3628_v15 = vadd.f32 %v3627_v9, %v3626_v5  ;;  %v1769_v1 = vlaneseq }
 0x154   : > { %v4003_v28 = vpop.f32.mrb[40].mxu1  ;;  %v4920_v60 = vadd.f32 %v3996_v46, %v3628_v15  ;;  %v4945_v9 = vshrl.u32 %v1769_v1, 7 }
 0x155   : > { %v4910_v10 = vadd.f32 %v4003_v28, %v4837_v55  ;;  %v1128_v13 = vpop.f32.mrb[41].mxu1 }
 0x156   : > { %v4915_v16 = vadd.f32 %v4829_v43, %v1128_v13  ;;  %v4004_v53 = vpop.f32.mrb[42].mxu1  ;;  %v3629_v33 = vpop.f32.mrb[40].mxu0  ;;  %vm1771_vm0 = vcmp.lt.s32.totalorder %v4945_v9, 1  ;;  %vm2447_vm1 = vcmp.lt.s32.totalorder %v4945_v9, 7 }
 0x157   : > { %v4918_v11 = vadd.f32 %v4004_v53, %v4840_v58  ;;  %v1131_v18 = vpop.f32.mrb[43].mxu1  ;;  %v3630_v55 = vpop.f32.mrb[41].mxu0 }
 0x158   : > { %v4923_v61 = vadd.f32 %v4832_v47, %v1131_v18  ;;  %v3631_v25 = vadd.f32 %v3630_v55, %v3629_v33  ;;  %v3632_v27 = vpop.f32.mrb[42].mxu0 }
 0x159   : > { %v3633_v31 = vpop.f32.mrb[43].mxu0 }
 0x15a   : > { %v4928_v2 = vadd.f32 %v3631_v25, %v1112_v57  ;;  %v3634_v58 = vadd.f32 %v3633_v31, %v3632_v27 }
 0x15c   : > { %v4007_v30 = vpop.f32.mrb[44].mxu1  ;;  %v4936_v46 = vadd.f32 %v3634_v58, %v1115_v62 }
 0x15d   : > { %v4926_v36 = vadd.f32 %v4007_v30, %v4853_v17  ;;  %v1144_v43 = vpop.f32.mrb[45].mxu1 }
 0x15e   : > { %v4931_v41 = vadd.f32 %v4845_v4, %v1144_v43  ;;  %v4008_v20 = vpop.f32.mrb[46].mxu1  ;;  %v3635_v49 = vpop.f32.mrb[44].mxu0 }
 0x15f   : > { %v4934_v47 = vadd.f32 %v4008_v20, %v4856_v19  ;;  %v1147_v45 = vpop.f32.mrb[47].mxu1  ;;  %v3636_v17 = vpop.f32.mrb[45].mxu0 }
 0x160   : > { %v4939_v39 = vadd.f32 %v4848_v7, %v1147_v45  ;;  %v3637_v21 = vadd.f32 %v3636_v17, %v3635_v49  ;;  %v3638_v3 = vpop.f32.mrb[46].mxu0 }
 0x161   : > { %v3639_v56 = vpop.f32.mrb[47].mxu0 }
 0x162   : > { %v4941_v42 = vadd.f32 %v3999_v52, %v3637_v21  ;;  %v3640_v4 = vadd.f32 %v3639_v56, %v3638_v3 }
 0x164   : > { %v3705_v50 = vpop.f32.mrb[48].mxu1  ;;  %v4943_v5 = vadd.f32 %v4000_v59, %v3640_v4 }
 0x165   : > { %v3706_v57 = vpop.f32.mrb[49].mxu1 }
 0x166   : > { %v3707_v12 = vadd.f32 %v3706_v57, %v3705_v50  ;;  %v3708_v8 = vpop.f32.mrb[50].mxu1  ;;  %v4027_v28 = vpop.f32.mrb[48].mxu0 }
 0x167   : > { %v3709_v19 = vpop.f32.mrb[51].mxu1  ;;  %v1578_v7 = vpop.f32.mrb[49].mxu0 }
 0x168   : > { %v3710_v62 = vadd.f32 %v3709_v19, %v3708_v8  ;;  %v4947_v13 = vadd.f32 %v3707_v12, %v1578_v7  ;;  %v4028_v15 = vpop.f32.mrb[50].mxu0 }
 0x169   : > { %v1581_v18 = vpop.f32.mrb[51].mxu0 }
 0x16a   : > { %v1582_v52 = vadd.f32 %v3710_v62, %v1581_v18  ;;  %v5480_v59 = vrot.slane %v4947_v13, 7 }
 0x16c   : > { %v3711_v53 = vpop.f32.mrb[52].mxu1  ;;  %v1738_v30 = vrot.slane %v1582_v52, 7 }
 0x16d   : > { %v3712_v33 = vpop.f32.mrb[53].mxu1 }
 0x16e   : > { %v3713_v55 = vadd.f32 %v3712_v33, %v3711_v53  ;;  %v3714_v25 = vpop.f32.mrb[54].mxu1  ;;  %v1802_v58 = vsel %vm1771_vm0, %v5480_v59, %v1738_v30  ;;  %v4031_v20 = vpop.f32.mrb[52].mxu0 }
 0x16f   : > { %v3715_v27 = vpop.f32.mrb[55].mxu1  ;;  %v4956_v17 = vadd.f32 %v1802_v58, %v4868_v38  ;;  %v1594_v21 = vpop.f32.mrb[53].mxu0 }
 0x170   : > { %v1587_v31 = vadd.f32 %v4027_v28, %v3713_v55  ;;  %v3716_v43 = vadd.f32 %v3715_v27, %v3714_v25  ;;  %v4032_v50 = vpop.f32.mrb[54].mxu0 }
 0x171   : > { %v1597_v4 = vpop.f32.mrb[55].mxu0 }
 0x172   : > { %v1739_v45 = vrot.slane %v1587_v31, 7  ;;  %v1590_v49 = vadd.f32 %v4028_v15, %v3716_v43 }
 0x174   : > { %v1801_v3 = vsel %vm1771_vm0, %v1738_v30, %v1739_v45  ;;  %v1740_v56 = vrot.slane %v1590_v49, 7  ;;  %v3717_v57 = vpop.f32.mrb[56].mxu1 }
 0x175   : > { %v3718_v12 = vpop.f32.mrb[57].mxu1  ;;  %v4961_v8 = vadd.f32 %v1801_v3, %v4861_v40 }
 0x176   : > { %v1800_v19 = vsel %vm1771_vm0, %v1739_v45, %v1740_v56  ;;  %v3719_v1 = vadd.f32 %v3718_v12, %v3717_v57  ;;  %v3720_v62 = vpop.f32.mrb[58].mxu1  ;;  %v4035_v53 = vpop.f32.mrb[56].mxu0 }
 0x177   : > { %v3721_v28 = vpop.f32.mrb[59].mxu1  ;;  %v4966_v38 = vadd.f32 %v1800_v19, %v4866_v37  ;;  %v1610_v52 = vpop.f32.mrb[57].mxu0 }
 0x178   : > { %v1595_v7 = vadd.f32 %v3719_v1, %v1594_v21  ;;  %v3722_v15 = vadd.f32 %v3721_v28, %v3720_v62  ;;  %v4036_v40 = vpop.f32.mrb[58].mxu0 }
 0x179   : > { %v1613_v30 = vpop.f32.mrb[59].mxu0 }
 0x17a   : > { %v1741_v18 = vrot.slane %v1595_v7, 7  ;;  %v1598_v33 = vadd.f32 %v3722_v15, %v1597_v4 }
 0x17c   : > { %v1799_v55 = vsel %vm1771_vm0, %v1740_v56, %v1741_v18  ;;  %v1742_v25 = vrot.slane %v1598_v33, 7  ;;  %v3723_v27 = vpop.f32.mrb[60].mxu1 }
 0x17d   : > { %v3724_v31 = vpop.f32.mrb[61].mxu1  ;;  %v4971_v43 = vadd.f32 %v1799_v55, %v4874_v44 }
 0x17e   : > { %v1798_v37 = vsel %vm1771_vm0, %v1741_v18, %v1742_v25  ;;  %v3725_v58 = vadd.f32 %v3724_v31, %v3723_v27  ;;  %v3726_v45 = vpop.f32.mrb[62].mxu1  ;;  %v4978_v56 = vpop.f32.mrb[60].mxu0 }
 0x17f   : > { %v3727_v49 = vpop.f32.mrb[63].mxu1  ;;  %v4976_v21 = vadd.f32 %v1798_v37, %v4879_v54  ;;  %v1626_v19 = vpop.f32.mrb[61].mxu0 }
 0x180   : > { %v1603_v3 = vadd.f32 %v4031_v20, %v3725_v58  ;;  %v3728_v57 = vadd.f32 %v3727_v49, %v3726_v45  ;;  %v4982_v1 = vpop.f32.mrb[62].mxu0 }
 0x181   : > { %v1629_v7 = vpop.f32.mrb[63].mxu0 }
 0x182   : > { %v1743_v4 = vrot.slane %v1603_v3, 7  ;;  %v1606_v12 = vadd.f32 %v4032_v50, %v3728_v57 }
 0x184   : > { %v1797_v44 = vsel %vm1771_vm0, %v1742_v25, %v1743_v4  ;;  %v1744_v62 = vrot.slane %v1606_v12, 7  ;;  %v3729_v28 = vpop.f32.mrb[64].mxu1 }
 0x185   : > { %v3730_v15 = vpop.f32.mrb[65].mxu1  ;;  %v4985_v18 = vadd.f32 %v1797_v44, %v4872_v35 }
 0x186   : > { %v1796_v54 = vsel %vm1771_vm0, %v1743_v4, %v1744_v62  ;;  %v3731_v20 = vadd.f32 %v3730_v15, %v3729_v28  ;;  %v3732_v33 = vpop.f32.mrb[66].mxu1  ;;  %v4992_v31 = vpop.f32.mrb[64].mxu0 }
 0x187   : > { %v3733_v55 = vpop.f32.mrb[67].mxu1  ;;  %v4990_v50 = vadd.f32 %v1796_v54, %v4877_v51  ;;  %v4994_v45 = vpop.f32.mrb[65].mxu0 }
 0x188   : > { %v1611_v27 = vadd.f32 %v3731_v20, %v1610_v52  ;;  %v3734_v25 = vadd.f32 %v3733_v55, %v3732_v33  ;;  %v4998_v49 = vpop.f32.mrb[66].mxu0 }
 0x189   : > { %v5000_v4 = vpop.f32.mrb[67].mxu0 }
 0x18a   : > { %v1745_v37 = vrot.slane %v1611_v27, 7  ;;  %v1614_v58 = vadd.f32 %v3734_v25, %v1613_v30 }
 0x18c   : > { %v1795_v35 = vsel %vm1771_vm0, %v1744_v62, %v1745_v37  ;;  %v1746_v3 = vrot.slane %v1614_v58, 7  ;;  %v3735_v57 = vpop.f32.mrb[68].mxu1 }
 0x18d   : > { %v3736_v12 = vpop.f32.mrb[69].mxu1  ;;  %v5003_v51 = vadd.f32 %v1795_v35, %v4885_v0 }
 0x18e   : > { %v1794_v52 = vsel %vm1771_vm0, %v1745_v37, %v1746_v3  ;;  %v3737_v44 = vadd.f32 %v3736_v12, %v3735_v57  ;;  %v3738_v30 = vpop.f32.mrb[70].mxu1  ;;  %v5010_v20 = vpop.f32.mrb[68].mxu0 }
 0x18f   : > { %v3739_v28 = vpop.f32.mrb[71].mxu1  ;;  %v5008_v15 = vadd.f32 %v1794_v52, %v4889_v48  ;;  %v5012_v27 = vpop.f32.mrb[69].mxu0 }
 0x190   : > { %v1619_v62 = vadd.f32 %v4035_v53, %v3737_v44  ;;  %v3740_v54 = vadd.f32 %v3739_v28, %v3738_v30  ;;  %v5016_v25 = vpop.f32.mrb[70].mxu0 }
 0x191   : > { %5484 = vst [vmem:[#allocation3_spill] sm:$0xff] %v5008_v15  ;;  %v5018_v35 = vpop.f32.mrb[71].mxu0 }
 0x192   : > { %v1747_v33 = vrot.slane %v1619_v62, 7  ;;  %v1622_v55 = vadd.f32 %v4036_v40, %v3740_v54 }
 0x194   : > { %v1793_v0 = vsel %vm1771_vm0, %v1746_v3, %v1747_v33  ;;  %v1748_v37 = vrot.slane %v1622_v55, 7  ;;  %v3741_v58 = vpop.f32.mrb[72].mxu1 }
 0x195   : > { %v3742_v57 = vpop.f32.mrb[73].mxu1  ;;  %v5021_v48 = vadd.f32 %v1793_v0, %v4883_v63 }
 0x196   : > { %v1792_v53 = vsel %vm1771_vm0, %v1747_v33, %v1748_v37  ;;  %v3743_v12 = vadd.f32 %v3742_v57, %v3741_v58  ;;  %v3744_v40 = vpop.f32.mrb[74].mxu1  ;;  %v5028_v28 = vpop.f32.mrb[72].mxu0 }
 0x197   : > { %v3745_v52 = vpop.f32.mrb[75].mxu1  ;;  %v5026_v44 = vadd.f32 %v1792_v53, %v4887_v6  ;;  %v5030_v55 = vpop.f32.mrb[73].mxu0 }
 0x198   : > { %v1627_v3 = vadd.f32 %v3743_v12, %v1626_v19  ;;  %v3746_v30 = vadd.f32 %v3745_v52, %v3744_v40  ;;  %v5034_v0 = vpop.f32.mrb[74].mxu0 }
 0x199   : > { %5485 = vst [vmem:[#allocation4_spill] sm:$0xff] %v5026_v44  ;;  %v5036_v57 = vpop.f32.mrb[75].mxu0 }
 0x19a   : > { %v1749_v62 = vrot.slane %v1627_v3, 7  ;;  %v1630_v54 = vadd.f32 %v3746_v30, %v1629_v7 }
 0x19c   : > { %v1791_v63 = vsel %vm1771_vm0, %v1748_v37, %v1749_v62  ;;  %v1750_v33 = vrot.slane %v1630_v54, 7  ;;  %v3747_v58 = vpop.f32.mrb[76].mxu1 }
 0x19d   : > { %v3748_v59 = vpop.f32.mrb[77].mxu1  ;;  %v5039_v6 = vadd.f32 %v1791_v63, %v4893_v22 }
 0x19e   : > { %v1790_v19 = vsel %vm1771_vm0, %v1749_v62, %v1750_v33  ;;  %v3749_v53 = vadd.f32 %v3748_v59, %v3747_v58  ;;  %v3750_v7 = vpop.f32.mrb[78].mxu1  ;;  %v5047_v3 = vpop.f32.mrb[76].mxu0 }
 0x19f   : > { %5486 = vst [vmem:[#allocation5_spill] sm:$0xff] %v5039_v6  ;;  %v3751_v12 = vpop.f32.mrb[79].mxu1  ;;  %v5044_v40 = vadd.f32 %v1790_v19, %v4895_v24  ;;  %v5050_v44 = vpop.f32.mrb[77].mxu0 }
 0x1a0   : > { %v1635_v37 = vadd.f32 %v4978_v56, %v3749_v53  ;;  %v3752_v52 = vadd.f32 %v3751_v12, %v3750_v7  ;;  %v5054_v62 = vpop.f32.mrb[78].mxu0 }
 0x1a1   : > { %5487 = vst [vmem:[#allocation6_spill] sm:$0xff] %v5044_v40  ;;  %v5056_v58 = vpop.f32.mrb[79].mxu0 }
 0x1a2   : > { %v1751_v30 = vrot.slane %v1635_v37, 7  ;;  %v1638_v54 = vadd.f32 %v4982_v1, %v3752_v52 }
 0x1a4   : > { %v1789_v22 = vsel %vm1771_vm0, %v1750_v33, %v1751_v30  ;;  %v1752_v59 = vrot.slane %v1638_v54, 7  ;;  %v3753_v63 = vpop.f32.mrb[80].mxu1 }
 0x1a5   : > { %v3754_v24 = vpop.f32.mrb[81].mxu1  ;;  %v5059_v56 = vadd.f32 %v1789_v22, %v4899_v26 }
 0x1a6   : > { %v1788_v19 = vsel %vm1771_vm0, %v1751_v30, %v1752_v59  ;;  %v3755_v53 = vadd.f32 %v3754_v24, %v3753_v63  ;;  %v3756_v1 = vpop.f32.mrb[82].mxu1  ;;  %v3841_v52 = vpop.f32.mrb[80].mxu0 }
 0x1a7   : > { %5488 = vst [vmem:[#allocation7_spill] sm:$0xff] %v5059_v56  ;;  %v3757_v7 = vpop.f32.mrb[83].mxu1  ;;  %v5064_v12 = vadd.f32 %v1788_v19, %v4902_v32  ;;  %v3842_v40 = vpop.f32.mrb[81].mxu0 }
 0x1a8   : > { %v1643_v33 = vadd.f32 %v3755_v53, %v4994_v45  ;;  %v3758_v37 = vadd.f32 %v3757_v7, %v3756_v1  ;;  %v5070_v22 = vadd.f32 %v3842_v40, %v3841_v52  ;;  %v3844_v30 = vpop.f32.mrb[82].mxu0 }
 0x1a9   : > { %v3845_v56 = vpop.f32.mrb[83].mxu0 }
 0x1aa   : > { %v1753_v54 = vrot.slane %v1643_v33, 7  ;;  %v1646_v6 = vadd.f32 %v3758_v37, %v5000_v4  ;;  %v5077_v19 = vadd.f32 %v3845_v56, %v3844_v30 }
 0x1ac   : > { %v1787_v26 = vsel %vm1771_vm0, %v1752_v59, %v1753_v54  ;;  %v1754_v63 = vrot.slane %v1646_v6, 7  ;;  %v3759_v24 = vpop.f32.mrb[84].mxu1 }
 0x1ad   : > { %v3760_v15 = vpop.f32.mrb[85].mxu1  ;;  %v5073_v32 = vadd.f32 %v1787_v26, %v4905_v23 }
 0x1ae   : > { %v1786_v45 = vsel %vm1771_vm0, %v1753_v54, %v1754_v63  ;;  %v3761_v4 = vadd.f32 %v3760_v15, %v3759_v24  ;;  %v3762_v53 = vpop.f32.mrb[86].mxu1  ;;  %v3847_v7 = vpop.f32.mrb[84].mxu0 }
 0x1af   : > { %v3763_v1 = vpop.f32.mrb[87].mxu1  ;;  %v5080_v59 = vadd.f32 %v1786_v45, %v4907_v29  ;;  %v3848_v23 = vpop.f32.mrb[85].mxu0 }
 0x1b0   : > { %v1651_v40 = vadd.f32 %v4992_v31, %v3761_v4  ;;  %v3764_v6 = vadd.f32 %v3763_v1, %v3762_v53  ;;  %v5086_v54 = vadd.f32 %v3848_v23, %v3847_v7  ;;  %v3850_v56 = vpop.f32.mrb[86].mxu0 }
 0x1b1   : > { %v3851_v30 = vpop.f32.mrb[87].mxu0 }
 0x1b2   : > { %v1755_v33 = vrot.slane %v1651_v40, 7  ;;  %v1654_v37 = vadd.f32 %v4998_v49, %v3764_v6  ;;  %v5093_v45 = vadd.f32 %v3851_v30, %v3850_v56 }
 0x1b4   : > { %v1785_v52 = vsel %vm1771_vm0, %v1754_v63, %v1755_v33  ;;  %v1756_v15 = vrot.slane %v1654_v37, 7  ;;  %v3765_v26 = vpop.f32.mrb[88].mxu1 }
 0x1b5   : > { %v3766_v24 = vpop.f32.mrb[89].mxu1  ;;  %v5089_v29 = vadd.f32 %v1785_v52, %v4912_v14 }
 0x1b6   : > { %v1784_v31 = vsel %vm1771_vm0, %v1755_v33, %v1756_v15  ;;  %v3767_v49 = vadd.f32 %v3766_v24, %v3765_v26  ;;  %v3768_v4 = vpop.f32.mrb[90].mxu1  ;;  %v3853_v6 = vpop.f32.mrb[88].mxu0 }
 0x1b7   : > { %v3769_v53 = vpop.f32.mrb[91].mxu1  ;;  %v5096_v63 = vadd.f32 %v1784_v31, %v4920_v60  ;;  %v3854_v14 = vpop.f32.mrb[89].mxu0 }
 0x1b8   : > { %v1659_v1 = vadd.f32 %v3767_v49, %v5012_v27  ;;  %v3770_v40 = vadd.f32 %v3769_v53, %v3768_v4  ;;  %v5102_v33 = vadd.f32 %v3854_v14, %v3853_v6  ;;  %v3856_v52 = vpop.f32.mrb[90].mxu0  ;;  %v5118_v14 = vpop.permute.xlu0 %2681 }
 0x1b9   : > { %v3857_v30 = vpop.f32.mrb[91].mxu0 }
 0x1ba   : > { %v1757_v7 = vrot.slane %v1659_v1, 7  ;;  %v1662_v37 = vadd.f32 %v3770_v40, %v5018_v35  ;;  %v5109_v31 = vadd.f32 %v3857_v30, %v3856_v52  ;;  %v5115_v40 = vpop.permute.xlu1 %2691 }
 0x1bc   : > { %v1783_v23 = vsel %vm1771_vm0, %v1756_v15, %v1757_v7  ;;  %v1758_v56 = vrot.slane %v1662_v37, 7  ;;  %v3771_v26 = vpop.f32.mrb[92].mxu1 }
 0x1bd   : > { %v3772_v24 = vpop.f32.mrb[93].mxu1  ;;  %v5105_v60 = vadd.f32 %v1783_v23, %v4928_v2 }
 0x1be   : > { %v1782_v27 = vsel %vm1771_vm0, %v1757_v7, %v1758_v56  ;;  %v3773_v35 = vadd.f32 %v3772_v24, %v3771_v26  ;;  %v3774_v49 = vpop.f32.mrb[94].mxu1  ;;  %v3859_v6 = vpop.f32.mrb[92].mxu0 }
 0x1bf   : > { %5489 = vst [vmem:[#allocation8_spill] sm:$0xff] %v5105_v60  ;;  %v3775_v4 = vpop.f32.mrb[95].mxu1  ;;  %v5112_v15 = vadd.f32 %v1782_v27, %v4936_v46  ;;  %v3860_v7 = vpop.f32.mrb[93].mxu0 }
 0x1c0   : > { %v1667_v53 = vadd.f32 %v5010_v20, %v3773_v35  ;;  %v3776_v1 = vadd.f32 %v3775_v4, %v3774_v49  ;;  %v5122_v52 = vadd.f32 %v3860_v7, %v3859_v6  ;;  %v3862_v26 = vpop.f32.mrb[94].mxu0 }
 0x1c1   : > { %5490 = vst [vmem:[#allocation9_spill] sm:$0xff] %v5112_v15  ;;  %v3863_v24 = vpop.f32.mrb[95].mxu0 }
 0x1c2   : > { %v1759_v37 = vrot.slane %v1667_v53, 7  ;;  %v1670_v2 = vadd.f32 %v5016_v25, %v3776_v1  ;;  %v5129_v25 = vadd.f32 %v3863_v24, %v3862_v26 }
 0x1c4   : > { %v1781_v23 = vsel %vm1771_vm0, %v1758_v56, %v1759_v37  ;;  %v1760_v46 = vrot.slane %v1670_v2, 7  ;;  %v3777_v30 = vpop.f32.mrb[96].mxu1  ;;  %v5135_v2 = vpop.permute.xlu1 %2696 }
 0x1c5   : > { %v3778_v20 = vpop.f32.mrb[97].mxu1  ;;  %v5125_v27 = vadd.f32 %v1781_v23, %v4941_v42  ;;  %v5138_v23 = vpop.permute.xlu0 %2686 }
 0x1c6   : > { %v1780_v35 = vsel %vm1771_vm0, %v1759_v37, %v1760_v46  ;;  %v3779_v49 = vadd.f32 %v3778_v20, %v3777_v30  ;;  %v3780_v4 = vpop.f32.mrb[98].mxu1  ;;  %v3865_v7 = vpop.f32.mrb[96].mxu0 }
 0x1c7   : > { %v3781_v53 = vpop.f32.mrb[99].mxu1  ;;  %v5132_v56 = vadd.f32 %v1780_v35, %v4943_v5  ;;  %v3866_v37 = vpop.f32.mrb[97].mxu0 }
 0x1c8   : > { %v1675_v1 = vadd.f32 %v3779_v49, %v5030_v55  ;;  %v3782_v6 = vadd.f32 %v3781_v53, %v3780_v4  ;;  %v5142_v30 = vadd.f32 %v3866_v37, %v3865_v7  ;;  %v3868_v24 = vpop.f32.mrb[98].mxu0  ;;  %v5155_v37 = vpop.permute.xlu1 %2706 }
 0x1c9   : > { %5491 = vst [vmem:[#allocation10_spill] sm:$0xff] %v5132_v56  ;;  %v3869_v35 = vpop.f32.mrb[99].mxu0 }
 0x1ca   : > { %v1761_v15 = vrot.slane %v1675_v1, 7  ;;  %v1678_v42 = vadd.f32 %v3782_v6, %v5036_v57  ;;  %v5149_v57 = vadd.f32 %v3869_v35, %v3868_v24 }
 0x1cc   : > { %v1779_v26 = vsel %vm1771_vm0, %v1760_v46, %v1761_v15  ;;  %v1762_v5 = vrot.slane %v1678_v42, 7  ;;  %v3783_v20 = vpop.f32.mrb[100].mxu1 }
 0x1cd   : > { %v3784_v55 = vpop.f32.mrb[101].mxu1  ;;  %v5145_v49 = vadd.f32 %v1779_v26, %v4915_v16  ;;  %v5158_v26 = vpop.permute.xlu0 %2701 }
 0x1ce   : > { %v1778_v4 = vsel %vm1771_vm0, %v1761_v15, %v1762_v5  ;;  %v3785_v53 = vadd.f32 %v3784_v55, %v3783_v20  ;;  %v3786_v1 = vpop.f32.mrb[102].mxu1  ;;  %v3871_v56 = vpop.f32.mrb[100].mxu0 }
 0x1cf   : > { %5492 = vst [vmem:[#allocation11_spill] sm:$0xff] %v5145_v49  ;;  %v3787_v6 = vpop.f32.mrb[103].mxu1  ;;  %v5152_v46 = vadd.f32 %v1778_v4, %v4923_v61  ;;  %v3872_v15 = vpop.f32.mrb[101].mxu0 }
 0x1d0   : > { %v1683_v7 = vadd.f32 %v5028_v28, %v3785_v53  ;;  %v3788_v42 = vadd.f32 %v3787_v6, %v3786_v1  ;;  %v5162_v20 = vadd.f32 %v3872_v15, %v3871_v56  ;;  %v3874_v35 = vpop.f32.mrb[102].mxu0  ;;  %v5175_v15 = vpop.permute.xlu1 %2716 }
 0x1d1   : > { %5493 = vst [vmem:[#allocation12_spill] sm:$0xff] %v5152_v46  ;;  %v3875_v4 = vpop.f32.mrb[103].mxu0 }
 0x1d2   : > { %v1763_v60 = vrot.slane %v1683_v7, 7  ;;  %v1686_v16 = vadd.f32 %v5034_v0, %v3788_v42  ;;  %v5169_v0 = vadd.f32 %v3875_v4, %v3874_v35 }
 0x1d4   : > { %v1777_v24 = vsel %vm1771_vm0, %v1762_v5, %v1763_v60  ;;  %v1764_v61 = vrot.slane %v1686_v16, 7  ;;  %v3789_v55 = vpop.f32.mrb[104].mxu1 }
 0x1d5   : > { %v3790_v28 = vpop.f32.mrb[105].mxu1  ;;  %v5165_v53 = vadd.f32 %v1777_v24, %v4910_v10  ;;  %v5178_v24 = vpop.permute.xlu0 %2711 }
 0x1d6   : > { %v1776_v1 = vsel %vm1771_vm0, %v1763_v60, %v1764_v61  ;;  %v3791_v6 = vadd.f32 %v3790_v28, %v3789_v55  ;;  %v3792_v7 = vpop.f32.mrb[106].mxu1  ;;  %v3877_v49 = vpop.f32.mrb[104].mxu0 }
 0x1d7   : > { %5494 = vst [vmem:[#allocation13_spill] sm:$0xff] %v5165_v53  ;;  %v3793_v42 = vpop.f32.mrb[107].mxu1  ;;  %v5172_v5 = vadd.f32 %v1776_v1, %v4918_v11  ;;  %v3878_v60 = vpop.f32.mrb[105].mxu0 }
 0x1d8   : > { %v1691_v56 = vadd.f32 %v3791_v6, %v5050_v44  ;;  %v3794_v16 = vadd.f32 %v3793_v42, %v3792_v7  ;;  %v5182_v55 = vadd.f32 %v3878_v60, %v3877_v49  ;;  %v3880_v4 = vpop.f32.mrb[106].mxu0  ;;  %v5195_v60 = vpop.permute.xlu1 %2726 }
 0x1d9   : > { %5495 = vst [vmem:[#allocation14_spill] sm:$0xff] %v5172_v5  ;;  %v3881_v1 = vpop.f32.mrb[107].mxu0 }
 0x1da   : > { %v1765_v46 = vrot.slane %v1691_v56, 7  ;;  %v1694_v10 = vadd.f32 %v3794_v16, %v5056_v58  ;;  %v5189_v58 = vadd.f32 %v3881_v1, %v3880_v4 }
 0x1dc   : > { %v1775_v35 = vsel %vm1771_vm0, %v1764_v61, %v1765_v46  ;;  %v1766_v11 = vrot.slane %v1694_v10, 7  ;;  %v3795_v28 = vpop.f32.mrb[108].mxu1 }
 0x1dd   : > { %v3796_v44 = vpop.f32.mrb[109].mxu1  ;;  %v5185_v6 = vadd.f32 %v1775_v35, %v4931_v41  ;;  %v5198_v35 = vpop.permute.xlu0 %2721 }
 0x1de   : > { %v1774_v7 = vsel %vm1771_vm0, %v1765_v46, %v1766_v11  ;;  %v3797_v42 = vadd.f32 %v3796_v44, %v3795_v28  ;;  %v3798_v56 = vpop.f32.mrb[110].mxu1  ;;  %v3883_v5 = vpop.f32.mrb[108].mxu0 }
 0x1df   : > { %v3799_v16 = vpop.f32.mrb[111].mxu1  ;;  %v5192_v61 = vadd.f32 %v1774_v7, %v4939_v39  ;;  %v3884_v46 = vpop.f32.mrb[109].mxu0 }
 0x1e0   : > { %v1699_v49 = vadd.f32 %v5047_v3, %v3797_v42  ;;  %v3800_v10 = vadd.f32 %v3799_v16, %v3798_v56  ;;  %v5202_v28 = vadd.f32 %v3884_v46, %v3883_v5  ;;  %v3886_v1 = vpop.f32.mrb[110].mxu0  ;;  %v5497_v16 = vrot.slane %v4947_v13, 7 }
 0x1e1   : > { %v3887_v7 = vpop.f32.mrb[111].mxu0 }
 0x1e2   : > { %v1767_v53 = vrot.slane %v1699_v49, 7  ;;  %v1702_v41 = vadd.f32 %v5054_v62, %v3800_v10  ;;  %v5214_v5 = vadd.f32 %v3887_v7, %v3886_v1  ;;  %v5226_v1 = vpop.permute.xlu1 %2736  ;;  %v5229_v7 = vpop.permute.xlu0 %2731 }
 0x1e4   : > { %v1773_v4 = vsel %vm1771_vm0, %v1766_v11, %v1767_v53  ;;  %v1768_v39 = vrot.slane %v1702_v41, 7  ;;  %v4075_v44 = vpop.f32.mrb[112].mxu1 }
 0x1e5   : > { %v5205_v3 = vadd.f32 %v1773_v4, %v4926_v36  ;;  %v2265_v42 = vadd.f32 %v4075_v44, %v5086_v54  ;;  %v2256_v56 = vpop.f32.mrb[113].mxu1 }
 0x1e6   : > { %v1772_v62 = vsel %vm1771_vm0, %v1767_v53, %v1768_v39  ;;  %v1803_v11 = vsel %vm1771_vm0, %v1768_v39, %v5497_v16  ;;  %v5217_v49 = vadd.f32 %v5070_v22, %v2256_v56  ;;  %v4076_v10 = vpop.f32.mrb[114].mxu1  ;;  %v3889_v39 = vpop.f32.mrb[112].mxu0 }
 0x1e7   : > { %5496 = vst [vmem:[#allocation15_spill] sm:$0xff] %v5205_v3  ;;  %v5220_v36 = vadd.f32 %v1772_v62, %v4934_v47  ;;  %v2268_v54 = vadd.f32 %v4076_v10, %v5093_v45  ;;  %v1804_v41 = vadd.f32 %v1803_v11, %v4863_v34  ;;  %v2259_v46 = vpop.f32.mrb[115].mxu1  ;;  %v2417_v53 = vrot.slane %v2265_v42, 1  ;;  %v3890_v47 = vpop.f32.mrb[113].mxu0  ;;  %v5236_v34 = vld [vmem:[%s5477_s4] ss:$0 sm:$0xff] }
 0x1e8   : > { %v2260_v13 = vadd.f32 %v5077_v19, %v2259_v46  ;;  %v5481_v22 = vrot.slane %v5217_v49, 1  ;;  %v5238_v19 = vadd.f32 %v3890_v47, %v3889_v39  ;;  %v3892_v42 = vpop.f32.mrb[114].mxu0 }
 0x1e9   : > { %5498 = vst [vmem:[#allocation16_spill] sm:$0xff] %v5220_v36  ;;  %v2418_v4 = vrot.slane %v2268_v54, 1  ;;  %v3893_v10 = vpop.f32.mrb[115].mxu0 }
 0x1ea   : > { %v2416_v44 = vrot.slane %v2260_v13, 1  ;;  %v5250_v36 = vadd.f32 %v3893_v10, %v3892_v42  ;;  %v5257_v42 = vpop.permute.xlu1 %2746 }
 0x1eb   : > { %v2476_v45 = vsel %vm2447_vm1, %v2417_v53, %v2418_v4 }
 0x1ec   : > { %v2482_v56 = vadd.f32 %v2476_v45, %v4961_v8  ;;  %v2477_v62 = vsel %vm2447_vm1, %v2416_v44, %v2417_v53  ;;  %v2478_v16 = vsel %vm2447_vm1, %v5481_v22, %v2416_v44  ;;  %v4079_v11 = vpop.f32.mrb[116].mxu1 }
 0x1ed   : > { %v2480_v54 = vadd.f32 %v2478_v16, %v1804_v41  ;;  %v2481_v46 = vadd.f32 %v2477_v62, %v4956_v17  ;;  %v2281_v13 = vadd.f32 %v4079_v11, %v5122_v52  ;;  %v2272_v39 = vpop.f32.mrb[117].mxu1 }
 0x1ee   : > { %v2585_v47 = vadd.f32 %v5236_v34, %v2482_v56  ;;  %v2273_v8 = vadd.f32 %v5102_v33, %v2272_v39  ;;  %v4080_v53 = vpop.f32.mrb[118].mxu1  ;;  %v3895_v33 = vpop.f32.mrb[116].mxu0 }
 0x1ef   : > { %v2583_v45 = vadd.f32 %v5236_v34, %v2480_v54  ;;  %v2584_v3 = vadd.f32 %v5236_v34, %v2481_v46  ;;  %v2284_v44 = vadd.f32 %v4080_v53, %v5129_v25  ;;  %v2275_v22 = vpop.f32.mrb[119].mxu1  ;;  %v2421_v16 = vrot.slane %v2281_v13, 1  ;;  %v5261_v46 = vpop.permute.xlu0 %2741 }
 0x1f0   : > { %v2419_v41 = vrot.slane %v2273_v8, 1  ;;  %v2276_v17 = vadd.f32 %v5109_v31, %v2275_v22  ;;  %v2617_v11 = vmax.f32 %v2585_v47, 0.0  ;;  %v3896_v31 = vpop.f32.mrb[117].mxu0 }
 0x1f1   : > { %v2615_v52 = vmax.f32 %v2583_v45, 0.0  ;;  %v2616_v62 = vmax.f32 %v2584_v3, 0.0  ;;  %v2422_v56 = vrot.slane %v2284_v44, 1  ;;  %v5274_v13 = vadd.f32 %v3896_v31, %v3895_v33 }
 0x1f2   : > { %v2475_v10 = vsel %vm2447_vm1, %v2418_v4, %v2419_v41  ;;  %v2420_v54 = vrot.slane %v2276_v17, 1  ;;  %v3898_v4 = vpop.f32.mrb[118].mxu0 }
 0x1f3   : > { %v2839_v25 = vmul.f32 %v5118_v14, %v2615_v52  ;;  %v2840_v39 = vmul.f32 %v5138_v23, %v2616_v62  ;;  %v2483_v22 = vadd.f32 %v2475_v10, %v4966_v38  ;;  %v2472_v3 = vsel %vm2447_vm1, %v2421_v16, %v2422_v56  ;;  %v3899_v45 = vpop.f32.mrb[119].mxu0 }
 0x1f4   : > { %v2486_v47 = vadd.f32 %v2472_v3, %v4985_v18  ;;  %v2473_v14 = vsel %vm2447_vm1, %v2420_v54, %v2421_v16  ;;  %v2474_v38 = vsel %vm2447_vm1, %v2419_v41, %v2420_v54  ;;  %v4083_v23 = vpop.f32.mrb[120].mxu1  ;;  %v5285_v33 = vadd.f32 %v3899_v45, %v3898_v4 }
 0x1f5   : > { %v3461_v8 = vpack.c.bf16 %v2840_v39, %v2839_v25  ;;  %v2586_v53 = vadd.f32 %v5236_v34, %v2483_v22  ;;  %v2484_v44 = vadd.f32 %v2474_v38, %v4971_v43  ;;  %v2485_v17 = vadd.f32 %v2473_v14, %v4976_v21  ;;  %v2288_v52 = vpop.f32.mrb[121].mxu1 }
 0x1f6   : > { %v2589_v62 = vadd.f32 %v5236_v34, %v2486_v47  ;;  %v2297_v18 = vadd.f32 %v4083_v23, %v5162_v20  ;;  %v2289_v16 = vadd.f32 %v5142_v30, %v2288_v52  ;;  %v4084_v10 = vpop.f32.mrb[122].mxu1  ;;  %v2841_v21 = vmul.f32 %v5115_v40, %v2617_v11  ;;  %v5296_v47 = vpop.permute.xlu1 %2756 }
 0x1f7   : > { %3462 = vst [vmem:[%s5272_s22] sm:$0xff] %v3461_v8   ;;  %v2618_v41 = vmax.f32 %v2586_v53, 0.0  ;;  %v2587_v54 = vadd.f32 %v5236_v34, %v2484_v44  ;;  %v2588_v25 = vadd.f32 %v5236_v34, %v2485_v17  ;;  %v2300_v43 = vadd.f32 %v4084_v10, %v5169_v0  ;;  %v2291_v39 = vpop.f32.mrb[123].mxu1  ;;  %v3901_v38 = vpop.f32.mrb[120].mxu0 }
 0x1f8   : > { %v2423_v31 = vrot.slane %v2289_v16, 1  ;;  %v2292_v22 = vadd.f32 %v5149_v57, %v2291_v39  ;;  %v2621_v14 = vmax.f32 %v2589_v62, 0.0  ;;  %v2425_v23 = vrot.slane %v2297_v18, 1  ;;  %v5300_v53 = vpop.permute.xlu0 %2751  ;;  %v3902_v11 = vpop.f32.mrb[121].mxu0 }
 0x1f9   : > { %v2842_v3 = vmul.f32 %v5135_v2, %v2618_v41  ;;  %v2619_v20 = vmax.f32 %v2587_v54, 0.0  ;;  %v2620_v4 = vmax.f32 %v2588_v25, 0.0  ;;  %v2426_v30 = vrot.slane %v2300_v43, 1  ;;  %v3904_v17 = vpop.f32.mrb[122].mxu0  ;;  %v5499_v25 = vld [vmem:[#allocation3_spill] sm:$0xff] }
 0x1fa   : > { %v2471_v0 = vsel %vm2447_vm1, %v2422_v56, %v2423_v31  ;;  %v2424_v8 = vrot.slane %v2292_v22, 1  ;;  %v5305_v44 = vadd.f32 %v3902_v11, %v3901_v38  ;;  %v3905_v16 = vpop.f32.mrb[123].mxu0 }
 0x1fb   : > { %v3466_v40 = vpack.c.bf16 %v2842_v3, %v2841_v21  ;;  %v2843_v57 = vmul.f32 %v5158_v26, %v2619_v20  ;;  %v2844_v2 = vmul.f32 %v5155_v37, %v2620_v4  ;;  %v2487_v45 = vadd.f32 %v2471_v0, %v4990_v50 }
 0x1fc   : > { %v2468_v52 = vsel %vm2447_vm1, %v2425_v23, %v2426_v30  ;;  %v2469_v56 = vsel %vm2447_vm1, %v2424_v8, %v2425_v23  ;;  %v2470_v62 = vsel %vm2447_vm1, %v2423_v31, %v2424_v8  ;;  %v4087_v18 = vpop.f32.mrb[124].mxu1  ;;  %v5317_v54 = vadd.f32 %v3905_v16, %v3904_v17  ;;  %v5337_v17 = vpop.permute.xlu0 %2761 }
 0x1fd   : > { %3538 = vst [vmem:[%s5272_s22 + $0x8] sm:$0xff] %v3466_v40   ;;  %v3471_v26 = vpack.c.bf16 %v2844_v2, %v2843_v57  ;;  %v2590_v37 = vadd.f32 %v5236_v34, %v2487_v45  ;;  %v2490_v50 = vadd.f32 %v2468_v52, %v5021_v48  ;;  %v2488_v10 = vadd.f32 %v2470_v62, %v5003_v51  ;;  %v2304_v41 = vpop.f32.mrb[125].mxu1  ;;  %v5333_v40 = vpop.permute.xlu1 %2766 }
 0x1fe   : > { %v2489_v43 = vadd.f32 %v2469_v56, %v5499_v25  ;;  %v2313_v39 = vadd.f32 %v4087_v18, %v5202_v28  ;;  %v2305_v21 = vadd.f32 %v5182_v55, %v2304_v41  ;;  %v4088_v31 = vpop.f32.mrb[126].mxu1  ;;  %v2845_v28 = vmul.f32 %v5178_v24, %v2621_v14  ;;  %v3907_v2 = vpop.f32.mrb[124].mxu0  ;;  %v5500_v14 = vld [vmem:[#allocation4_spill] sm:$0xff] }
 0x1ff   : > { %3539 = vst [vmem:[%s5272_s22 + $0x10] sm:$0xff] %v3471_v26   ;;  %v2622_v22 = vmax.f32 %v2590_v37, 0.0  ;;  %v2593_v3 = vadd.f32 %v5236_v34, %v2490_v50  ;;  %v2591_v20 = vadd.f32 %v5236_v34, %v2488_v10  ;;  %v5326_v48 = vadd.f32 %v4088_v31, %v5214_v5  ;;  %v2307_v51 = vpop.f32.mrb[127].mxu1  ;;  %v5501_v10 = vld [vmem:[#allocation7_spill] sm:$0xff] }
 0x200   : > { %v2592_v4 = vadd.f32 %v5236_v34, %v2489_v43  ;;  %v2427_v38 = vrot.slane %v2305_v21, 1  ;;  %v2308_v23 = vadd.f32 %v5189_v58, %v2307_v51  ;;  %v2429_v5 = vrot.slane %v2313_v39, 1 }
 0x201   : > { %v2846_v55 = vmul.f32 %v5175_v15, %v2622_v22  ;;  %v2623_v0 = vmax.f32 %v2591_v20, 0.0  ;;  %v2430_v8 = vrot.slane %v5326_v48, 1  ;;  %v2625_v52 = vmax.f32 %v2593_v3, 0.0  ;;  %v3908_v15 = vpop.f32.mrb[125].mxu0  ;;  %v5503_v22 = vld [vmem:[#allocation5_spill] sm:$0xff] }
 0x202   : > { %v2624_v57 = vmax.f32 %v2592_v4, 0.0  ;;  %v2467_v11 = vsel %vm2447_vm1, %v2426_v30, %v2427_v38  ;;  %v2428_v45 = vrot.slane %v2308_v23, 1  ;;  %v3909_v18 = vadd.f32 %v3908_v15, %v3907_v2  ;;  %v3910_v26 = vpop.f32.mrb[126].mxu0 }
 0x203   : > { %v3476_v58 = vpack.c.bf16 %v2846_v55, %v2845_v28  ;;  %v2847_v24 = vmul.f32 %v5198_v35, %v2623_v0  ;;  %v2491_v56 = vadd.f32 %v2467_v11, %v5500_v14  ;;  %v2464_v37 = vsel %vm2447_vm1, %v2429_v5, %v2430_v8  ;;  %v3911_v41 = vpop.f32.mrb[127].mxu0 }
 0x204   : > { %v2848_v62 = vmul.f32 %v5195_v60, %v2624_v57  ;;  %v2465_v30 = vsel %vm2447_vm1, %v2428_v45, %v2429_v5  ;;  %v4091_v50 = vpop.f32.mrb[128].mxu1  ;;  %v2494_v35 = vadd.f32 %v2464_v37, %v5501_v10  ;;  %v2466_v25 = vsel %vm2447_vm1, %v2427_v38, %v2428_v45  ;;  %v5502_v60 = vld [vmem:[#allocation6_spill] sm:$0xff]  ;;  %v5363_v45 = vpop.permute.xlu1 %2776 }
 0x205   : > { %3540 = vst [vmem:[%s5272_s22 + $0x18] sm:$0xff] %v3476_v58   ;;  %v2594_v16 = vadd.f32 %v5236_v34, %v2491_v56  ;;  %v2493_v43 = vadd.f32 %v2465_v30, %v5502_v60  ;;  %v2320_v39 = vpop.f32.mrb[129].mxu1  ;;  %v3912_v31 = vadd.f32 %v3911_v41, %v3910_v26  ;;  %v2492_v3 = vadd.f32 %v2466_v25, %v5503_v22  ;;  %v5365_v56 = vpop.permute.xlu0 %2771 }
 0x206   : > { %v3481_v21 = vpack.c.bf16 %v2848_v62, %v2847_v24  ;;  %v2329_v20 = vadd.f32 %v4091_v50, %v5274_v13  ;;  %v4092_v48 = vpop.f32.mrb[130].mxu1  ;;  %v2597_v4 = vadd.f32 %v5236_v34, %v2494_v35  ;;  %v2321_v28 = vadd.f32 %v5238_v19, %v2320_v39  ;;  %v3913_v24 = vpop.f32.mrb[128].mxu0 }
 0x207   : > { %v2626_v51 = vmax.f32 %v2594_v16, 0.0  ;;  %v2596_v23 = vadd.f32 %v5236_v34, %v2493_v43  ;;  %v2323_v55 = vpop.f32.mrb[131].mxu1  ;;  %v2595_v38 = vadd.f32 %v5236_v34, %v2492_v3  ;;  %v2332_v0 = vadd.f32 %v4092_v48, %v5285_v33  ;;  %v3914_v26 = vpop.f32.mrb[129].mxu0 }
 0x208   : > { %3541 = vst [vmem:[%s5272_s22 + $0x20] sm:$0xff] %v3481_v21   ;;  %v2324_v57 = vadd.f32 %v5250_v36, %v2323_v55  ;;  %v2849_v2 = vmul.f32 %v5229_v7, %v2625_v52  ;;  %v2431_v11 = vrot.slane %v2321_v28, 1  ;;  %v2433_v19 = vrot.slane %v2329_v20, 1  ;;  %v3916_v30 = vpop.f32.mrb[130].mxu0  ;;  %v2787_v28 = vpop.permute.xlu1 %2786 }
 0x209   : > { %v2850_v13 = vmul.f32 %v5226_v1, %v2626_v51  ;;  %v2628_v5 = vmax.f32 %v2596_v23, 0.0  ;;  %v2627_v58 = vmax.f32 %v2595_v38, 0.0  ;;  %v2434_v15 = vrot.slane %v2332_v0, 1  ;;  %v3917_v35 = vpop.f32.mrb[131].mxu0 }
 0x20a   : > { %v2432_v14 = vrot.slane %v2324_v57, 1  ;;  %v2629_v33 = vmax.f32 %v2597_v4, 0.0  ;;  %v2463_v1 = vsel %vm2447_vm1, %v2430_v8, %v2431_v11  ;;  %v3915_v52 = vadd.f32 %v3914_v26, %v3913_v24  ;;  %v2782_v57 = vpop.permute.xlu0 %2781 }
 0x20b   : > { %v3486_v62 = vpack.c.bf16 %v2850_v13, %v2849_v2  ;;  %v2852_v36 = vmul.f32 %v5257_v42, %v2628_v5  ;;  %v2851_v7 = vmul.f32 %v5261_v46, %v2627_v58  ;;  %v2495_v37 = vadd.f32 %v2463_v1, %v5064_v12 }
 0x20c   : > { %v2460_v50 = vsel %vm2447_vm1, %v2433_v19, %v2434_v15  ;;  %v4095_v16 = vpop.f32.mrb[132].mxu1  ;;  %v2461_v42 = vsel %vm2447_vm1, %v2432_v14, %v2433_v19  ;;  %v2462_v8 = vsel %vm2447_vm1, %v2431_v11, %v2432_v14  ;;  %v3918_v60 = vadd.f32 %v3917_v35, %v3916_v30 }
 0x20d   : > { %3542 = vst [vmem:[%s5272_s22 + $0x28] sm:$0xff] %v3486_v62   ;;  %v2498_v10 = vadd.f32 %v2460_v50, %v5089_v29  ;;  %v2345_v46 = vadd.f32 %v4095_v16, %v3909_v18  ;;  %v2336_v41 = vpop.f32.mrb[133].mxu1  ;;  %v3491_v25 = vpack.c.bf16 %v2852_v36, %v2851_v7  ;;  %v2598_v12 = vadd.f32 %v5236_v34, %v2495_v37  ;;  %v5504_v7 = vld [vmem:[#allocation8_spill] sm:$0xff]  ;;  %v5505_v50 = vld [vmem:[#allocation9_spill] sm:$0xff] }
 0x20e   : > { %v2496_v43 = vadd.f32 %v2462_v8, %v5073_v32  ;;  %v4096_v39 = vpop.f32.mrb[134].mxu1  ;;  %v2497_v29 = vadd.f32 %v2461_v42, %v5080_v59  ;;  %v2337_v22 = vadd.f32 %v5305_v44, %v2336_v41  ;;  %v2853_v4 = vmul.f32 %v5300_v53, %v2629_v33  ;;  %v3919_v59 = vpop.f32.mrb[132].mxu0 }
 0x20f   : > { %v2601_v21 = vadd.f32 %v5236_v34, %v2498_v10  ;;  %v2339_v3 = vpop.f32.mrb[135].mxu1  ;;  %3543 = vst [vmem:[%s5272_s22 + $0x30] sm:$0xff] %v3491_v25   ;;  %v2630_v20 = vmax.f32 %v2598_v12, 0.0  ;;  %v2348_v18 = vadd.f32 %v4096_v39, %v3912_v31  ;;  %v2437_v5 = vrot.slane %v2345_v46, 1  ;;  %v3920_v31 = vpop.f32.mrb[133].mxu0 }
 0x210   : > { %v2599_v48 = vadd.f32 %v5236_v34, %v2496_v43  ;;  %v2340_v51 = vadd.f32 %v5317_v54, %v2339_v3  ;;  %v2600_v23 = vadd.f32 %v5236_v34, %v2497_v29  ;;  %v2435_v32 = vrot.slane %v2337_v22, 1  ;;  %v2797_v12 = vpop.permute.xlu1 %2796 }
 0x211   : > { %v2854_v55 = vmul.f32 %v5296_v47, %v2630_v20  ;;  %v2438_v0 = vrot.slane %v2348_v18, 1  ;;  %v2633_v2 = vmax.f32 %v2601_v21, 0.0  ;;  %v3921_v58 = vadd.f32 %v3920_v31, %v3919_v59  ;;  %v3922_v47 = vpop.f32.mrb[134].mxu0  ;;  %v2792_v21 = vpop.permute.xlu0 %2791 }
 0x212   : > { %v2631_v38 = vmax.f32 %v2599_v48, 0.0  ;;  %v2436_v44 = vrot.slane %v2340_v51, 1  ;;  %v2632_v13 = vmax.f32 %v2600_v23, 0.0  ;;  %v2459_v54 = vsel %vm2447_vm1, %v2434_v15, %v2435_v32  ;;  %v3923_v33 = vpop.f32.mrb[135].mxu0 }
 0x213   : > { %v3496_v53 = vpack.c.bf16 %v2854_v55, %v2853_v4  ;;  %v2499_v24 = vadd.f32 %v2459_v54, %v5096_v63  ;;  %v2456_v62 = vsel %vm2447_vm1, %v2437_v5, %v2438_v0  ;;  %v3924_v1 = vadd.f32 %v3923_v33, %v3922_v47 }
 0x214   : > { %v2855_v11 = vmul.f32 %v5337_v17, %v2631_v38  ;;  %v4099_v19 = vpop.f32.mrb[136].mxu1  ;;  %v2856_v14 = vmul.f32 %v5333_v40, %v2632_v13  ;;  %v2457_v36 = vsel %vm2447_vm1, %v2436_v44, %v2437_v5  ;;  %v2458_v15 = vsel %vm2447_vm1, %v2435_v32, %v2436_v44 }
 0x215   : > { %v2352_v26 = vpop.f32.mrb[137].mxu1  ;;  %3544 = vst [vmem:[%s5272_s22 + $0x38] sm:$0xff] %v3496_v53   ;;  %v2602_v17 = vadd.f32 %v5236_v34, %v2499_v24  ;;  %v2502_v63 = vadd.f32 %v2456_v62, %v5125_v27  ;;  %v2500_v40 = vadd.f32 %v2458_v15, %v5504_v7  ;;  %v2501_v16 = vadd.f32 %v2457_v36, %v5505_v50  ;;  %v2807_v15 = vpop.permute.xlu1 %2806 }
 0x216   : > { %v4100_v37 = vpop.f32.mrb[138].mxu1  ;;  %v3501_v30 = vpack.c.bf16 %v2856_v14, %v2855_v11  ;;  %v2361_v10 = vadd.f32 %v4099_v19, %v3921_v58  ;;  %v2353_v35 = vadd.f32 %v3915_v52, %v2352_v26  ;;  %v2857_v29 = vmul.f32 %v5365_v56, %v2633_v2  ;;  %v3925_v52 = vpop.f32.mrb[136].mxu0  ;;  %v5506_v2 = vld [vmem:[#allocation10_spill] sm:$0xff]  ;;  %v5508_v58 = vld [vmem:[#allocation12_spill] sm:$0xff]  ;;  %v5509_v14 = vld [vmem:[#allocation11_spill] sm:$0xff] }
 0x217   : > { %v2355_v42 = vpop.f32.mrb[139].mxu1  ;;  %v2634_v8 = vmax.f32 %v2602_v17, 0.0  ;;  %v2605_v46 = vadd.f32 %v5236_v34, %v2502_v63  ;;  %v2603_v41 = vadd.f32 %v5236_v34, %v2500_v40  ;;  %v2364_v25 = vadd.f32 %v4100_v37, %v3924_v1  ;;  %v3926_v51 = vpop.f32.mrb[137].mxu0 }
 0x218   : > { %3545 = vst [vmem:[%s5272_s22 + $0x40] sm:$0xff] %v3501_v30   ;;  %v2604_v27 = vadd.f32 %v5236_v34, %v2501_v16  ;;  %v2439_v43 = vrot.slane %v2353_v35, 1  ;;  %v2356_v39 = vadd.f32 %v3918_v60, %v2355_v42  ;;  %v2441_v18 = vrot.slane %v2361_v10, 1  ;;  %v3928_v59 = vpop.f32.mrb[138].mxu0  ;;  %v2802_v26 = vpop.permute.xlu0 %2801 }
 0x219   : > { %v2858_v22 = vmul.f32 %v5363_v45, %v2634_v8  ;;  %v2635_v3 = vmax.f32 %v2603_v41, 0.0  ;;  %v2442_v20 = vrot.slane %v2364_v25, 1  ;;  %v2637_v55 = vmax.f32 %v2605_v46, 0.0  ;;  %v3929_v5 = vpop.f32.mrb[139].mxu0 }
 0x21a   : > { %v2636_v48 = vmax.f32 %v2604_v27, 0.0  ;;  %v2455_v4 = vsel %vm2447_vm1, %v2438_v0, %v2439_v43  ;;  %v2440_v23 = vrot.slane %v2356_v39, 1  ;;  %v3927_v60 = vadd.f32 %v3926_v51, %v3925_v52  ;;  %v5507_v0 = vld [vmem:[#allocation13_spill] sm:$0xff]  ;;  %v5510_v27 = vld [vmem:[#allocation14_spill] sm:$0xff] }
 0x21b   : > { %v3506_v32 = vpack.c.bf16 %v2858_v22, %v2857_v29  ;;  %v2859_v38 = vmul.f32 %v2782_v57, %v2635_v3  ;;  %v2503_v45 = vadd.f32 %v2455_v4, %v5506_v2  ;;  %v2452_v13 = vsel %vm2447_vm1, %v2441_v18, %v2442_v20 }
 0x21c   : > { %v4103_v44 = vpop.f32.mrb[140].mxu1  ;;  %v2860_v56 = vmul.f32 %v2787_v28, %v2636_v48  ;;  %v2453_v31 = vsel %vm2447_vm1, %v2440_v23, %v2441_v18  ;;  %v2506_v53 = vadd.f32 %v2452_v13, %v5507_v0  ;;  %v3930_v11 = vadd.f32 %v3929_v5, %v3928_v59  ;;  %v2812_v48 = vpop.permute.xlu0 %2811 }
 0x21d   : > { %v2368_v54 = vpop.f32.mrb[141].mxu1  ;;  %3546 = vst [vmem:[%s5272_s22 + $0x48] sm:$0xff] %v3506_v32   ;;  %v2454_v57 = vsel %vm2447_vm1, %v2439_v43, %v2440_v23  ;;  %v2505_v28 = vadd.f32 %v2453_v31, %v5508_v58  ;;  %v2606_v19 = vadd.f32 %v5236_v34, %v2503_v45  ;;  %v2861_v10 = vmul.f32 %v2792_v21, %v2637_v55  ;;  %v5513_v58 = vld [vmem:[#allocation16_spill] sm:$0xff] }
 0x21e   : > { %v4104_v24 = vpop.f32.mrb[142].mxu1  ;;  %v3511_v47 = vpack.c.bf16 %v2860_v56, %v2859_v38  ;;  %v2504_v62 = vadd.f32 %v2454_v57, %v5509_v14  ;;  %v2369_v33 = vadd.f32 %v3927_v60, %v2368_v54  ;;  %v2609_v7 = vadd.f32 %v5236_v34, %v2506_v53  ;;  %v3931_v50 = vpop.f32.mrb[140].mxu0 }
 0x21f   : > { %v2371_v36 = vpop.f32.mrb[143].mxu1  ;;  %v2608_v17 = vadd.f32 %v5236_v34, %v2505_v28  ;;  %v2638_v1 = vmax.f32 %v2606_v19, 0.0  ;;  %v3932_v8 = vpop.f32.mrb[141].mxu0  ;;  %v5511_v0 = vrot.slane %v5217_v49, 1 }
 0x220   : > { %v2372_v63 = vadd.f32 %v3930_v11, %v2371_v36  ;;  %3547 = vst [vmem:[%s5272_s22 + $0x50] sm:$0xff] %v3511_v47   ;;  %v2607_v40 = vadd.f32 %v5236_v34, %v2504_v62  ;;  %v2443_v37 = vrot.slane %v2369_v33, 1  ;;  %v3933_v25 = vadd.f32 %v3932_v8, %v3931_v50  ;;  %v3934_v39 = vpop.f32.mrb[142].mxu0  ;;  %v5512_v11 = vld [vmem:[#allocation15_spill] sm:$0xff] }
 0x221   : > { %v2640_v30 = vmax.f32 %v2608_v17, 0.0  ;;  %v2862_v35 = vmul.f32 %v2797_v12, %v2638_v1  ;;  %v2641_v22 = vmax.f32 %v2609_v7, 0.0  ;;  %v3935_v52 = vpop.f32.mrb[143].mxu0  ;;  %v2817_v12 = vpop.permute.xlu1 %2816 }
 0x222   : > { %v2444_v16 = vrot.slane %v2372_v63, 1  ;;  %v2639_v42 = vmax.f32 %v2607_v40, 0.0  ;;  %v2451_v46 = vsel %vm2447_vm1, %v2442_v20, %v2443_v37  ;;  %v2377_v18 = vadd.f32 %v4103_v44, %v3933_v25 }
 0x223   : > { %v2864_v41 = vmul.f32 %v2807_v15, %v2640_v30  ;;  %v2507_v43 = vadd.f32 %v2451_v46, %v5510_v27  ;;  %v3516_v29 = vpack.c.bf16 %v2862_v35, %v2861_v10  ;;  %v3936_v20 = vadd.f32 %v3935_v52, %v3934_v39 }
 0x224   : > { %v2863_v3 = vmul.f32 %v2802_v26, %v2639_v42  ;;  %v2450_v21 = vsel %vm2447_vm1, %v2443_v37, %v2444_v16  ;;  %v2445_v32 = vrot.slane %v2377_v18, 1  ;;  %v2865_v59 = vmul.f32 %v2812_v48, %v2641_v22 }
 0x225   : > { %v2610_v51 = vadd.f32 %v5236_v34, %v2507_v43  ;;  %v2508_v4 = vadd.f32 %v2450_v21, %v5185_v6  ;;  %3548 = vst [vmem:[%s5272_s22 + $0x58] sm:$0xff] %v3516_v29   ;;  %v2380_v38 = vadd.f32 %v4104_v24, %v3936_v20  ;;  %v2827_v5 = vpop.permute.xlu1 %2826  ;;  %v2822_v6 = vpop.permute.xlu0 %2821 }
 0x226   : > { %v3521_v23 = vpack.c.bf16 %v2864_v41, %v2863_v3  ;;  %v2449_v44 = vsel %vm2447_vm1, %v2444_v16, %v2445_v32 }
 0x227   : > { %v2642_v55 = vmax.f32 %v2610_v51, 0.0  ;;  %v2611_v60 = vadd.f32 %v5236_v34, %v2508_v4  ;;  %v2446_v2 = vrot.slane %v2380_v38, 1  ;;  %v2509_v45 = vadd.f32 %v2449_v44, %v5192_v61 }
 0x228   : > { %3549 = vst [vmem:[%s5272_s22 + $0x60] sm:$0xff] %v3521_v23  }
 0x229   : > { %v2866_v56 = vmul.f32 %v2817_v12, %v2642_v55  ;;  %v2643_v13 = vmax.f32 %v2611_v60, 0.0  ;;  %v2448_v54 = vsel %vm2447_vm1, %v2445_v32, %v2446_v2  ;;  %v2479_v53 = vsel %vm2447_vm1, %v2446_v2, %v5511_v0  ;;  %v2837_v9 = vpop.permute.xlu1 %2836  ;;  %v2832_v36 = vpop.permute.xlu0 %2831 }
 0x22a   : > { %v2510_v57 = vadd.f32 %v2448_v54, %v5512_v11  ;;  %v2511_v28 = vadd.f32 %v2479_v53, %v5513_v58  ;;  %v2612_v24 = vadd.f32 %v5236_v34, %v2509_v45 }
 0x22b   : > { %v3526_v31 = vpack.c.bf16 %v2866_v56, %v2865_v59  ;;  %v2867_v14 = vmul.f32 %v2822_v6, %v2643_v13 }
 0x22c   : > { %v2613_v61 = vadd.f32 %v5236_v34, %v2510_v57  ;;  %v2614_v47 = vadd.f32 %v5236_v34, %v2511_v28  ;;  %v2644_v19 = vmax.f32 %v2612_v24, 0.0 }
 0x22d   : > { %3550 = vst [vmem:[%s5272_s22 + $0x68] sm:$0xff] %v3526_v31  }
 0x22e   : > { %v2645_v62 = vmax.f32 %v2613_v61, 0.0  ;;  %v2646_v49 = vmax.f32 %v2614_v47, 0.0  ;;  %v2868_v33 = vmul.f32 %v2827_v5, %v2644_v19 }
 0x230   : > { %v2869_v15 = vmul.f32 %v2832_v36, %v2645_v62  ;;  %v2870_v26 = vmul.f32 %v2837_v9, %v2646_v49  ;;  %v3531_v17 = vpack.c.bf16 %v2868_v33, %v2867_v14 }
 0x232   : > { %v3536_v63 = vpack.c.bf16 %v2870_v26, %v2869_v15  ;;  %3551 = vst [vmem:[%s5272_s22 + $0x70] sm:$0xff] %v3531_v17  }
 0x234   : > { %3552 = vst [vmem:[%s5272_s22 + $0x78] sm:$0xff] %v3536_v63  }
 0x235 PF: > { %s16_s25 = sadd.s32 1, %s4297_s25   ;;  %s5514_s21 = smov %s4289_s23 }
 0x236   : > { %p13_p1 = scmp.ge.s32.totalorder %s16_s25, 10   ;;  %s5515_s22 = smov %s4293_s24 }
 0x237   : > { %s5516_s23 = smov %s5519_s26  ;;  %s5517_s24 = smov %s5523_s27 }
 0x238   :  { %15 = sbr.rel (!%p13_p1) target bundleno = 3 (0x3), region = 85 }

// kernel: vgg_loss.10
= control target key start
LH: loop header
LB: loop body
LE: loop exit
PB: predicated region body
PF: predicated region fallthrough
CT: control target
= control target key end

     0   :  { %s2888_s9 = smov 0   ;;  %s2890_s10 = smov 0   ;;  %s5070_s0 = inlined_call_operand.vmem [shape: bf16[4,1536,64], index: 0, kind: input, shape index: {}, may-alias: {0,1}]   ;;  %s5071_s1 = inlined_call_operand.vmem [shape: bf16[4,1536,64], index: 1, kind: input, shape index: {}, may-alias: {0,1}]   ;;  %s5072_s2 = inlined_call_operand.vmem [shape: f32[2,8,128], index: 2, kind: output, shape index: {}]  }
   0x1   :  { %s2892_s11 = smov 0  }
   0x2 LB: > { %s24_s12 = sadd.s32 1, %s2867_s10  ;;  %p1856_p0 = scmp.ge.s32.totalorder %s2871_s11, 1  ;;  %s2871_s11 = sphi %s2892_s11, %s12_s11   ;;  %s2867_s10 = sphi %s2890_s10, %s6069_s10   ;;  %s2863_s9 = sphi %s2888_s9, %s6068_s9  }
   0x3   : > { %p26_p1 = scmp.ge.s32.totalorder %s24_s12, 2  ;;  %p152_p2 = scmp.lt.s32.totalorder %s2871_s11, 3 }
   0x5   : > { %s6071_s12 = smov (%p26_p1, %s24_s12), 0  ;;  %p153_p3 = pnand %p1856_p0, %p152_p2 }
   0x7   : > { %156 = sbr.rel (%p153_p3) target bundleno = 849 (0x351), region = 28 }
   0xe   : > { %p188_p4 = scmp.lt.s32.totalorder %s2863_s9, 3  ;;  %s197_s18 = sadd.s32 2, %s2863_s9  ;;  %vm1371_vm0 = vcmask 523264  }
   0xf   : > { %p3171_p5 = scmp.lt.s32.totalorder %s197_s18, 3  ;;  %p209_p6 = scmp.lt.s32.totalorder %s2863_s9, 1 }
  0x10   : > { %s189_s13 = scalar_select %p188_p4, %s2863_s9, 3 }
  0x11   : > { %s6073_s18 = smov (!%p3171_p5, %s197_s18), 3  ;;  %s6075_s9 = smov (!%p209_p6, %s2863_s9), 1 }
  0x12   : > { %s2820_s14 = smul.u32 768, %s189_s13  ;;  %s1859_s24 = sshll.u32 %s6075_s9, 3 }
  0x13   : > { %s2821_s20 = smul.u32 768, %s6073_s18  ;;  %s212_s28 = scalar_lea.vmem %s5072_s2, %s1859_s24 }
  0x14   : > { %s2913_s17 = scalar_lea.vmem %s5070_s0, %s2820_s14 }
  0x15   : > { %v2916_v0 = vld [vmem:[%s2913_s17 + $0x88] sm:$0xff]   ;;  %v2919_v1 = vld [vmem:[%s2913_s17 + $0x90] sm:$0xff]   ;;  %v2922_v2 = vld [vmem:[%s2913_s17 + $0x98] sm:$0xff]   ;;  %s3305_s23 = scalar_lea.vmem %s5071_s1, %s2821_s20 }
  0x16   : > { %v2925_v3 = vld [vmem:[%s2913_s17 + $0xa0] sm:$0xff]   ;;  %v2928_v4 = vld [vmem:[%s2913_s17 + $0xa8] sm:$0xff]   ;;  %v2933_v7 = vld [vmem:[%s2913_s17 + $0xb0] sm:$0xff]  }
  0x17   : > { %v2936_v8 = vld [vmem:[%s2913_s17 + $0xb8] sm:$0xff]   ;;  %v2943_v13 = vld [vmem:[%s2913_s17 + $0xc0] sm:$0xff]   ;;  %v2946_v14 = vld [vmem:[%s2913_s17 + $0xc8] sm:$0xff]  }
  0x18   : > { %v2953_v19 = vld [vmem:[%s2913_s17 + $0xd0] sm:$0xff]   ;;  %v2956_v20 = vld [vmem:[%s2913_s17 + $0xd8] sm:$0xff]   ;;  %v2963_v25 = vld [vmem:[%s2913_s17 + $0xe0] sm:$0xff]  }
  0x19   : > { %v2966_v26 = vld [vmem:[%s2913_s17 + $0xe8] sm:$0xff]   ;;  %v2973_v31 = vld [vmem:[%s2913_s17 + $0xf0] sm:$0xff]   ;;  %v2976_v32 = vld [vmem:[%s2913_s17 + $0xf8] sm:$0xff]  }
  0x1a   : > { %v2983_v37 = vld [vmem:[%s2913_s17 + $0x100] sm:$0xff]   ;;  %v2986_v38 = vld [vmem:[%s2913_s17 + $0x108] sm:$0xff]   ;;  %v2993_v43 = vld [vmem:[%s2913_s17 + $0x110] sm:$0xff]  }
  0x1b   : > { %v2996_v44 = vld [vmem:[%s2913_s17 + $0x118] sm:$0xff]   ;;  %v3003_v49 = vld [vmem:[%s2913_s17 + $0x120] sm:$0xff]   ;;  %v3006_v50 = vld [vmem:[%s2913_s17 + $0x128] sm:$0xff]  }
  0x1c   : > { %v3013_v55 = vld [vmem:[%s2913_s17 + $0x130] sm:$0xff]   ;;  %v3016_v56 = vld [vmem:[%s2913_s17 + $0x138] sm:$0xff]   ;;  %v3023_v61 = vld [vmem:[%s2913_s17 + $0x140] sm:$0xff]  }
  0x1d   : > { %5285 = vst [vmem:[#allocation2_spill] sm:$0xff] %v3023_v61  ;;  %v3026_v62 = vld [vmem:[%s2913_s17 + $0x148] sm:$0xff]   ;;  %v3033_v58 = vld [vmem:[%s2913_s17 + $0x150] sm:$0xff]   ;;  %v3036_v52 = vld [vmem:[%s2913_s17 + $0x158] sm:$0xff]  }
  0x1e   : > { %5286 = vst [vmem:[#allocation3_spill] sm:$0xff] %v3026_v62  ;;  %5287 = vst [vmem:[#allocation4_spill] sm:$0xff] %v3033_v58  ;;  %v3043_v54 = vld [vmem:[%s2913_s17 + $0x160] sm:$0xff]   ;;  %v3046_v48 = vld [vmem:[%s2913_s17 + $0x168] sm:$0xff]  }
  0x1f   : > { %5288 = vst [vmem:[#allocation5_spill] sm:$0xff] %v3036_v52  ;;  %5289 = vst [vmem:[#allocation6_spill] sm:$0xff] %v3043_v54  ;;  %v3053_v59 = vld [vmem:[%s2913_s17 + $0x170] sm:$0xff]   ;;  %v3056_v46 = vld [vmem:[%s2913_s17 + $0x178] sm:$0xff]  }
  0x20   : > { %5290 = vst [vmem:[#allocation7_spill] sm:$0xff] %v3046_v48  ;;  %5291 = vst [vmem:[#allocation8_spill] sm:$0xff] %v3053_v59  ;;  %v3063_v57 = vld [vmem:[%s2913_s17 + $0x180] sm:$0xff]   ;;  %v3066_v42 = vld [vmem:[%s2913_s17 + $0x188] sm:$0xff]  }
  0x21   : > { %5292 = vst [vmem:[#allocation9_spill] sm:$0xff] %v3056_v46  ;;  %5293 = vst [vmem:[#allocation10_spill] sm:$0xff] %v3063_v57  ;;  %v3073_v63 = vld [vmem:[%s2913_s17 + $0x190] sm:$0xff]   ;;  %v3076_v40 = vld [vmem:[%s2913_s17 + $0x198] sm:$0xff]  }
  0x22   : > { %5294 = vst [vmem:[#allocation11_spill] sm:$0xff] %v3066_v42  ;;  %5295 = vst [vmem:[#allocation12_spill] sm:$0xff] %v3073_v63  ;;  %v3083_v60 = vld [vmem:[%s2913_s17 + $0x1a0] sm:$0xff]   ;;  %v3086_v36 = vld [vmem:[%s2913_s17 + $0x1a8] sm:$0xff]  }
  0x23   : > { %5296 = vst [vmem:[#allocation13_spill] sm:$0xff] %v3076_v40  ;;  %5297 = vst [vmem:[#allocation14_spill] sm:$0xff] %v3083_v60  ;;  %v3093_v53 = vld [vmem:[%s2913_s17 + $0x1b0] sm:$0xff]   ;;  %v3096_v34 = vld [vmem:[%s2913_s17 + $0x1b8] sm:$0xff]  }
  0x24   : > { %5298 = vst [vmem:[#allocation15_spill] sm:$0xff] %v3086_v36  ;;  %5299 = vst [vmem:[#allocation16_spill] sm:$0xff] %v3093_v53  ;;  %v3103_v51 = vld [vmem:[%s2913_s17 + $0x1c0] sm:$0xff]   ;;  %v3106_v30 = vld [vmem:[%s2913_s17 + $0x1c8] sm:$0xff]  }
  0x25   : > { %5300 = vst [vmem:[#allocation17_spill] sm:$0xff] %v3096_v34  ;;  %5301 = vst [vmem:[#allocation18_spill] sm:$0xff] %v3103_v51  ;;  %v3113_v29 = vld [vmem:[%s2913_s17 + $0x1d0] sm:$0xff]   ;;  %v3116_v41 = vld [vmem:[%s2913_s17 + $0x1d8] sm:$0xff]  }
  0x26   : > { %5302 = vst [vmem:[#allocation19_spill] sm:$0xff] %v3106_v30  ;;  %5303 = vst [vmem:[#allocation20_spill] sm:$0xff] %v3113_v29  ;;  %v3123_v27 = vld [vmem:[%s2913_s17 + $0x1e0] sm:$0xff]   ;;  %v3126_v39 = vld [vmem:[%s2913_s17 + $0x1e8] sm:$0xff]  }
  0x27   : > { %5304 = vst [vmem:[#allocation21_spill] sm:$0xff] %v3116_v41  ;;  %5305 = vst [vmem:[#allocation22_spill] sm:$0xff] %v3123_v27  ;;  %v3133_v33 = vld [vmem:[%s2913_s17 + $0x1f0] sm:$0xff]   ;;  %v3136_v35 = vld [vmem:[%s2913_s17 + $0x1f8] sm:$0xff]  }
  0x28   : > { %5306 = vst [vmem:[#allocation23_spill] sm:$0xff] %v3126_v39  ;;  %5307 = vst [vmem:[#allocation24_spill] sm:$0xff] %v3133_v33  ;;  %v3144_v23 = vld [vmem:[%s2913_s17 + $0x200] sm:$0xff]   ;;  %v3147_v21 = vld [vmem:[%s2913_s17 + $0x208] sm:$0xff]  }
  0x29   : > { %5308 = vst [vmem:[#allocation25_spill] sm:$0xff] %v3136_v35  ;;  %5309 = vst [vmem:[#allocation26_spill] sm:$0xff] %v3144_v23  ;;  %v3154_v17 = vld [vmem:[%s2913_s17 + $0x210] sm:$0xff]   ;;  %v3157_v47 = vld [vmem:[%s2913_s17 + $0x218] sm:$0xff]  }
  0x2a   : > { %5310 = vst [vmem:[#allocation27_spill] sm:$0xff] %v3147_v21  ;;  %5311 = vst [vmem:[#allocation28_spill] sm:$0xff] %v3154_v17  ;;  %v3164_v28 = vld [vmem:[%s2913_s17 + $0x220] sm:$0xff]   ;;  %v3167_v45 = vld [vmem:[%s2913_s17 + $0x228] sm:$0xff]  }
  0x2b   : > { %5312 = vst [vmem:[#allocation29_spill] sm:$0xff] %v3157_v47  ;;  %5313 = vst [vmem:[#allocation30_spill] sm:$0xff] %v3164_v28  ;;  %v3180_v18 = vld [vmem:[%s2913_s17 + $0x230] sm:$0xff]   ;;  %v3183_v12 = vld [vmem:[%s2913_s17 + $0x238] sm:$0xff]  }
  0x2c   : > { %5314 = vst [vmem:[#allocation31_spill] sm:$0xff] %v3167_v45  ;;  %5316 = vst [vmem:[#allocation32_spill] sm:$0xff] %v3180_v18  ;;  %v3190_v9 = vld [vmem:[%s2913_s17 + $0x240] sm:$0xff]   ;;  %v3193_v15 = vld [vmem:[%s2913_s17 + $0x248] sm:$0xff]  }
  0x2d   : > { %5317 = vst [vmem:[#allocation33_spill] sm:$0xff] %v3183_v12  ;;  %5318 = vst [vmem:[#allocation34_spill] sm:$0xff] %v3190_v9  ;;  %v3200_v5 = vld [vmem:[%s2913_s17 + $0x250] sm:$0xff]   ;;  %v3203_v22 = vld [vmem:[%s2913_s17 + $0x258] sm:$0xff]  }
  0x2e   : > { %5319 = vst [vmem:[#allocation35_spill] sm:$0xff] %v3193_v15  ;;  %5320 = vst [vmem:[#allocation36_spill] sm:$0xff] %v3200_v5  ;;  %v3210_v24 = vld [vmem:[%s2913_s17 + $0x260] sm:$0xff]   ;;  %v3213_v11 = vld [vmem:[%s2913_s17 + $0x268] sm:$0xff]  }
  0x2f   : > { %5321 = vst [vmem:[#allocation37_spill] sm:$0xff] %v3203_v22  ;;  %5322 = vst [vmem:[#allocation38_spill] sm:$0xff] %v3210_v24  ;;  %v3226_v18 = vld [vmem:[%s2913_s17 + $0x270] sm:$0xff]   ;;  %v3229_v6 = vld [vmem:[%s2913_s17 + $0x278] sm:$0xff]  }
  0x30   : > { %5323 = vst [vmem:[#allocation39_spill] sm:$0xff] %v3213_v11  ;;  %5324 = vst [vmem:[#allocation40_spill] sm:$0xff] %v3226_v18  ;;  %v3236_v9 = vld [vmem:[%s2913_s17 + $0x280] sm:$0xff]   ;;  %v3239_v47 = vld [vmem:[%s2913_s17 + $0x288] sm:$0xff]  }
  0x31   : > { %5325 = vst [vmem:[#allocation41_spill] sm:$0xff] %v3229_v6  ;;  %5326 = vst [vmem:[#allocation42_spill] sm:$0xff] %v3236_v9  ;;  %v3246_v5 = vld [vmem:[%s2913_s17 + $0x290] sm:$0xff]   ;;  %v3249_v10 = vld [vmem:[%s2913_s17 + $0x298] sm:$0xff]  }
  0x32   : > { %5327 = vst [vmem:[#allocation43_spill] sm:$0xff] %v3239_v47  ;;  %5328 = vst [vmem:[#allocation44_spill] sm:$0xff] %v3246_v5  ;;  %v3256_v17 = vld [vmem:[%s2913_s17 + $0x2a0] sm:$0xff]   ;;  %v3259_v12 = vld [vmem:[%s2913_s17 + $0x2a8] sm:$0xff]  }
  0x33   : > { %5329 = vst [vmem:[#allocation45_spill] sm:$0xff] %v3249_v10  ;;  %5330 = vst [vmem:[#allocation46_spill] sm:$0xff] %v3256_v17  ;;  %v3267_v18 = vld [vmem:[%s2913_s17 + $0x2b0] sm:$0xff]   ;;  %v3270_v28 = vld [vmem:[%s2913_s17 + $0x2b8] sm:$0xff]  }
  0x34   : > { %5331 = vst [vmem:[#allocation47_spill] sm:$0xff] %v3259_v12  ;;  %5332 = vst [vmem:[#allocation48_spill] sm:$0xff] %v3267_v18  ;;  %v3277_v11 = vld [vmem:[%s2913_s17 + $0x2c0] sm:$0xff]   ;;  %v3280_v9 = vld [vmem:[%s2913_s17 + $0x2c8] sm:$0xff]  }
  0x35   : > { %5333 = vst [vmem:[#allocation49_spill] sm:$0xff] %v3270_v28  ;;  %5334 = vst [vmem:[#allocation50_spill] sm:$0xff] %v3277_v11  ;;  %v3287_v6 = vld [vmem:[%s2913_s17 + $0x2d0] sm:$0xff]   ;;  %v3290_v5 = vld [vmem:[%s2913_s17 + $0x2d8] sm:$0xff]  }
  0x36   : > { %5335 = vst [vmem:[#allocation51_spill] sm:$0xff] %v3280_v9  ;;  %5336 = vst [vmem:[#allocation52_spill] sm:$0xff] %v3287_v6  ;;  %v3297_v21 = vld [vmem:[%s2913_s17 + $0x2e0] sm:$0xff]   ;;  %v3300_v16 = vld [vmem:[%s2913_s17 + $0x2e8] sm:$0xff]  }
  0x37   : > { %5337 = vst [vmem:[#allocation53_spill] sm:$0xff] %v3290_v5  ;;  %5338 = vst [vmem:[#allocation54_spill] sm:$0xff] %v3297_v21  ;;  %v3312_v24 = vld [vmem:[%s2913_s17 + $0x2f0] sm:$0xff]   ;;  %v3315_v47 = vld [vmem:[%s2913_s17 + $0x2f8] sm:$0xff]  }
  0x38   : > { %5339 = vst [vmem:[#allocation55_spill] sm:$0xff] %v3300_v16  ;;  %5340 = vst [vmem:[#allocation56_spill] sm:$0xff] %v3312_v24  ;;  %v3322_v45 = vld [vmem:[%s3305_s23 + $0x88] sm:$0xff]   ;;  %v3325_v11 = vld [vmem:[%s3305_s23 + $0x90] sm:$0xff]  }
  0x39   : > { %5341 = vst [vmem:[#allocation57_spill] sm:$0xff] %v3315_v47  ;;  %v3332_v18 = vld [vmem:[%s3305_s23 + $0x98] sm:$0xff]   ;;  %v3335_v6 = vld [vmem:[%s3305_s23 + $0xa0] sm:$0xff]   ;;  %v3342_v10 = vld [vmem:[%s3305_s23 + $0xa8] sm:$0xff]  }
  0x3a   : > { %v3345_v21 = vld [vmem:[%s3305_s23 + $0xb0] sm:$0xff]   ;;  %v3352_v15 = vld [vmem:[%s3305_s23 + $0xb8] sm:$0xff]   ;;  %v3355_v24 = vld [vmem:[%s3305_s23 + $0xc0] sm:$0xff]  }
  0x3b   : > { %v3362_v28 = vld [vmem:[%s3305_s23 + $0xc8] sm:$0xff]   ;;  %v3365_v17 = vld [vmem:[%s3305_s23 + $0xd0] sm:$0xff]   ;;  %v3372_v22 = vld [vmem:[%s3305_s23 + $0xd8] sm:$0xff]  }
  0x3c   : > { %v3375_v35 = vld [vmem:[%s3305_s23 + $0xe0] sm:$0xff]   ;;  %v3382_v12 = vld [vmem:[%s3305_s23 + $0xe8] sm:$0xff]   ;;  %v3385_v39 = vld [vmem:[%s3305_s23 + $0xf0] sm:$0xff]  }
  0x3d   : > { %v3392_v9 = vld [vmem:[%s3305_s23 + $0xf8] sm:$0xff]   ;;  %v3395_v41 = vld [vmem:[%s3305_s23 + $0x100] sm:$0xff]   ;;  %v3402_v5 = vld [vmem:[%s3305_s23 + $0x108] sm:$0xff]  }
  0x3e   : > { %v3405_v30 = vld [vmem:[%s3305_s23 + $0x110] sm:$0xff]   ;;  %v3412_v16 = vld [vmem:[%s3305_s23 + $0x118] sm:$0xff]   ;;  %v3415_v34 = vld [vmem:[%s3305_s23 + $0x120] sm:$0xff]  }
  0x3f   : > { %v3422_v47 = vld [vmem:[%s3305_s23 + $0x128] sm:$0xff]   ;;  %v3425_v36 = vld [vmem:[%s3305_s23 + $0x130] sm:$0xff]   ;;  %v3432_v23 = vld [vmem:[%s3305_s23 + $0x138] sm:$0xff]  }
  0x40   : > { %v3435_v40 = vld [vmem:[%s3305_s23 + $0x140] sm:$0xff]   ;;  %v3442_v33 = vld [vmem:[%s3305_s23 + $0x148] sm:$0xff]   ;;  %v3445_v42 = vld [vmem:[%s3305_s23 + $0x150] sm:$0xff]  }
  0x41   : > { %5342 = vst [vmem:[#allocation58_spill] sm:$0xff] %v3442_v33  ;;  %5343 = vst [vmem:[#allocation59_spill] sm:$0xff] %v3445_v42  ;;  %v3452_v27 = vld [vmem:[%s3305_s23 + $0x158] sm:$0xff]   ;;  %v3455_v46 = vld [vmem:[%s3305_s23 + $0x160] sm:$0xff]  }
  0x42   : > { %5344 = vst [vmem:[#allocation60_spill] sm:$0xff] %v3452_v27  ;;  %5345 = vst [vmem:[#allocation61_spill] sm:$0xff] %v3455_v46  ;;  %v3462_v29 = vld [vmem:[%s3305_s23 + $0x168] sm:$0xff]   ;;  %v3465_v48 = vld [vmem:[%s3305_s23 + $0x170] sm:$0xff]  }
  0x43   : > { %5346 = vst [vmem:[#allocation62_spill] sm:$0xff] %v3462_v29  ;;  %5347 = vst [vmem:[#allocation63_spill] sm:$0xff] %v3465_v48  ;;  %v3472_v51 = vld [vmem:[%s3305_s23 + $0x178] sm:$0xff]   ;;  %v3475_v52 = vld [vmem:[%s3305_s23 + $0x180] sm:$0xff]  }
  0x44   : > { %5348 = vst [vmem:[#allocation64_spill] sm:$0xff] %v3472_v51  ;;  %5349 = vst [vmem:[#allocation65_spill] sm:$0xff] %v3475_v52  ;;  %v3482_v53 = vld [vmem:[%s3305_s23 + $0x188] sm:$0xff]   ;;  %v3485_v62 = vld [vmem:[%s3305_s23 + $0x190] sm:$0xff]  }
  0x45   : > { %5350 = vst [vmem:[#allocation66_spill] sm:$0xff] %v3482_v53  ;;  %5351 = vst [vmem:[#allocation67_spill] sm:$0xff] %v3485_v62  ;;  %v3492_v60 = vld [vmem:[%s3305_s23 + $0x198] sm:$0xff]   ;;  %v3495_v27 = vld [vmem:[%s3305_s23 + $0x1a0] sm:$0xff]  }
  0x46   : > { %5352 = vst [vmem:[#allocation68_spill] sm:$0xff] %v3492_v60  ;;  %5353 = vst [vmem:[#allocation69_spill] sm:$0xff] %v3495_v27  ;;  %v3502_v63 = vld [vmem:[%s3305_s23 + $0x1a8] sm:$0xff]   ;;  %v3505_v29 = vld [vmem:[%s3305_s23 + $0x1b0] sm:$0xff]  }
  0x47   : > { %5354 = vst [vmem:[#allocation70_spill] sm:$0xff] %v3502_v63  ;;  %5355 = vst [vmem:[#allocation71_spill] sm:$0xff] %v3505_v29  ;;  %v3512_v57 = vld [vmem:[%s3305_s23 + $0x1b8] sm:$0xff]   ;;  %v3515_v51 = vld [vmem:[%s3305_s23 + $0x1c0] sm:$0xff]  }
  0x48   : > { %5356 = vst [vmem:[#allocation72_spill] sm:$0xff] %v3512_v57  ;;  %5357 = vst [vmem:[#allocation73_spill] sm:$0xff] %v3515_v51  ;;  %v3522_v59 = vld [vmem:[%s3305_s23 + $0x1c8] sm:$0xff]   ;;  %v3525_v53 = vld [vmem:[%s3305_s23 + $0x1d0] sm:$0xff]  }
  0x49   : > { %5358 = vst [vmem:[#allocation74_spill] sm:$0xff] %v3522_v59  ;;  %5359 = vst [vmem:[#allocation75_spill] sm:$0xff] %v3525_v53  ;;  %v3532_v54 = vld [vmem:[%s3305_s23 + $0x1d8] sm:$0xff]   ;;  %v3535_v60 = vld [vmem:[%s3305_s23 + $0x1e0] sm:$0xff]  }
  0x4a   : > { %5360 = vst [vmem:[#allocation76_spill] sm:$0xff] %v3532_v54  ;;  %5361 = vst [vmem:[#allocation77_spill] sm:$0xff] %v3535_v60  ;;  %v3542_v58 = vld [vmem:[%s3305_s23 + $0x1e8] sm:$0xff]   ;;  %v3545_v63 = vld [vmem:[%s3305_s23 + $0x1f0] sm:$0xff]  }
  0x4b   : > { %5362 = vst [vmem:[#allocation78_spill] sm:$0xff] %v3542_v58  ;;  %5363 = vst [vmem:[#allocation79_spill] sm:$0xff] %v3545_v63  ;;  %v3552_v42 = vld [vmem:[%s3305_s23 + $0x1f8] sm:$0xff]   ;;  %v3555_v57 = vld [vmem:[%s3305_s23 + $0x200] sm:$0xff]  }
  0x4c   : > { %5364 = vst [vmem:[#allocation80_spill] sm:$0xff] %v3552_v42  ;;  %5365 = vst [vmem:[#allocation81_spill] sm:$0xff] %v3555_v57  ;;  %v3562_v46 = vld [vmem:[%s3305_s23 + $0x208] sm:$0xff]   ;;  %v3565_v59 = vld [vmem:[%s3305_s23 + $0x210] sm:$0xff]  }
  0x4d   : > { %5366 = vst [vmem:[#allocation82_spill] sm:$0xff] %v3562_v46  ;;  %5367 = vst [vmem:[#allocation83_spill] sm:$0xff] %v3565_v59  ;;  %v3572_v48 = vld [vmem:[%s3305_s23 + $0x218] sm:$0xff]   ;;  %v3575_v54 = vld [vmem:[%s3305_s23 + $0x220] sm:$0xff]  }
  0x4e   : > { %5368 = vst [vmem:[#allocation84_spill] sm:$0xff] %v3572_v48  ;;  %5369 = vst [vmem:[#allocation85_spill] sm:$0xff] %v3575_v54  ;;  %v3582_v52 = vld [vmem:[%s3305_s23 + $0x228] sm:$0xff]   ;;  %v3585_v58 = vld [vmem:[%s3305_s23 + $0x230] sm:$0xff]  }
  0x4f   : > { %5370 = vst [vmem:[#allocation86_spill] sm:$0xff] %v3582_v52  ;;  %5371 = vst [vmem:[#allocation87_spill] sm:$0xff] %v3585_v58  ;;  %v3592_v62 = vld [vmem:[%s3305_s23 + $0x238] sm:$0xff]   ;;  %v3595_v42 = vld [vmem:[%s3305_s23 + $0x240] sm:$0xff]  }
  0x50   : > { %5372 = vst [vmem:[#allocation88_spill] sm:$0xff] %v3592_v62  ;;  %5373 = vst [vmem:[#allocation89_spill] sm:$0xff] %v3595_v42  ;;  %v3602_v27 = vld [vmem:[%s3305_s23 + $0x248] sm:$0xff]   ;;  %v3605_v46 = vld [vmem:[%s3305_s23 + $0x250] sm:$0xff]   ;;  %v5397_v42 = vunpack.c.l.bf16 %v2919_v1 }
  0x51   : > { %5374 = vst [vmem:[#allocation90_spill] sm:$0xff] %v3602_v27  ;;  %5375 = vst [vmem:[#allocation91_spill] sm:$0xff] %v3605_v46  ;;  %v3612_v29 = vld [vmem:[%s3305_s23 + $0x258] sm:$0xff]   ;;  %v3615_v48 = vld [vmem:[%s3305_s23 + $0x260] sm:$0xff]   ;;  %v5394_v46 = vunpack.c.h.bf16 %v3322_v45 }
  0x52   : > { %5376 = vst [vmem:[#allocation92_spill] sm:$0xff] %v3612_v29  ;;  %5377 = vst [vmem:[#allocation93_spill] sm:$0xff] %v3615_v48  ;;  %v3622_v51 = vld [vmem:[%s3305_s23 + $0x268] sm:$0xff]   ;;  %v3625_v52 = vld [vmem:[%s3305_s23 + $0x270] sm:$0xff]   ;;  %v5396_v48 = vunpack.c.l.bf16 %v3325_v11 }
  0x53   : > { %5378 = vst [vmem:[#allocation94_spill] sm:$0xff] %v3622_v51  ;;  %5379 = vst [vmem:[#allocation95_spill] sm:$0xff] %v3625_v52  ;;  %v3632_v53 = vld [vmem:[%s3305_s23 + $0x278] sm:$0xff]   ;;  %v3635_v62 = vld [vmem:[%s3305_s23 + $0x280] sm:$0xff]  }
  0x54   : > { %5380 = vst [vmem:[#allocation96_spill] sm:$0xff] %v3632_v53  ;;  %5381 = vst [vmem:[#allocation97_spill] sm:$0xff] %v3635_v62  ;;  %v3642_v60 = vld [vmem:[%s3305_s23 + $0x288] sm:$0xff]   ;;  %v3645_v27 = vld [vmem:[%s3305_s23 + $0x290] sm:$0xff]   ;;  %v5392_v62 = vunpack.c.l.bf16 %v3322_v45  ;;  %v5401_v45 = vunpack.c.l.bf16 %v2922_v2 }
  0x55   : > { %5382 = vst [vmem:[#allocation98_spill] sm:$0xff] %v3642_v60  ;;  %5383 = vst [vmem:[#allocation99_spill] sm:$0xff] %v3645_v27  ;;  %v3652_v63 = vld [vmem:[%s3305_s23 + $0x298] sm:$0xff]   ;;  %v3655_v29 = vld [vmem:[%s3305_s23 + $0x2a0] sm:$0xff]   ;;  %v3740_v27 = vsub.f32 %v5397_v42, %v5396_v48  ;;  %v5404_v42 = vunpack.c.l.bf16 %v3335_v6 }
  0x56   : > { %5384 = vst [vmem:[#allocation100_spill] sm:$0xff] %v3652_v63  ;;  %5385 = vst [vmem:[#allocation101_spill] sm:$0xff] %v3655_v29  ;;  %v3662_v57 = vld [vmem:[%s3305_s23 + $0x2a8] sm:$0xff]   ;;  %v3665_v51 = vld [vmem:[%s3305_s23 + $0x2b0] sm:$0xff]   ;;  %v5393_v29 = vunpack.c.l.bf16 %v2916_v0 }
  0x57   : > { %5386 = vst [vmem:[#allocation102_spill] sm:$0xff] %v3662_v57  ;;  %5387 = vst [vmem:[#allocation103_spill] sm:$0xff] %v3665_v51  ;;  %v3672_v59 = vld [vmem:[%s3305_s23 + $0x2b8] sm:$0xff]   ;;  %v3675_v53 = vld [vmem:[%s3305_s23 + $0x2c0] sm:$0xff]   ;;  %v5399_v51 = vunpack.c.h.bf16 %v2919_v1  ;;  %v5406_v1 = vunpack.c.h.bf16 %v3335_v6  ;;  %v5413_v6 = vunpack.c.l.bf16 %v2933_v7 }
  0x58   : > { %5388 = vst [vmem:[#allocation104_spill] sm:$0xff] %v3675_v53  ;;  %v3682_v54 = vld [vmem:[%s3305_s23 + $0x2c8] sm:$0xff]   ;;  %v3685_v60 = vld [vmem:[%s3305_s23 + $0x2d0] sm:$0xff]   ;;  %v3692_v33 = vld [vmem:[%s3305_s23 + $0x2d8] sm:$0xff]   ;;  %v5395_v53 = vunpack.c.h.bf16 %v2916_v0  ;;  %v5402_v0 = vunpack.c.h.bf16 %v3332_v18 }
  0x59   : > { %5389 = vst [vmem:[#allocation105_spill] sm:$0xff] %v3685_v60  ;;  %5390 = vst [vmem:[#allocation106_spill] sm:$0xff] %v3692_v33  ;;  %v3695_v58 = vld [vmem:[%s3305_s23 + $0x2e0] sm:$0xff]   ;;  %v3702_v52 = vld [vmem:[%s3305_s23 + $0x2e8] sm:$0xff]   ;;  %v3728_v33 = vsub.f32 %v5393_v29, %v5392_v62  ;;  %v5398_v60 = vunpack.c.h.bf16 %v3325_v11  ;;  %v5400_v29 = vunpack.c.l.bf16 %v3332_v18  ;;  %v5405_v11 = vunpack.c.l.bf16 %v2925_v3 }
  0x5a   : > { %v3705_v61 = vld [vmem:[%s3305_s23 + $0x2f0] sm:$0xff]   ;;  %v3712_v57 = vld [vmem:[%s3305_s23 + $0x2f8] sm:$0xff]   ;;  %v3734_v63 = vsub.f32 %v5395_v53, %v5394_v46  ;;  %v5403_v46 = vunpack.c.h.bf16 %v2922_v2  ;;  %v5409_v18 = vunpack.c.l.bf16 %v2928_v4  ;;  %v5410_v2 = vunpack.c.h.bf16 %v3342_v10 }
  0x5b   : > { %5391 = vst [vmem:[#allocation107_spill] sm:$0xff] %v3712_v57  ;;  %v3746_v57 = vsub.f32 %v5399_v51, %v5398_v60  ;;  %v3752_v62 = vsub.f32 %v5401_v45, %v5400_v29  ;;  %v3764_v48 = vsub.f32 %v5405_v11, %v5404_v42  ;;  %v5407_v51 = vunpack.c.h.bf16 %v2925_v3 }
  0x5c   : > { %v3758_v53 = vsub.f32 %v5403_v46, %v5402_v0  ;;  %v5408_v29 = vunpack.c.l.bf16 %v3342_v10  ;;  %v5411_v0 = vunpack.c.h.bf16 %v2928_v4  ;;  %v5412_v42 = vunpack.c.l.bf16 %v3345_v21 }
  0x5d   : > { %v3770_v60 = vsub.f32 %v5407_v51, %v5406_v1  ;;  %v5414_v3 = vunpack.c.h.bf16 %v3345_v21  ;;  %v5415_v1 = vunpack.c.h.bf16 %v2933_v7  ;;  %v5417_v10 = vunpack.c.l.bf16 %v2936_v8 }
  0x5e   : > { %v3776_v45 = vsub.f32 %v5409_v18, %v5408_v29  ;;  %v3782_v46 = vsub.f32 %v5411_v0, %v5410_v2  ;;  %v3788_v11 = vsub.f32 %v5413_v6, %v5412_v42  ;;  %v5416_v29 = vunpack.c.l.bf16 %v3352_v15 }
  0x5f   : > { %v3794_v51 = vsub.f32 %v5415_v1, %v5414_v3  ;;  %v5418_v4 = vunpack.c.h.bf16 %v3352_v15  ;;  %v5419_v2 = vunpack.c.h.bf16 %v2936_v8  ;;  %v5420_v42 = vunpack.c.l.bf16 %v3355_v24 }
  0x60   : > { %v3800_v18 = vsub.f32 %v5417_v10, %v5416_v29  ;;  %v5421_v21 = vunpack.c.l.bf16 %v2943_v13  ;;  %v5422_v7 = vunpack.c.h.bf16 %v3355_v24  ;;  %v5423_v3 = vunpack.c.h.bf16 %v2943_v13 }
  0x61   : > { %v3806_v0 = vsub.f32 %v5419_v2, %v5418_v4  ;;  %v5424_v29 = vunpack.c.l.bf16 %v3362_v28  ;;  %v5425_v15 = vunpack.c.l.bf16 %v2946_v14  ;;  %v5426_v8 = vunpack.c.h.bf16 %v3362_v28 }
  0x62   : > { %v3812_v6 = vsub.f32 %v5421_v21, %v5420_v42  ;;  %v3818_v1 = vsub.f32 %v5423_v3, %v5422_v7  ;;  %v5427_v4 = vunpack.c.h.bf16 %v2946_v14  ;;  %v5428_v42 = vunpack.c.l.bf16 %v3365_v17 }
  0x63   : > { %v3824_v10 = vsub.f32 %v5425_v15, %v5424_v29  ;;  %v5429_v24 = vunpack.c.l.bf16 %v2953_v19  ;;  %v5430_v13 = vunpack.c.h.bf16 %v3365_v17  ;;  %v5431_v7 = vunpack.c.h.bf16 %v2953_v19 }
  0x64   : > { %v3830_v2 = vsub.f32 %v5427_v4, %v5426_v8  ;;  %v5432_v29 = vunpack.c.l.bf16 %v3372_v22  ;;  %v5433_v28 = vunpack.c.l.bf16 %v2956_v20  ;;  %v5434_v14 = vunpack.c.h.bf16 %v3372_v22 }
  0x65   : > { %v3836_v21 = vsub.f32 %v5429_v24, %v5428_v42  ;;  %v3842_v3 = vsub.f32 %v5431_v7, %v5430_v13  ;;  %v5435_v8 = vunpack.c.h.bf16 %v2956_v20  ;;  %v5436_v42 = vunpack.c.l.bf16 %v3375_v35 }
  0x66   : > { %v3848_v15 = vsub.f32 %v5433_v28, %v5432_v29  ;;  %v5437_v17 = vunpack.c.l.bf16 %v2963_v25  ;;  %v5438_v19 = vunpack.c.h.bf16 %v3375_v35  ;;  %v5439_v13 = vunpack.c.h.bf16 %v2963_v25 }
  0x67   : > { %v3854_v4 = vsub.f32 %v5435_v8, %v5434_v14  ;;  %v5440_v29 = vunpack.c.l.bf16 %v3382_v12  ;;  %v5441_v22 = vunpack.c.l.bf16 %v2966_v26  ;;  %v5442_v20 = vunpack.c.h.bf16 %v3382_v12 }
  0x68   : > { %v3860_v24 = vsub.f32 %v5437_v17, %v5436_v42  ;;  %v3866_v7 = vsub.f32 %v5439_v13, %v5438_v19  ;;  %v5443_v14 = vunpack.c.h.bf16 %v2966_v26  ;;  %v5444_v42 = vunpack.c.l.bf16 %v3385_v39 }
  0x69   : > { %v3872_v28 = vsub.f32 %v5441_v22, %v5440_v29  ;;  %v5445_v35 = vunpack.c.l.bf16 %v2973_v31  ;;  %v5446_v25 = vunpack.c.h.bf16 %v3385_v39  ;;  %v5447_v19 = vunpack.c.h.bf16 %v2973_v31 }
  0x6a   : > { %v3878_v8 = vsub.f32 %v5443_v14, %v5442_v20  ;;  %v5448_v29 = vunpack.c.l.bf16 %v3392_v9  ;;  %v5449_v12 = vunpack.c.l.bf16 %v2976_v32  ;;  %v5450_v26 = vunpack.c.h.bf16 %v3392_v9 }
  0x6b   : > { %v3884_v17 = vsub.f32 %v5445_v35, %v5444_v42  ;;  %v3890_v13 = vsub.f32 %v5447_v19, %v5446_v25  ;;  %v5451_v20 = vunpack.c.h.bf16 %v2976_v32  ;;  %v5452_v42 = vunpack.c.l.bf16 %v3395_v41 }
  0x6c   : > { %v3896_v22 = vsub.f32 %v5449_v12, %v5448_v29  ;;  %v5453_v39 = vunpack.c.l.bf16 %v2983_v37  ;;  %v5454_v31 = vunpack.c.h.bf16 %v3395_v41  ;;  %v5455_v25 = vunpack.c.h.bf16 %v2983_v37 }
  0x6d   : > { %v3902_v14 = vsub.f32 %v5451_v20, %v5450_v26  ;;  %v5457_v29 = vunpack.c.l.bf16 %v3402_v5  ;;  %v5458_v9 = vunpack.c.l.bf16 %v2986_v38  ;;  %v5460_v32 = vunpack.c.h.bf16 %v3402_v5 }
  0x6e   : > { %v3908_v35 = vsub.f32 %v5453_v39, %v5452_v42  ;;  %v3914_v19 = vsub.f32 %v5455_v25, %v5454_v31  ;;  %v5461_v26 = vunpack.c.h.bf16 %v2986_v38  ;;  %v5463_v42 = vunpack.c.l.bf16 %v3405_v30 }
  0x6f   : > { %v3920_v12 = vsub.f32 %v5458_v9, %v5457_v29  ;;  %v5464_v41 = vunpack.c.l.bf16 %v2993_v43  ;;  %v5466_v37 = vunpack.c.h.bf16 %v3405_v30  ;;  %v5467_v31 = vunpack.c.h.bf16 %v2993_v43 }
  0x70   : > { %5456 = vst [vmem:[#allocation108_spill] sm:$0xff] %v3914_v19  ;;  %v3926_v20 = vsub.f32 %v5461_v26, %v5460_v32  ;;  %v5469_v29 = vunpack.c.l.bf16 %v3412_v16  ;;  %v5470_v5 = vunpack.c.l.bf16 %v2996_v44  ;;  %v5472_v38 = vunpack.c.h.bf16 %v3412_v16 }
  0x71   : > { %5459 = vst [vmem:[#allocation109_spill] sm:$0xff] %v3920_v12  ;;  %v3932_v39 = vsub.f32 %v5464_v41, %v5463_v42  ;;  %v3938_v25 = vsub.f32 %v5467_v31, %v5466_v37  ;;  %v5473_v32 = vunpack.c.h.bf16 %v2996_v44  ;;  %v5475_v42 = vunpack.c.l.bf16 %v3415_v34 }
  0x72   : > { %5462 = vst [vmem:[#allocation110_spill] sm:$0xff] %v3926_v20  ;;  %v3944_v9 = vsub.f32 %v5470_v5, %v5469_v29  ;;  %v5476_v30 = vunpack.c.l.bf16 %v3003_v49  ;;  %v5478_v43 = vunpack.c.h.bf16 %v3415_v34  ;;  %v5479_v37 = vunpack.c.h.bf16 %v3003_v49 }
  0x73   : > { %5465 = vst [vmem:[#allocation111_spill] sm:$0xff] %v3932_v39  ;;  %5468 = vst [vmem:[#allocation112_spill] sm:$0xff] %v3938_v25  ;;  %v3950_v26 = vsub.f32 %v5473_v32, %v5472_v38  ;;  %v5481_v29 = vunpack.c.l.bf16 %v3422_v47  ;;  %v5482_v16 = vunpack.c.l.bf16 %v3006_v50  ;;  %v5484_v44 = vunpack.c.h.bf16 %v3422_v47 }
  0x74   : > { %5471 = vst [vmem:[#allocation113_spill] sm:$0xff] %v3944_v9  ;;  %v3956_v41 = vsub.f32 %v5476_v30, %v5475_v42  ;;  %v3962_v31 = vsub.f32 %v5479_v37, %v5478_v43  ;;  %v5485_v38 = vunpack.c.h.bf16 %v3006_v50  ;;  %v5487_v42 = vunpack.c.l.bf16 %v3425_v36 }
  0x75   : > { %5474 = vst [vmem:[#allocation114_spill] sm:$0xff] %v3950_v26  ;;  %v3968_v5 = vsub.f32 %v5482_v16, %v5481_v29  ;;  %v5488_v34 = vunpack.c.l.bf16 %v3013_v55  ;;  %v5490_v49 = vunpack.c.h.bf16 %v3425_v36  ;;  %v5491_v43 = vunpack.c.h.bf16 %v3013_v55 }
  0x76   : > { %5477 = vst [vmem:[#allocation115_spill] sm:$0xff] %v3956_v41  ;;  %5480 = vst [vmem:[#allocation116_spill] sm:$0xff] %v3962_v31  ;;  %v3974_v32 = vsub.f32 %v5485_v38, %v5484_v44  ;;  %v5493_v29 = vunpack.c.l.bf16 %v3432_v23  ;;  %v5494_v47 = vunpack.c.l.bf16 %v3016_v56  ;;  %v5496_v50 = vunpack.c.h.bf16 %v3432_v23  ;;  %v2633_v31 = vld [vmem:[%s2913_s17 + $0x20] sm:$0xff]  }
  0x77   : > { %5483 = vst [vmem:[#allocation117_spill] sm:$0xff] %v3968_v5  ;;  %v3980_v30 = vsub.f32 %v5488_v34, %v5487_v42  ;;  %v3986_v37 = vsub.f32 %v5491_v43, %v5490_v49  ;;  %v5497_v44 = vunpack.c.h.bf16 %v3016_v56  ;;  %v5499_v42 = vunpack.c.l.bf16 %v3435_v40  ;;  %v5500_v34 = vld [vmem:[#allocation2_spill] sm:$0xff] }
  0x78   : > { %5486 = vst [vmem:[#allocation118_spill] sm:$0xff] %v3974_v32  ;;  %v3992_v16 = vsub.f32 %v5494_v47, %v5493_v29  ;;  %v5501_v36 = vunpack.c.l.bf16 %v5500_v34  ;;  %v5503_v55 = vunpack.c.h.bf16 %v3435_v40  ;;  %v5504_v49 = vunpack.c.h.bf16 %v5500_v34  ;;  %v5506_v29 = vld [vmem:[#allocation58_spill] sm:$0xff] }
  0x79   : > { %5489 = vst [vmem:[#allocation119_spill] sm:$0xff] %v3980_v30  ;;  %5492 = vst [vmem:[#allocation120_spill] sm:$0xff] %v3986_v37  ;;  %v3998_v38 = vsub.f32 %v5497_v44, %v5496_v50  ;;  %v5507_v47 = vunpack.c.l.bf16 %v5506_v29  ;;  %v5511_v56 = vunpack.c.h.bf16 %v5506_v29  ;;  %v2728_v41 = vld [vmem:[%s3305_s23 + $0x20] sm:$0xff]  }
  0x7a   : > { %5495 = vst [vmem:[#allocation121_spill] sm:$0xff] %v3992_v16  ;;  %v4004_v30 = vsub.f32 %v5501_v36, %v5499_v42  ;;  %v4010_v43 = vsub.f32 %v5504_v49, %v5503_v55  ;;  %v5508_v16 = vld [vmem:[#allocation3_spill] sm:$0xff] }
  0x7b   : > { %5498 = vst [vmem:[#allocation122_spill] sm:$0xff] %v3998_v38  ;;  %v5509_v23 = vunpack.c.l.bf16 %v5508_v16  ;;  %v5512_v50 = vunpack.c.h.bf16 %v5508_v16  ;;  %v5514_v42 = vld [vmem:[#allocation59_spill] sm:$0xff] }
  0x7c   : > { %5502 = vst [vmem:[#allocation2_spill] sm:$0xff] %v4004_v30  ;;  %5505 = vst [vmem:[#allocation123_spill] sm:$0xff] %v4010_v43  ;;  %v5515_v36 = vunpack.c.l.bf16 %v5514_v42  ;;  %v5516_v30 = vld [vmem:[#allocation4_spill] sm:$0xff]  ;;  %v5519_v34 = vunpack.c.h.bf16 %v5514_v42 }
  0x7d   : > { %v4016_v37 = vsub.f32 %v5509_v23, %v5507_v47  ;;  %v4022_v44 = vsub.f32 %v5512_v50, %v5511_v56  ;;  %v5517_v40 = vunpack.c.l.bf16 %v5516_v30  ;;  %v5520_v55 = vunpack.c.h.bf16 %v5516_v30  ;;  %v5522_v47 = vld [vmem:[#allocation60_spill] sm:$0xff] }
  0x7e   : > { %v5523_v23 = vunpack.c.l.bf16 %v5522_v47  ;;  %v5527_v16 = vunpack.c.h.bf16 %v5522_v47 }
  0x7f   : > { %5510 = vst [vmem:[#allocation58_spill] sm:$0xff] %v4016_v37  ;;  %5513 = vst [vmem:[#allocation3_spill] sm:$0xff] %v4022_v44  ;;  %v4028_v38 = vsub.f32 %v5517_v40, %v5515_v36  ;;  %v4034_v49 = vsub.f32 %v5520_v55, %v5519_v34  ;;  %v5524_v37 = vld [vmem:[#allocation5_spill] sm:$0xff] }
  0x80   : > { %v5525_v29 = vunpack.c.l.bf16 %v5524_v37  ;;  %v5528_v56 = vunpack.c.h.bf16 %v5524_v37  ;;  %v5530_v36 = vld [vmem:[#allocation61_spill] sm:$0xff] }
  0x81   : > { %5518 = vst [vmem:[#allocation59_spill] sm:$0xff] %v4028_v38  ;;  %5521 = vst [vmem:[#allocation4_spill] sm:$0xff] %v4034_v49  ;;  %v5531_v40 = vunpack.c.l.bf16 %v5530_v36  ;;  %v5532_v38 = vld [vmem:[#allocation6_spill] sm:$0xff]  ;;  %v5535_v30 = vunpack.c.h.bf16 %v5530_v36 }
  0x82   : > { %v4040_v43 = vsub.f32 %v5525_v29, %v5523_v23  ;;  %v4046_v50 = vsub.f32 %v5528_v56, %v5527_v16  ;;  %v5533_v42 = vunpack.c.l.bf16 %v5532_v38  ;;  %v5536_v34 = vunpack.c.h.bf16 %v5532_v38  ;;  %v5538_v23 = vld [vmem:[#allocation62_spill] sm:$0xff] }
  0x83   : > { %v5539_v29 = vunpack.c.l.bf16 %v5538_v23  ;;  %v5543_v37 = vunpack.c.h.bf16 %v5538_v23 }
  0x84   : > { %5526 = vst [vmem:[#allocation60_spill] sm:$0xff] %v4040_v43  ;;  %5529 = vst [vmem:[#allocation5_spill] sm:$0xff] %v4046_v50  ;;  %v4052_v44 = vsub.f32 %v5533_v42, %v5531_v40  ;;  %v4058_v55 = vsub.f32 %v5536_v34, %v5535_v30  ;;  %v5540_v43 = vld [vmem:[#allocation7_spill] sm:$0xff] }
  0x85   : > { %v5541_v47 = vunpack.c.l.bf16 %v5540_v43  ;;  %v5544_v16 = vunpack.c.h.bf16 %v5540_v43  ;;  %v5546_v40 = vld [vmem:[#allocation63_spill] sm:$0xff] }
  0x86   : > { %5534 = vst [vmem:[#allocation61_spill] sm:$0xff] %v4052_v44  ;;  %5537 = vst [vmem:[#allocation6_spill] sm:$0xff] %v4058_v55  ;;  %v5547_v42 = vunpack.c.l.bf16 %v5546_v40  ;;  %v5548_v44 = vld [vmem:[#allocation8_spill] sm:$0xff]  ;;  %v5551_v38 = vunpack.c.h.bf16 %v5546_v40 }
  0x87   : > { %v4064_v49 = vsub.f32 %v5541_v47, %v5539_v29  ;;  %v4070_v56 = vsub.f32 %v5544_v16, %v5543_v37  ;;  %v5549_v36 = vunpack.c.l.bf16 %v5548_v44  ;;  %v5552_v30 = vunpack.c.h.bf16 %v5548_v44  ;;  %v5554_v29 = vld [vmem:[#allocation64_spill] sm:$0xff] }
  0x88   : > { %v5555_v47 = vunpack.c.l.bf16 %v5554_v29  ;;  %v5559_v43 = vunpack.c.h.bf16 %v5554_v29 }
  0x89   : > { %5542 = vst [vmem:[#allocation62_spill] sm:$0xff] %v4064_v49  ;;  %5545 = vst [vmem:[#allocation7_spill] sm:$0xff] %v4070_v56  ;;  %v4076_v50 = vsub.f32 %v5549_v36, %v5547_v42  ;;  %v4082_v34 = vsub.f32 %v5552_v30, %v5551_v38  ;;  %v5556_v49 = vld [vmem:[#allocation9_spill] sm:$0xff] }
  0x8a   : > { %v5557_v23 = vunpack.c.l.bf16 %v5556_v49  ;;  %v5560_v37 = vunpack.c.h.bf16 %v5556_v49  ;;  %v5562_v42 = vld [vmem:[#allocation65_spill] sm:$0xff] }
  0x8b   : > { %5550 = vst [vmem:[#allocation63_spill] sm:$0xff] %v4076_v50  ;;  %5553 = vst [vmem:[#allocation8_spill] sm:$0xff] %v4082_v34  ;;  %v5563_v36 = vunpack.c.l.bf16 %v5562_v42  ;;  %v5564_v50 = vld [vmem:[#allocation10_spill] sm:$0xff]  ;;  %v5567_v44 = vunpack.c.h.bf16 %v5562_v42 }
  0x8c   : > { %v4088_v55 = vsub.f32 %v5557_v23, %v5555_v47  ;;  %v4094_v16 = vsub.f32 %v5560_v37, %v5559_v43  ;;  %v5565_v40 = vunpack.c.l.bf16 %v5564_v50  ;;  %v5568_v38 = vunpack.c.h.bf16 %v5564_v50  ;;  %v5570_v47 = vld [vmem:[#allocation66_spill] sm:$0xff] }
  0x8d   : > { %v5571_v23 = vunpack.c.l.bf16 %v5570_v47  ;;  %v5575_v49 = vunpack.c.h.bf16 %v5570_v47 }
  0x8e   : > { %5558 = vst [vmem:[#allocation64_spill] sm:$0xff] %v4088_v55  ;;  %5561 = vst [vmem:[#allocation9_spill] sm:$0xff] %v4094_v16  ;;  %v4100_v56 = vsub.f32 %v5565_v40, %v5563_v36  ;;  %v4106_v30 = vsub.f32 %v5568_v38, %v5567_v44  ;;  %v5572_v55 = vld [vmem:[#allocation11_spill] sm:$0xff] }
  0x8f   : > { %v5573_v29 = vunpack.c.l.bf16 %v5572_v55  ;;  %v5576_v43 = vunpack.c.h.bf16 %v5572_v55  ;;  %v5578_v36 = vld [vmem:[#allocation67_spill] sm:$0xff] }
  0x90   : > { %5566 = vst [vmem:[#allocation65_spill] sm:$0xff] %v4100_v56  ;;  %5569 = vst [vmem:[#allocation10_spill] sm:$0xff] %v4106_v30  ;;  %v5579_v40 = vunpack.c.l.bf16 %v5578_v36  ;;  %v5580_v56 = vld [vmem:[#allocation12_spill] sm:$0xff]  ;;  %v5583_v50 = vunpack.c.h.bf16 %v5578_v36 }
  0x91   : > { %v4112_v34 = vsub.f32 %v5573_v29, %v5571_v23  ;;  %v4118_v37 = vsub.f32 %v5576_v43, %v5575_v49  ;;  %v5581_v42 = vunpack.c.l.bf16 %v5580_v56  ;;  %v5584_v44 = vunpack.c.h.bf16 %v5580_v56  ;;  %v5586_v23 = vld [vmem:[#allocation68_spill] sm:$0xff] }
  0x92   : > { %v5587_v29 = vunpack.c.l.bf16 %v5586_v23  ;;  %v5591_v55 = vunpack.c.h.bf16 %v5586_v23 }
  0x93   : > { %5574 = vst [vmem:[#allocation66_spill] sm:$0xff] %v4112_v34  ;;  %5577 = vst [vmem:[#allocation11_spill] sm:$0xff] %v4118_v37  ;;  %v4124_v16 = vsub.f32 %v5581_v42, %v5579_v40  ;;  %v4130_v38 = vsub.f32 %v5584_v44, %v5583_v50  ;;  %v5588_v34 = vld [vmem:[#allocation13_spill] sm:$0xff] }
  0x94   : > { %v5589_v47 = vunpack.c.l.bf16 %v5588_v34  ;;  %v5592_v49 = vunpack.c.h.bf16 %v5588_v34  ;;  %v5594_v40 = vld [vmem:[#allocation69_spill] sm:$0xff] }
  0x95   : > { %5582 = vst [vmem:[#allocation67_spill] sm:$0xff] %v4124_v16  ;;  %5585 = vst [vmem:[#allocation12_spill] sm:$0xff] %v4130_v38  ;;  %v5595_v42 = vunpack.c.l.bf16 %v5594_v40  ;;  %v5596_v16 = vld [vmem:[#allocation14_spill] sm:$0xff]  ;;  %v5599_v56 = vunpack.c.h.bf16 %v5594_v40 }
  0x96   : > { %v4136_v30 = vsub.f32 %v5589_v47, %v5587_v29  ;;  %v4142_v43 = vsub.f32 %v5592_v49, %v5591_v55  ;;  %v5597_v36 = vunpack.c.l.bf16 %v5596_v16  ;;  %v5600_v50 = vunpack.c.h.bf16 %v5596_v16  ;;  %v5602_v29 = vld [vmem:[#allocation70_spill] sm:$0xff] }
  0x97   : > { %v5603_v47 = vunpack.c.l.bf16 %v5602_v29  ;;  %v5607_v34 = vunpack.c.h.bf16 %v5602_v29 }
  0x98   : > { %5590 = vst [vmem:[#allocation68_spill] sm:$0xff] %v4136_v30  ;;  %5593 = vst [vmem:[#allocation13_spill] sm:$0xff] %v4142_v43  ;;  %v4148_v37 = vsub.f32 %v5597_v36, %v5595_v42  ;;  %v4154_v44 = vsub.f32 %v5600_v50, %v5599_v56  ;;  %v5604_v30 = vld [vmem:[#allocation15_spill] sm:$0xff] }
  0x99   : > { %v5605_v23 = vunpack.c.l.bf16 %v5604_v30  ;;  %v5608_v55 = vunpack.c.h.bf16 %v5604_v30  ;;  %v5610_v42 = vld [vmem:[#allocation71_spill] sm:$0xff] }
  0x9a   : > { %5598 = vst [vmem:[#allocation69_spill] sm:$0xff] %v4148_v37  ;;  %5601 = vst [vmem:[#allocation14_spill] sm:$0xff] %v4154_v44  ;;  %v5611_v36 = vunpack.c.l.bf16 %v5610_v42  ;;  %v5612_v37 = vld [vmem:[#allocation16_spill] sm:$0xff]  ;;  %v5615_v16 = vunpack.c.h.bf16 %v5610_v42 }
  0x9b   : > { %v4160_v38 = vsub.f32 %v5605_v23, %v5603_v47  ;;  %v4166_v49 = vsub.f32 %v5608_v55, %v5607_v34  ;;  %v5613_v40 = vunpack.c.l.bf16 %v5612_v37  ;;  %v5616_v56 = vunpack.c.h.bf16 %v5612_v37  ;;  %v5618_v47 = vld [vmem:[#allocation72_spill] sm:$0xff] }
  0x9c   : > { %v5619_v23 = vunpack.c.l.bf16 %v5618_v47  ;;  %v5623_v30 = vunpack.c.h.bf16 %v5618_v47 }
  0x9d   : > { %5606 = vst [vmem:[#allocation70_spill] sm:$0xff] %v4160_v38  ;;  %5609 = vst [vmem:[#allocation15_spill] sm:$0xff] %v4166_v49  ;;  %v4172_v43 = vsub.f32 %v5613_v40, %v5611_v36  ;;  %v4178_v50 = vsub.f32 %v5616_v56, %v5615_v16  ;;  %v5620_v38 = vld [vmem:[#allocation17_spill] sm:$0xff] }
  0x9e   : > { %v5621_v29 = vunpack.c.l.bf16 %v5620_v38  ;;  %v5624_v34 = vunpack.c.h.bf16 %v5620_v38  ;;  %v5626_v36 = vld [vmem:[#allocation73_spill] sm:$0xff] }
  0x9f   : > { %5614 = vst [vmem:[#allocation71_spill] sm:$0xff] %v4172_v43  ;;  %5617 = vst [vmem:[#allocation16_spill] sm:$0xff] %v4178_v50  ;;  %v5627_v40 = vunpack.c.l.bf16 %v5626_v36  ;;  %v5628_v43 = vld [vmem:[#allocation18_spill] sm:$0xff]  ;;  %v5631_v37 = vunpack.c.h.bf16 %v5626_v36 }
  0xa0   : > { %v4184_v44 = vsub.f32 %v5621_v29, %v5619_v23  ;;  %v4190_v55 = vsub.f32 %v5624_v34, %v5623_v30  ;;  %v5629_v42 = vunpack.c.l.bf16 %v5628_v43  ;;  %v5632_v16 = vunpack.c.h.bf16 %v5628_v43  ;;  %v5634_v23 = vld [vmem:[#allocation74_spill] sm:$0xff] }
  0xa1   : > { %v5635_v29 = vunpack.c.l.bf16 %v5634_v23  ;;  %v5639_v38 = vunpack.c.h.bf16 %v5634_v23 }
  0xa2   : > { %5622 = vst [vmem:[#allocation72_spill] sm:$0xff] %v4184_v44  ;;  %5625 = vst [vmem:[#allocation17_spill] sm:$0xff] %v4190_v55  ;;  %v4196_v49 = vsub.f32 %v5629_v42, %v5627_v40  ;;  %v4202_v56 = vsub.f32 %v5632_v16, %v5631_v37  ;;  %v5636_v44 = vld [vmem:[#allocation19_spill] sm:$0xff] }
  0xa3   : > { %v5637_v47 = vunpack.c.l.bf16 %v5636_v44  ;;  %v5640_v30 = vunpack.c.h.bf16 %v5636_v44  ;;  %v5642_v40 = vld [vmem:[#allocation75_spill] sm:$0xff] }
  0xa4   : > { %5630 = vst [vmem:[#allocation73_spill] sm:$0xff] %v4196_v49  ;;  %5633 = vst [vmem:[#allocation18_spill] sm:$0xff] %v4202_v56  ;;  %v5643_v42 = vunpack.c.l.bf16 %v5642_v40  ;;  %v5644_v49 = vld [vmem:[#allocation20_spill] sm:$0xff]  ;;  %v5647_v43 = vunpack.c.h.bf16 %v5642_v40 }
  0xa5   : > { %v4208_v50 = vsub.f32 %v5637_v47, %v5635_v29  ;;  %v4214_v34 = vsub.f32 %v5640_v30, %v5639_v38  ;;  %v5645_v36 = vunpack.c.l.bf16 %v5644_v49  ;;  %v5648_v37 = vunpack.c.h.bf16 %v5644_v49  ;;  %v5650_v29 = vld [vmem:[#allocation76_spill] sm:$0xff] }
  0xa6   : > { %v5651_v47 = vunpack.c.l.bf16 %v5650_v29  ;;  %v5655_v44 = vunpack.c.h.bf16 %v5650_v29 }
  0xa7   : > { %5638 = vst [vmem:[#allocation74_spill] sm:$0xff] %v4208_v50  ;;  %5641 = vst [vmem:[#allocation19_spill] sm:$0xff] %v4214_v34  ;;  %v4220_v55 = vsub.f32 %v5645_v36, %v5643_v42  ;;  %v4226_v16 = vsub.f32 %v5648_v37, %v5647_v43  ;;  %v5652_v50 = vld [vmem:[#allocation21_spill] sm:$0xff] }
  0xa8   : > { %v5653_v23 = vunpack.c.l.bf16 %v5652_v50  ;;  %v5656_v38 = vunpack.c.h.bf16 %v5652_v50  ;;  %v5658_v42 = vld [vmem:[#allocation77_spill] sm:$0xff] }
  0xa9   : > { %5646 = vst [vmem:[#allocation75_spill] sm:$0xff] %v4220_v55  ;;  %5649 = vst [vmem:[#allocation20_spill] sm:$0xff] %v4226_v16  ;;  %v5659_v36 = vunpack.c.l.bf16 %v5658_v42  ;;  %v5660_v55 = vld [vmem:[#allocation22_spill] sm:$0xff]  ;;  %v5663_v49 = vunpack.c.h.bf16 %v5658_v42 }
  0xaa   : > { %v4232_v56 = vsub.f32 %v5653_v23, %v5651_v47  ;;  %v4238_v30 = vsub.f32 %v5656_v38, %v5655_v44  ;;  %v5661_v40 = vunpack.c.l.bf16 %v5660_v55  ;;  %v5664_v43 = vunpack.c.h.bf16 %v5660_v55  ;;  %v5666_v47 = vld [vmem:[#allocation78_spill] sm:$0xff] }
  0xab   : > { %v5667_v23 = vunpack.c.l.bf16 %v5666_v47  ;;  %v5671_v50 = vunpack.c.h.bf16 %v5666_v47 }
  0xac   : > { %5654 = vst [vmem:[#allocation76_spill] sm:$0xff] %v4232_v56  ;;  %5657 = vst [vmem:[#allocation21_spill] sm:$0xff] %v4238_v30  ;;  %v4244_v34 = vsub.f32 %v5661_v40, %v5659_v36  ;;  %v4250_v37 = vsub.f32 %v5664_v43, %v5663_v49  ;;  %v5668_v56 = vld [vmem:[#allocation23_spill] sm:$0xff] }
  0xad   : > { %v5669_v29 = vunpack.c.l.bf16 %v5668_v56  ;;  %v5672_v44 = vunpack.c.h.bf16 %v5668_v56  ;;  %v5674_v36 = vld [vmem:[#allocation79_spill] sm:$0xff] }
  0xae   : > { %5662 = vst [vmem:[#allocation77_spill] sm:$0xff] %v4244_v34  ;;  %5665 = vst [vmem:[#allocation22_spill] sm:$0xff] %v4250_v37  ;;  %v5675_v40 = vunpack.c.l.bf16 %v5674_v36  ;;  %v5676_v34 = vld [vmem:[#allocation24_spill] sm:$0xff]  ;;  %v5679_v55 = vunpack.c.h.bf16 %v5674_v36 }
  0xaf   : > { %v4256_v16 = vsub.f32 %v5669_v29, %v5667_v23  ;;  %v4262_v38 = vsub.f32 %v5672_v44, %v5671_v50  ;;  %v5677_v42 = vunpack.c.l.bf16 %v5676_v34  ;;  %v5680_v49 = vunpack.c.h.bf16 %v5676_v34  ;;  %v5682_v23 = vld [vmem:[#allocation80_spill] sm:$0xff] }
  0xb0   : > { %v5683_v29 = vunpack.c.l.bf16 %v5682_v23  ;;  %v5687_v56 = vunpack.c.h.bf16 %v5682_v23 }
  0xb1   : > { %5670 = vst [vmem:[#allocation78_spill] sm:$0xff] %v4256_v16  ;;  %5673 = vst [vmem:[#allocation23_spill] sm:$0xff] %v4262_v38  ;;  %v4268_v30 = vsub.f32 %v5677_v42, %v5675_v40  ;;  %v4274_v43 = vsub.f32 %v5680_v49, %v5679_v55  ;;  %v5684_v16 = vld [vmem:[#allocation25_spill] sm:$0xff] }
  0xb2   : > { %v5685_v47 = vunpack.c.l.bf16 %v5684_v16  ;;  %v5688_v50 = vunpack.c.h.bf16 %v5684_v16  ;;  %v5690_v40 = vld [vmem:[#allocation81_spill] sm:$0xff] }
  0xb3   : > { %5678 = vst [vmem:[#allocation79_spill] sm:$0xff] %v4268_v30  ;;  %5681 = vst [vmem:[#allocation24_spill] sm:$0xff] %v4274_v43  ;;  %v5691_v42 = vunpack.c.l.bf16 %v5690_v40  ;;  %v5692_v30 = vld [vmem:[#allocation26_spill] sm:$0xff]  ;;  %v5695_v34 = vunpack.c.h.bf16 %v5690_v40 }
  0xb4   : > { %v4280_v37 = vsub.f32 %v5685_v47, %v5683_v29  ;;  %v4286_v44 = vsub.f32 %v5688_v50, %v5687_v56  ;;  %v5693_v36 = vunpack.c.l.bf16 %v5692_v30  ;;  %v5696_v55 = vunpack.c.h.bf16 %v5692_v30  ;;  %v5698_v29 = vld [vmem:[#allocation82_spill] sm:$0xff] }
  0xb5   : > { %v5699_v47 = vunpack.c.l.bf16 %v5698_v29  ;;  %v5703_v16 = vunpack.c.h.bf16 %v5698_v29 }
  0xb6   : > { %5686 = vst [vmem:[#allocation80_spill] sm:$0xff] %v4280_v37  ;;  %5689 = vst [vmem:[#allocation25_spill] sm:$0xff] %v4286_v44  ;;  %v4292_v38 = vsub.f32 %v5693_v36, %v5691_v42  ;;  %v4298_v49 = vsub.f32 %v5696_v55, %v5695_v34  ;;  %v5700_v37 = vld [vmem:[#allocation27_spill] sm:$0xff] }
  0xb7   : > { %v5701_v23 = vunpack.c.l.bf16 %v5700_v37  ;;  %v5704_v56 = vunpack.c.h.bf16 %v5700_v37  ;;  %v5706_v42 = vld [vmem:[#allocation83_spill] sm:$0xff] }
  0xb8   : > { %5694 = vst [vmem:[#allocation81_spill] sm:$0xff] %v4292_v38  ;;  %5697 = vst [vmem:[#allocation26_spill] sm:$0xff] %v4298_v49  ;;  %v5707_v36 = vunpack.c.l.bf16 %v5706_v42  ;;  %v5708_v38 = vld [vmem:[#allocation28_spill] sm:$0xff]  ;;  %v5711_v30 = vunpack.c.h.bf16 %v5706_v42 }
  0xb9   : > { %v4304_v43 = vsub.f32 %v5701_v23, %v5699_v47  ;;  %v4310_v50 = vsub.f32 %v5704_v56, %v5703_v16  ;;  %v5709_v40 = vunpack.c.l.bf16 %v5708_v38  ;;  %v5712_v34 = vunpack.c.h.bf16 %v5708_v38  ;;  %v5714_v47 = vld [vmem:[#allocation84_spill] sm:$0xff] }
  0xba   : > { %v5715_v23 = vunpack.c.l.bf16 %v5714_v47  ;;  %v5719_v37 = vunpack.c.h.bf16 %v5714_v47 }
  0xbb   : > { %5702 = vst [vmem:[#allocation82_spill] sm:$0xff] %v4304_v43  ;;  %5705 = vst [vmem:[#allocation27_spill] sm:$0xff] %v4310_v50  ;;  %v4316_v44 = vsub.f32 %v5709_v40, %v5707_v36  ;;  %v4322_v55 = vsub.f32 %v5712_v34, %v5711_v30  ;;  %v5716_v43 = vld [vmem:[#allocation29_spill] sm:$0xff] }
  0xbc   : > { %v5717_v29 = vunpack.c.l.bf16 %v5716_v43  ;;  %v5720_v16 = vunpack.c.h.bf16 %v5716_v43  ;;  %v5722_v36 = vld [vmem:[#allocation85_spill] sm:$0xff] }
  0xbd   : > { %5710 = vst [vmem:[#allocation83_spill] sm:$0xff] %v4316_v44  ;;  %5713 = vst [vmem:[#allocation28_spill] sm:$0xff] %v4322_v55  ;;  %v5723_v40 = vunpack.c.l.bf16 %v5722_v36  ;;  %v5724_v44 = vld [vmem:[#allocation30_spill] sm:$0xff]  ;;  %v5727_v38 = vunpack.c.h.bf16 %v5722_v36 }
  0xbe   : > { %v4328_v49 = vsub.f32 %v5717_v29, %v5715_v23  ;;  %v4334_v56 = vsub.f32 %v5720_v16, %v5719_v37  ;;  %v5725_v42 = vunpack.c.l.bf16 %v5724_v44  ;;  %v5728_v30 = vunpack.c.h.bf16 %v5724_v44  ;;  %v5730_v23 = vld [vmem:[#allocation86_spill] sm:$0xff] }
  0xbf   : > { %v5731_v29 = vunpack.c.l.bf16 %v5730_v23  ;;  %v5735_v43 = vunpack.c.h.bf16 %v5730_v23 }
  0xc0   : > { %5718 = vst [vmem:[#allocation84_spill] sm:$0xff] %v4328_v49  ;;  %5721 = vst [vmem:[#allocation29_spill] sm:$0xff] %v4334_v56  ;;  %v4340_v50 = vsub.f32 %v5725_v42, %v5723_v40  ;;  %v4346_v34 = vsub.f32 %v5728_v30, %v5727_v38  ;;  %v5732_v49 = vld [vmem:[#allocation31_spill] sm:$0xff] }
  0xc1   : > { %v5733_v47 = vunpack.c.l.bf16 %v5732_v49  ;;  %v5736_v37 = vunpack.c.h.bf16 %v5732_v49  ;;  %v5738_v40 = vld [vmem:[#allocation87_spill] sm:$0xff] }
  0xc2   : > { %5726 = vst [vmem:[#allocation85_spill] sm:$0xff] %v4340_v50  ;;  %5729 = vst [vmem:[#allocation30_spill] sm:$0xff] %v4346_v34  ;;  %v5739_v42 = vunpack.c.l.bf16 %v5738_v40  ;;  %v5740_v50 = vld [vmem:[#allocation32_spill] sm:$0xff]  ;;  %v5743_v44 = vunpack.c.h.bf16 %v5738_v40 }
  0xc3   : > { %v4352_v55 = vsub.f32 %v5733_v47, %v5731_v29  ;;  %v4358_v16 = vsub.f32 %v5736_v37, %v5735_v43  ;;  %v5741_v36 = vunpack.c.l.bf16 %v5740_v50  ;;  %v5744_v38 = vunpack.c.h.bf16 %v5740_v50  ;;  %v5746_v29 = vld [vmem:[#allocation88_spill] sm:$0xff] }
  0xc4   : > { %v5747_v47 = vunpack.c.l.bf16 %v5746_v29  ;;  %v5751_v49 = vunpack.c.h.bf16 %v5746_v29 }
  0xc5   : > { %5734 = vst [vmem:[#allocation86_spill] sm:$0xff] %v4352_v55  ;;  %5737 = vst [vmem:[#allocation31_spill] sm:$0xff] %v4358_v16  ;;  %v4364_v56 = vsub.f32 %v5741_v36, %v5739_v42  ;;  %v4370_v30 = vsub.f32 %v5744_v38, %v5743_v44  ;;  %v5748_v55 = vld [vmem:[#allocation33_spill] sm:$0xff] }
  0xc6   : > { %v5749_v23 = vunpack.c.l.bf16 %v5748_v55  ;;  %v5752_v43 = vunpack.c.h.bf16 %v5748_v55  ;;  %v5754_v42 = vld [vmem:[#allocation89_spill] sm:$0xff] }
  0xc7   : > { %5742 = vst [vmem:[#allocation87_spill] sm:$0xff] %v4364_v56  ;;  %5745 = vst [vmem:[#allocation32_spill] sm:$0xff] %v4370_v30  ;;  %v5755_v36 = vunpack.c.l.bf16 %v5754_v42  ;;  %v5756_v56 = vld [vmem:[#allocation34_spill] sm:$0xff]  ;;  %v5759_v50 = vunpack.c.h.bf16 %v5754_v42 }
  0xc8   : > { %v4376_v34 = vsub.f32 %v5749_v23, %v5747_v47  ;;  %v4382_v37 = vsub.f32 %v5752_v43, %v5751_v49  ;;  %v5757_v40 = vunpack.c.l.bf16 %v5756_v56  ;;  %v5760_v44 = vunpack.c.h.bf16 %v5756_v56  ;;  %v5762_v47 = vld [vmem:[#allocation90_spill] sm:$0xff] }
  0xc9   : > { %v5763_v23 = vunpack.c.l.bf16 %v5762_v47  ;;  %v5767_v55 = vunpack.c.h.bf16 %v5762_v47 }
  0xca   : > { %5750 = vst [vmem:[#allocation88_spill] sm:$0xff] %v4376_v34  ;;  %5753 = vst [vmem:[#allocation33_spill] sm:$0xff] %v4382_v37  ;;  %v4388_v16 = vsub.f32 %v5757_v40, %v5755_v36  ;;  %v4394_v38 = vsub.f32 %v5760_v44, %v5759_v50  ;;  %v5764_v34 = vld [vmem:[#allocation35_spill] sm:$0xff] }
  0xcb   : > { %v5765_v29 = vunpack.c.l.bf16 %v5764_v34  ;;  %v5768_v49 = vunpack.c.h.bf16 %v5764_v34  ;;  %v5770_v36 = vld [vmem:[#allocation91_spill] sm:$0xff] }
  0xcc   : > { %5758 = vst [vmem:[#allocation89_spill] sm:$0xff] %v4388_v16  ;;  %5761 = vst [vmem:[#allocation34_spill] sm:$0xff] %v4394_v38  ;;  %v5771_v40 = vunpack.c.l.bf16 %v5770_v36  ;;  %v5772_v16 = vld [vmem:[#allocation36_spill] sm:$0xff]  ;;  %v5775_v56 = vunpack.c.h.bf16 %v5770_v36 }
  0xcd   : > { %v4400_v30 = vsub.f32 %v5765_v29, %v5763_v23  ;;  %v4406_v43 = vsub.f32 %v5768_v49, %v5767_v55  ;;  %v5773_v42 = vunpack.c.l.bf16 %v5772_v16  ;;  %v5776_v50 = vunpack.c.h.bf16 %v5772_v16  ;;  %v5778_v23 = vld [vmem:[#allocation92_spill] sm:$0xff] }
  0xce   : > { %v5779_v29 = vunpack.c.l.bf16 %v5778_v23  ;;  %v5783_v34 = vunpack.c.h.bf16 %v5778_v23 }
  0xcf   : > { %5766 = vst [vmem:[#allocation90_spill] sm:$0xff] %v4400_v30  ;;  %5769 = vst [vmem:[#allocation35_spill] sm:$0xff] %v4406_v43  ;;  %v4412_v37 = vsub.f32 %v5773_v42, %v5771_v40  ;;  %v4418_v44 = vsub.f32 %v5776_v50, %v5775_v56  ;;  %v5780_v30 = vld [vmem:[#allocation37_spill] sm:$0xff] }
  0xd0   : > { %v5781_v47 = vunpack.c.l.bf16 %v5780_v30  ;;  %v5784_v55 = vunpack.c.h.bf16 %v5780_v30  ;;  %v5786_v40 = vld [vmem:[#allocation93_spill] sm:$0xff] }
  0xd1   : > { %5774 = vst [vmem:[#allocation91_spill] sm:$0xff] %v4412_v37  ;;  %5777 = vst [vmem:[#allocation36_spill] sm:$0xff] %v4418_v44  ;;  %v5787_v42 = vunpack.c.l.bf16 %v5786_v40  ;;  %v5788_v37 = vld [vmem:[#allocation38_spill] sm:$0xff]  ;;  %v5791_v16 = vunpack.c.h.bf16 %v5786_v40 }
  0xd2   : > { %v4424_v38 = vsub.f32 %v5781_v47, %v5779_v29  ;;  %v4430_v49 = vsub.f32 %v5784_v55, %v5783_v34  ;;  %v5789_v36 = vunpack.c.l.bf16 %v5788_v37  ;;  %v5792_v56 = vunpack.c.h.bf16 %v5788_v37  ;;  %v5794_v29 = vld [vmem:[#allocation94_spill] sm:$0xff] }
  0xd3   : > { %v5795_v47 = vunpack.c.l.bf16 %v5794_v29  ;;  %v5799_v30 = vunpack.c.h.bf16 %v5794_v29 }
  0xd4   : > { %5782 = vst [vmem:[#allocation92_spill] sm:$0xff] %v4424_v38  ;;  %5785 = vst [vmem:[#allocation37_spill] sm:$0xff] %v4430_v49  ;;  %v4436_v43 = vsub.f32 %v5789_v36, %v5787_v42  ;;  %v4442_v50 = vsub.f32 %v5792_v56, %v5791_v16  ;;  %v5796_v38 = vld [vmem:[#allocation39_spill] sm:$0xff] }
  0xd5   : > { %v5797_v23 = vunpack.c.l.bf16 %v5796_v38  ;;  %v5800_v34 = vunpack.c.h.bf16 %v5796_v38  ;;  %v5802_v42 = vld [vmem:[#allocation95_spill] sm:$0xff] }
  0xd6   : > { %5790 = vst [vmem:[#allocation93_spill] sm:$0xff] %v4436_v43  ;;  %5793 = vst [vmem:[#allocation38_spill] sm:$0xff] %v4442_v50  ;;  %v5803_v36 = vunpack.c.l.bf16 %v5802_v42  ;;  %v5804_v43 = vld [vmem:[#allocation40_spill] sm:$0xff]  ;;  %v5807_v37 = vunpack.c.h.bf16 %v5802_v42 }
  0xd7   : > { %v4448_v44 = vsub.f32 %v5797_v23, %v5795_v47  ;;  %v4454_v55 = vsub.f32 %v5800_v34, %v5799_v30  ;;  %v5805_v40 = vunpack.c.l.bf16 %v5804_v43  ;;  %v5808_v16 = vunpack.c.h.bf16 %v5804_v43  ;;  %v5810_v47 = vld [vmem:[#allocation96_spill] sm:$0xff] }
  0xd8   : > { %v5811_v23 = vunpack.c.l.bf16 %v5810_v47  ;;  %v5815_v38 = vunpack.c.h.bf16 %v5810_v47 }
  0xd9   : > { %5798 = vst [vmem:[#allocation94_spill] sm:$0xff] %v4448_v44  ;;  %5801 = vst [vmem:[#allocation39_spill] sm:$0xff] %v4454_v55  ;;  %v4460_v49 = vsub.f32 %v5805_v40, %v5803_v36  ;;  %v4466_v56 = vsub.f32 %v5808_v16, %v5807_v37  ;;  %v5812_v44 = vld [vmem:[#allocation41_spill] sm:$0xff] }
  0xda   : > { %v5813_v29 = vunpack.c.l.bf16 %v5812_v44  ;;  %v5816_v30 = vunpack.c.h.bf16 %v5812_v44  ;;  %v5818_v36 = vld [vmem:[#allocation97_spill] sm:$0xff] }
  0xdb   : > { %5806 = vst [vmem:[#allocation95_spill] sm:$0xff] %v4460_v49  ;;  %5809 = vst [vmem:[#allocation40_spill] sm:$0xff] %v4466_v56  ;;  %v5819_v40 = vunpack.c.l.bf16 %v5818_v36  ;;  %v5820_v49 = vld [vmem:[#allocation42_spill] sm:$0xff]  ;;  %v5823_v43 = vunpack.c.h.bf16 %v5818_v36 }
  0xdc   : > { %v4472_v50 = vsub.f32 %v5813_v29, %v5811_v23  ;;  %v4478_v34 = vsub.f32 %v5816_v30, %v5815_v38  ;;  %v5821_v42 = vunpack.c.l.bf16 %v5820_v49  ;;  %v5824_v37 = vunpack.c.h.bf16 %v5820_v49  ;;  %v5826_v23 = vld [vmem:[#allocation98_spill] sm:$0xff] }
  0xdd   : > { %v5827_v29 = vunpack.c.l.bf16 %v5826_v23  ;;  %v5831_v44 = vunpack.c.h.bf16 %v5826_v23 }
  0xde   : > { %5814 = vst [vmem:[#allocation96_spill] sm:$0xff] %v4472_v50  ;;  %5817 = vst [vmem:[#allocation41_spill] sm:$0xff] %v4478_v34  ;;  %v4484_v55 = vsub.f32 %v5821_v42, %v5819_v40  ;;  %v4490_v16 = vsub.f32 %v5824_v37, %v5823_v43  ;;  %v5828_v50 = vld [vmem:[#allocation43_spill] sm:$0xff] }
  0xdf   : > { %v5829_v47 = vunpack.c.l.bf16 %v5828_v50  ;;  %v5832_v38 = vunpack.c.h.bf16 %v5828_v50  ;;  %v5834_v40 = vld [vmem:[#allocation99_spill] sm:$0xff] }
  0xe0   : > { %5822 = vst [vmem:[#allocation97_spill] sm:$0xff] %v4484_v55  ;;  %5825 = vst [vmem:[#allocation42_spill] sm:$0xff] %v4490_v16  ;;  %v5835_v42 = vunpack.c.l.bf16 %v5834_v40  ;;  %v5836_v55 = vld [vmem:[#allocation44_spill] sm:$0xff]  ;;  %v5839_v49 = vunpack.c.h.bf16 %v5834_v40 }
  0xe1   : > { %v4496_v56 = vsub.f32 %v5829_v47, %v5827_v29  ;;  %v4502_v30 = vsub.f32 %v5832_v38, %v5831_v44  ;;  %v5837_v36 = vunpack.c.l.bf16 %v5836_v55  ;;  %v5840_v43 = vunpack.c.h.bf16 %v5836_v55  ;;  %v5842_v29 = vld [vmem:[#allocation100_spill] sm:$0xff] }
  0xe2   : > { %v5843_v47 = vunpack.c.l.bf16 %v5842_v29  ;;  %v5847_v50 = vunpack.c.h.bf16 %v5842_v29 }
  0xe3   : > { %5830 = vst [vmem:[#allocation98_spill] sm:$0xff] %v4496_v56  ;;  %5833 = vst [vmem:[#allocation43_spill] sm:$0xff] %v4502_v30  ;;  %v4508_v34 = vsub.f32 %v5837_v36, %v5835_v42  ;;  %v4514_v37 = vsub.f32 %v5840_v43, %v5839_v49  ;;  %v5844_v56 = vld [vmem:[#allocation45_spill] sm:$0xff] }
  0xe4   : > { %v5845_v23 = vunpack.c.l.bf16 %v5844_v56  ;;  %v5848_v44 = vunpack.c.h.bf16 %v5844_v56  ;;  %v5850_v42 = vld [vmem:[#allocation101_spill] sm:$0xff] }
  0xe5   : > { %5838 = vst [vmem:[#allocation99_spill] sm:$0xff] %v4508_v34  ;;  %5841 = vst [vmem:[#allocation44_spill] sm:$0xff] %v4514_v37  ;;  %v5851_v36 = vunpack.c.l.bf16 %v5850_v42  ;;  %v5852_v34 = vld [vmem:[#allocation46_spill] sm:$0xff]  ;;  %v5855_v55 = vunpack.c.h.bf16 %v5850_v42 }
  0xe6   : > { %v4520_v16 = vsub.f32 %v5845_v23, %v5843_v47  ;;  %v4526_v38 = vsub.f32 %v5848_v44, %v5847_v50  ;;  %v5853_v40 = vunpack.c.l.bf16 %v5852_v34  ;;  %v5856_v49 = vunpack.c.h.bf16 %v5852_v34  ;;  %v5858_v47 = vld [vmem:[#allocation102_spill] sm:$0xff] }
  0xe7   : > { %v5859_v23 = vunpack.c.l.bf16 %v5858_v47  ;;  %v5863_v56 = vunpack.c.h.bf16 %v5858_v47 }
  0xe8   : > { %5846 = vst [vmem:[#allocation100_spill] sm:$0xff] %v4520_v16  ;;  %5849 = vst [vmem:[#allocation45_spill] sm:$0xff] %v4526_v38  ;;  %v4532_v30 = vsub.f32 %v5853_v40, %v5851_v36  ;;  %v4538_v43 = vsub.f32 %v5856_v49, %v5855_v55  ;;  %v5860_v16 = vld [vmem:[#allocation47_spill] sm:$0xff] }
  0xe9   : > { %v5861_v29 = vunpack.c.l.bf16 %v5860_v16  ;;  %v5864_v50 = vunpack.c.h.bf16 %v5860_v16  ;;  %v5866_v36 = vld [vmem:[#allocation103_spill] sm:$0xff]  ;;  %v5878_v16 = vunpack.c.h.bf16 %v3672_v59 }
  0xea   : > { %5854 = vst [vmem:[#allocation101_spill] sm:$0xff] %v4532_v30  ;;  %5857 = vst [vmem:[#allocation46_spill] sm:$0xff] %v4538_v43  ;;  %v5867_v40 = vunpack.c.l.bf16 %v5866_v36  ;;  %v5868_v30 = vld [vmem:[#allocation48_spill] sm:$0xff]  ;;  %v5871_v34 = vunpack.c.h.bf16 %v5866_v36 }
  0xeb   : > { %v4544_v37 = vsub.f32 %v5861_v29, %v5859_v23  ;;  %v4550_v44 = vsub.f32 %v5864_v50, %v5863_v56  ;;  %v5869_v42 = vunpack.c.l.bf16 %v5868_v30  ;;  %v5872_v55 = vunpack.c.h.bf16 %v5868_v30  ;;  %v5875_v29 = vld [vmem:[#allocation49_spill] sm:$0xff] }
  0xec   : > { %v5874_v23 = vunpack.c.l.bf16 %v3672_v59  ;;  %v5876_v47 = vunpack.c.l.bf16 %v5875_v29  ;;  %v5879_v56 = vunpack.c.h.bf16 %v5875_v29  ;;  %v5890_v59 = vld [vmem:[#allocation51_spill] sm:$0xff] }
  0xed   : > { %5862 = vst [vmem:[#allocation102_spill] sm:$0xff] %v4544_v37  ;;  %5865 = vst [vmem:[#allocation47_spill] sm:$0xff] %v4550_v44  ;;  %v4556_v38 = vsub.f32 %v5869_v42, %v5867_v40  ;;  %v4562_v49 = vsub.f32 %v5872_v55, %v5871_v34  ;;  %v5881_v40 = vld [vmem:[#allocation104_spill] sm:$0xff] }
  0xee   : > { %v4568_v37 = vsub.f32 %v5876_v47, %v5874_v23  ;;  %v4574_v50 = vsub.f32 %v5879_v56, %v5878_v16  ;;  %v5882_v42 = vunpack.c.l.bf16 %v5881_v40  ;;  %v5886_v30 = vunpack.c.h.bf16 %v5881_v40  ;;  %v5896_v40 = vld [vmem:[#allocation105_spill] sm:$0xff] }
  0xef   : > { %5870 = vst [vmem:[#allocation103_spill] sm:$0xff] %v4556_v38  ;;  %5873 = vst [vmem:[#allocation48_spill] sm:$0xff] %v4562_v49  ;;  %v5883_v38 = vld [vmem:[#allocation50_spill] sm:$0xff]  ;;  %v5889_v23 = vunpack.c.l.bf16 %v3682_v54  ;;  %v5891_v47 = vunpack.c.l.bf16 %v5890_v59  ;;  %v5893_v16 = vunpack.c.h.bf16 %v3682_v54  ;;  %v5894_v56 = vunpack.c.h.bf16 %v5890_v59 }
  0xf0   : > { %5877 = vst [vmem:[#allocation49_spill] sm:$0xff] %v4568_v37  ;;  %5880 = vst [vmem:[#allocation124_spill] sm:$0xff] %v4574_v50  ;;  %v5884_v36 = vunpack.c.l.bf16 %v5883_v38  ;;  %v5887_v34 = vunpack.c.h.bf16 %v5883_v38  ;;  %v5898_v38 = vld [vmem:[#allocation52_spill] sm:$0xff] }
  0xf1   : > { %v4592_v29 = vsub.f32 %v5891_v47, %v5889_v23  ;;  %v5904_v47 = vld [vmem:[#allocation106_spill] sm:$0xff] }
  0xf2   : > { %v4580_v44 = vsub.f32 %v5884_v36, %v5882_v42  ;;  %v4586_v55 = vsub.f32 %v5887_v34, %v5886_v30  ;;  %v4598_v42 = vsub.f32 %v5894_v56, %v5893_v16  ;;  %v5897_v36 = vunpack.c.l.bf16 %v5896_v40 }
  0xf3   : > { %5892 = vst [vmem:[#allocation51_spill] sm:$0xff] %v4592_v29  ;;  %v5901_v34 = vunpack.c.h.bf16 %v5896_v40  ;;  %v5905_v54 = vunpack.c.l.bf16 %v5904_v47  ;;  %v5906_v29 = vld [vmem:[#allocation53_spill] sm:$0xff]  ;;  %v5909_v16 = vunpack.c.h.bf16 %v5904_v47  ;;  %v5920_v47 = vld [vmem:[#allocation55_spill] sm:$0xff] }
  0xf4   : > { %5885 = vst [vmem:[#allocation104_spill] sm:$0xff] %v4580_v44  ;;  %5888 = vst [vmem:[#allocation50_spill] sm:$0xff] %v4586_v55  ;;  %v5899_v44 = vunpack.c.l.bf16 %v5898_v38  ;;  %v5902_v55 = vunpack.c.h.bf16 %v5898_v38  ;;  %v5907_v59 = vunpack.c.l.bf16 %v5906_v29  ;;  %v5910_v56 = vunpack.c.h.bf16 %v5906_v29 }
  0xf5   : > { %5895 = vst [vmem:[#allocation125_spill] sm:$0xff] %v4598_v42 }
  0xf6   : > { %v4604_v30 = vsub.f32 %v5899_v44, %v5897_v36  ;;  %v4610_v23 = vsub.f32 %v5902_v55, %v5901_v34  ;;  %v4616_v50 = vsub.f32 %v5907_v59, %v5905_v54  ;;  %v4622_v42 = vsub.f32 %v5910_v56, %v5909_v16  ;;  %v5913_v36 = vld [vmem:[#allocation54_spill] sm:$0xff] }
  0xf7   : > { %v5912_v44 = vunpack.c.l.bf16 %v3695_v58  ;;  %v5914_v40 = vunpack.c.l.bf16 %v5913_v36  ;;  %v5916_v55 = vunpack.c.h.bf16 %v3695_v58  ;;  %v5917_v34 = vunpack.c.h.bf16 %v5913_v36 }
  0xf8   : > { %5900 = vst [vmem:[#allocation105_spill] sm:$0xff] %v4604_v30  ;;  %5903 = vst [vmem:[#allocation52_spill] sm:$0xff] %v4610_v23  ;;  %v5919_v54 = vunpack.c.l.bf16 %v3702_v52  ;;  %v5921_v59 = vunpack.c.l.bf16 %v5920_v47  ;;  %v5923_v16 = vunpack.c.h.bf16 %v3702_v52  ;;  %v5924_v56 = vunpack.c.h.bf16 %v5920_v47  ;;  %v5935_v52 = vld [vmem:[#allocation57_spill] sm:$0xff] }
  0xf9   : > { %5908 = vst [vmem:[#allocation106_spill] sm:$0xff] %v4616_v50  ;;  %5911 = vst [vmem:[#allocation53_spill] sm:$0xff] %v4622_v42  ;;  %v4628_v38 = vsub.f32 %v5914_v40, %v5912_v44  ;;  %v4634_v23 = vsub.f32 %v5917_v34, %v5916_v55  ;;  %v5926_v44 = vunpack.c.l.bf16 %v3705_v61  ;;  %v5927_v40 = vld [vmem:[#allocation56_spill] sm:$0xff]  ;;  %v5930_v55 = vunpack.c.h.bf16 %v3705_v61  ;;  %v2247_v61 = vld [vmem:[%s3305_s23] sm:$0xff]  }
  0xfa   : > { %v4640_v29 = vsub.f32 %v5921_v59, %v5919_v54  ;;  %v4646_v42 = vsub.f32 %v5924_v56, %v5923_v16  ;;  %v5928_v58 = vunpack.c.l.bf16 %v5927_v40  ;;  %v5931_v34 = vunpack.c.h.bf16 %v5927_v40  ;;  %v5933_v54 = vld [vmem:[#allocation107_spill] sm:$0xff] }
  0xfb   : > { %5915 = vst [vmem:[#allocation54_spill] sm:$0xff] %v4628_v38  ;;  %5918 = vst [vmem:[#allocation126_spill] sm:$0xff] %v4634_v23  ;;  %v5934_v59 = vunpack.c.l.bf16 %v5933_v54  ;;  %v5938_v16 = vunpack.c.h.bf16 %v5933_v54  ;;  %v5939_v56 = vunpack.c.h.bf16 %v5935_v52  ;;  %v2725_v40 = vld [vmem:[%s3305_s23 + $0x8] sm:$0xff]   ;;  %v2248_v38 = vunpack.c.l.bf16 %v2247_v61 }
  0xfc   : > { %5922 = vst [vmem:[#allocation55_spill] sm:$0xff] %v4640_v29  ;;  %5925 = vst [vmem:[#allocation127_spill] sm:$0xff] %v4646_v42  ;;  %v4652_v36 = vsub.f32 %v5928_v58, %v5926_v44  ;;  %v4658_v23 = vsub.f32 %v5931_v34, %v5930_v55  ;;  %v5936_v29 = vunpack.c.l.bf16 %v5935_v52  ;;  %v1863_v44 = vld [vmem:[%s2913_s17] sm:$0xff]   ;;  %v2630_v58 = vld [vmem:[%s2913_s17 + $0x8] sm:$0xff]   ;;  %v2249_v50 = vunpack.c.h.bf16 %v2247_v61 }
  0xfd   : > { %v4670_v42 = vsub.f32 %v5939_v56, %v5938_v16  ;;  %v1864_v55 = vunpack.c.l.bf16 %v1863_v44  ;;  %v1865_v34 = vunpack.c.h.bf16 %v1863_v44  ;;  %v1869_v54 = vunpack.c.h.bf16 %v2630_v58  ;;  %v2632_v56 = vld [vmem:[%s2913_s17 + $0x18] sm:$0xff]  }
  0xfe   : > { %5929 = vst [vmem:[#allocation56_spill] sm:$0xff] %v4652_v36  ;;  %5932 = vst [vmem:[#allocation128_spill] sm:$0xff] %v4658_v23  ;;  %v4664_v47 = vsub.f32 %v5936_v29, %v5934_v59  ;;  %v1868_v23 = vunpack.c.l.bf16 %v2630_v58  ;;  %v2631_v36 = vld [vmem:[%s2913_s17 + $0x10] sm:$0xff]   ;;  %v2252_v29 = vunpack.c.l.bf16 %v2725_v40  ;;  %v2253_v52 = vunpack.c.h.bf16 %v2725_v40 }
  0xff   : > { %5940 = vst [vmem:[#allocation57_spill] sm:$0xff] %v4670_v42  ;;  %v2726_v59 = vld [vmem:[%s3305_s23 + $0x10] sm:$0xff]   ;;  %v1872_v16 = vunpack.c.l.bf16 %v2631_v36  ;;  %v986_v30 = vsub.f32 %v1864_v55, %v2248_v38  ;;  %v987_v37 = vsub.f32 %v1865_v34, %v2249_v50  ;;  %v1873_v43 = vunpack.c.h.bf16 %v2631_v36  ;;  %v2634_v36 = vld [vmem:[%s2913_s17 + $0x28] sm:$0xff]  }
 0x100   : > { %5937 = vst [vmem:[#allocation107_spill] sm:$0xff] %v4664_v47  ;;  %v2256_v42 = vunpack.c.l.bf16 %v2726_v59  ;;  %v2727_v47 = vld [vmem:[%s3305_s23 + $0x18] sm:$0xff]   ;;  %v988_v49 = vsub.f32 %v1868_v23, %v2252_v29  ;;  %v2257_v32 = vunpack.c.h.bf16 %v2726_v59  ;;  %v989_v44 = vsub.f32 %v1869_v54, %v2253_v52  ;;  %v2635_v52 = vld [vmem:[%s2913_s17 + $0x30] sm:$0xff]  }
 0x101   : > { %v1876_v5 = vunpack.c.l.bf16 %v2632_v56  ;;  %v2260_v61 = vunpack.c.l.bf16 %v2727_v47  ;;  %v1178_v9 = vand.u32 2147483647, %v986_v30  ;;  %v1179_v25 = vand.u32 2147483647, %v987_v37 }
 0x102   : > { %v990_v26 = vsub.f32 %v1872_v16, %v2256_v42  ;;  %v1180_v58 = vand.u32 2147483647, %v988_v49  ;;  %v1877_v40 = vunpack.c.h.bf16 %v2632_v56  ;;  %v2261_v39 = vunpack.c.h.bf16 %v2727_v47  ;;  %v2729_v49 = vld [vmem:[%s3305_s23 + $0x28] sm:$0xff]  }
 0x103   : > { %v991_v20 = vsub.f32 %v1873_v43, %v2257_v32  ;;  %v1181_v12 = vand.u32 2147483647, %v989_v44  ;;  %v1880_v38 = vunpack.c.l.bf16 %v2633_v31  ;;  %v2264_v50 = vunpack.c.l.bf16 %v2728_v41  ;;  %v2730_v44 = vld [vmem:[%s3305_s23 + $0x30] sm:$0xff]  }
 0x104   : > { %v992_v23 = vsub.f32 %v1876_v5, %v2260_v61  ;;  %v1182_v55 = vand.u32 2147483647, %v990_v26  ;;  %v1372_v34 = vsel %vm1371_vm0, %v1178_v9, 0.0  ;;  %v1373_v29 = vsel %vm1371_vm0, %v1179_v25, 0.0 }
 0x105   : > { %v1375_v42 = vsel %vm1371_vm0, %v1180_v58, 0.0  ;;  %v1881_v37 = vunpack.c.h.bf16 %v2633_v31  ;;  %v1374_v30 = vadd.f32 %v1373_v29, %v1372_v34  ;;  %v2265_v47 = vunpack.c.h.bf16 %v2728_v41 }
 0x106   : > { %v993_v32 = vsub.f32 %v1877_v40, %v2261_v39  ;;  %v1183_v43 = vand.u32 2147483647, %v991_v20  ;;  %v1377_v59 = vsel %vm1371_vm0, %v1181_v12, 0.0  ;;  %v1884_v5 = vunpack.c.l.bf16 %v2634_v36  ;;  %v2636_v40 = vld [vmem:[%s2913_s17 + $0x38] sm:$0xff]  }
 0x107   : > { %v1376_v54 = vadd.f32 %v1375_v42, %v1374_v30  ;;  %v2268_v26 = vunpack.c.l.bf16 %v2729_v49  ;;  %v994_v16 = vsub.f32 %v1880_v38, %v2264_v50  ;;  %v1184_v9 = vand.u32 2147483647, %v992_v23  ;;  %v2731_v23 = vld [vmem:[%s3305_s23 + $0x38] sm:$0xff]  }
 0x108   : > { %v1379_v25 = vsel %vm1371_vm0, %v1182_v55, 0.0  ;;  %v1885_v56 = vunpack.c.h.bf16 %v2634_v36  ;;  %v2269_v61 = vunpack.c.h.bf16 %v2729_v49  ;;  %v995_v58 = vsub.f32 %v1881_v37, %v2265_v47 }
 0x109   : > { %v1378_v31 = vadd.f32 %v1377_v59, %v1376_v54  ;;  %v1185_v41 = vand.u32 2147483647, %v993_v32  ;;  %v1381_v20 = vsel %vm1371_vm0, %v1183_v43, 0.0  ;;  %v1888_v39 = vunpack.c.l.bf16 %v2635_v52  ;;  %v2637_v43 = vld [vmem:[%s2913_s17 + $0x40] sm:$0xff]  }
 0x10a   : > { %v2272_v34 = vunpack.c.l.bf16 %v2730_v44  ;;  %v996_v29 = vsub.f32 %v1884_v5, %v2268_v26  ;;  %v1186_v42 = vand.u32 2147483647, %v994_v16  ;;  %v1383_v38 = vsel %vm1371_vm0, %v1184_v9, 0.0  ;;  %v2732_v16 = vld [vmem:[%s3305_s23 + $0x40] sm:$0xff]  }
 0x10b   : > { %v1380_v12 = vadd.f32 %v1379_v25, %v1378_v31  ;;  %v1889_v50 = vunpack.c.h.bf16 %v2635_v52  ;;  %v2273_v55 = vunpack.c.h.bf16 %v2730_v44  ;;  %v997_v30 = vsub.f32 %v1885_v56, %v2269_v61 }
 0x10c   : > { %v1187_v49 = vand.u32 2147483647, %v995_v58  ;;  %v1385_v37 = vsel %vm1371_vm0, %v1185_v41, 0.0  ;;  %v1892_v47 = vunpack.c.l.bf16 %v2636_v40  ;;  %v2276_v59 = vunpack.c.l.bf16 %v2731_v23  ;;  %v2638_v41 = vld [vmem:[%s2913_s17 + $0x48] sm:$0xff]  }
 0x10d   : > { %v1382_v36 = vadd.f32 %v1381_v20, %v1380_v12  ;;  %v998_v54 = vsub.f32 %v1888_v39, %v2272_v34  ;;  %v1188_v25 = vand.u32 2147483647, %v996_v29  ;;  %v1387_v5 = vsel %vm1371_vm0, %v1186_v42, 0.0  ;;  %v2733_v29 = vld [vmem:[%s3305_s23 + $0x48] sm:$0xff]  }
 0x10e   : > { %v1893_v26 = vunpack.c.h.bf16 %v2636_v40  ;;  %v2277_v9 = vunpack.c.h.bf16 %v2731_v23  ;;  %v999_v31 = vsub.f32 %v1889_v50, %v2273_v55  ;;  %v1189_v44 = vand.u32 2147483647, %v997_v30 }
 0x10f   : > { %v1384_v32 = vadd.f32 %v1383_v38, %v1382_v36  ;;  %v1389_v56 = vsel %vm1371_vm0, %v1187_v49, 0.0  ;;  %v1896_v61 = vunpack.c.l.bf16 %v2637_v43  ;;  %v2280_v20 = vunpack.c.l.bf16 %v2732_v16  ;;  %v2639_v49 = vld [vmem:[%s2913_s17 + $0x50] sm:$0xff]  }
 0x110   : > { %v1000_v12 = vsub.f32 %v1892_v47, %v2276_v59  ;;  %v1190_v38 = vand.u32 2147483647, %v998_v54  ;;  %v1391_v39 = vsel %vm1371_vm0, %v1188_v25, 0.0  ;;  %v1897_v34 = vunpack.c.h.bf16 %v2637_v43  ;;  %v2734_v54 = vld [vmem:[%s3305_s23 + $0x50] sm:$0xff]  }
 0x111   : > { %v1386_v52 = vadd.f32 %v1385_v37, %v1384_v32  ;;  %v2281_v42 = vunpack.c.h.bf16 %v2732_v16  ;;  %v1001_v36 = vsub.f32 %v1893_v26, %v2277_v9  ;;  %v1191_v23 = vand.u32 2147483647, %v999_v31 }
 0x112   : > { %v1393_v50 = vsel %vm1371_vm0, %v1189_v44, 0.0  ;;  %v1900_v55 = vunpack.c.l.bf16 %v2638_v41  ;;  %v2284_v37 = vunpack.c.l.bf16 %v2733_v29  ;;  %v1002_v32 = vsub.f32 %v1896_v61, %v2280_v20  ;;  %v2640_v44 = vld [vmem:[%s2913_s17 + $0x58] sm:$0xff]  }
 0x113   : > { %v1388_v58 = vadd.f32 %v1387_v5, %v1386_v52  ;;  %v1192_v5 = vand.u32 2147483647, %v1000_v12  ;;  %v1395_v47 = vsel %vm1371_vm0, %v1190_v38, 0.0  ;;  %v1901_v59 = vunpack.c.h.bf16 %v2638_v41  ;;  %v2735_v12 = vld [vmem:[%s3305_s23 + $0x58] sm:$0xff]  }
 0x114   : > { %v2285_v25 = vunpack.c.h.bf16 %v2733_v29  ;;  %v1003_v52 = vsub.f32 %v1897_v34, %v2281_v42  ;;  %v1193_v16 = vand.u32 2147483647, %v1001_v36  ;;  %v1397_v26 = vsel %vm1371_vm0, %v1191_v23, 0.0  ;;  %v2641_v23 = vld [vmem:[%s2913_s17 + $0x60] sm:$0xff]  }
 0x115   : > { %v1390_v40 = vadd.f32 %v1389_v56, %v1388_v58  ;;  %v1904_v9 = vunpack.c.l.bf16 %v2639_v49  ;;  %v2288_v56 = vunpack.c.l.bf16 %v2734_v54  ;;  %v1004_v58 = vsub.f32 %v1900_v55, %v2284_v37 }
 0x116   : > { %v1399_v61 = vsel %vm1371_vm0, %v1192_v5, 0.0  ;;  %v1905_v20 = vunpack.c.h.bf16 %v2639_v49  ;;  %v2289_v38 = vunpack.c.h.bf16 %v2734_v54  ;;  %v1195_v29 = vand.u32 2147483647, %v1003_v52 }
 0x117   : > { %v1392_v30 = vadd.f32 %v1391_v39, %v1390_v40  ;;  %v1194_v39 = vand.u32 2147483647, %v1002_v32  ;;  %v1005_v40 = vsub.f32 %v1901_v59, %v2285_v25  ;;  %v1401_v34 = vsel %vm1371_vm0, %v1193_v16, 0.0  ;;  %v2736_v32 = vld [vmem:[%s3305_s23 + $0x60] sm:$0xff]   ;;  %v2642_v16 = vld [vmem:[%s2913_s17 + $0x68] sm:$0xff]  }
 0x118   : > { %v1908_v42 = vunpack.c.l.bf16 %v2640_v44  ;;  %v1909_v37 = vunpack.c.h.bf16 %v2640_v44  ;;  %v2293_v5 = vunpack.c.h.bf16 %v2735_v12  ;;  %v1405_v59 = vsel %vm1371_vm0, %v1195_v29, 0.0  ;;  %v2643_v29 = vld [vmem:[%s2913_s17 + $0x70] sm:$0xff]  }
 0x119   : > { %v1394_v43 = vadd.f32 %v1393_v50, %v1392_v30  ;;  %v2292_v50 = vunpack.c.l.bf16 %v2735_v12  ;;  %v1006_v30 = vsub.f32 %v1904_v9, %v2288_v56  ;;  %v1403_v55 = vsel %vm1371_vm0, %v1194_v39, 0.0 }
 0x11a   : > { %v1197_v54 = vand.u32 2147483647, %v1005_v40  ;;  %v1912_v25 = vunpack.c.l.bf16 %v2641_v23  ;;  %v1913_v56 = vunpack.c.h.bf16 %v2641_v23  ;;  %v2297_v39 = vunpack.c.h.bf16 %v2736_v32 }
 0x11b   : > { %v1396_v31 = vadd.f32 %v1395_v47, %v1394_v43  ;;  %v1196_v47 = vand.u32 2147483647, %v1004_v58  ;;  %v1007_v43 = vsub.f32 %v1905_v20, %v2289_v38  ;;  %v2737_v58 = vld [vmem:[%s3305_s23 + $0x68] sm:$0xff]   ;;  %v1916_v38 = vunpack.c.l.bf16 %v2642_v16 }
 0x11c   : > { %v1409_v20 = vsel %vm1371_vm0, %v1197_v54, 0.0  ;;  %v2644_v54 = vld [vmem:[%s2913_s17 + $0x78] sm:$0xff]  }
 0x11d   : > { %v1398_v41 = vadd.f32 %v1397_v26, %v1396_v31  ;;  %v2296_v26 = vunpack.c.l.bf16 %v2736_v32  ;;  %v1008_v31 = vsub.f32 %v1908_v42, %v2292_v50  ;;  %v1407_v9 = vsel %vm1371_vm0, %v1196_v47, 0.0 }
 0x11e   : > { %v1199_v12 = vand.u32 2147483647, %v1007_v43  ;;  %v1917_v50 = vunpack.c.h.bf16 %v2642_v16  ;;  %v2301_v47 = vunpack.c.h.bf16 %v2737_v58 }
 0x11f   : > { %v1400_v36 = vadd.f32 %v1399_v61, %v1398_v41  ;;  %v1198_v61 = vand.u32 2147483647, %v1006_v30  ;;  %v1009_v41 = vsub.f32 %v1909_v37, %v2293_v5  ;;  %v2738_v30 = vld [vmem:[%s3305_s23 + $0x70] sm:$0xff]   ;;  %v1920_v5 = vunpack.c.l.bf16 %v2643_v29 }
 0x120   : > { %v1413_v37 = vsel %vm1371_vm0, %v1199_v12, 0.0  ;;  %v2645_v12 = vld [vmem:[%s2913_s17 + $0x80] sm:$0xff]  }
 0x121   : > { %v1402_v49 = vadd.f32 %v1401_v34, %v1400_v36  ;;  %v2300_v34 = vunpack.c.l.bf16 %v2737_v58  ;;  %v1010_v36 = vsub.f32 %v1912_v25, %v2296_v26  ;;  %v1411_v42 = vsel %vm1371_vm0, %v1198_v61, 0.0 }
 0x122   : > { %v1201_v32 = vand.u32 2147483647, %v1009_v41  ;;  %v1921_v26 = vunpack.c.h.bf16 %v2643_v29  ;;  %v2305_v61 = vunpack.c.h.bf16 %v2738_v30 }
 0x123   : > { %v1404_v52 = vadd.f32 %v1403_v55, %v1402_v49  ;;  %v1200_v55 = vand.u32 2147483647, %v1008_v31  ;;  %v1011_v49 = vsub.f32 %v1913_v56, %v2297_v39  ;;  %v2739_v31 = vld [vmem:[%s3305_s23 + $0x78] sm:$0xff]   ;;  %v1924_v39 = vunpack.c.l.bf16 %v2644_v54 }
 0x124   : > { %v1417_v56 = vsel %vm1371_vm0, %v1201_v32, 0.0  ;;  %v1015_v29 = vsub.f32 %v1921_v26, %v2305_v61 }
 0x125   : > { %v1406_v44 = vadd.f32 %v1405_v59, %v1404_v52  ;;  %v2304_v59 = vunpack.c.l.bf16 %v2738_v30  ;;  %v1012_v52 = vsub.f32 %v1916_v38, %v2300_v34  ;;  %v1415_v25 = vsel %vm1371_vm0, %v1200_v55, 0.0 }
 0x126   : > { %v1203_v58 = vand.u32 2147483647, %v1011_v49  ;;  %v1925_v34 = vunpack.c.h.bf16 %v2644_v54 }
 0x127   : > { %v1408_v40 = vadd.f32 %v1407_v9, %v1406_v44  ;;  %v1202_v9 = vand.u32 2147483647, %v1010_v36  ;;  %v1013_v44 = vsub.f32 %v1917_v50, %v2301_v47  ;;  %v2740_v36 = vld [vmem:[%s3305_s23 + $0x80] sm:$0xff]   ;;  %v1928_v50 = vunpack.c.l.bf16 %v2645_v12 }
 0x128   : > { %v1421_v30 = vsel %vm1371_vm0, %v1203_v58, 0.0  ;;  %v2312_v49 = vunpack.c.l.bf16 %v2740_v36 }
 0x129   : > { %v1410_v23 = vadd.f32 %v1409_v20, %v1408_v40  ;;  %v2308_v20 = vunpack.c.l.bf16 %v2739_v31  ;;  %v1014_v40 = vsub.f32 %v1920_v5, %v2304_v59  ;;  %v1419_v38 = vsel %vm1371_vm0, %v1202_v9, 0.0 }
 0x12a   : > { %v1205_v19 = vand.u32 2147483647, %v1013_v44  ;;  %v2313_v59 = vunpack.c.h.bf16 %v2740_v36  ;;  %v1207_v9 = vand.u32 2147483647, %v1015_v29 }
 0x12b   : > { %v1412_v43 = vadd.f32 %v1411_v42, %v1410_v23  ;;  %v1204_v42 = vand.u32 2147483647, %v1012_v52  ;;  %v2309_v23 = vunpack.c.h.bf16 %v2739_v31  ;;  %v1016_v32 = vsub.f32 %v1924_v39, %v2308_v20 }
 0x12c   : > { %v1425_v54 = vsel %vm1371_vm0, %v1205_v19, 0.0  ;;  %v1018_v31 = vsub.f32 %v1928_v50, %v2312_v49  ;;  %v1429_v39 = vsel %vm1371_vm0, %v1207_v9, 0.0  ;;  %v1212_v19 = vand.u32 2147483647, %v3728_v33 }
 0x12d   : > { %v1414_v16 = vadd.f32 %v1413_v37, %v1412_v43  ;;  %v1206_v37 = vand.u32 2147483647, %v1014_v40  ;;  %v1423_v43 = vsel %vm1371_vm0, %v1204_v42, 0.0  ;;  %v1017_v52 = vsub.f32 %v1925_v34, %v2309_v23 }
 0x12e   : > { %v1208_v26 = vand.u32 2147483647, %v1016_v32  ;;  %v1210_v20 = vand.u32 2147483647, %v1018_v31  ;;  %v1213_v23 = vand.u32 2147483647, %v3734_v63 }
 0x12f   : > { %v1416_v41 = vadd.f32 %v1415_v25, %v1414_v16  ;;  %v1929_v25 = vunpack.c.h.bf16 %v2645_v12  ;;  %v1427_v61 = vsel %vm1371_vm0, %v1206_v37, 0.0  ;;  %v1214_v50 = vand.u32 2147483647, %v3740_v27 }
 0x130   : > { %v1431_v12 = vsel %vm1371_vm0, %v1208_v26, 0.0  ;;  %v1435_v36 = vsel %vm1371_vm0, %v1210_v20, 0.0  ;;  %v1215_v32 = vand.u32 2147483647, %v3746_v57  ;;  %v1441_v37 = vsel %vm1371_vm0, %v1213_v23, 0.0 }
 0x131   : > { %v1418_v55 = vadd.f32 %v1417_v56, %v1416_v41  ;;  %v1019_v58 = vsub.f32 %v1929_v25, %v2313_v59  ;;  %v1209_v56 = vand.u32 2147483647, %v1017_v52  ;;  %v1216_v33 = vand.u32 2147483647, %v3752_v62 }
 0x132   : > { %v1443_v25 = vsel %vm1371_vm0, %v1214_v50, 0.0  ;;  %v1217_v63 = vand.u32 2147483647, %v3758_v53  ;;  %v1445_v59 = vsel %vm1371_vm0, %v1215_v32, 0.0  ;;  %v1218_v27 = vand.u32 2147483647, %v3764_v48 }
 0x133   : > { %v1420_v47 = vadd.f32 %v1419_v38, %v1418_v55  ;;  %v1211_v42 = vand.u32 2147483647, %v1019_v58  ;;  %v1433_v38 = vsel %vm1371_vm0, %v1209_v56, 0.0  ;;  %v1447_v9 = vsel %vm1371_vm0, %v1216_v33, 0.0 }
 0x134   : > { %v1219_v57 = vand.u32 2147483647, %v3770_v60  ;;  %v1220_v62 = vand.u32 2147483647, %v3776_v45  ;;  %v1451_v26 = vsel %vm1371_vm0, %v1218_v27, 0.0 }
 0x135   : > { %v1422_v5 = vadd.f32 %v1421_v30, %v1420_v47  ;;  %v1437_v29 = vsel %vm1371_vm0, %v1211_v42, 0.0  ;;  %v1439_v47 = vsel %vm1371_vm0, %v1212_v19, 0.0  ;;  %v1221_v53 = vand.u32 2147483647, %v3782_v46 }
 0x136   : > { %v1222_v48 = vand.u32 2147483647, %v3788_v11  ;;  %v1455_v56 = vsel %vm1371_vm0, %v1220_v62, 0.0  ;;  %v1223_v60 = vand.u32 2147483647, %v3794_v51 }
 0x137   : > { %v1424_v16 = vadd.f32 %v1423_v43, %v1422_v5  ;;  %v1224_v45 = vand.u32 2147483647, %v3800_v18  ;;  %v1225_v46 = vand.u32 2147483647, %v3806_v0  ;;  %v1226_v11 = vand.u32 2147483647, %v3812_v6 }
 0x138   : > { %v1461_v42 = vsel %vm1371_vm0, %v1223_v60, 0.0  ;;  %v1227_v51 = vand.u32 2147483647, %v3818_v1  ;;  %v1228_v18 = vand.u32 2147483647, %v3824_v10  ;;  %v5941_v60 = vld [vmem:[#allocation108_spill] sm:$0xff] }
 0x139   : > { %v1426_v44 = vadd.f32 %v1425_v54, %v1424_v16  ;;  %v1449_v16 = vsel %vm1371_vm0, %v1217_v63, 0.0  ;;  %v1467_v23 = vsel %vm1371_vm0, %v1226_v11, 0.0  ;;  %v1229_v0 = vand.u32 2147483647, %v3830_v2  ;;  %v5944_v11 = vld [vmem:[#allocation111_spill] sm:$0xff] }
 0x13a   : > { %v1230_v6 = vand.u32 2147483647, %v3836_v21  ;;  %v1231_v1 = vand.u32 2147483647, %v3842_v3  ;;  %v1232_v10 = vand.u32 2147483647, %v3848_v15 }
 0x13b   : > { %v1428_v41 = vadd.f32 %v1427_v61, %v1426_v44  ;;  %v1453_v44 = vsel %vm1371_vm0, %v1219_v57, 0.0  ;;  %v1473_v32 = vsel %vm1371_vm0, %v1229_v0, 0.0  ;;  %v1233_v2 = vand.u32 2147483647, %v3854_v4 }
 0x13c   : > { %v1234_v21 = vand.u32 2147483647, %v3860_v24  ;;  %v1479_v63 = vsel %vm1371_vm0, %v1232_v10, 0.0  ;;  %v1235_v3 = vand.u32 2147483647, %v3866_v7 }
 0x13d   : > { %v1430_v40 = vadd.f32 %v1429_v39, %v1428_v41  ;;  %v1457_v41 = vsel %vm1371_vm0, %v1221_v53, 0.0  ;;  %v1236_v15 = vand.u32 2147483647, %v3872_v28  ;;  %v1237_v4 = vand.u32 2147483647, %v3878_v8 }
 0x13e   : > { %v1485_v57 = vsel %vm1371_vm0, %v1235_v3, 0.0  ;;  %v1238_v24 = vand.u32 2147483647, %v3884_v17  ;;  %v1239_v7 = vand.u32 2147483647, %v3890_v13  ;;  %v5951_v3 = vld [vmem:[#allocation118_spill] sm:$0xff] }
 0x13f   : > { %v1432_v34 = vadd.f32 %v1431_v12, %v1430_v40  ;;  %v1459_v12 = vsel %vm1371_vm0, %v1222_v48, 0.0  ;;  %v1240_v28 = vand.u32 2147483647, %v3896_v22  ;;  %v1241_v8 = vand.u32 2147483647, %v3902_v14 }
 0x140   : > { %v1491_v53 = vsel %vm1371_vm0, %v1238_v24, 0.0  ;;  %v1242_v17 = vand.u32 2147483647, %v3908_v35  ;;  %v1243_v13 = vand.u32 2147483647, %v5941_v60  ;;  %v5957_v60 = vld [vmem:[#allocation123_spill] sm:$0xff] }
 0x141   : > { %v1434_v55 = vadd.f32 %v1433_v38, %v1432_v34  ;;  %v1463_v34 = vsel %vm1371_vm0, %v1224_v45, 0.0  ;;  %v5942_v45 = vld [vmem:[#allocation109_spill] sm:$0xff]  ;;  %v1246_v35 = vand.u32 2147483647, %v5944_v11  ;;  %v5960_v11 = vld [vmem:[#allocation59_spill] sm:$0xff] }
 0x142   : > { %v1244_v22 = vand.u32 2147483647, %v5942_v45  ;;  %v5958_v45 = vld [vmem:[#allocation58_spill] sm:$0xff] }
 0x143   : > { %v1436_v30 = vadd.f32 %v1435_v36, %v1434_v55  ;;  %v1465_v36 = vsel %vm1371_vm0, %v1225_v46, 0.0  ;;  %v5943_v46 = vld [vmem:[#allocation110_spill] sm:$0xff]  ;;  %v1507_v0 = vsel %vm1371_vm0, %v1246_v35, 0.0  ;;  %v1262_v35 = vand.u32 2147483647, %v5960_v11  ;;  %v5976_v11 = vld [vmem:[#allocation67_spill] sm:$0xff] }
 0x144   : > { %v1245_v14 = vand.u32 2147483647, %v5943_v46  ;;  %v5959_v46 = vld [vmem:[#allocation3_spill] sm:$0xff] }
 0x145   : > { %v1438_v49 = vadd.f32 %v1437_v29, %v1436_v30  ;;  %v1469_v30 = vsel %vm1371_vm0, %v1227_v51, 0.0  ;;  %v5945_v51 = vld [vmem:[#allocation112_spill] sm:$0xff] }
 0x147   : > { %v1440_v43 = vadd.f32 %v1439_v47, %v1438_v49  ;;  %v1471_v47 = vsel %vm1371_vm0, %v1228_v18, 0.0 }
 0x149   : > { %v1442_v5 = vadd.f32 %v1441_v37, %v1440_v43  ;;  %v1475_v43 = vsel %vm1371_vm0, %v1230_v6, 0.0 }
 0x14b   : > { %v1444_v52 = vadd.f32 %v1443_v25, %v1442_v5  ;;  %v1477_v25 = vsel %vm1371_vm0, %v1231_v1, 0.0  ;;  %v5948_v1 = vld [vmem:[#allocation115_spill] sm:$0xff] }
 0x14d   : > { %v1446_v54 = vadd.f32 %v1445_v59, %v1444_v52  ;;  %v1481_v52 = vsel %vm1371_vm0, %v1233_v2, 0.0 }
 0x14f   : > { %v1448_v31 = vadd.f32 %v1447_v9, %v1446_v54  ;;  %v1483_v9 = vsel %vm1371_vm0, %v1234_v21, 0.0 }
 0x151   : > { %v1450_v61 = vadd.f32 %v1449_v16, %v1448_v31  ;;  %v1487_v31 = vsel %vm1371_vm0, %v1236_v15, 0.0 }
 0x153   : > { %v1452_v58 = vadd.f32 %v1451_v26, %v1450_v61  ;;  %v1489_v26 = vsel %vm1371_vm0, %v1237_v4, 0.0 }
 0x155   : > { %v1454_v39 = vadd.f32 %v1453_v44, %v1452_v58  ;;  %v1493_v58 = vsel %vm1371_vm0, %v1239_v7, 0.0  ;;  %v5954_v7 = vld [vmem:[#allocation121_spill] sm:$0xff] }
 0x157   : > { %v1456_v20 = vadd.f32 %v1455_v56, %v1454_v39  ;;  %v1495_v56 = vsel %vm1371_vm0, %v1240_v28, 0.0 }
 0x159   : > { %v1458_v40 = vadd.f32 %v1457_v41, %v1456_v20  ;;  %v1497_v41 = vsel %vm1371_vm0, %v1241_v8, 0.0 }
 0x15b   : > { %v1460_v38 = vadd.f32 %v1459_v12, %v1458_v40  ;;  %v1499_v12 = vsel %vm1371_vm0, %v1242_v17, 0.0 }
 0x15d   : > { %v1462_v19 = vadd.f32 %v1461_v42, %v1460_v38  ;;  %v1501_v42 = vsel %vm1371_vm0, %v1243_v13, 0.0  ;;  %v1259_v13 = vand.u32 2147483647, %v5957_v60  ;;  %v5973_v60 = vld [vmem:[#allocation10_spill] sm:$0xff] }
 0x15f   : > { %v1464_v55 = vadd.f32 %v1463_v34, %v1462_v19  ;;  %v1503_v34 = vsel %vm1371_vm0, %v1244_v22, 0.0  ;;  %v1260_v22 = vand.u32 2147483647, %v5958_v45  ;;  %v5974_v45 = vld [vmem:[#allocation66_spill] sm:$0xff] }
 0x161   : > { %v1466_v29 = vadd.f32 %v1465_v36, %v1464_v55  ;;  %v1247_v36 = vand.u32 2147483647, %v5945_v51  ;;  %v1505_v55 = vsel %vm1371_vm0, %v1245_v14, 0.0  ;;  %v1261_v14 = vand.u32 2147483647, %v5959_v46  ;;  %v5961_v51 = vld [vmem:[#allocation4_spill] sm:$0xff] }
 0x162   : > { %v5975_v46 = vld [vmem:[#allocation11_spill] sm:$0xff] }
 0x163   : > { %v1468_v50 = vadd.f32 %v1467_v23, %v1466_v29  ;;  %v5946_v23 = vld [vmem:[#allocation113_spill] sm:$0xff] }
 0x164   : > { %v1248_v29 = vand.u32 2147483647, %v5946_v23  ;;  %v5962_v23 = vld [vmem:[#allocation60_spill] sm:$0xff] }
 0x165   : > { %v1470_v49 = vadd.f32 %v1469_v30, %v1468_v50  ;;  %v5947_v50 = vld [vmem:[#allocation114_spill] sm:$0xff] }
 0x166   : > { %v1249_v6 = vand.u32 2147483647, %v5947_v50  ;;  %v5963_v50 = vld [vmem:[#allocation5_spill] sm:$0xff] }
 0x167   : > { %v1472_v37 = vadd.f32 %v1471_v47, %v1470_v49  ;;  %v1509_v47 = vsel %vm1371_vm0, %v1247_v36, 0.0  ;;  %v1263_v36 = vand.u32 2147483647, %v5961_v51  ;;  %v5977_v51 = vld [vmem:[#allocation12_spill] sm:$0xff] }
 0x168   : > { %v1513_v2 = vsel %vm1371_vm0, %v1249_v6, 0.0  ;;  %v1265_v6 = vand.u32 2147483647, %v5963_v50  ;;  %v5979_v50 = vld [vmem:[#allocation13_spill] sm:$0xff] }
 0x169   : > { %v1474_v33 = vadd.f32 %v1473_v32, %v1472_v37  ;;  %v1250_v32 = vand.u32 2147483647, %v5948_v1  ;;  %v1511_v37 = vsel %vm1371_vm0, %v1248_v29, 0.0  ;;  %v1264_v29 = vand.u32 2147483647, %v5962_v23  ;;  %v5964_v1 = vld [vmem:[#allocation61_spill] sm:$0xff] }
 0x16a   : > { %v5978_v23 = vld [vmem:[#allocation68_spill] sm:$0xff] }
 0x16b   : > { %v1476_v5 = vadd.f32 %v1475_v43, %v1474_v33  ;;  %v5949_v43 = vld [vmem:[#allocation116_spill] sm:$0xff] }
 0x16c   : > { %v1251_v33 = vand.u32 2147483647, %v5949_v43  ;;  %v5965_v43 = vld [vmem:[#allocation6_spill] sm:$0xff] }
 0x16d   : > { %v1478_v59 = vadd.f32 %v1477_v25, %v1476_v5  ;;  %v5950_v5 = vld [vmem:[#allocation117_spill] sm:$0xff] }
 0x16e   : > { %v1252_v21 = vand.u32 2147483647, %v5950_v5  ;;  %v5966_v5 = vld [vmem:[#allocation62_spill] sm:$0xff] }
 0x16f   : > { %v1480_v27 = vadd.f32 %v1479_v63, %v1478_v59  ;;  %v1515_v63 = vsel %vm1371_vm0, %v1250_v32, 0.0  ;;  %v1266_v32 = vand.u32 2147483647, %v5964_v1  ;;  %v5980_v1 = vld [vmem:[#allocation69_spill] sm:$0xff] }
 0x170   : > { %v1519_v4 = vsel %vm1371_vm0, %v1252_v21, 0.0  ;;  %v1268_v21 = vand.u32 2147483647, %v5966_v5  ;;  %v5982_v5 = vld [vmem:[#allocation70_spill] sm:$0xff] }
 0x171   : > { %v1482_v54 = vadd.f32 %v1481_v52, %v1480_v27  ;;  %v1253_v52 = vand.u32 2147483647, %v5951_v3  ;;  %v1517_v27 = vsel %vm1371_vm0, %v1251_v33, 0.0  ;;  %v1267_v33 = vand.u32 2147483647, %v5965_v43  ;;  %v5967_v3 = vld [vmem:[#allocation7_spill] sm:$0xff] }
 0x172   : > { %v5981_v43 = vld [vmem:[#allocation14_spill] sm:$0xff] }
 0x173   : > { %v1484_v16 = vadd.f32 %v1483_v9, %v1482_v54  ;;  %v5952_v9 = vld [vmem:[#allocation119_spill] sm:$0xff] }
 0x174   : > { %v1254_v54 = vand.u32 2147483647, %v5952_v9  ;;  %v5968_v9 = vld [vmem:[#allocation63_spill] sm:$0xff] }
 0x175   : > { %v1486_v62 = vadd.f32 %v1485_v57, %v1484_v16  ;;  %v5953_v16 = vld [vmem:[#allocation120_spill] sm:$0xff] }
 0x176   : > { %v1255_v24 = vand.u32 2147483647, %v5953_v16  ;;  %v5969_v16 = vld [vmem:[#allocation8_spill] sm:$0xff] }
 0x177   : > { %v1488_v61 = vadd.f32 %v1487_v31, %v1486_v62  ;;  %v1521_v31 = vsel %vm1371_vm0, %v1253_v52, 0.0  ;;  %v1269_v52 = vand.u32 2147483647, %v5967_v3  ;;  %v5983_v3 = vld [vmem:[#allocation15_spill] sm:$0xff] }
 0x178   : > { %v1525_v8 = vsel %vm1371_vm0, %v1255_v24, 0.0  ;;  %v1271_v24 = vand.u32 2147483647, %v5969_v16  ;;  %v5985_v16 = vld [vmem:[#allocation16_spill] sm:$0xff] }
 0x179   : > { %v1490_v44 = vadd.f32 %v1489_v26, %v1488_v61  ;;  %v1256_v26 = vand.u32 2147483647, %v5954_v7  ;;  %v1523_v61 = vsel %vm1371_vm0, %v1254_v54, 0.0  ;;  %v1270_v54 = vand.u32 2147483647, %v5968_v9  ;;  %v5970_v7 = vld [vmem:[#allocation64_spill] sm:$0xff] }
 0x17a   : > { %v5984_v9 = vld [vmem:[#allocation71_spill] sm:$0xff] }
 0x17b   : > { %v1492_v48 = vadd.f32 %v1491_v53, %v1490_v44  ;;  %v5955_v53 = vld [vmem:[#allocation122_spill] sm:$0xff] }
 0x17c   : > { %v1257_v44 = vand.u32 2147483647, %v5955_v53  ;;  %v5971_v53 = vld [vmem:[#allocation9_spill] sm:$0xff] }
 0x17d   : > { %v1494_v39 = vadd.f32 %v1493_v58, %v1492_v48  ;;  %v5956_v48 = vld [vmem:[#allocation2_spill] sm:$0xff] }
 0x17e   : > { %v1258_v17 = vand.u32 2147483647, %v5956_v48  ;;  %v5972_v48 = vld [vmem:[#allocation65_spill] sm:$0xff] }
 0x17f   : > { %v1496_v20 = vadd.f32 %v1495_v56, %v1494_v39  ;;  %v1527_v56 = vsel %vm1371_vm0, %v1256_v26, 0.0  ;;  %v1272_v26 = vand.u32 2147483647, %v5970_v7  ;;  %v5986_v7 = vld [vmem:[#allocation72_spill] sm:$0xff] }
 0x181   : > { %v1498_v40 = vadd.f32 %v1497_v41, %v1496_v20  ;;  %v1529_v41 = vsel %vm1371_vm0, %v1257_v44, 0.0  ;;  %v1273_v44 = vand.u32 2147483647, %v5971_v53  ;;  %v5987_v53 = vld [vmem:[#allocation17_spill] sm:$0xff] }
 0x183   : > { %v1500_v38 = vadd.f32 %v1499_v12, %v1498_v40  ;;  %v1531_v12 = vsel %vm1371_vm0, %v1258_v17, 0.0  ;;  %v1274_v17 = vand.u32 2147483647, %v5972_v48  ;;  %v5988_v48 = vld [vmem:[#allocation73_spill] sm:$0xff] }
 0x185   : > { %v1502_v19 = vadd.f32 %v1501_v42, %v1500_v38  ;;  %v1533_v42 = vsel %vm1371_vm0, %v1259_v13, 0.0  ;;  %v1275_v13 = vand.u32 2147483647, %v5973_v60  ;;  %v5989_v60 = vld [vmem:[#allocation18_spill] sm:$0xff] }
 0x187   : > { %v1504_v18 = vadd.f32 %v1503_v34, %v1502_v19  ;;  %v1535_v34 = vsel %vm1371_vm0, %v1260_v22, 0.0  ;;  %v1276_v22 = vand.u32 2147483647, %v5974_v45  ;;  %v5990_v45 = vld [vmem:[#allocation74_spill] sm:$0xff] }
 0x189   : > { %v1506_v30 = vadd.f32 %v1505_v55, %v1504_v18  ;;  %v1537_v55 = vsel %vm1371_vm0, %v1261_v14, 0.0  ;;  %v1277_v14 = vand.u32 2147483647, %v5975_v46  ;;  %v5991_v46 = vld [vmem:[#allocation19_spill] sm:$0xff] }
 0x18b   : > { %v1508_v49 = vadd.f32 %v1507_v0, %v1506_v30  ;;  %v1539_v0 = vsel %vm1371_vm0, %v1262_v35, 0.0  ;;  %v1278_v35 = vand.u32 2147483647, %v5976_v11  ;;  %v5992_v11 = vld [vmem:[#allocation75_spill] sm:$0xff] }
 0x18d   : > { %v1510_v10 = vadd.f32 %v1509_v47, %v1508_v49  ;;  %v1541_v47 = vsel %vm1371_vm0, %v1263_v36, 0.0  ;;  %v1279_v36 = vand.u32 2147483647, %v5977_v51  ;;  %v5993_v51 = vld [vmem:[#allocation20_spill] sm:$0xff] }
 0x18f   : > { %v1512_v25 = vadd.f32 %v1511_v37, %v1510_v10  ;;  %v1543_v37 = vsel %vm1371_vm0, %v1264_v29, 0.0  ;;  %v1280_v29 = vand.u32 2147483647, %v5978_v23  ;;  %v5994_v23 = vld [vmem:[#allocation76_spill] sm:$0xff] }
 0x191   : > { %v1514_v59 = vadd.f32 %v1513_v2, %v1512_v25  ;;  %v1545_v2 = vsel %vm1371_vm0, %v1265_v6, 0.0  ;;  %v1281_v6 = vand.u32 2147483647, %v5979_v50  ;;  %v5995_v50 = vld [vmem:[#allocation21_spill] sm:$0xff] }
 0x193   : > { %v1516_v15 = vadd.f32 %v1515_v63, %v1514_v59  ;;  %v1547_v63 = vsel %vm1371_vm0, %v1266_v32, 0.0  ;;  %v1282_v32 = vand.u32 2147483647, %v5980_v1  ;;  %v5996_v1 = vld [vmem:[#allocation77_spill] sm:$0xff] }
 0x195   : > { %v1518_v57 = vadd.f32 %v1517_v27, %v1516_v15  ;;  %v1549_v27 = vsel %vm1371_vm0, %v1267_v33, 0.0  ;;  %v1283_v33 = vand.u32 2147483647, %v5981_v43  ;;  %v5997_v43 = vld [vmem:[#allocation22_spill] sm:$0xff] }
 0x197   : > { %v1520_v62 = vadd.f32 %v1519_v4, %v1518_v57  ;;  %v1551_v4 = vsel %vm1371_vm0, %v1268_v21, 0.0  ;;  %v1284_v21 = vand.u32 2147483647, %v5982_v5  ;;  %v5998_v5 = vld [vmem:[#allocation78_spill] sm:$0xff] }
 0x199   : > { %v1522_v28 = vadd.f32 %v1521_v31, %v1520_v62  ;;  %v1553_v31 = vsel %vm1371_vm0, %v1269_v52, 0.0  ;;  %v1285_v52 = vand.u32 2147483647, %v5983_v3  ;;  %v5999_v3 = vld [vmem:[#allocation23_spill] sm:$0xff] }
 0x19b   : > { %v1524_v58 = vadd.f32 %v1523_v61, %v1522_v28  ;;  %v1555_v61 = vsel %vm1371_vm0, %v1270_v54, 0.0  ;;  %v1286_v54 = vand.u32 2147483647, %v5984_v9  ;;  %v6000_v9 = vld [vmem:[#allocation79_spill] sm:$0xff] }
 0x19d   : > { %v1526_v39 = vadd.f32 %v1525_v8, %v1524_v58  ;;  %v1557_v8 = vsel %vm1371_vm0, %v1271_v24, 0.0  ;;  %v1287_v24 = vand.u32 2147483647, %v5985_v16  ;;  %v6001_v16 = vld [vmem:[#allocation24_spill] sm:$0xff] }
 0x19f   : > { %v1528_v20 = vadd.f32 %v1527_v56, %v1526_v39  ;;  %v1559_v56 = vsel %vm1371_vm0, %v1272_v26, 0.0  ;;  %v1288_v26 = vand.u32 2147483647, %v5986_v7  ;;  %v6002_v7 = vld [vmem:[#allocation80_spill] sm:$0xff] }
 0x1a1   : > { %v1530_v40 = vadd.f32 %v1529_v41, %v1528_v20  ;;  %v1561_v41 = vsel %vm1371_vm0, %v1273_v44, 0.0  ;;  %v1289_v44 = vand.u32 2147483647, %v5987_v53  ;;  %v6003_v53 = vld [vmem:[#allocation25_spill] sm:$0xff] }
 0x1a3   : > { %v1532_v38 = vadd.f32 %v1531_v12, %v1530_v40  ;;  %v1563_v12 = vsel %vm1371_vm0, %v1274_v17, 0.0  ;;  %v1290_v17 = vand.u32 2147483647, %v5988_v48  ;;  %v6004_v48 = vld [vmem:[#allocation81_spill] sm:$0xff] }
 0x1a5   : > { %v1534_v19 = vadd.f32 %v1533_v42, %v1532_v38  ;;  %v1565_v42 = vsel %vm1371_vm0, %v1275_v13, 0.0  ;;  %v1291_v13 = vand.u32 2147483647, %v5989_v60  ;;  %v6005_v60 = vld [vmem:[#allocation26_spill] sm:$0xff] }
 0x1a7   : > { %v1536_v18 = vadd.f32 %v1535_v34, %v1534_v19  ;;  %v1567_v34 = vsel %vm1371_vm0, %v1276_v22, 0.0  ;;  %v1292_v22 = vand.u32 2147483647, %v5990_v45  ;;  %v6006_v45 = vld [vmem:[#allocation82_spill] sm:$0xff] }
 0x1a9   : > { %v1538_v30 = vadd.f32 %v1537_v55, %v1536_v18  ;;  %v1569_v55 = vsel %vm1371_vm0, %v1277_v14, 0.0  ;;  %v1293_v14 = vand.u32 2147483647, %v5991_v46  ;;  %v6007_v46 = vld [vmem:[#allocation27_spill] sm:$0xff] }
 0x1ab   : > { %v1540_v49 = vadd.f32 %v1539_v0, %v1538_v30  ;;  %v1571_v0 = vsel %vm1371_vm0, %v1278_v35, 0.0  ;;  %v1294_v35 = vand.u32 2147483647, %v5992_v11  ;;  %v6008_v11 = vld [vmem:[#allocation83_spill] sm:$0xff] }
 0x1ad   : > { %v1542_v10 = vadd.f32 %v1541_v47, %v1540_v49  ;;  %v1573_v47 = vsel %vm1371_vm0, %v1279_v36, 0.0  ;;  %v1295_v36 = vand.u32 2147483647, %v5993_v51  ;;  %v6009_v51 = vld [vmem:[#allocation28_spill] sm:$0xff] }
 0x1af   : > { %v1544_v25 = vadd.f32 %v1543_v37, %v1542_v10  ;;  %v1575_v37 = vsel %vm1371_vm0, %v1280_v29, 0.0  ;;  %v1296_v29 = vand.u32 2147483647, %v5994_v23  ;;  %v6010_v23 = vld [vmem:[#allocation84_spill] sm:$0xff] }
 0x1b1   : > { %v1546_v59 = vadd.f32 %v1545_v2, %v1544_v25  ;;  %v1577_v2 = vsel %vm1371_vm0, %v1281_v6, 0.0  ;;  %v1297_v6 = vand.u32 2147483647, %v5995_v50  ;;  %v6011_v50 = vld [vmem:[#allocation29_spill] sm:$0xff] }
 0x1b3   : > { %v1548_v15 = vadd.f32 %v1547_v63, %v1546_v59  ;;  %v1579_v63 = vsel %vm1371_vm0, %v1282_v32, 0.0  ;;  %v1298_v32 = vand.u32 2147483647, %v5996_v1  ;;  %v6012_v1 = vld [vmem:[#allocation85_spill] sm:$0xff] }
 0x1b5   : > { %v1550_v57 = vadd.f32 %v1549_v27, %v1548_v15  ;;  %v1581_v27 = vsel %vm1371_vm0, %v1283_v33, 0.0  ;;  %v1299_v33 = vand.u32 2147483647, %v5997_v43  ;;  %v6013_v43 = vld [vmem:[#allocation30_spill] sm:$0xff] }
 0x1b7   : > { %v1552_v62 = vadd.f32 %v1551_v4, %v1550_v57  ;;  %v1583_v4 = vsel %vm1371_vm0, %v1284_v21, 0.0  ;;  %v1300_v21 = vand.u32 2147483647, %v5998_v5  ;;  %v6014_v5 = vld [vmem:[#allocation86_spill] sm:$0xff] }
 0x1b9   : > { %v1554_v28 = vadd.f32 %v1553_v31, %v1552_v62  ;;  %v1585_v31 = vsel %vm1371_vm0, %v1285_v52, 0.0  ;;  %v1301_v52 = vand.u32 2147483647, %v5999_v3  ;;  %v6015_v3 = vld [vmem:[#allocation31_spill] sm:$0xff] }
 0x1bb   : > { %v1556_v58 = vadd.f32 %v1555_v61, %v1554_v28  ;;  %v1587_v61 = vsel %vm1371_vm0, %v1286_v54, 0.0  ;;  %v1302_v54 = vand.u32 2147483647, %v6000_v9  ;;  %v6016_v9 = vld [vmem:[#allocation87_spill] sm:$0xff] }
 0x1bd   : > { %v1558_v39 = vadd.f32 %v1557_v8, %v1556_v58  ;;  %v1589_v8 = vsel %vm1371_vm0, %v1287_v24, 0.0  ;;  %v1303_v24 = vand.u32 2147483647, %v6001_v16  ;;  %v6017_v16 = vld [vmem:[#allocation32_spill] sm:$0xff] }
 0x1bf   : > { %v1560_v20 = vadd.f32 %v1559_v56, %v1558_v39  ;;  %v1591_v56 = vsel %vm1371_vm0, %v1288_v26, 0.0  ;;  %v1304_v26 = vand.u32 2147483647, %v6002_v7  ;;  %v6018_v7 = vld [vmem:[#allocation88_spill] sm:$0xff] }
 0x1c1   : > { %v1562_v40 = vadd.f32 %v1561_v41, %v1560_v20  ;;  %v1593_v41 = vsel %vm1371_vm0, %v1289_v44, 0.0  ;;  %v1305_v44 = vand.u32 2147483647, %v6003_v53  ;;  %v6019_v53 = vld [vmem:[#allocation33_spill] sm:$0xff] }
 0x1c3   : > { %v1564_v38 = vadd.f32 %v1563_v12, %v1562_v40  ;;  %v1595_v12 = vsel %vm1371_vm0, %v1290_v17, 0.0  ;;  %v1306_v17 = vand.u32 2147483647, %v6004_v48  ;;  %v6020_v48 = vld [vmem:[#allocation89_spill] sm:$0xff] }
 0x1c5   : > { %v1566_v19 = vadd.f32 %v1565_v42, %v1564_v38  ;;  %v1597_v42 = vsel %vm1371_vm0, %v1291_v13, 0.0  ;;  %v1307_v13 = vand.u32 2147483647, %v6005_v60  ;;  %v6021_v60 = vld [vmem:[#allocation34_spill] sm:$0xff] }
 0x1c7   : > { %v1568_v18 = vadd.f32 %v1567_v34, %v1566_v19  ;;  %v1599_v34 = vsel %vm1371_vm0, %v1292_v22, 0.0  ;;  %v1308_v22 = vand.u32 2147483647, %v6006_v45  ;;  %v6022_v45 = vld [vmem:[#allocation90_spill] sm:$0xff] }
 0x1c9   : > { %v1570_v30 = vadd.f32 %v1569_v55, %v1568_v18  ;;  %v1601_v55 = vsel %vm1371_vm0, %v1293_v14, 0.0  ;;  %v1309_v14 = vand.u32 2147483647, %v6007_v46  ;;  %v6023_v46 = vld [vmem:[#allocation35_spill] sm:$0xff] }
 0x1cb   : > { %v1572_v49 = vadd.f32 %v1571_v0, %v1570_v30  ;;  %v1603_v0 = vsel %vm1371_vm0, %v1294_v35, 0.0  ;;  %v1310_v35 = vand.u32 2147483647, %v6008_v11  ;;  %v6024_v11 = vld [vmem:[#allocation91_spill] sm:$0xff] }
 0x1cd   : > { %v1574_v10 = vadd.f32 %v1573_v47, %v1572_v49  ;;  %v1605_v47 = vsel %vm1371_vm0, %v1295_v36, 0.0  ;;  %v1311_v36 = vand.u32 2147483647, %v6009_v51  ;;  %v6025_v51 = vld [vmem:[#allocation36_spill] sm:$0xff] }
 0x1cf   : > { %v1576_v25 = vadd.f32 %v1575_v37, %v1574_v10  ;;  %v1607_v37 = vsel %vm1371_vm0, %v1296_v29, 0.0  ;;  %v1312_v29 = vand.u32 2147483647, %v6010_v23  ;;  %v6026_v23 = vld [vmem:[#allocation92_spill] sm:$0xff] }
 0x1d1   : > { %v1578_v59 = vadd.f32 %v1577_v2, %v1576_v25  ;;  %v1609_v2 = vsel %vm1371_vm0, %v1297_v6, 0.0  ;;  %v1313_v6 = vand.u32 2147483647, %v6011_v50  ;;  %v6027_v50 = vld [vmem:[#allocation37_spill] sm:$0xff] }
 0x1d3   : > { %v1580_v15 = vadd.f32 %v1579_v63, %v1578_v59  ;;  %v1611_v63 = vsel %vm1371_vm0, %v1298_v32, 0.0  ;;  %v1314_v32 = vand.u32 2147483647, %v6012_v1  ;;  %v6028_v1 = vld [vmem:[#allocation93_spill] sm:$0xff] }
 0x1d5   : > { %v1582_v57 = vadd.f32 %v1581_v27, %v1580_v15  ;;  %v1613_v27 = vsel %vm1371_vm0, %v1299_v33, 0.0  ;;  %v1315_v33 = vand.u32 2147483647, %v6013_v43  ;;  %v6029_v43 = vld [vmem:[#allocation38_spill] sm:$0xff] }
 0x1d7   : > { %v1584_v62 = vadd.f32 %v1583_v4, %v1582_v57  ;;  %v1615_v4 = vsel %vm1371_vm0, %v1300_v21, 0.0  ;;  %v1316_v21 = vand.u32 2147483647, %v6014_v5  ;;  %v6030_v5 = vld [vmem:[#allocation94_spill] sm:$0xff] }
 0x1d9   : > { %v1586_v28 = vadd.f32 %v1585_v31, %v1584_v62  ;;  %v1617_v31 = vsel %vm1371_vm0, %v1301_v52, 0.0  ;;  %v1317_v52 = vand.u32 2147483647, %v6015_v3  ;;  %v6031_v3 = vld [vmem:[#allocation39_spill] sm:$0xff] }
 0x1db   : > { %v1588_v58 = vadd.f32 %v1587_v61, %v1586_v28  ;;  %v1619_v61 = vsel %vm1371_vm0, %v1302_v54, 0.0  ;;  %v1318_v54 = vand.u32 2147483647, %v6016_v9  ;;  %v6032_v9 = vld [vmem:[#allocation95_spill] sm:$0xff] }
 0x1dd   : > { %v1590_v39 = vadd.f32 %v1589_v8, %v1588_v58  ;;  %v1621_v8 = vsel %vm1371_vm0, %v1303_v24, 0.0  ;;  %v1319_v24 = vand.u32 2147483647, %v6017_v16  ;;  %v6033_v16 = vld [vmem:[#allocation40_spill] sm:$0xff] }
 0x1df   : > { %v1592_v20 = vadd.f32 %v1591_v56, %v1590_v39  ;;  %v1623_v56 = vsel %vm1371_vm0, %v1304_v26, 0.0  ;;  %v1320_v26 = vand.u32 2147483647, %v6018_v7  ;;  %v6034_v7 = vld [vmem:[#allocation96_spill] sm:$0xff] }
 0x1e1   : > { %v1594_v40 = vadd.f32 %v1593_v41, %v1592_v20  ;;  %v1625_v41 = vsel %vm1371_vm0, %v1305_v44, 0.0  ;;  %v1321_v44 = vand.u32 2147483647, %v6019_v53  ;;  %v6035_v53 = vld [vmem:[#allocation41_spill] sm:$0xff] }
 0x1e3   : > { %v1596_v38 = vadd.f32 %v1595_v12, %v1594_v40  ;;  %v1627_v12 = vsel %vm1371_vm0, %v1306_v17, 0.0  ;;  %v1322_v17 = vand.u32 2147483647, %v6020_v48  ;;  %v6036_v48 = vld [vmem:[#allocation97_spill] sm:$0xff] }
 0x1e5   : > { %v1598_v19 = vadd.f32 %v1597_v42, %v1596_v38  ;;  %v1629_v42 = vsel %vm1371_vm0, %v1307_v13, 0.0  ;;  %v1323_v13 = vand.u32 2147483647, %v6021_v60  ;;  %v6037_v60 = vld [vmem:[#allocation42_spill] sm:$0xff] }
 0x1e7   : > { %v1600_v18 = vadd.f32 %v1599_v34, %v1598_v19  ;;  %v1631_v34 = vsel %vm1371_vm0, %v1308_v22, 0.0  ;;  %v1324_v22 = vand.u32 2147483647, %v6022_v45  ;;  %v6038_v45 = vld [vmem:[#allocation98_spill] sm:$0xff] }
 0x1e9   : > { %v1602_v30 = vadd.f32 %v1601_v55, %v1600_v18  ;;  %v1633_v55 = vsel %vm1371_vm0, %v1309_v14, 0.0  ;;  %v1325_v14 = vand.u32 2147483647, %v6023_v46  ;;  %v6039_v46 = vld [vmem:[#allocation43_spill] sm:$0xff] }
 0x1eb   : > { %v1604_v49 = vadd.f32 %v1603_v0, %v1602_v30  ;;  %v1635_v0 = vsel %vm1371_vm0, %v1310_v35, 0.0  ;;  %v1326_v35 = vand.u32 2147483647, %v6024_v11  ;;  %v6040_v11 = vld [vmem:[#allocation99_spill] sm:$0xff] }
 0x1ed   : > { %v1606_v10 = vadd.f32 %v1605_v47, %v1604_v49  ;;  %v1637_v47 = vsel %vm1371_vm0, %v1311_v36, 0.0  ;;  %v1327_v36 = vand.u32 2147483647, %v6025_v51  ;;  %v6041_v51 = vld [vmem:[#allocation44_spill] sm:$0xff] }
 0x1ef   : > { %v1608_v25 = vadd.f32 %v1607_v37, %v1606_v10  ;;  %v1639_v37 = vsel %vm1371_vm0, %v1312_v29, 0.0  ;;  %v1328_v29 = vand.u32 2147483647, %v6026_v23  ;;  %v6042_v23 = vld [vmem:[#allocation100_spill] sm:$0xff] }
 0x1f1   : > { %v1610_v59 = vadd.f32 %v1609_v2, %v1608_v25  ;;  %v1641_v2 = vsel %vm1371_vm0, %v1313_v6, 0.0  ;;  %v1329_v6 = vand.u32 2147483647, %v6027_v50  ;;  %v6043_v50 = vld [vmem:[#allocation45_spill] sm:$0xff] }
 0x1f3   : > { %v1612_v15 = vadd.f32 %v1611_v63, %v1610_v59  ;;  %v1643_v63 = vsel %vm1371_vm0, %v1314_v32, 0.0  ;;  %v1330_v32 = vand.u32 2147483647, %v6028_v1  ;;  %v6044_v1 = vld [vmem:[#allocation101_spill] sm:$0xff] }
 0x1f5   : > { %v1614_v57 = vadd.f32 %v1613_v27, %v1612_v15  ;;  %v1645_v27 = vsel %vm1371_vm0, %v1315_v33, 0.0  ;;  %v1331_v33 = vand.u32 2147483647, %v6029_v43  ;;  %v6045_v43 = vld [vmem:[#allocation46_spill] sm:$0xff] }
 0x1f7   : > { %v1616_v62 = vadd.f32 %v1615_v4, %v1614_v57  ;;  %v1647_v4 = vsel %vm1371_vm0, %v1316_v21, 0.0  ;;  %v1332_v21 = vand.u32 2147483647, %v6030_v5  ;;  %v6046_v5 = vld [vmem:[#allocation102_spill] sm:$0xff] }
 0x1f9   : > { %v1618_v28 = vadd.f32 %v1617_v31, %v1616_v62  ;;  %v1649_v31 = vsel %vm1371_vm0, %v1317_v52, 0.0  ;;  %v1333_v52 = vand.u32 2147483647, %v6031_v3  ;;  %v6047_v3 = vld [vmem:[#allocation47_spill] sm:$0xff] }
 0x1fb   : > { %v1620_v58 = vadd.f32 %v1619_v61, %v1618_v28  ;;  %v1651_v61 = vsel %vm1371_vm0, %v1318_v54, 0.0  ;;  %v1334_v54 = vand.u32 2147483647, %v6032_v9  ;;  %v6048_v9 = vld [vmem:[#allocation103_spill] sm:$0xff] }
 0x1fd   : > { %v1622_v39 = vadd.f32 %v1621_v8, %v1620_v58  ;;  %v1653_v8 = vsel %vm1371_vm0, %v1319_v24, 0.0  ;;  %v1335_v24 = vand.u32 2147483647, %v6033_v16  ;;  %v6049_v16 = vld [vmem:[#allocation48_spill] sm:$0xff] }
 0x1ff   : > { %v1624_v20 = vadd.f32 %v1623_v56, %v1622_v39  ;;  %v1655_v56 = vsel %vm1371_vm0, %v1320_v26, 0.0  ;;  %v1336_v26 = vand.u32 2147483647, %v6034_v7  ;;  %v6050_v7 = vld [vmem:[#allocation49_spill] sm:$0xff] }
 0x201   : > { %v1626_v40 = vadd.f32 %v1625_v41, %v1624_v20  ;;  %v1657_v41 = vsel %vm1371_vm0, %v1321_v44, 0.0  ;;  %v1337_v44 = vand.u32 2147483647, %v6035_v53  ;;  %v6051_v53 = vld [vmem:[#allocation124_spill] sm:$0xff] }
 0x203   : > { %v1628_v38 = vadd.f32 %v1627_v12, %v1626_v40  ;;  %v1659_v12 = vsel %vm1371_vm0, %v1322_v17, 0.0  ;;  %v1338_v17 = vand.u32 2147483647, %v6036_v48  ;;  %v6052_v48 = vld [vmem:[#allocation104_spill] sm:$0xff] }
 0x205   : > { %v1630_v19 = vadd.f32 %v1629_v42, %v1628_v38  ;;  %v1661_v42 = vsel %vm1371_vm0, %v1323_v13, 0.0  ;;  %v1339_v13 = vand.u32 2147483647, %v6037_v60  ;;  %v6053_v60 = vld [vmem:[#allocation50_spill] sm:$0xff] }
 0x207   : > { %v1632_v18 = vadd.f32 %v1631_v34, %v1630_v19  ;;  %v1663_v34 = vsel %vm1371_vm0, %v1324_v22, 0.0  ;;  %v1340_v22 = vand.u32 2147483647, %v6038_v45  ;;  %v6054_v45 = vld [vmem:[#allocation51_spill] sm:$0xff] }
 0x209   : > { %v1634_v30 = vadd.f32 %v1633_v55, %v1632_v18  ;;  %v1665_v55 = vsel %vm1371_vm0, %v1325_v14, 0.0  ;;  %v1341_v14 = vand.u32 2147483647, %v6039_v46  ;;  %v6055_v46 = vld [vmem:[#allocation125_spill] sm:$0xff] }
 0x20b   : > { %v1636_v49 = vadd.f32 %v1635_v0, %v1634_v30  ;;  %v1667_v0 = vsel %vm1371_vm0, %v1326_v35, 0.0  ;;  %v1342_v35 = vand.u32 2147483647, %v6040_v11  ;;  %v6056_v11 = vld [vmem:[#allocation105_spill] sm:$0xff] }
 0x20d   : > { %v1638_v10 = vadd.f32 %v1637_v47, %v1636_v49  ;;  %v1669_v47 = vsel %vm1371_vm0, %v1327_v36, 0.0  ;;  %v1343_v36 = vand.u32 2147483647, %v6041_v51  ;;  %v6057_v51 = vld [vmem:[#allocation52_spill] sm:$0xff] }
 0x20f   : > { %v1640_v25 = vadd.f32 %v1639_v37, %v1638_v10  ;;  %v1671_v37 = vsel %vm1371_vm0, %v1328_v29, 0.0  ;;  %v1344_v29 = vand.u32 2147483647, %v6042_v23  ;;  %v6058_v23 = vld [vmem:[#allocation106_spill] sm:$0xff] }
 0x211   : > { %v1642_v59 = vadd.f32 %v1641_v2, %v1640_v25  ;;  %v1673_v2 = vsel %vm1371_vm0, %v1329_v6, 0.0  ;;  %v1345_v6 = vand.u32 2147483647, %v6043_v50  ;;  %v6059_v50 = vld [vmem:[#allocation53_spill] sm:$0xff] }
 0x213   : > { %v1644_v15 = vadd.f32 %v1643_v63, %v1642_v59  ;;  %v1675_v63 = vsel %vm1371_vm0, %v1330_v32, 0.0  ;;  %v1346_v32 = vand.u32 2147483647, %v6044_v1  ;;  %v6060_v1 = vld [vmem:[#allocation54_spill] sm:$0xff] }
 0x215   : > { %v1646_v57 = vadd.f32 %v1645_v27, %v1644_v15  ;;  %v1677_v27 = vsel %vm1371_vm0, %v1331_v33, 0.0  ;;  %v1347_v33 = vand.u32 2147483647, %v6045_v43  ;;  %v6061_v43 = vld [vmem:[#allocation126_spill] sm:$0xff] }
 0x217   : > { %v1648_v62 = vadd.f32 %v1647_v4, %v1646_v57  ;;  %v1679_v4 = vsel %vm1371_vm0, %v1332_v21, 0.0  ;;  %v1348_v21 = vand.u32 2147483647, %v6046_v5  ;;  %v6062_v5 = vld [vmem:[#allocation55_spill] sm:$0xff] }
 0x219   : > { %v1650_v28 = vadd.f32 %v1649_v31, %v1648_v62  ;;  %v1681_v31 = vsel %vm1371_vm0, %v1333_v52, 0.0  ;;  %v1349_v52 = vand.u32 2147483647, %v6047_v3  ;;  %v6063_v3 = vld [vmem:[#allocation127_spill] sm:$0xff] }
 0x21b   : > { %v1652_v58 = vadd.f32 %v1651_v61, %v1650_v28  ;;  %v1683_v61 = vsel %vm1371_vm0, %v1334_v54, 0.0  ;;  %v1350_v54 = vand.u32 2147483647, %v6048_v9  ;;  %v6064_v9 = vld [vmem:[#allocation56_spill] sm:$0xff] }
 0x21d   : > { %v1654_v39 = vadd.f32 %v1653_v8, %v1652_v58  ;;  %v1685_v8 = vsel %vm1371_vm0, %v1335_v24, 0.0  ;;  %v1351_v24 = vand.u32 2147483647, %v6049_v16  ;;  %v6065_v16 = vld [vmem:[#allocation128_spill] sm:$0xff] }
 0x21f   : > { %v1656_v20 = vadd.f32 %v1655_v56, %v1654_v39  ;;  %v1687_v56 = vsel %vm1371_vm0, %v1336_v26, 0.0  ;;  %v1352_v26 = vand.u32 2147483647, %v6050_v7  ;;  %v6066_v7 = vld [vmem:[#allocation107_spill] sm:$0xff] }
 0x221   : > { %v1658_v40 = vadd.f32 %v1657_v41, %v1656_v20  ;;  %v1689_v41 = vsel %vm1371_vm0, %v1337_v44, 0.0  ;;  %v1353_v44 = vand.u32 2147483647, %v6051_v53  ;;  %v6067_v53 = vld [vmem:[#allocation57_spill] sm:$0xff] }
 0x223   : > { %v1660_v38 = vadd.f32 %v1659_v12, %v1658_v40  ;;  %v1691_v12 = vsel %vm1371_vm0, %v1338_v17, 0.0  ;;  %v1354_v17 = vand.u32 2147483647, %v6052_v48 }
 0x225   : > { %v1662_v19 = vadd.f32 %v1661_v42, %v1660_v38  ;;  %v1693_v42 = vsel %vm1371_vm0, %v1339_v13, 0.0  ;;  %v1355_v13 = vand.u32 2147483647, %v6053_v60 }
 0x227   : > { %v1664_v18 = vadd.f32 %v1663_v34, %v1662_v19  ;;  %v1695_v34 = vsel %vm1371_vm0, %v1340_v22, 0.0  ;;  %v1356_v22 = vand.u32 2147483647, %v6054_v45 }
 0x229   : > { %v1666_v30 = vadd.f32 %v1665_v55, %v1664_v18  ;;  %v1697_v55 = vsel %vm1371_vm0, %v1341_v14, 0.0  ;;  %v1357_v14 = vand.u32 2147483647, %v6055_v46 }
 0x22b   : > { %v1668_v49 = vadd.f32 %v1667_v0, %v1666_v30  ;;  %v1699_v0 = vsel %vm1371_vm0, %v1342_v35, 0.0  ;;  %v1358_v35 = vand.u32 2147483647, %v6056_v11 }
 0x22d   : > { %v1670_v10 = vadd.f32 %v1669_v47, %v1668_v49  ;;  %v1701_v47 = vsel %vm1371_vm0, %v1343_v36, 0.0  ;;  %v1359_v36 = vand.u32 2147483647, %v6057_v51 }
 0x22f   : > { %v1672_v25 = vadd.f32 %v1671_v37, %v1670_v10  ;;  %v1703_v37 = vsel %vm1371_vm0, %v1344_v29, 0.0  ;;  %v1360_v29 = vand.u32 2147483647, %v6058_v23 }
 0x231   : > { %v1674_v59 = vadd.f32 %v1673_v2, %v1672_v25  ;;  %v1705_v2 = vsel %vm1371_vm0, %v1345_v6, 0.0  ;;  %v1361_v6 = vand.u32 2147483647, %v6059_v50 }
 0x233   : > { %v1676_v15 = vadd.f32 %v1675_v63, %v1674_v59  ;;  %v1707_v63 = vsel %vm1371_vm0, %v1346_v32, 0.0  ;;  %v1362_v32 = vand.u32 2147483647, %v6060_v1 }
 0x235   : > { %v1678_v57 = vadd.f32 %v1677_v27, %v1676_v15  ;;  %v1709_v27 = vsel %vm1371_vm0, %v1347_v33, 0.0  ;;  %v1363_v33 = vand.u32 2147483647, %v6061_v43 }
 0x237   : > { %v1680_v62 = vadd.f32 %v1679_v4, %v1678_v57  ;;  %v1711_v4 = vsel %vm1371_vm0, %v1348_v21, 0.0  ;;  %v1364_v21 = vand.u32 2147483647, %v6062_v5 }
 0x239   : > { %v1682_v28 = vadd.f32 %v1681_v31, %v1680_v62  ;;  %v1713_v31 = vsel %vm1371_vm0, %v1349_v52, 0.0  ;;  %v1365_v52 = vand.u32 2147483647, %v6063_v3 }
 0x23b   : > { %v1684_v58 = vadd.f32 %v1683_v61, %v1682_v28  ;;  %v1715_v61 = vsel %vm1371_vm0, %v1350_v54, 0.0  ;;  %v1366_v54 = vand.u32 2147483647, %v6064_v9 }
 0x23d   : > { %v1686_v39 = vadd.f32 %v1685_v8, %v1684_v58  ;;  %v1717_v8 = vsel %vm1371_vm0, %v1351_v24, 0.0  ;;  %v1367_v24 = vand.u32 2147483647, %v6065_v16 }
 0x23f   : > { %v1688_v20 = vadd.f32 %v1687_v56, %v1686_v39  ;;  %v1719_v56 = vsel %vm1371_vm0, %v1352_v26, 0.0  ;;  %v1368_v26 = vand.u32 2147483647, %v6066_v7 }
 0x241   : > { %v1690_v40 = vadd.f32 %v1689_v41, %v1688_v20  ;;  %v1721_v41 = vsel %vm1371_vm0, %v1353_v44, 0.0  ;;  %v1369_v44 = vand.u32 2147483647, %v6067_v53  ;;  %v1751_v48 = vsel %vm1371_vm0, %v1368_v26, 0.0 }
 0x243   : > { %v1692_v38 = vadd.f32 %v1691_v12, %v1690_v40  ;;  %v1723_v12 = vsel %vm1371_vm0, %v1354_v17, 0.0 }
 0x245   : > { %v1694_v19 = vadd.f32 %v1693_v42, %v1692_v38  ;;  %v1725_v42 = vsel %vm1371_vm0, %v1355_v13, 0.0 }
 0x247   : > { %v1696_v18 = vadd.f32 %v1695_v34, %v1694_v19  ;;  %v1727_v34 = vsel %vm1371_vm0, %v1356_v22, 0.0 }
 0x249   : > { %v1698_v30 = vadd.f32 %v1697_v55, %v1696_v18  ;;  %v1729_v55 = vsel %vm1371_vm0, %v1357_v14, 0.0 }
 0x24b   : > { %v1700_v49 = vadd.f32 %v1699_v0, %v1698_v30  ;;  %v1731_v0 = vsel %vm1371_vm0, %v1358_v35, 0.0 }
 0x24d   : > { %v1702_v10 = vadd.f32 %v1701_v47, %v1700_v49  ;;  %v1733_v47 = vsel %vm1371_vm0, %v1359_v36, 0.0 }
 0x24f   : > { %v1704_v25 = vadd.f32 %v1703_v37, %v1702_v10  ;;  %v1735_v37 = vsel %vm1371_vm0, %v1360_v29, 0.0 }
 0x251   : > { %v1706_v59 = vadd.f32 %v1705_v2, %v1704_v25  ;;  %v1737_v2 = vsel %vm1371_vm0, %v1361_v6, 0.0 }
 0x253   : > { %v1708_v15 = vadd.f32 %v1707_v63, %v1706_v59  ;;  %v1739_v63 = vsel %vm1371_vm0, %v1362_v32, 0.0 }
 0x255   : > { %v1710_v57 = vadd.f32 %v1709_v27, %v1708_v15  ;;  %v1741_v27 = vsel %vm1371_vm0, %v1363_v33, 0.0 }
 0x257   : > { %v1712_v62 = vadd.f32 %v1711_v4, %v1710_v57  ;;  %v1743_v4 = vsel %vm1371_vm0, %v1364_v21, 0.0 }
 0x259   : > { %v1714_v28 = vadd.f32 %v1713_v31, %v1712_v62  ;;  %v1745_v31 = vsel %vm1371_vm0, %v1365_v52, 0.0 }
 0x25b   : > { %v1716_v58 = vadd.f32 %v1715_v61, %v1714_v28  ;;  %v1747_v61 = vsel %vm1371_vm0, %v1366_v54, 0.0 }
 0x25d   : > { %v1718_v39 = vadd.f32 %v1717_v8, %v1716_v58  ;;  %v1749_v8 = vsel %vm1371_vm0, %v1367_v24, 0.0 }
 0x25f   : > { %v1720_v20 = vadd.f32 %v1719_v56, %v1718_v39  ;;  %v1753_v56 = vsel %vm1371_vm0, %v1369_v44, 0.0 }
 0x261   : > { %v1722_v40 = vadd.f32 %v1721_v41, %v1720_v20 }
 0x263   : > { %v1724_v38 = vadd.f32 %v1723_v12, %v1722_v40 }
 0x265   : > { %v1726_v19 = vadd.f32 %v1725_v42, %v1724_v38 }
 0x267   : > { %v1728_v18 = vadd.f32 %v1727_v34, %v1726_v19 }
 0x269   : > { %v1730_v30 = vadd.f32 %v1729_v55, %v1728_v18 }
 0x26b   : > { %v1732_v49 = vadd.f32 %v1731_v0, %v1730_v30 }
 0x26d   : > { %v1734_v10 = vadd.f32 %v1733_v47, %v1732_v49 }
 0x26f   : > { %v1736_v25 = vadd.f32 %v1735_v37, %v1734_v10 }
 0x271   : > { %v1738_v59 = vadd.f32 %v1737_v2, %v1736_v25 }
 0x273   : > { %v1740_v15 = vadd.f32 %v1739_v63, %v1738_v59 }
 0x275   : > { %v1742_v57 = vadd.f32 %v1741_v27, %v1740_v15 }
 0x277   : > { %v1744_v62 = vadd.f32 %v1743_v4, %v1742_v57 }
 0x279   : > { %v1746_v28 = vadd.f32 %v1745_v31, %v1744_v62 }
 0x27b   : > { %v1748_v58 = vadd.f32 %v1747_v61, %v1746_v28 }
 0x27d   : > { %v1750_v17 = vadd.f32 %v1749_v8, %v1748_v58 }
 0x27f   : > { %v1752_v39 = vadd.f32 %v1751_v48, %v1750_v17 }
 0x281   : > { %v1754_v60 = vadd.f32 %v1753_v56, %v1752_v39 }
 0x283   : > { %1755 = vadd.xlane.f32.xlu0 %v1754_v60 }
 0x310   : > { %v1756_v13 = vpop.xlane.xlu0 %1755 }
 0x311   : > { %v1757_v41 = vrot.slane %v1756_v13, 4 }
 0x313   : > { %v1758_v20 = vadd.f32 %v1757_v41, %v1756_v13 }
 0x315   : > { %v1759_v45 = vrot.slane %v1758_v20, 2 }
 0x317   : > { %v1760_v22 = vadd.f32 %v1759_v45, %v1758_v20 }
 0x319   : > { %v1761_v12 = vrot.slane %v1760_v22, 1 }
 0x31b   : > { %v1762_v40 = vadd.f32 %v1761_v12, %v1760_v22 }
 0x31d   : > { %2822 = vpush %v1762_v40 }
 0x34e   : > { %s2823_s25 = spop %2822 }
 0x34f   : > { %v1764_v46 = vstv %s2823_s25 }
 0x350   : > { %1766 = vst [vmem:[%s212_s28] sm:$0xff] %v1764_v46 }
 0x351 PF: > { %s12_s11 = sadd.s32 1, %s2871_s11   ;;  %s6068_s9 = smov %s2867_s10 }
 0x352   : > { %p9_p7 = scmp.ge.s32.totalorder %s12_s11, 4   ;;  %s6069_s10 = smov %s6071_s12 }
 0x354   :  { %11 = sbr.rel (!%p9_p7) target bundleno = 2 (0x2), region = 65 }

</bundles_post_ra>
